<compile_context>
chip_gen: v7x
topology: tpu7x:2x2x1
jax: 0.10.0
libtpu: 0.0.40
codegen_flags: <defaults>
</compile_context>

<pallas_src>
import math
import functools

import jax
import jax.numpy as jnp
from jax import lax
from jax.experimental import pallas as pl
from jax.experimental.pallas import tpu as pltpu


_SQRT_2_OVER_PI = math.sqrt(2.0 / math.pi)


def _gelu_tanh(x):
    # TODO(synk): nn.GELU() default is exact erf GELU; tanh approx used here.
    return 0.5 * x * (1.0 + jnp.tanh(_SQRT_2_OVER_PI * (x + 0.044715 * x * x * x)))


def _layernorm(x, gamma, beta, eps=1e-5):
    # One-pass statistics: E[x] and E[x^2] -> single cross-lane reduction pair.
    mu = jnp.mean(x, axis=-1, keepdims=True)
    ms = jnp.mean(x * x, axis=-1, keepdims=True)
    var = jnp.maximum(ms - mu * mu, 0.0)
    return (x - mu) * lax.rsqrt(var + eps) * gamma + beta


# --------------------------------------------------------------------------- #
# Kernel
# --------------------------------------------------------------------------- #
def attention_layer_kernel(x_ref, mask_ref,
                           wqkv_ref, wo_ref,
                           g1_ref, b1_ref, g2_ref, b2_ref,
                           wf1_ref, bf1_ref, wf2_ref, bf2_ref,
                           out_ref, *, nhead, h_chunk, ffn_unroll):
    TB, L, D = x_ref.shape
    TM = TB * L                        # batch folded into the matmul M dimension
    H = wf1_ref.shape[1]
    head_dim = D // nhead              # nhead == 1 (k/v are not head-split)
    scale = 1.0 / math.sqrt(head_dim)

    # f32 VPU/EUP math; bf16 MXU operands with f32 accumulation.
    x = x_ref[...].astype(jnp.float32).reshape(TM, D)
    mask = mask_ref[...].astype(jnp.float32)           # (L, L) additive mask

    # ---- sublayer 1: pre-norm attention + residual (gate1 ~ residual add) ---
    xn = _layernorm(x, g1_ref[...], b1_ref[...])
    xn_b = xn.astype(jnp.bfloat16)

    # Fused q/k/v projection: one N=3D matmul (fills the 256-wide MXU), sliced
    # at lane-aligned (multiple-of-128) column offsets.
    qkv = jnp.dot(xn_b, wqkv_ref[...], preferred_element_type=jnp.float32)
    qb = qkv[:, :D].reshape(TB, L, D).astype(jnp.bfloat16)
    kb = qkv[:, D:2 * D].reshape(TB, L, D).astype(jnp.bfloat16)
    vb = qkv[:, 2 * D:].reshape(TB, L, D).astype(jnp.bfloat16)

    # Batched scores contracting the last dims of q and k (no materialized k.T).
    scores = jnp.einsum("bld,bmd->blm", qb, kb,
                        preferred_element_type=jnp.float32) * scale
    scores = scores + mask[None, :, :]
    scores = scores - jnp.max(scores, axis=-1, keepdims=True)
    p = jnp.exp(scores)
    # Exact f32 normalization (approx reciprocal removed: correctness fix).
    p = p / jnp.sum(p, axis=-1, keepdims=True)

    attn = jnp.einsum("blm,bmd->bld", p.astype(jnp.bfloat16), vb,
                      preferred_element_type=jnp.float32)
    o = jnp.dot(attn.reshape(TM, D).astype(jnp.bfloat16), wo_ref[...],
                preferred_element_type=jnp.float32)

    x = x + o          # gate1 -> residual add; dropout1: identity (inference)

    # ---- sublayer 2: pre-norm feed-forward + residual (gate2 ~ residual add) -
    xn2 = _layernorm(x, g2_ref[...], b2_ref[...])
    xn2_b = xn2.astype(jnp.bfloat16)

    if h_chunk >= H:
        # Hidden tile fits: one wide matmul, no chunk-loop overhead.
        h = jnp.dot(xn2_b, wf1_ref[...], preferred_element_type=jnp.float32)
        h = _gelu_tanh(h + bf1_ref[...])
        ff = jnp.dot(h.astype(jnp.bfloat16), wf2_ref[...],
                     preferred_element_type=jnp.float32)
    else:
        n_chunks = H // h_chunk        # bound live VMEM independent of H = 4*D

        def ffn_body(c, acc):
            start = pl.multiple_of(c * h_chunk, 128)
            hh = jnp.dot(xn2_b, wf1_ref[:, pl.ds(start, h_chunk)],
                         preferred_element_type=jnp.float32)
            hh = _gelu_tanh(hh + bf1_ref[:, pl.ds(start, h_chunk)])
            return acc + jnp.dot(hh.astype(jnp.bfloat16),
                                 wf2_ref[pl.ds(start, h_chunk), :],
                                 preferred_element_type=jnp.float32)

        ff = lax.fori_loop(0, n_chunks, ffn_body,
                           jnp.zeros((TM, D), jnp.float32), unroll=ffn_unroll)

    ff = ff + bf2_ref[...]
    x = x + ff         # gate2 -> residual add; dropout2: identity (inference)

    out_ref[...] = x.reshape(TB, L, D).astype(out_ref.dtype)


# --------------------------------------------------------------------------- #
# Wrapper
# --------------------------------------------------------------------------- #
def _vmem_limit_bytes():
    """Generation-aware VMEM limit: ~85% of physical capacity."""
    try:
        info = pltpu.get_tpu_info()
        cap = getattr(info, "vmem_capacity_bytes", 64 * 1024 * 1024)
    except Exception:
        cap = 64 * 1024 * 1024          # conservative fallback (< v7x physical)
    return int(cap * 0.85)


def _const_spec(shape):
    """BlockSpec for a grid-constant input: fetched once, single-buffered."""
    index_map = lambda g: (0,) * len(shape)
    try:
        return pl.BlockSpec(shape, index_map, pipeline_mode=pl.Buffered(1))
    except TypeError:                    # older JAX without pipeline_mode kwarg
        return pl.BlockSpec(shape, index_map)


def _pick_tb(B, L):
    """Batches per grid step: target TM = tb*L in [256, 512] rows (amortize
    per-step overhead, keep vreg pressure sane on v5e), prefer an even grid
    length so v7x's two TensorCores stay balanced."""
    divisors = [d for d in range(1, B + 1) if B % d == 0]
    best, best_key = divisors[0], None
    for d in divisors:
        tm = d * L
        grid = B // d
        key = (
            tm >= 128,                   # at least one full MXU M tile
            256 <= tm <= 512,            # sweet spot for per-step overhead
            grid % 2 == 0,               # v7x: 2 TCs share the parallel axis
            -abs(tm - 256),              # prefer ~256 (v5e spill safety)
        )
        if best_key is None or key > best_key:
            best, best_key = d, key
    return best


def prepare_params(raw):
    """One-time parameter prep: fuse [wq | wkv] -> (D, 3D) so the kernel does a
    single wide projection matmul (done once, not per call)."""
    p = dict(raw)
    p["wqkv"] = jnp.concatenate([raw["wq"], raw["wkv"]], axis=1)
    return p


def attention_layer(x, mask, params, *, nhead, batches_per_step=None, h_chunk=None):
    B, L, D = x.shape
    H = params["wf1"].shape[1]
    if nhead != 1:
        # TODO(synk): reference Attention only shape-checks for nhead == 1.
        raise NotImplementedError("only nhead == 1 is supported")
    assert mask.shape == (L, L), "pass a single additive (L, L) mask"
    assert D % 128 == 0, "keep D lane-dense (multiple of 128)"

    tb = _pick_tb(B, L) if batches_per_step is None else batches_per_step
    assert B % tb == 0
    tm = tb * L

    # FFN hidden tiling: skip chunking when the (TM, H) f32 tile is small;
    # otherwise use lane-aligned multiples of 256 and cap the unroll.
    if h_chunk is None:
        if tm * H * 4 <= 4 * 1024 * 1024:
            h_chunk = H
        else:
            h_chunk = 512
    h_chunk = min(h_chunk, H)
    assert H % h_chunk == 0 and (h_chunk == H or h_chunk % 128 == 0)
    n_chunks = H // h_chunk
    ffn_unroll = True if n_chunks <= 4 else 2

    kern = functools.partial(attention_layer_kernel, nhead=nhead,
                             h_chunk=h_chunk, ffn_unroll=ffn_unroll)

    wqkv = params["wqkv"]
    return pl.pallas_call(
        kern,
        out_shape=jax.ShapeDtypeStruct((B, L, D), x.dtype),
        grid=(B // tb,),
        in_specs=[
            pl.BlockSpec((tb, L, D), lambda g: (g, 0, 0)),    # x: tb batches/step
            _const_spec(mask.shape),                          # (L, L) mask, once
            _const_spec(wqkv.shape), _const_spec(params["wo"].shape),
            _const_spec(params["g1"].shape), _const_spec(params["b1"].shape),
            _const_spec(params["g2"].shape), _const_spec(params["b2"].shape),
            _const_spec(params["wf1"].shape), _const_spec(params["bf1"].shape),
            _const_spec(params["wf2"].shape), _const_spec(params["bf2"].shape),
        ],
        out_specs=pl.BlockSpec((tb, L, D), lambda g: (g, 0, 0)),
        compiler_params=pltpu.CompilerParams(
            dimension_semantics=("parallel",),                # v7x: 2 TCs share grid
            vmem_limit_bytes=_vmem_limit_bytes(),             # generation-aware
        ),
    )(x, mask,
      wqkv, params["wo"],
      params["g1"], params["b1"], params["g2"], params["b2"],
      params["wf1"], params["bf1"], params["wf2"], params["bf2"])


# --------------------------------------------------------------------------- #
# Pure-JAX reference (mirrors the kernel's numerics policy exactly)
# --------------------------------------------------------------------------- #
def reference(x, mask, params, *, nhead):
    def mm(a, w):
        return jnp.dot(a.astype(jnp.bfloat16), w, preferred_element_type=jnp.float32)

    B, L, D = x.shape
    wqkv = params["wqkv"]
    xn = _layernorm(x, params["g1"], params["b1"])
    qkv = mm(xn, wqkv)
    q, k, v = qkv[..., :D], qkv[..., D:2 * D], qkv[..., 2 * D:]

    scale = 1.0 / math.sqrt(D // nhead)
    s = jnp.einsum("bld,bmd->blm", q.astype(jnp.bfloat16), k.astype(jnp.bfloat16),
                   preferred_element_type=jnp.float32) * scale + mask
    s = s - jnp.max(s, axis=-1, keepdims=True)
    p = jnp.exp(s)
    p = p / jnp.sum(p, axis=-1, keepdims=True)
    o = jnp.einsum("blm,bmd->bld", p.astype(jnp.bfloat16), v.astype(jnp.bfloat16),
                   preferred_element_type=jnp.float32)
    x = x + mm(o, params["wo"])

    xn2 = _layernorm(x, params["g2"], params["b2"])
    h = _gelu_tanh(mm(xn2, params["wf1"]) + params["bf1"])
    return x + mm(h, params["wf2"]) + params["bf2"]


# --------------------------------------------------------------------------- #
# Parameter init (matches the PyTorch module's layer set)
# --------------------------------------------------------------------------- #
def init_params(key, D):
    H = 4 * D
    ks = jax.random.split(key, 8)
    s = 1.0 / math.sqrt(D)
    bf16 = jnp.bfloat16
    return {
        # Attention projections: nn.Linear(..., bias=False); weights stored
        # pre-transposed (in, out) and in bf16 (MXU-native, halves HBM/VMEM).
        "wq":  (jax.random.normal(ks[0], (D, D), jnp.float32) * s).astype(bf16),
        "wkv": (jax.random.normal(ks[1], (D, 2 * D), jnp.float32) * s).astype(bf16),
        "wo":  (jax.random.normal(ks[2], (D, D), jnp.float32) * s).astype(bf16),
        # LayerNorm affine params stay f32 (VPU math stays f32).
        "g1":  jnp.ones((1, D), jnp.float32),
        "b1":  jnp.zeros((1, D), jnp.float32),
        "g2":  jnp.ones((1, D), jnp.float32),
        "b2":  jnp.zeros((1, D), jnp.float32),
        # FFN Linears keep their (default) biases.
        "wf1": (jax.random.normal(ks[3], (D, H), jnp.float32) * s).astype(bf16),
        "bf1": jax.random.normal(ks[4], (1, H), jnp.float32) * 0.02,
        "wf2": (jax.random.normal(ks[5], (H, D), jnp.float32) / math.sqrt(H)).astype(bf16),
        "bf2": jax.random.normal(ks[6], (1, D), jnp.float32) * 0.02,
    }


if __name__ == "__main__":
    # Small, lane-dense shapes: D multiple of 128 so every matmul/store is
    # full-lane.  B=8, L=64 -> tb=4 batches per step (TM=256 rows) and a grid
    # of 2 parallel steps (keeps both v7x TensorCores busy).
    B, L, D, nhead = 8, 64, 128, 1

    key = jax.random.PRNGKey(0)
    kx, kp = jax.random.split(key)
    x = jax.random.normal(kx, (B, L, D), jnp.float32)

    # Single additive causal (L, L) mask shared across the batch.
    causal = jnp.where(jnp.tril(jnp.ones((L, L), jnp.bool_)), 0.0, -1e9)
    causal = causal.astype(jnp.float32)

    params = prepare_params(init_params(kp, D))

    out = attention_layer(x, causal, params, nhead=nhead)
    out = jax.block_until_ready(out)

    ref = reference(x, causal, params, nhead=nhead)
    assert out.shape == (B, L, D)
    # Reference mirrors the kernel's numerics policy (bf16 MXU operands, f32
    # accumulation, tanh GELU, exact softmax); tolerance absorbs Mosaic-vs-XLA
    # transcendental and accumulation-order differences on hardware.
    err = float(jnp.max(jnp.abs(out - ref)))
    assert jnp.allclose(out, ref, atol=2e-2, rtol=2e-2), err

    print("KERNEL_OK")
</pallas_src>

<mosaic_0001>
module attributes {stable_mosaic.version = 11 : i64} {
  func.func @attention_layer_kernel(%arg0: i32, %arg1: memref<4x64x128xf32, #tpu.memory_space<vmem>>, %arg2: memref<64x64xf32, #tpu.memory_space<vmem>>, %arg3: memref<128x384xbf16, #tpu.memory_space<vmem>>, %arg4: memref<128x128xbf16, #tpu.memory_space<vmem>>, %arg5: memref<1x128xf32, #tpu.memory_space<vmem>>, %arg6: memref<1x128xf32, #tpu.memory_space<vmem>>, %arg7: memref<1x128xf32, #tpu.memory_space<vmem>>, %arg8: memref<1x128xf32, #tpu.memory_space<vmem>>, %arg9: memref<128x512xbf16, #tpu.memory_space<vmem>>, %arg10: memref<1x512xf32, #tpu.memory_space<vmem>>, %arg11: memref<512x128xbf16, #tpu.memory_space<vmem>>, %arg12: memref<1x128xf32, #tpu.memory_space<vmem>>, %arg13: memref<4x64x128xf32, #tpu.memory_space<vmem>>) attributes {dimension_semantics = [#tpu.dimension_semantics<parallel>], iteration_bounds = array<i64: 2>, scalar_prefetch = 0 : i64, scratch_operands = 0 : i64, tpu.core_type = #tpu.core_type<tc>, window_params = [{transform_indices = @transform_0, window_bounds = array<i64: 4, 64, 128>}, {pipeline_mode = #tpu.pipeline_mode<synchronous>, transform_indices = @transform_1, window_bounds = array<i64: 64, 64>}, {pipeline_mode = #tpu.pipeline_mode<synchronous>, transform_indices = @transform_2, window_bounds = array<i64: 128, 384>}, {pipeline_mode = #tpu.pipeline_mode<synchronous>, transform_indices = @transform_3, window_bounds = array<i64: 128, 128>}, {pipeline_mode = #tpu.pipeline_mode<synchronous>, transform_indices = @transform_4, window_bounds = array<i64: 1, 128>}, {pipeline_mode = #tpu.pipeline_mode<synchronous>, transform_indices = @transform_5, window_bounds = array<i64: 1, 128>}, {pipeline_mode = #tpu.pipeline_mode<synchronous>, transform_indices = @transform_6, window_bounds = array<i64: 1, 128>}, {pipeline_mode = #tpu.pipeline_mode<synchronous>, transform_indices = @transform_7, window_bounds = array<i64: 1, 128>}, {pipeline_mode = #tpu.pipeline_mode<synchronous>, transform_indices = @transform_8, window_bounds = array<i64: 128, 512>}, {pipeline_mode = #tpu.pipeline_mode<synchronous>, transform_indices = @transform_9, window_bounds = array<i64: 1, 512>}, {pipeline_mode = #tpu.pipeline_mode<synchronous>, transform_indices = @transform_10, window_bounds = array<i64: 512, 128>}, {pipeline_mode = #tpu.pipeline_mode<synchronous>, transform_indices = @transform_11, window_bounds = array<i64: 1, 128>}, {transform_indices = @transform_12, window_bounds = array<i64: 4, 64, 128>}]} {
    %c0 = arith.constant 0 : index
    %c0_0 = arith.constant 0 : index
    %c0_1 = arith.constant 0 : index
    %0 = vector.load %arg1[%c0, %c0_0, %c0_1] : memref<4x64x128xf32, #tpu.memory_space<vmem>>, vector<4x64x128xf32>
    %1 = vector.shape_cast %0 : vector<4x64x128xf32> to vector<256x128xf32>
    %c0_2 = arith.constant 0 : index
    %c0_3 = arith.constant 0 : index
    %2 = vector.load %arg2[%c0_2, %c0_3] : memref<64x64xf32, #tpu.memory_space<vmem>>, vector<64x64xf32>
    %c0_4 = arith.constant 0 : index
    %c0_5 = arith.constant 0 : index
    %3 = vector.load %arg5[%c0_4, %c0_5] : memref<1x128xf32, #tpu.memory_space<vmem>>, vector<1x128xf32>
    %c0_6 = arith.constant 0 : index
    %c0_7 = arith.constant 0 : index
    %4 = vector.load %arg6[%c0_6, %c0_7] : memref<1x128xf32, #tpu.memory_space<vmem>>, vector<1x128xf32>
    %cst = arith.constant dense<0.000000e+00> : vector<256xf32>
    %5 = vector.multi_reduction <add>, %1, %cst [1] : vector<256x128xf32> to vector<256xf32>
    %6 = vector.shape_cast %5 : vector<256xf32> to vector<256x1xf32>
    %cst_8 = arith.constant 1.280000e+02 : f32
    %7 = vector.broadcast %cst_8 : f32 to vector<256x1xf32>
    %8 = arith.divf %6, %7 : vector<256x1xf32>
    %9 = arith.mulf %1, %1 : vector<256x128xf32>
    %cst_9 = arith.constant dense<0.000000e+00> : vector<256xf32>
    %10 = vector.multi_reduction <add>, %9, %cst_9 [1] : vector<256x128xf32> to vector<256xf32>
    %11 = vector.shape_cast %10 : vector<256xf32> to vector<256x1xf32>
    %cst_10 = arith.constant 1.280000e+02 : f32
    %12 = vector.broadcast %cst_10 : f32 to vector<256x1xf32>
    %13 = arith.divf %11, %12 : vector<256x1xf32>
    %14 = arith.mulf %8, %8 : vector<256x1xf32>
    %15 = arith.subf %13, %14 : vector<256x1xf32>
    %cst_11 = arith.constant 0.000000e+00 : f32
    %16 = vector.broadcast %cst_11 : f32 to vector<256x1xf32>
    %17 = arith.maximumf %15, %16 : vector<256x1xf32>
    %18 = vector.broadcast %8 : vector<256x1xf32> to vector<256x128xf32>
    %19 = arith.subf %1, %18 : vector<256x128xf32>
    %cst_12 = arith.constant 9.99999974E-6 : f32
    %20 = vector.broadcast %cst_12 : f32 to vector<256x1xf32>
    %21 = arith.addf %17, %20 : vector<256x1xf32>
    %22 = math.rsqrt %21 : vector<256x1xf32>
    %23 = vector.broadcast %22 : vector<256x1xf32> to vector<256x128xf32>
    %24 = arith.mulf %19, %23 : vector<256x128xf32>
    %25 = vector.broadcast %3 : vector<1x128xf32> to vector<256x128xf32>
    %26 = arith.mulf %24, %25 : vector<256x128xf32>
    %27 = vector.broadcast %4 : vector<1x128xf32> to vector<256x128xf32>
    %28 = arith.addf %26, %27 : vector<256x128xf32>
    %29 = arith.truncf %28 : vector<256x128xf32> to vector<256x128xbf16>
    %c0_13 = arith.constant 0 : index
    %c0_14 = arith.constant 0 : index
    %30 = vector.load %arg3[%c0_13, %c0_14] : memref<128x384xbf16, #tpu.memory_space<vmem>>, vector<128x384xbf16>
    %cst_15 = arith.constant dense<0.000000e+00> : vector<256x384xf32>
    %31 = tpu.matmul %29, %30, %cst_15 {dimension_numbers = #tpu.dot_dimension_numbers<[1], [0], [0], [1], [0, 0, 1, 1], [], []>} : vector<256x128xbf16>, vector<128x384xbf16>, vector<256x384xf32> -> vector<256x384xf32>
    %32 = vector.extract_strided_slice %31 {offsets = [0, 0], sizes = [256, 128], strides = [1, 1]} : vector<256x384xf32> to vector<256x128xf32>
    %33 = vector.shape_cast %32 : vector<256x128xf32> to vector<4x64x128xf32>
    %34 = arith.truncf %33 : vector<4x64x128xf32> to vector<4x64x128xbf16>
    %35 = vector.extract_strided_slice %31 {offsets = [0, 128], sizes = [256, 128], strides = [1, 1]} : vector<256x384xf32> to vector<256x128xf32>
    %36 = vector.shape_cast %35 : vector<256x128xf32> to vector<4x64x128xf32>
    %37 = arith.truncf %36 : vector<4x64x128xf32> to vector<4x64x128xbf16>
    %38 = vector.extract_strided_slice %31 {offsets = [0, 256], sizes = [256, 128], strides = [1, 1]} : vector<256x384xf32> to vector<256x128xf32>
    %39 = vector.shape_cast %38 : vector<256x128xf32> to vector<4x64x128xf32>
    %40 = arith.truncf %39 : vector<4x64x128xf32> to vector<4x64x128xbf16>
    "tpu.trace_start"() <{level = 10 : i32, message = "bld,bmd->blm"}> : () -> ()
    %cst_16 = arith.constant dense<0.000000e+00> : vector<4x64x64xf32>
    %41 = tpu.matmul %34, %37, %cst_16 {dimension_numbers = #tpu.dot_dimension_numbers<[2], [2], [1], [1], [0, 0, 0, 1, 1, 1], [0], [0]>} : vector<4x64x128xbf16>, vector<4x64x128xbf16>, vector<4x64x64xf32> -> vector<4x64x64xf32>
    "tpu.trace_stop"() : () -> ()
    %cst_17 = arith.constant 0.0883883461 : f32
    %42 = vector.broadcast %cst_17 : f32 to vector<4x64x64xf32>
    %43 = arith.mulf %41, %42 : vector<4x64x64xf32>
    %44 = vector.shape_cast %2 : vector<64x64xf32> to vector<1x64x64xf32>
    %45 = vector.broadcast %44 : vector<1x64x64xf32> to vector<4x64x64xf32>
    %46 = arith.addf %43, %45 : vector<4x64x64xf32>
    %cst_18 = arith.constant dense<0xFF800000> : vector<4x64xf32>
    %47 = vector.multi_reduction <maximumf>, %46, %cst_18 [2] : vector<4x64x64xf32> to vector<4x64xf32>
    %48 = vector.shape_cast %47 : vector<4x64xf32> to vector<4x64x1xf32>
    %49 = vector.broadcast %48 : vector<4x64x1xf32> to vector<4x64x64xf32>
    %50 = arith.subf %46, %49 : vector<4x64x64xf32>
    %51 = math.exp %50 : vector<4x64x64xf32>
    %cst_19 = arith.constant dense<0.000000e+00> : vector<4x64xf32>
    %52 = vector.multi_reduction <add>, %51, %cst_19 [2] : vector<4x64x64xf32> to vector<4x64xf32>
    %53 = vector.shape_cast %52 : vector<4x64xf32> to vector<4x64x1xf32>
    %54 = vector.broadcast %53 : vector<4x64x1xf32> to vector<4x64x64xf32>
    %55 = arith.divf %51, %54 : vector<4x64x64xf32>
    %56 = arith.truncf %55 : vector<4x64x64xf32> to vector<4x64x64xbf16>
    "tpu.trace_start"() <{level = 10 : i32, message = "blm,bmd->bld"}> : () -> ()
    %cst_20 = arith.constant dense<0.000000e+00> : vector<4x64x128xf32>
    %57 = tpu.matmul %56, %40, %cst_20 {dimension_numbers = #tpu.dot_dimension_numbers<[2], [1], [1], [2], [0, 0, 0, 1, 1, 2], [0], [0]>} : vector<4x64x64xbf16>, vector<4x64x128xbf16>, vector<4x64x128xf32> -> vector<4x64x128xf32>
    "tpu.trace_stop"() : () -> ()
    %58 = vector.shape_cast %57 : vector<4x64x128xf32> to vector<256x128xf32>
    %59 = arith.truncf %58 : vector<256x128xf32> to vector<256x128xbf16>
    %c0_21 = arith.constant 0 : index
    %c0_22 = arith.constant 0 : index
    %60 = vector.load %arg4[%c0_21, %c0_22] : memref<128x128xbf16, #tpu.memory_space<vmem>>, vector<128x128xbf16>
    %cst_23 = arith.constant dense<0.000000e+00> : vector<256x128xf32>
    %61 = tpu.matmul %59, %60, %cst_23 {dimension_numbers = #tpu.dot_dimension_numbers<[1], [0], [0], [1], [0, 0, 1, 1], [], []>} : vector<256x128xbf16>, vector<128x128xbf16>, vector<256x128xf32> -> vector<256x128xf32>
    %62 = arith.addf %1, %61 : vector<256x128xf32>
    %c0_24 = arith.constant 0 : index
    %c0_25 = arith.constant 0 : index
    %63 = vector.load %arg7[%c0_24, %c0_25] : memref<1x128xf32, #tpu.memory_space<vmem>>, vector<1x128xf32>
    %c0_26 = arith.constant 0 : index
    %c0_27 = arith.constant 0 : index
    %64 = vector.load %arg8[%c0_26, %c0_27] : memref<1x128xf32, #tpu.memory_space<vmem>>, vector<1x128xf32>
    %cst_28 = arith.constant dense<0.000000e+00> : vector<256xf32>
    %65 = vector.multi_reduction <add>, %62, %cst_28 [1] : vector<256x128xf32> to vector<256xf32>
    %66 = vector.shape_cast %65 : vector<256xf32> to vector<256x1xf32>
    %cst_29 = arith.constant 1.280000e+02 : f32
    %67 = vector.broadcast %cst_29 : f32 to vector<256x1xf32>
    %68 = arith.divf %66, %67 : vector<256x1xf32>
    %69 = arith.mulf %62, %62 : vector<256x128xf32>
    %cst_30 = arith.constant dense<0.000000e+00> : vector<256xf32>
    %70 = vector.multi_reduction <add>, %69, %cst_30 [1] : vector<256x128xf32> to vector<256xf32>
    %71 = vector.shape_cast %70 : vector<256xf32> to vector<256x1xf32>
    %cst_31 = arith.constant 1.280000e+02 : f32
    %72 = vector.broadcast %cst_31 : f32 to vector<256x1xf32>
    %73 = arith.divf %71, %72 : vector<256x1xf32>
    %74 = arith.mulf %68, %68 : vector<256x1xf32>
    %75 = arith.subf %73, %74 : vector<256x1xf32>
    %cst_32 = arith.constant 0.000000e+00 : f32
    %76 = vector.broadcast %cst_32 : f32 to vector<256x1xf32>
    %77 = arith.maximumf %75, %76 : vector<256x1xf32>
    %78 = vector.broadcast %68 : vector<256x1xf32> to vector<256x128xf32>
    %79 = arith.subf %62, %78 : vector<256x128xf32>
    %cst_33 = arith.constant 9.99999974E-6 : f32
    %80 = vector.broadcast %cst_33 : f32 to vector<256x1xf32>
    %81 = arith.addf %77, %80 : vector<256x1xf32>
    %82 = math.rsqrt %81 : vector<256x1xf32>
    %83 = vector.broadcast %82 : vector<256x1xf32> to vector<256x128xf32>
    %84 = arith.mulf %79, %83 : vector<256x128xf32>
    %85 = vector.broadcast %63 : vector<1x128xf32> to vector<256x128xf32>
    %86 = arith.mulf %84, %85 : vector<256x128xf32>
    %87 = vector.broadcast %64 : vector<1x128xf32> to vector<256x128xf32>
    %88 = arith.addf %86, %87 : vector<256x128xf32>
    %89 = arith.truncf %88 : vector<256x128xf32> to vector<256x128xbf16>
    %c0_34 = arith.constant 0 : index
    %c0_35 = arith.constant 0 : index
    %90 = vector.load %arg9[%c0_34, %c0_35] : memref<128x512xbf16, #tpu.memory_space<vmem>>, vector<128x512xbf16>
    %cst_36 = arith.constant dense<0.000000e+00> : vector<256x512xf32>
    %91 = tpu.matmul %89, %90, %cst_36 {dimension_numbers = #tpu.dot_dimension_numbers<[1], [0], [0], [1], [0, 0, 1, 1], [], []>} : vector<256x128xbf16>, vector<128x512xbf16>, vector<256x512xf32> -> vector<256x512xf32>
    %c0_37 = arith.constant 0 : index
    %c0_38 = arith.constant 0 : index
    %92 = vector.load %arg10[%c0_37, %c0_38] : memref<1x512xf32, #tpu.memory_space<vmem>>, vector<1x512xf32>
    %93 = vector.broadcast %92 : vector<1x512xf32> to vector<256x512xf32>
    %94 = arith.addf %91, %93 : vector<256x512xf32>
    %cst_39 = arith.constant 5.000000e-01 : f32
    %95 = vector.broadcast %cst_39 : f32 to vector<256x512xf32>
    %96 = arith.mulf %95, %94 : vector<256x512xf32>
    %cst_40 = arith.constant 4.471500e-02 : f32
    %97 = vector.broadcast %cst_40 : f32 to vector<256x512xf32>
    %98 = arith.mulf %97, %94 : vector<256x512xf32>
    %99 = arith.mulf %98, %94 : vector<256x512xf32>
    %100 = arith.mulf %99, %94 : vector<256x512xf32>
    %101 = arith.addf %94, %100 : vector<256x512xf32>
    %cst_41 = arith.constant 0.797884583 : f32
    %102 = vector.broadcast %cst_41 : f32 to vector<256x512xf32>
    %103 = arith.mulf %102, %101 : vector<256x512xf32>
    %104 = math.tanh %103 : vector<256x512xf32>
    %cst_42 = arith.constant 1.000000e+00 : f32
    %105 = vector.broadcast %cst_42 : f32 to vector<256x512xf32>
    %106 = arith.addf %105, %104 : vector<256x512xf32>
    %107 = arith.mulf %96, %106 : vector<256x512xf32>
    %108 = arith.truncf %107 : vector<256x512xf32> to vector<256x512xbf16>
    %c0_43 = arith.constant 0 : index
    %c0_44 = arith.constant 0 : index
    %109 = vector.load %arg11[%c0_43, %c0_44] : memref<512x128xbf16, #tpu.memory_space<vmem>>, vector<512x128xbf16>
    %cst_45 = arith.constant dense<0.000000e+00> : vector<256x128xf32>
    %110 = tpu.matmul %108, %109, %cst_45 {dimension_numbers = #tpu.dot_dimension_numbers<[1], [0], [0], [1], [0, 0, 1, 1], [], []>} : vector<256x512xbf16>, vector<512x128xbf16>, vector<256x128xf32> -> vector<256x128xf32>
    %c0_46 = arith.constant 0 : index
    %c0_47 = arith.constant 0 : index
    %111 = vector.load %arg12[%c0_46, %c0_47] : memref<1x128xf32, #tpu.memory_space<vmem>>, vector<1x128xf32>
    %112 = vector.broadcast %111 : vector<1x128xf32> to vector<256x128xf32>
    %113 = arith.addf %110, %112 : vector<256x128xf32>
    %114 = arith.addf %62, %113 : vector<256x128xf32>
    %115 = vector.shape_cast %114 : vector<256x128xf32> to vector<4x64x128xf32>
    %c0_48 = arith.constant 0 : index
    %c0_49 = arith.constant 0 : index
    %c0_50 = arith.constant 0 : index
    %116 = vector.load %arg13[%c0_48, %c0_49, %c0_50] : memref<4x64x128xf32, #tpu.memory_space<vmem>>, vector<4x64x128xf32>
    tpu.vector_store %arg13[%c0_48, %c0_49, %c0_50], %115 {strides = array<i32>} : memref<4x64x128xf32, #tpu.memory_space<vmem>>, vector<4x64x128xf32>,
    return
  }
  func.func @transform_0(%arg0: i32) -> (i32, i32, i32) {
    %c0_i32 = arith.constant 0 : i32
    %c0_i32_0 = arith.constant 0 : i32
    %c0_i32_1 = arith.constant 0 : i32
    return %arg0, %c0_i32, %c0_i32_0 : i32, i32, i32
  }
  func.func @transform_1(%arg0: i32) -> (i32, i32) {
    %c0_i32 = arith.constant 0 : i32
    %c0_i32_0 = arith.constant 0 : i32
    %c0_i32_1 = arith.constant 0 : i32
    return %c0_i32, %c0_i32_0 : i32, i32
  }
  func.func @transform_2(%arg0: i32) -> (i32, i32) {
    %c0_i32 = arith.constant 0 : i32
    %c0_i32_0 = arith.constant 0 : i32
    %c0_i32_1 = arith.constant 0 : i32
    return %c0_i32, %c0_i32_0 : i32, i32
  }
  func.func @transform_3(%arg0: i32) -> (i32, i32) {
    %c0_i32 = arith.constant 0 : i32
    %c0_i32_0 = arith.constant 0 : i32
    %c0_i32_1 = arith.constant 0 : i32
    return %c0_i32, %c0_i32_0 : i32, i32
  }
  func.func @transform_4(%arg0: i32) -> (i32, i32) {
    %c0_i32 = arith.constant 0 : i32
    %c0_i32_0 = arith.constant 0 : i32
    %c0_i32_1 = arith.constant 0 : i32
    return %c0_i32, %c0_i32_0 : i32, i32
  }
  func.func @transform_5(%arg0: i32) -> (i32, i32) {
    %c0_i32 = arith.constant 0 : i32
    %c0_i32_0 = arith.constant 0 : i32
    %c0_i32_1 = arith.constant 0 : i32
    return %c0_i32, %c0_i32_0 : i32, i32
  }
  func.func @transform_6(%arg0: i32) -> (i32, i32) {
    %c0_i32 = arith.constant 0 : i32
    %c0_i32_0 = arith.constant 0 : i32
    %c0_i32_1 = arith.constant 0 : i32
    return %c0_i32, %c0_i32_0 : i32, i32
  }
  func.func @transform_7(%arg0: i32) -> (i32, i32) {
    %c0_i32 = arith.constant 0 : i32
    %c0_i32_0 = arith.constant 0 : i32
    %c0_i32_1 = arith.constant 0 : i32
    return %c0_i32, %c0_i32_0 : i32, i32
  }
  func.func @transform_8(%arg0: i32) -> (i32, i32) {
    %c0_i32 = arith.constant 0 : i32
    %c0_i32_0 = arith.constant 0 : i32
    %c0_i32_1 = arith.constant 0 : i32
    return %c0_i32, %c0_i32_0 : i32, i32
  }
  func.func @transform_9(%arg0: i32) -> (i32, i32) {
    %c0_i32 = arith.constant 0 : i32
    %c0_i32_0 = arith.constant 0 : i32
    %c0_i32_1 = arith.constant 0 : i32
    return %c0_i32, %c0_i32_0 : i32, i32
  }
  func.func @transform_10(%arg0: i32) -> (i32, i32) {
    %c0_i32 = arith.constant 0 : i32
    %c0_i32_0 = arith.constant 0 : i32
    %c0_i32_1 = arith.constant 0 : i32
    return %c0_i32, %c0_i32_0 : i32, i32
  }
  func.func @transform_11(%arg0: i32) -> (i32, i32) {
    %c0_i32 = arith.constant 0 : i32
    %c0_i32_0 = arith.constant 0 : i32
    %c0_i32_1 = arith.constant 0 : i32
    return %c0_i32, %c0_i32_0 : i32, i32
  }
  func.func @transform_12(%arg0: i32) -> (i32, i32, i32) {
    %c0_i32 = arith.constant 0 : i32
    %c0_i32_0 = arith.constant 0 : i32
    %c0_i32_1 = arith.constant 0 : i32
    return %arg0, %c0_i32, %c0_i32_0 : i32, i32, i32
  }
}

</mosaic_0001>

<bundles_post_ra>
// kernel: tpu_custom_call.1
= control target key start
LH: loop header
LB: loop body
LE: loop exit
PB: predicated region body
PF: predicated region fallthrough
CT: control target
= control target key end

     0   :  { %s11858_s0 = inlined_call_operand.hbm [shape: f32[8,64,128], index: 0, kind: input, shape index: {}]   ;;  %s11859_s1 = inlined_call_operand.hbm [shape: f32[64,64], index: 1, kind: input, shape index: {}]   ;;  %s11860_s2 = inlined_call_operand.hbm [shape: bf16[128,384], index: 2, kind: input, shape index: {}]   ;;  %s11861_s3 = inlined_call_operand.hbm [shape: bf16[128,128], index: 3, kind: input, shape index: {}]   ;;  %s11862_s4 = inlined_call_operand.vmem [shape: f32[1,128], index: 4, kind: input, shape index: {}]   ;;  %s11863_s5 = inlined_call_operand.vmem [shape: f32[1,128], index: 5, kind: input, shape index: {}]   ;;  %s11864_s6 = inlined_call_operand.vmem [shape: f32[1,128], index: 6, kind: input, shape index: {}]   ;;  %s11865_s7 = inlined_call_operand.vmem [shape: f32[1,128], index: 7, kind: input, shape index: {}]   ;;  %s11866_s8 = inlined_call_operand.hbm [shape: bf16[128,512], index: 8, kind: input, shape index: {}]   ;;  %s11867_s9 = inlined_call_operand.vmem [shape: f32[1,512], index: 9, kind: input, shape index: {}]   ;;  %s11868_s10 = inlined_call_operand.hbm [shape: bf16[512,128], index: 10, kind: input, shape index: {}]   ;;  %s11869_s11 = inlined_call_operand.vmem [shape: f32[1,128], index: 11, kind: input, shape index: {}]   ;;  %s11870_s12 = inlined_call_operand.hbm [shape: f32[8,64,128], index: 12, kind: output, shape index: {}]  }
   0x1   :  { %12026 = sst [smem:[#allocation129_spill]] %s11865_s7 }
   0x2   :  { %12027 = sst [smem:[#allocation130_spill]] %s11867_s9 }
   0x3   :  { %12028 = sst [smem:[#allocation131_spill]] %s11869_s11 }
   0x4   :  { %12029 = sst [smem:[#allocation132_spill]] %s11870_s12 }
   0x5   :  { %17 = vsyncpa [#allocation3], 0 }
   0x6   :  { %19 = vsyncpa [#allocation3 + $0x1], 0 }
   0x7   :  { %20 = vsyncpa [#allocation6], 0 }
   0x8   :  { %21 = vsyncpa [#allocation9], 0 }
   0x9   :  { %22 = vsyncpa [#allocation12], 0 }
   0xa   :  { %23 = vsyncpa [#allocation4], 0 }
   0xb   :  { %25 = vsyncpa [#allocation4 + $0x1], 0  ;;  %s7901_s21 = smov 0   ;;  %s7903_s22 = smov 0  }
   0xc   :  { %s7905_s23 = smov 0   ;;  %s7907_s24 = smov 0  }
   0xd LB: > { %s7818_s25 = smov [#allocation5]   ;;  %s7922_s27 = sadd.s32 4294967295, %s7816_s24   ;;  %s7816_s24 = sphi %s7907_s24, %s12475_s24   ;;  %s7812_s23 = sphi %s7905_s23, %s12474_s23   ;;  %s7808_s22 = sphi %s7903_s22, %s12473_s22   ;;  %s7804_s21 = sphi %s7901_s21, %s12472_s21  }
   0xe   : > { %s331_s26 = sshll.u32 %s7818_s25, 4  ;;  %p6072_p0 = scmp.ge.s32.totalorder %s7816_s24, 1  ;;  %s7927_s26 = int_to_ptr.vmem [resolvable:$true] %s331_s26 }
   0xf   : > { %p11874_p1 = scmp.eq.s32.totalorder %s7922_s27, 0  ;;  %p319_p2 = scmp.lt.s32.totalorder %s7816_s24, 3 }
  0x10   : > { %s7819_s29 = smov [#allocation8]   ;;  %s7820_s14 = smov [#allocation7]  }
  0x11   : > { %p7929_p3 = pnand %p6072_p0, %p319_p2  ;;  %s357_s30 = sshll.u32 %s7819_s29, 4  ;;  %s7942_s30 = int_to_ptr.vmem [resolvable:$true] %s357_s30 }
  0x12   : > { %s7944_s15 = sshll.u32 %s7820_s14, 4  ;;  %s7568_s18 = scalar_lea.hbm %s11859_s1, 1024  ;;  %s345_s15 = int_to_ptr.vmem [resolvable:$true] %s7944_s15 }
  0x13   : > { %s12030_s28 = scalar_select %p7929_p3, 1, 0 }
  0x14   : > { %p6818_p5 = pneg %p7929_p3  ;;  %p7569_p7 = scmp.ne.s32.totalorder %s11859_s1, %s7568_s18 }
  0x15   : > { %p7575_p11 = scmp.lt.u32.totalorder %s7568_s18, %s11859_s1 }
  0x16   : > { %p7938_p6 = pnand %p6818_p5, %p11874_p1 }
  0x18   : > { %p7954_p8 = pneg %p7938_p6 }
  0x1a   : > { %p7571_p9 = pnand %p7954_p8, %p7569_p7 }
  0x1c   : > { %p7572_p10 = pneg %p7571_p9 }
  0x1e   : > { %p7577_p12 = pnand %p7575_p11, %p7572_p10 }
  0x20   : > { %7580 = shalt.err (!%p7577_p12)
}
  0x21   : > { %s7581_s16 = scalar_lea.vmem %s7927_s26, 1024  ;;  %p7589_p5 = scmp.lt.s32.totalorder %s7927_s26, %s7927_s26 }
  0x22   : > { %p7582_p13 = scmp.ne.s32.totalorder %s7927_s26, %s7581_s16  ;;  %p7590_p4 = scmp.lt.s32.totalorder %s7581_s16, %s7581_s16 }
  0x24   : > { %p7584_p0 = pnand %p7582_p13, %p7954_p8  ;;  %p7591_p7 = por %p7590_p4, %p7589_p5 }
  0x26   : > { %p7585_p2 = pneg %p7584_p0 }
  0x28   : > { %p7592_p9 = pnand %p7591_p7, %p7585_p2 }
  0x2a   : > { %7595 = shalt.err (!%p7592_p9)
}
  0x2b   : > { %s11873_s17 = smov 128   ;;  %s11876_s18 = smov 8  }
  0x2c   : > { %6821 = dma.hbm_to_vmem [thread:$0]  (!%p7938_p6), %s11859_s1, 1024, %s7927_s26, [#allocation6], %s11873_s17, %s11873_s17, %s11876_s18  }
  0x2d   : > { %s7596_s16 = scalar_lea.hbm %s11861_s3, 1024 }
  0x2e   : > { %p7597_p4 = scmp.ne.s32.totalorder %s11861_s3, %s7596_s16  ;;  %p7603_p12 = scmp.lt.u32.totalorder %s7596_s16, %s11861_s3 }
  0x30   : > { %p7599_p10 = pnand %p7597_p4, %p7954_p8 }
  0x32   : > { %p7600_p11 = pneg %p7599_p10 }
  0x34   : > { %p7605_p13 = pnand %p7603_p12, %p7600_p11 }
  0x36   : > { %7608 = shalt.err (!%p7605_p13)
}
  0x37   : > { %s7609_s26 = scalar_lea.vmem %s7942_s30, 1024  ;;  %p7617_p7 = scmp.lt.s32.totalorder %s7942_s30, %s7942_s30 }
  0x38   : > { %p7610_p0 = scmp.ne.s32.totalorder %s7942_s30, %s7609_s26  ;;  %p7618_p9 = scmp.lt.s32.totalorder %s7609_s26, %s7609_s26 }
  0x3a   : > { %p7612_p2 = pnand %p7610_p0, %p7954_p8  ;;  %p7619_p4 = por %p7618_p9, %p7617_p7 }
  0x3c   : > { %p7613_p5 = pneg %p7612_p2 }
  0x3e   : > { %p7620_p10 = pnand %p7619_p4, %p7613_p5 }
  0x40   : > { %7623 = shalt.err (!%p7620_p10)
}
  0x41   : > { %s11877_s11 = smov 64   ;;  %s11878_s7 = smov 4  }
  0x42   : > { %6827 = dma.hbm_to_vmem [thread:$0]  (!%p7938_p6), %s11861_s3, 1024, %s7942_s30, [#allocation9], %s11877_s11, %s11877_s11, %s11878_s7  }
  0x43   : > { %s7624_s29 = scalar_lea.hbm %s11860_s2, 3072 }
  0x44   : > { %p7625_p11 = scmp.ne.s32.totalorder %s11860_s2, %s7624_s29  ;;  %p7631_p0 = scmp.lt.u32.totalorder %s7624_s29, %s11860_s2 }
  0x46   : > { %p7627_p12 = pnand %p7625_p11, %p7954_p8 }
  0x48   : > { %p7628_p13 = pneg %p7627_p12 }
  0x4a   : > { %p7633_p2 = pnand %p7631_p0, %p7628_p13 }
  0x4c   : > { %7636 = shalt.err (!%p7633_p2)
}
  0x4d   : > { %s7637_s9 = scalar_lea.vmem %s345_s15, 3072  ;;  %p7645_p4 = scmp.lt.s32.totalorder %s345_s15, %s345_s15 }
  0x4e   : > { %p7638_p5 = scmp.ne.s32.totalorder %s345_s15, %s7637_s9  ;;  %p7646_p10 = scmp.lt.s32.totalorder %s7637_s9, %s7637_s9 }
  0x50   : > { %p7640_p7 = pnand %p7638_p5, %p7954_p8  ;;  %p7647_p1 = por %p7646_p10, %p7645_p4 }
  0x52   : > { %p7641_p9 = pneg %p7640_p7 }
  0x54   : > { %p7648_p3 = pnand %p7647_p1, %p7641_p9 }
  0x56   : > { %7651 = shalt.err (!%p7648_p3)
}
  0x57   : > { %s7825_s30 = smov 192   ;;  %s7826_s12 = smov 12  }
  0x58   : > { %6824 = dma.hbm_to_vmem [thread:$0]  (!%p7938_p6), %s11860_s2, 3072, %s345_s15, [#allocation6], %s7825_s30, %s7825_s30, %s7826_s12  }
  0x59   : > { %s7827_s20 = smov [#allocation10]   ;;  %s7652_s26 = scalar_lea.hbm %s11866_s8, 4096 }
  0x5a   : > { %s382_s29 = sshll.u32 %s7827_s20, 4  ;;  %p7653_p1 = scmp.ne.s32.totalorder %s11866_s8, %s7652_s26  ;;  %s383_s29 = int_to_ptr.vmem [resolvable:$true] %s382_s29 }
  0x5b   : > { %p7659_p12 = scmp.lt.u32.totalorder %s7652_s26, %s11866_s8 }
  0x5c   : > { %p7655_p3 = pnand %p7653_p1, %p7954_p8 }
  0x5e   : > { %p7656_p11 = pneg %p7655_p3 }
  0x60   : > { %p7661_p13 = pnand %p7659_p12, %p7656_p11 }
  0x62   : > { %7664 = shalt.err (!%p7661_p13)
}
  0x63   : > { %s7665_s15 = scalar_lea.vmem %s383_s29, 4096  ;;  %p7673_p7 = scmp.lt.s32.totalorder %s383_s29, %s383_s29 }
  0x64   : > { %p7666_p0 = scmp.ne.s32.totalorder %s383_s29, %s7665_s15  ;;  %p7674_p9 = scmp.lt.s32.totalorder %s7665_s15, %s7665_s15 }
  0x66   : > { %p7668_p2 = pnand %p7666_p0, %p7954_p8  ;;  %p7675_p4 = por %p7674_p9, %p7673_p7 }
  0x68   : > { %p7669_p5 = pneg %p7668_p2 }
  0x6a   : > { %p7676_p10 = pnand %p7675_p4, %p7669_p5 }
  0x6c   : > { %7679 = shalt.err (!%p7676_p10)
}
  0x6d   : > { %s7828_s18 = smov 256   ;;  %s7829_s30 = smov 16  }
  0x6e   : > { %6830 = dma.hbm_to_vmem [thread:$0]  (!%p7938_p6), %s11866_s8, 4096, %s383_s29, [#allocation9], %s7828_s18, %s7828_s18, %s7829_s30  }
  0x6f   : > { %s7830_s12 = smov [#allocation11]   ;;  %s7680_s14 = scalar_lea.hbm %s11868_s10, 4096 }
  0x70   : > { %s398_s17 = sshll.u32 %s7830_s12, 4  ;;  %p7681_p1 = scmp.ne.s32.totalorder %s11868_s10, %s7680_s14  ;;  %s399_s17 = int_to_ptr.vmem [resolvable:$true] %s398_s17 }
  0x71   : > { %p7687_p12 = scmp.lt.u32.totalorder %s7680_s14, %s11868_s10 }
  0x72   : > { %p7683_p3 = pnand %p7681_p1, %p7954_p8 }
  0x74   : > { %p7684_p11 = pneg %p7683_p3 }
  0x76   : > { %p7689_p13 = pnand %p7687_p12, %p7684_p11 }
  0x78   : > { %7692 = shalt.err (!%p7689_p13)
}
  0x79   : > { %s7693_s29 = scalar_lea.vmem %s399_s17, 4096  ;;  %p7701_p7 = scmp.lt.s32.totalorder %s399_s17, %s399_s17 }
  0x7a   : > { %p7694_p0 = scmp.ne.s32.totalorder %s399_s17, %s7693_s29  ;;  %p7702_p9 = scmp.lt.s32.totalorder %s7693_s29, %s7693_s29 }
  0x7c   : > { %p7696_p2 = pnand %p7694_p0, %p7954_p8  ;;  %p7703_p4 = por %p7702_p9, %p7701_p7 }
  0x7e   : > { %p7697_p5 = pneg %p7696_p2 }
  0x80   : > { %p7704_p10 = pnand %p7703_p4, %p7697_p5 }
  0x82   : > { %7707 = shalt.err (!%p7704_p10)
}
  0x83   : > { %s12033_s18 = smov 4   ;;  %s12034_s30 = smov 64  }
  0x84   : > { %6833 = dma.hbm_to_vmem [thread:$0]  (!%p7938_p6), %s11868_s10, 4096, %s399_s17, [#allocation12], %s12034_s30, %s12034_s30, %s12033_s18  }
  0x85   : > { %s6071_s13 = sadd.s32 4294967294, %s7816_s24   ;;  %s8064_s25 = sadd.s32 1, %s7816_s24  }
  0x86   : > { %s38_s12 = sadd.s32 1, %s7812_s23  ;;  %s35_s19 = ssub.s32 %s7816_s24, %s8064_s25 }
  0x87   : > { %p45_p8 = scmp.ne.s32.totalorder %s7812_s23, %s7808_s22  ;;  %p36_p1 = scmp.eq.s32.totalorder %s35_s19, 0 }
  0x88   : > { %p46_p3 = scmp.eq.s32.totalorder %s7816_s24, 0  ;;  %p51_p11 = scmp.ne.s32.totalorder %s7808_s22, %s7804_s21 }
  0x89   : > { %p306_p12 = scmp.eq.s32.totalorder %s7922_s27, 1  ;;  %p12035_p0 = scmp.eq.s32.totalorder %s7922_s27, 0 }
  0x8a   : > { %s8076_s20 = scalar_select %p36_p1, %s7812_s23, %s38_s12  }
  0x8b   : > { %p47_p13 = por %p46_p3, %p45_p8  ;;  %p8080_p2 = por %p12035_p0, %p51_p11 }
  0x8c   : > { %p8084_p6 = por %p306_p12, %p45_p8  ;;  %p312_p5 = scmp.eq.s32.totalorder %s6071_s13, 1 }
  0x8d   : > { %p6847_p7 = scmp.lt.s32.totalorder %s7816_s24, 2  ;;  %s415_s16 = sand.u32 1, %s7812_s23  }
  0x8e   : > { %s12037_s17 = scalar_select %p8084_p6, 1, 0 }
  0x8f   : > { %p8090_p9 = por %p312_p5, %p51_p11  ;;  %s6079_s9 = sshll.u32 %s415_s16, 8 }
  0x90   : > { %s6215_s15 = sshll.u32 %s7816_s24, 12  ;;  %s419_s11 = scalar_lea.vmem [#allocation2], %s6079_s9 }
  0x91   : > { %s12038_s26 = scalar_select %p8090_p9, 1, 0 }
  0x92   : > { %s8098_s30 = scalar_lea.hbm %s11858_s0, %s6215_s15  ;;  %s427_s7 = sshll.u32 %s419_s11, 4  ;;  %s8104_s7 = int_to_ptr.vmem [resolvable:$true] %s427_s7 }
  0x93   : > { %p8100_p4 = pnand %p6847_p7, %p47_p13  ;;  %s8106_s12 = scalar_lea.sflag [#allocation3], %s415_s16 }
  0x94   : > { %s7708_s19 = scalar_lea.hbm %s8098_s30, 4096  ;;  %s7713_s29 = scalar_lea.hbm %s11858_s0, 8192 }
  0x95   : > { %p7709_p10 = scmp.ne.s32.totalorder %s8098_s30, %s7708_s19  ;;  %p7710_p8 = pneg %p8100_p4 }
  0x96   : > { %p7714_p11 = scmp.lt.u32.totalorder %s8098_s30, %s11858_s0  ;;  %p7715_p12 = scmp.lt.u32.totalorder %s7713_s29, %s7708_s19 }
  0x97   : > { %p7711_p1 = pnand %p7710_p8, %p7709_p10  ;;  %p7717_p0 = scmp.lt.u32.totalorder %s7708_s19, %s8098_s30 }
  0x98   : > { %p7716_p13 = por %p7715_p12, %p7714_p11 }
  0x99   : > { %p7712_p3 = pneg %p7711_p1 }
  0x9a   : > { %p7718_p5 = por %p7717_p0, %p7716_p13 }
  0x9c   : > { %p7719_p7 = pnand %p7718_p5, %p7712_p3 }
  0x9e   : > { %7722 = shalt.err (!%p7719_p7)
}
  0x9f   : > { %s7723_s16 = scalar_lea.vmem %s8104_s7, 4096  ;;  %s7831_s9 = smov [#allocation2]  }
  0xa0   : > { %p7724_p10 = scmp.ne.s32.totalorder %s8104_s7, %s7723_s16  ;;  %s7728_s15 = sshll.u32 %s7831_s9, 4  ;;  %s7729_s15 = int_to_ptr.vmem [resolvable:$false] %s7728_s15 }
  0xa1   : > { %s7730_s18 = scalar_lea.vmem %s7729_s15, 8192  ;;  %p7731_p6 = scmp.lt.s32.totalorder %s8104_s7, %s7729_s15 }
  0xa2   : > { %p7726_p1 = pnand %p7724_p10, %p7710_p8  ;;  %p7732_p11 = scmp.lt.s32.totalorder %s7730_s18, %s7723_s16 }
  0xa4   : > { %p7727_p9 = pneg %p7726_p1  ;;  %p7733_p12 = por %p7732_p11, %p7731_p6 }
  0xa6   : > { %p7734_p13 = pnand %p7733_p12, %p7727_p9 }
  0xa8   : > { %7737 = shalt.err (!%p7734_p13)
}
  0xa9   : > { %s12040_s19 = smov 8   ;;  %s12041_s29 = smov 128  }
  0xaa   : > { %6837 = dma.hbm_to_vmem [thread:$0]  (!%p8100_p4), %s8098_s30, 4096, %s8104_s7, %s8106_s12, %s12041_s29, %s12041_s29, %s12040_s19  }
  0xab   : > { %p12042_p8 = scmp.ne.s32.totalorder %s12030_s28, 0 }
  0xad   : > { %439 = sbr.rel (%p12042_p8) target bundleno = 2567 (0xa07), region = 68 }
  0xb4   : > { %s8140_s11 = sand.u32 1, %s7808_s22  }
  0xb5   : > { %s6084_s16 = sshll.u32 %s8140_s11, 8  ;;  %s442_s9 = scalar_lea.sflag [#allocation3], %s8140_s11 }
  0xb6   : > { %s8146_s13 = scalar_lea.vmem [#allocation2], %s6084_s16 }
  0xb7   : > { %7783 = dma.done.wait (%p8080_p2), %s442_s9, 4096  }
  0xb8   : > { %7785 = vsyncadd (%p8080_p2), %s442_s9, 4294963200  ;;  %p12043_p6 = scmp.eq.s32.totalorder %s7922_s27, 0 }
  0xba   : > { %7787 = dma.done.wait (%p12043_p6), [#allocation6], 4096   ;;  %p12044_p9 = pmov %p12043_p6 }
  0xbb   : > { %p12045_p4 = pmov %p12043_p6 }
  0xbc   : > { %7789 = vsyncadd (%p12044_p9), [#allocation6], 4294963200 }
  0xbd   : > { %7791 = dma.done.wait (%p12045_p4), [#allocation9], 5120   ;;  %p12046_p3 = pmov %p12045_p4 }
  0xbf   : > { %7793 = vsyncadd (%p12046_p3), [#allocation9], 4294962176  ;;  %p12047_p0 = pmov %p12046_p3 }
  0xc1   : > { %7795 = dma.done.wait (%p12047_p0), [#allocation12], 4096   ;;  %p12048_p5 = pmov %p12047_p0 }
  0xc2   : > { %v8165_v0 = vld [vmem:[%s8146_s13] sm:$0xff]  ;;  %v8168_v1 = vld [vmem:[%s8146_s13 + $0x8] sm:$0xff]  ;;  %v8177_v4 = vld [vmem:[%s8146_s13 + $0x10] sm:$0xff]  ;;  %v7832_v42 = vmov 0   ;;  %vm1978_vm0 = vcmask 523264   ;;  %s12075_s29 = sld [smem:[#allocation129_spill]] }
  0xc3   : > { %7797 = vsyncadd (%p12048_p5), [#allocation12], 4294963200  ;;  %551 = vadd.xlane.f32.xlu0 %v8165_v0  ;;  %v648_v2 = vmul.f32 %v8165_v0, %v8165_v0  ;;  %v649_v3 = vmul.f32 %v8168_v1, %v8168_v1  ;;  %v8180_v5 = vld [vmem:[%s8146_s13 + $0x18] sm:$0xff]  ;;  %v650_v6 = vmul.f32 %v8177_v4, %v8177_v4  ;;  %v8189_v8 = vld [vmem:[%s8146_s13 + $0x20] sm:$0xff]  ;;  %1284 = vmatprep.mubr.bf16.mxu0 %v7832_v42  ;;  %s12082_s12 = sld [smem:[#allocation130_spill]]  ;;  %s12426_s19 = sld [smem:[#allocation131_spill]] }
  0xc4   : > { %v651_v7 = vmul.f32 %v8180_v5, %v8180_v5  ;;  %v8192_v9 = vld [vmem:[%s8146_s13 + $0x28] sm:$0xff]  ;;  %v6902_v10 = vld [vmem:[#allocation7 + $0x4] ss:$12 sps:$4 sm:$0xff]   ;;  %v652_v12 = vmul.f32 %v8189_v8, %v8189_v8  ;;  %v8204_v17 = vld [vmem:[%s8146_s13 + $0x38] sm:$0xff]  ;;  %1404 = vmatprep.mubr.bf16.mxu1 %v7832_v42  ;;  %s11698_s9 = scalar_lea.vmem [#allocation13], %s6084_s16  ;;  %s6217_s16 = sshll.u32 %s7922_s27, 12 }
  0xc5   : > { %680 = vadd.xlane.f32.xlu1 %v648_v2  ;;  %v6904_v11 = vld [vmem:[#allocation7] ss:$12 sps:$4 sm:$0xff]   ;;  %1252 = vmatprep.subr.bf16.mxu0 %v6902_v10  ;;  %v6905_v13 = vld [vmem:[#allocation7 + $0x1c] ss:$12 sps:$4 sm:$0xff]   ;;  %v653_v14 = vmul.f32 %v8192_v9, %v8192_v9  ;;  %v6907_v15 = vld [vmem:[#allocation7 + $0x18] ss:$12 sps:$4 sm:$0xff]   ;;  %v655_v21 = vmul.f32 %v8204_v17, %v8204_v17 }
  0xc6   : > { %6778 = vmatprep.subr.bf16.mxu1 %v6902_v10  ;;  %1253 = vmatpush1.bf16.msra.mxu0 %v6904_v11  ;;  %v8201_v16 = vld [vmem:[%s8146_s13 + $0x30] sm:$0xff]  ;;  %v6911_v22 = vld [vmem:[#allocation7 + $0x4c] ss:$12 sps:$4 sm:$0xff]   ;;  %v8213_v23 = vld [vmem:[%s8146_s13 + $0x40] sm:$0xff]  ;;  %s12467_s30 = sld [smem:[#allocation132_spill]]  ;;  %p12469_p7 = scmp.ne.s32.totalorder %s12037_s17, 0 }
  0xc7   : > { %553 = vadd.xlane.f32.xlu0 %v8168_v1  ;;  %6786 = vmatpush1.bf16.msra.mxu1 %v6904_v11  ;;  %v6908_v18 = vld [vmem:[#allocation7 + $0x34] ss:$12 sps:$4 sm:$0xff]   ;;  %v6910_v19 = vld [vmem:[#allocation7 + $0x30] ss:$12 sps:$4 sm:$0xff]   ;;  %v654_v20 = vmul.f32 %v8201_v16, %v8201_v16  ;;  %v8216_v25 = vld [vmem:[%s8146_s13 + $0x48] sm:$0xff]  ;;  %v656_v28 = vmul.f32 %v8213_v23, %v8213_v23  ;;  %s7833_s15 = smov [#allocation13]  }
  0xc8   : > { %1254 = vmatprep.subr.bf16.mxu0 %v6905_v13  ;;  %6779 = vmatprep.subr.bf16.mxu1 %v6905_v13  ;;  %v6913_v24 = vld [vmem:[#allocation7 + $0x48] ss:$12 sps:$4 sm:$0xff]   ;;  %v6914_v26 = vld [vmem:[#allocation7 + $0x64] ss:$12 sps:$4 sm:$0xff]   ;;  %v6916_v27 = vld [vmem:[#allocation7 + $0x60] ss:$12 sps:$4 sm:$0xff]   ;;  %v657_v29 = vmul.f32 %v8216_v25, %v8216_v25 }
  0xc9   : > { %682 = vadd.xlane.f32.xlu1 %v649_v3  ;;  %v6917_v30 = vld [vmem:[#allocation7 + $0x7c] ss:$12 sps:$4 sm:$0xff]   ;;  %v6919_v31 = vld [vmem:[#allocation7 + $0x78] ss:$12 sps:$4 sm:$0xff]   ;;  %v8225_v32 = vld [vmem:[%s8146_s13 + $0x50] sm:$0xff]  ;;  %s7742_s18 = sshll.u32 %s7833_s15, 4  ;;  %s7743_s18 = int_to_ptr.vmem [resolvable:$false] %s7742_s18 }
  0xca   : > { %1255 = vmatpush1.bf16.msra.mxu0 %v6907_v15  ;;  %v6920_v33 = vld [vmem:[#allocation7 + $0x94] ss:$12 sps:$4 sm:$0xff]   ;;  %v8228_v34 = vld [vmem:[%s8146_s13 + $0x58] sm:$0xff]  ;;  %v658_v36 = vmul.f32 %v8225_v32, %v8225_v32  ;;  %v8240_v41 = vld [vmem:[%s8146_s13 + $0x68] sm:$0xff] }
  0xcb   : > { %555 = vadd.xlane.f32.xlu0 %v8177_v4  ;;  %6787 = vmatpush1.bf16.msra.mxu1 %v6907_v15  ;;  %v6922_v35 = vld [vmem:[#allocation7 + $0x90] ss:$12 sps:$4 sm:$0xff]   ;;  %v659_v37 = vmul.f32 %v8228_v34, %v8228_v34  ;;  %v6923_v38 = vld [vmem:[#allocation7 + $0xac] ss:$12 sps:$4 sm:$0xff]   ;;  %v8237_v39 = vld [vmem:[%s8146_s13 + $0x60] sm:$0xff]  ;;  %v661_v44 = vmul.f32 %v8240_v41, %v8240_v41 }
  0xcc   : > { %1256 = vmatprep.subr.bf16.mxu0 %v6908_v18  ;;  %6780 = vmatprep.subr.bf16.mxu1 %v6908_v18  ;;  %v6925_v40 = vld [vmem:[#allocation7 + $0xa8] ss:$12 sps:$4 sm:$0xff]   ;;  %v660_v43 = vmul.f32 %v8237_v39, %v8237_v39  ;;  %v8254_v46 = vld [vmem:[%s8146_s13 + $0x78] sm:$0xff]  ;;  %v8263_v49 = vld [vmem:[%s8146_s13 + $0x80] sm:$0xff]  ;;  %s11809_s7 = scalar_lea.hbm %s12467_s30, %s6217_s16 }
  0xcd   : > { %557 = vadd.xlane.f32.xlu1 %v8180_v5  ;;  %v8251_v45 = vld [vmem:[%s8146_s13 + $0x70] sm:$0xff]  ;;  %v663_v48 = vmul.f32 %v8254_v46, %v8254_v46  ;;  %v8266_v50 = vld [vmem:[%s8146_s13 + $0x88] sm:$0xff]  ;;  %v664_v51 = vmul.f32 %v8263_v49, %v8263_v49  ;;  %v8278_v54 = vld [vmem:[%s8146_s13 + $0x98] sm:$0xff] }
  0xce   : > { %1257 = vmatpush1.bf16.msra.mxu0 %v6910_v19  ;;  %v662_v47 = vmul.f32 %v8251_v45, %v8251_v45  ;;  %v665_v52 = vmul.f32 %v8266_v50, %v8266_v50  ;;  %v8275_v53 = vld [vmem:[%s8146_s13 + $0x90] sm:$0xff]  ;;  %v667_v56 = vmul.f32 %v8278_v54, %v8278_v54  ;;  %v8287_v57 = vld [vmem:[%s8146_s13 + $0xa0] sm:$0xff]  ;;  %v8290_v58 = vld [vmem:[%s8146_s13 + $0xa8] sm:$0xff] }
  0xcf   : > { %684 = vadd.xlane.f32.xlu0 %v650_v6  ;;  %6788 = vmatpush1.bf16.msra.mxu1 %v6910_v19  ;;  %v666_v55 = vmul.f32 %v8275_v53, %v8275_v53  ;;  %v668_v59 = vmul.f32 %v8287_v57, %v8287_v57  ;;  %v669_v60 = vmul.f32 %v8290_v58, %v8290_v58  ;;  %v8299_v61 = vld [vmem:[%s8146_s13 + $0xb0] sm:$0xff]  ;;  %v8302_v62 = vld [vmem:[%s8146_s13 + $0xb8] sm:$0xff]  ;;  %v8311_v3 = vld [vmem:[%s8146_s13 + $0xc0] sm:$0xff] }
  0xd0   : > { %1258 = vmatprep.subr.bf16.mxu0 %v6911_v22  ;;  %6781 = vmatprep.subr.bf16.mxu1 %v6911_v22  ;;  %v670_v63 = vmul.f32 %v8299_v61, %v8299_v61  ;;  %v671_v2 = vmul.f32 %v8302_v62, %v8302_v62  ;;  %v8314_v6 = vld [vmem:[%s8146_s13 + $0xc8] sm:$0xff]  ;;  %v8323_v11 = vld [vmem:[%s8146_s13 + $0xd0] sm:$0xff]  ;;  %v8335_v15 = vld [vmem:[%s8146_s13 + $0xe0] sm:$0xff] }
  0xd1   : > { %686 = vadd.xlane.f32.xlu1 %v651_v7  ;;  %v672_v7 = vmul.f32 %v8311_v3, %v8311_v3  ;;  %v673_v10 = vmul.f32 %v8314_v6, %v8314_v6  ;;  %v674_v13 = vmul.f32 %v8323_v11, %v8323_v11  ;;  %v8338_v18 = vld [vmem:[%s8146_s13 + $0xe8] sm:$0xff]  ;;  %v676_v19 = vmul.f32 %v8335_v15, %v8335_v15  ;;  %v8350_v22 = vld [vmem:[%s8146_s13 + $0xf8] sm:$0xff] }
  0xd2   : > { %1259 = vmatpush1.bf16.msra.mxu0 %v6913_v24 }
  0xd3   : > { %559 = vadd.xlane.f32.xlu0 %v8189_v8  ;;  %6789 = vmatpush1.bf16.msra.mxu1 %v6913_v24 }
  0xd4   : > { %1260 = vmatprep.subr.bf16.mxu0 %v6914_v26  ;;  %6782 = vmatprep.subr.bf16.mxu1 %v6914_v26  ;;  %v679_v26 = vmul.f32 %v8350_v22, %v8350_v22 }
  0xd5   : > { %561 = vadd.xlane.f32.xlu1 %v8192_v9 }
  0xd6   : > { %1261 = vmatpush1.bf16.msra.mxu0 %v6916_v27 }
  0xd7   : > { %688 = vadd.xlane.f32.xlu0 %v652_v12  ;;  %6790 = vmatpush1.bf16.msra.mxu1 %v6916_v27  ;;  %v8326_v12 = vld [vmem:[%s8146_s13 + $0xd8] sm:$0xff] }
  0xd8   : > { %1262 = vmatprep.subr.bf16.mxu0 %v6917_v30  ;;  %6783 = vmatprep.subr.bf16.mxu1 %v6917_v30 }
  0xd9   : > { %690 = vadd.xlane.f32.xlu1 %v653_v14  ;;  %v675_v14 = vmul.f32 %v8326_v12, %v8326_v12 }
  0xda   : > { %1263 = vmatpush1.bf16.msra.mxu0 %v6919_v31 }
  0xdb   : > { %563 = vadd.xlane.f32.xlu0 %v8201_v16  ;;  %6791 = vmatpush1.bf16.msra.mxu1 %v6919_v31 }
  0xdc   : > { %1264 = vmatprep.subr.bf16.mxu0 %v6920_v33  ;;  %6784 = vmatprep.subr.bf16.mxu1 %v6920_v33 }
  0xdd   : > { %565 = vadd.xlane.f32.xlu1 %v8204_v17 }
  0xde   : > { %1265 = vmatpush1.bf16.msra.mxu0 %v6922_v35 }
  0xdf   : > { %692 = vadd.xlane.f32.xlu0 %v654_v20  ;;  %6792 = vmatpush1.bf16.msra.mxu1 %v6922_v35  ;;  %v677_v20 = vmul.f32 %v8338_v18, %v8338_v18 }
  0xe0   : > { %1266 = vmatprep.subr.bf16.mxu0 %v6923_v38  ;;  %6785 = vmatprep.subr.bf16.mxu1 %v6923_v38 }
  0xe1   : > { %694 = vadd.xlane.f32.xlu1 %v655_v21  ;;  %v8347_v21 = vld [vmem:[%s8146_s13 + $0xf0] sm:$0xff] }
  0xe2   : > { %1267 = vmatpush1.bf16.msra.mxu0 %v6925_v40  ;;  %v678_v24 = vmul.f32 %v8347_v21, %v8347_v21 }
  0xe3   : > { %567 = vadd.xlane.f32.xlu0 %v8213_v23  ;;  %6793 = vmatpush1.bf16.msra.mxu1 %v6925_v40 }
  0xe5   : > { %569 = vadd.xlane.f32.xlu1 %v8216_v25 }
  0xe7   : > { %696 = vadd.xlane.f32.xlu0 %v656_v28 }
  0xe9   : > { %698 = vadd.xlane.f32.xlu1 %v657_v29  ;;  %v8358_v29 = vld [vmem:[#allocation7 + $0x8] ss:$12 sps:$4 sm:$0xff]  }
  0xea   : > { %6554 = vmatprep.subr.bf16.mxu1 %v8358_v29 }
  0xeb   : > { %571 = vadd.xlane.f32.xlu0 %v8225_v32 }
  0xed   : > { %573 = vadd.xlane.f32.xlu1 %v8228_v34 }
  0xef   : > { %700 = vadd.xlane.f32.xlu0 %v658_v36 }
  0xf1   : > { %702 = vadd.xlane.f32.xlu1 %v659_v37 }
  0xf3   : > { %575 = vadd.xlane.f32.xlu0 %v8237_v39 }
  0xf5   : > { %577 = vadd.xlane.f32.xlu1 %v8240_v41 }
  0xf7   : > { %704 = vadd.xlane.f32.xlu0 %v660_v43 }
  0xf9   : > { %706 = vadd.xlane.f32.xlu1 %v661_v44 }
  0xfb   : > { %579 = vadd.xlane.f32.xlu0 %v8251_v45 }
  0xfd   : > { %581 = vadd.xlane.f32.xlu1 %v8254_v46 }
  0xff   : > { %708 = vadd.xlane.f32.xlu0 %v662_v47 }
 0x101   : > { %710 = vadd.xlane.f32.xlu1 %v663_v48 }
 0x103   : > { %583 = vadd.xlane.f32.xlu0 %v8263_v49 }
 0x105   : > { %585 = vadd.xlane.f32.xlu1 %v8266_v50 }
 0x107   : > { %712 = vadd.xlane.f32.xlu0 %v664_v51 }
 0x109   : > { %714 = vadd.xlane.f32.xlu1 %v665_v52 }
 0x10b   : > { %587 = vadd.xlane.f32.xlu0 %v8275_v53 }
 0x10d   : > { %589 = vadd.xlane.f32.xlu1 %v8278_v54 }
 0x10f   : > { %716 = vadd.xlane.f32.xlu0 %v666_v55 }
 0x111   : > { %718 = vadd.xlane.f32.xlu1 %v667_v56 }
 0x113   : > { %591 = vadd.xlane.f32.xlu0 %v8287_v57 }
 0x115   : > { %593 = vadd.xlane.f32.xlu1 %v8290_v58 }
 0x117   : > { %720 = vadd.xlane.f32.xlu0 %v668_v59 }
 0x119   : > { %722 = vadd.xlane.f32.xlu1 %v669_v60 }
 0x11b   : > { %595 = vadd.xlane.f32.xlu0 %v8299_v61 }
 0x11d   : > { %597 = vadd.xlane.f32.xlu1 %v8302_v62 }
 0x11f   : > { %724 = vadd.xlane.f32.xlu0 %v670_v63 }
 0x121   : > { %726 = vadd.xlane.f32.xlu1 %v671_v2 }
 0x123   : > { %599 = vadd.xlane.f32.xlu0 %v8311_v3 }
 0x125   : > { %601 = vadd.xlane.f32.xlu1 %v8314_v6 }
 0x127   : > { %728 = vadd.xlane.f32.xlu0 %v672_v7 }
 0x129   : > { %730 = vadd.xlane.f32.xlu1 %v673_v10 }
 0x12b   : > { %603 = vadd.xlane.f32.xlu0 %v8323_v11 }
 0x12d   : > { %605 = vadd.xlane.f32.xlu1 %v8326_v12 }
 0x12f   : > { %732 = vadd.xlane.f32.xlu0 %v674_v13 }
 0x131   : > { %734 = vadd.xlane.f32.xlu1 %v675_v14 }
 0x133   : > { %607 = vadd.xlane.f32.xlu0 %v8335_v15 }
 0x135   : > { %609 = vadd.xlane.f32.xlu1 %v8338_v18 }
 0x137   : > { %736 = vadd.xlane.f32.xlu0 %v676_v19 }
 0x139   : > { %738 = vadd.xlane.f32.xlu1 %v677_v20 }
 0x13b   : > { %611 = vadd.xlane.f32.xlu0 %v8347_v21 }
 0x13d   : > { %613 = vadd.xlane.f32.xlu1 %v8350_v22 }
 0x13f   : > { %740 = vadd.xlane.f32.xlu0 %v678_v24 }
 0x141   : > { %742 = vadd.xlane.f32.xlu1 %v679_v26 }
 0x150   : > { %v552_v27 = vpop.xlane.xlu0 %551 }
 0x151   : > { %v616_v28 = vmul.f32 0.0078125, %v552_v27 }
 0x152   : > { %v681_v30 = vpop.xlane.xlu1 %680 }
 0x153   : > { %v776_v31 = vmul.f32 %v616_v28, %v616_v28  ;;  %v744_v33 = vmul.f32 0.0078125, %v681_v30 }
 0x154   : > { %v554_v35 = vpop.xlane.xlu0 %553 }
 0x155   : > { %v808_v36 = vsub.f32 %v744_v33, %v776_v31  ;;  %v617_v37 = vmul.f32 0.0078125, %v554_v35 }
 0x156   : > { %v683_v38 = vpop.xlane.xlu1 %682 }
 0x157   : > { %v840_v40 = vmax.f32 %v808_v36, 0.0  ;;  %v777_v43 = vmul.f32 %v617_v37, %v617_v37  ;;  %v745_v44 = vmul.f32 0.0078125, %v683_v38  ;;  %v872_v36 = vsub.f32 %v8165_v0, %v616_v28 }
 0x158   : > { %v556_v47 = vpop.xlane.xlu0 %555  ;;  %v873_v0 = vsub.f32 %v8168_v1, %v617_v37 }
 0x159   : > { %v904_v48 = vadd.f32 1e-05, %v840_v40  ;;  %v809_v51 = vsub.f32 %v745_v44, %v777_v43  ;;  %v8361_v52 = vmul.f32 0.0078125, %v556_v47 }
 0x15a   : > { %v558_v55 = vpop.xlane.xlu1 %557 }
 0x15b   : > { %7022 = vrsqrt.f32 %v904_v48  ;;  %v841_v56 = vmax.f32 %v809_v51, 0.0  ;;  %v778_v59 = vmul.f32 %v8361_v52, %v8361_v52  ;;  %v8365_v60 = vmul.f32 0.0078125, %v558_v55 }
 0x15c   : > { %v685_v63 = vpop.xlane.xlu0 %684 }
 0x15d   : > { %v905_v2 = vadd.f32 1e-05, %v841_v56  ;;  %v746_v7 = vmul.f32 0.0078125, %v685_v63  ;;  %v779_v13 = vmul.f32 %v8365_v60, %v8365_v60  ;;  %v8381_v63 = vld [vmem:[%s11862_s4] ss:$0 sm:$0xff] }
 0x15e   : > { %v687_v10 = vpop.xlane.xlu1 %686 }
 0x15f   : > { %7024 = vrsqrt.f32 %v905_v2  ;;  %v810_v14 = vsub.f32 %v746_v7, %v778_v59  ;;  %v747_v19 = vmul.f32 0.0078125, %v687_v10 }
 0x160   : > { %v560_v20 = vpop.xlane.xlu0 %559 }
 0x161   : > { %v842_v24 = vmax.f32 %v810_v14, 0.0  ;;  %v811_v26 = vsub.f32 %v747_v19, %v779_v13  ;;  %v8369_v27 = vmul.f32 0.0078125, %v560_v20 }
 0x162   : > { %v562_v30 = vpop.xlane.xlu1 %561 }
 0x163   : > { %v906_v31 = vadd.f32 1e-05, %v842_v24  ;;  %v843_v33 = vmax.f32 %v811_v26, 0.0  ;;  %v780_v35 = vmul.f32 %v8369_v27, %v8369_v27  ;;  %v8374_v38 = vmul.f32 0.0078125, %v562_v30 }
 0x164   : > { %v689_v40 = vpop.xlane.xlu0 %688 }
 0x165   : > { %v7023_v43 = vpop.eup %7022  ;;  %7026 = vrsqrt.f32 %v906_v31  ;;  %v907_v44 = vadd.f32 1e-05, %v843_v33  ;;  %v748_v47 = vmul.f32 0.0078125, %v689_v40  ;;  %v781_v55 = vmul.f32 %v8374_v38, %v8374_v38  ;;  %v8392_v31 = vld [vmem:[%s11863_s5] ss:$0 sm:$0xff] }
 0x166   : > { %v691_v48 = vpop.xlane.xlu1 %690  ;;  %v968_v51 = vmul.f32 %v7023_v43, %v872_v36  ;;  %v874_v40 = vsub.f32 %v8177_v4, %v8361_v52 }
 0x167   : > { %7028 = vrsqrt.f32 %v907_v44  ;;  %v812_v56 = vsub.f32 %v748_v47, %v780_v35  ;;  %v749_v59 = vmul.f32 0.0078125, %v691_v48 }
 0x168   : > { %v564_v28 = vpop.xlane.xlu0 %563  ;;  %v1006_v20 = vmul.f32 %v8381_v63, %v968_v51 }
 0x169   : > { %v7025_v2 = vpop.eup %7024  ;;  %v844_v7 = vmax.f32 %v812_v56, 0.0  ;;  %v813_v10 = vsub.f32 %v749_v59, %v781_v55  ;;  %v8384_v13 = vmul.f32 0.0078125, %v564_v28  ;;  %v875_v59 = vsub.f32 %v8180_v5, %v8365_v60 }
 0x16a   : > { %v566_v14 = vpop.xlane.xlu1 %565  ;;  %v969_v19 = vmul.f32 %v7025_v2, %v873_v0  ;;  %v1044_v44 = vadd.f32 %v8392_v31, %v1006_v20 }
 0x16b   : > { %v908_v24 = vadd.f32 1e-05, %v844_v7  ;;  %v845_v26 = vmax.f32 %v813_v10, 0.0  ;;  %v782_v30 = vmul.f32 %v8384_v13, %v8384_v13  ;;  %v8394_v1 = vmul.f32 0.0078125, %v566_v14 }
 0x16c   : > { %v693_v37 = vpop.xlane.xlu0 %692  ;;  %v1007_v33 = vmul.f32 %v8381_v63, %v969_v19 }
 0x16d   : > { %7030 = vrsqrt.f32 %v908_v24  ;;  %v909_v35 = vadd.f32 1e-05, %v845_v26  ;;  %v750_v36 = vmul.f32 0.0078125, %v693_v37  ;;  %v783_v51 = vmul.f32 %v8394_v1, %v8394_v1 }
 0x16e   : > { %v695_v43 = vpop.xlane.xlu1 %694  ;;  %v1045_v47 = vadd.f32 %v8392_v31, %v1007_v33 }
 0x16f   : > { %v7027_v48 = vpop.eup %7026  ;;  %7032 = vrsqrt.f32 %v909_v35  ;;  %v814_v55 = vsub.f32 %v750_v36, %v782_v30  ;;  %v751_v56 = vmul.f32 0.0078125, %v695_v43  ;;  %v876_v36 = vsub.f32 %v8189_v8, %v8369_v27 }
 0x170   : > { %v568_v0 = vpop.xlane.xlu0 %567  ;;  %v8405_v28 = vpack.c.bf16 %v1045_v47, %v1044_v44  ;;  %v970_v2 = vmul.f32 %v7027_v48, %v874_v40 }
 0x171   : > { %v7029_v4 = vpop.eup %7028  ;;  %v846_v52 = vmax.f32 %v814_v55, 0.0  ;;  %v815_v7 = vsub.f32 %v751_v56, %v783_v51  ;;  %v8407_v10 = vmul.f32 0.0078125, %v568_v0  ;;  %v877_v56 = vsub.f32 %v8192_v9, %v8374_v38 }
 0x172   : > { %1285 = vmatmul.mubr.bf16.vlgmr.msra.gmra.mrb[0].mxu0 %v8405_v28  ;;  %v570_v14 = vpop.xlane.xlu1 %569  ;;  %v971_v19 = vmul.f32 %v7029_v4, %v875_v59  ;;  %v1008_v20 = vmul.f32 %v8381_v63, %v970_v2 }
 0x173   : > { %v910_v24 = vadd.f32 1e-05, %v846_v52  ;;  %v847_v26 = vmax.f32 %v815_v7, 0.0  ;;  %v784_v5 = vmul.f32 %v8407_v10, %v8407_v10  ;;  %1294 = vmatprep.mubr.bf16.mxu0 %v7832_v42  ;;  %v8414_v60 = vmul.f32 0.0078125, %v570_v14 }
 0x174   : > { %v697_v30 = vpop.xlane.xlu0 %696  ;;  %v1009_v37 = vmul.f32 %v8381_v63, %v971_v19  ;;  %v1046_v44 = vadd.f32 %v8392_v31, %v1008_v20 }
 0x175   : > { %7034 = vrsqrt.f32 %v910_v24  ;;  %v911_v33 = vadd.f32 1e-05, %v847_v26  ;;  %v752_v35 = vmul.f32 0.0078125, %v697_v30  ;;  %v785_v40 = vmul.f32 %v8414_v60, %v8414_v60 }
 0x176   : > { %v699_v43 = vpop.xlane.xlu1 %698  ;;  %v1047_v47 = vadd.f32 %v8392_v31, %v1009_v37 }
 0x177   : > { %v7031_v48 = vpop.eup %7030  ;;  %7036 = vrsqrt.f32 %v911_v33  ;;  %v816_v51 = vsub.f32 %v752_v35, %v784_v5  ;;  %v753_v55 = vmul.f32 0.0078125, %v699_v43  ;;  %v878_v33 = vsub.f32 %v8201_v16, %v8384_v13 }
 0x178   : > { %v572_v59 = vpop.xlane.xlu0 %571  ;;  %v8425_v0 = vpack.c.bf16 %v1047_v47, %v1046_v44  ;;  %v972_v2 = vmul.f32 %v7031_v48, %v876_v36 }
 0x179   : > { %v7033_v8 = vpop.eup %7032  ;;  %v848_v27 = vmax.f32 %v816_v51, 0.0  ;;  %v817_v4 = vsub.f32 %v753_v55, %v785_v40  ;;  %v8427_v52 = vmul.f32 0.0078125, %v572_v59  ;;  %v879_v51 = vsub.f32 %v8204_v17, %v8394_v1 }
 0x17a   : > { %1295 = vmatmul.mubr.bf16.gmra.mrb[4].mxu0 %v8425_v0  ;;  %v574_v7 = vpop.xlane.xlu1 %573  ;;  %v973_v14 = vmul.f32 %v7033_v8, %v877_v56  ;;  %v1010_v19 = vmul.f32 %v8381_v63, %v972_v2  ;;  %v880_v1 = vsub.f32 %v8213_v23, %v8407_v10 }
 0x17b   : > { %v912_v20 = vadd.f32 1e-05, %v848_v27  ;;  %v849_v24 = vmax.f32 %v817_v4, 0.0  ;;  %v786_v9 = vmul.f32 %v8427_v52, %v8427_v52  ;;  %1304 = vmatprep.mubr.bf16.mxu0 %v7832_v42  ;;  %v8434_v38 = vmul.f32 0.0078125, %v574_v7 }
 0x17c   : > { %v701_v26 = vpop.xlane.xlu0 %700  ;;  %v1011_v5 = vmul.f32 %v8381_v63, %v973_v14  ;;  %v1048_v40 = vadd.f32 %v8392_v31, %v1010_v19 }
 0x17d   : > { %7038 = vrsqrt.f32 %v912_v20  ;;  %v913_v30 = vadd.f32 1e-05, %v849_v24  ;;  %v754_v37 = vmul.f32 0.0078125, %v701_v26  ;;  %v787_v35 = vmul.f32 %v8434_v38, %v8434_v38 }
 0x17e   : > { %v703_v36 = vpop.xlane.xlu1 %702  ;;  %v1049_v43 = vadd.f32 %v8392_v31, %v1011_v5 }
 0x17f   : > { %v7035_v44 = vpop.eup %7034  ;;  %7040 = vrsqrt.f32 %v913_v30  ;;  %v818_v47 = vsub.f32 %v754_v37, %v786_v9  ;;  %v755_v48 = vmul.f32 0.0078125, %v703_v36  ;;  %v881_v30 = vsub.f32 %v8216_v25, %v8414_v60 }
 0x180   : > { %v576_v55 = vpop.xlane.xlu0 %575  ;;  %v8445_v56 = vpack.c.bf16 %v1049_v43, %v1048_v40  ;;  %v974_v59 = vmul.f32 %v7035_v44, %v878_v33 }
 0x181   : > { %v7037_v16 = vpop.eup %7036  ;;  %v850_v13 = vmax.f32 %v818_v47, 0.0  ;;  %v819_v2 = vsub.f32 %v755_v48, %v787_v35  ;;  %v8447_v8 = vmul.f32 0.0078125, %v576_v55 }
 0x182   : > { %1305 = vmatmul.mubr.bf16.gmra.mrb[8].mxu0 %v8445_v56  ;;  %v578_v27 = vpop.xlane.xlu1 %577  ;;  %v975_v4 = vmul.f32 %v7037_v16, %v879_v51  ;;  %v1012_v7 = vmul.f32 %v8381_v63, %v974_v59 }
 0x183   : > { %v914_v14 = vadd.f32 1e-05, %v850_v13  ;;  %v851_v19 = vmax.f32 %v819_v2, 0.0  ;;  %v788_v17 = vmul.f32 %v8447_v8, %v8447_v8  ;;  %1314 = vmatprep.mubr.bf16.mxu0 %v7832_v42  ;;  %v8456_v20 = vmul.f32 0.0078125, %v578_v27 }
 0x184   : > { %v705_v24 = vpop.xlane.xlu0 %704  ;;  %v1013_v9 = vmul.f32 %v8381_v63, %v975_v4  ;;  %v1050_v35 = vadd.f32 %v8392_v31, %v1012_v7  ;;  %v882_v4 = vsub.f32 %v8225_v32, %v8427_v52 }
 0x185   : > { %7042 = vrsqrt.f32 %v914_v14  ;;  %v915_v26 = vadd.f32 1e-05, %v851_v19  ;;  %v756_v5 = vmul.f32 0.0078125, %v705_v24  ;;  %v789_v37 = vmul.f32 %v8456_v20, %v8456_v20 }
 0x186   : > { %v707_v33 = vpop.xlane.xlu1 %706  ;;  %v1051_v36 = vadd.f32 %v8392_v31, %v1013_v9  ;;  %v883_v9 = vsub.f32 %v8228_v34, %v8434_v38 }
 0x187   : > { %v7039_v23 = vpop.eup %7038  ;;  %7044 = vrsqrt.f32 %v915_v26  ;;  %v820_v10 = vsub.f32 %v756_v5, %v788_v17  ;;  %v757_v40 = vmul.f32 0.0078125, %v707_v33 }
 0x188   : > { %v580_v43 = vpop.xlane.xlu0 %579  ;;  %v8465_v44 = vpack.c.bf16 %v1051_v36, %v1050_v35  ;;  %v976_v47 = vmul.f32 %v7039_v23, %v880_v1 }
 0x189   : > { %v7041_v48 = vpop.eup %7040  ;;  %v852_v51 = vmax.f32 %v820_v10, 0.0  ;;  %v821_v55 = vsub.f32 %v757_v40, %v789_v37  ;;  %v8467_v25 = vmul.f32 0.0078125, %v580_v43 }
 0x18a   : > { %1315 = vmatmul.mubr.bf16.gmra.mrb[12].mxu0 %v8465_v44  ;;  %v582_v60 = vpop.xlane.xlu1 %581  ;;  %v977_v59 = vmul.f32 %v7041_v48, %v881_v30  ;;  %v1014_v16 = vmul.f32 %v8381_v63, %v976_v47 }
 0x18b   : > { %v916_v13 = vadd.f32 1e-05, %v852_v51  ;;  %v853_v2 = vmax.f32 %v821_v55, 0.0  ;;  %v790_v27 = vmul.f32 %v8467_v25, %v8467_v25  ;;  %1324 = vmatprep.mubr.bf16.mxu0 %v7832_v42  ;;  %v8476_v7 = vmul.f32 0.0078125, %v582_v60 }
 0x18c   : > { %v709_v14 = vpop.xlane.xlu0 %708  ;;  %v1015_v19 = vmul.f32 %v8381_v63, %v977_v59  ;;  %v1052_v17 = vadd.f32 %v8392_v31, %v1014_v16  ;;  %v884_v60 = vsub.f32 %v8237_v39, %v8447_v8 }
 0x18d   : > { %7046 = vrsqrt.f32 %v916_v13  ;;  %v917_v1 = vadd.f32 1e-05, %v853_v2  ;;  %v758_v24 = vmul.f32 0.0078125, %v709_v14  ;;  %v791_v26 = vmul.f32 %v8476_v7, %v8476_v7 }
 0x18e   : > { %v711_v5 = vpop.xlane.xlu1 %710  ;;  %v1053_v30 = vadd.f32 %v8392_v31, %v1015_v19  ;;  %v885_v14 = vsub.f32 %v8240_v41, %v8456_v20 }
 0x18f   : > { %v7043_v32 = vpop.eup %7042  ;;  %7048 = vrsqrt.f32 %v917_v1  ;;  %v822_v52 = vsub.f32 %v758_v24, %v790_v27  ;;  %v759_v37 = vmul.f32 0.0078125, %v711_v5 }
 0x190   : > { %v584_v33 = vpop.xlane.xlu0 %583  ;;  %v8485_v35 = vpack.c.bf16 %v1053_v30, %v1052_v17  ;;  %v978_v36 = vmul.f32 %v7043_v32, %v882_v4 }
 0x191   : > { %v7045_v23 = vpop.eup %7044  ;;  %v854_v10 = vmax.f32 %v822_v52, 0.0  ;;  %v823_v40 = vsub.f32 %v759_v37, %v791_v26  ;;  %v8487_v43 = vmul.f32 0.0078125, %v584_v33 }
 0x192   : > { %1325 = vmatmul.mubr.bf16.gmra.mrb[16].mxu0 %v8485_v35  ;;  %v586_v34 = vpop.xlane.xlu1 %585  ;;  %v979_v38 = vmul.f32 %v7045_v23, %v883_v9  ;;  %v1016_v47 = vmul.f32 %v8381_v63, %v978_v36 }
 0x193   : > { %v918_v48 = vadd.f32 1e-05, %v854_v10  ;;  %v855_v51 = vmax.f32 %v823_v40, 0.0  ;;  %v792_v55 = vmul.f32 %v8487_v43, %v8487_v43  ;;  %1334 = vmatprep.mubr.bf16.mxu0 %v7832_v42  ;;  %v8496_v59 = vmul.f32 0.0078125, %v586_v34 }
 0x194   : > { %v713_v16 = vpop.xlane.xlu0 %712  ;;  %v1017_v13 = vmul.f32 %v8381_v63, %v979_v38  ;;  %v1054_v2 = vadd.f32 %v8392_v31, %v1016_v47  ;;  %v886_v40 = vsub.f32 %v8251_v45, %v8467_v25 }
 0x195   : > { %7050 = vrsqrt.f32 %v918_v48  ;;  %v919_v27 = vadd.f32 1e-05, %v855_v51  ;;  %v760_v4 = vmul.f32 0.0078125, %v713_v16  ;;  %v793_v19 = vmul.f32 %v8496_v59, %v8496_v59 }
 0x196   : > { %v715_v17 = vpop.xlane.xlu1 %714  ;;  %v1055_v1 = vadd.f32 %v8392_v31, %v1017_v13 }
 0x197   : > { %v7047_v39 = vpop.eup %7046  ;;  %7052 = vrsqrt.f32 %v919_v27  ;;  %v824_v8 = vsub.f32 %v760_v4, %v792_v55  ;;  %v761_v24 = vmul.f32 0.0078125, %v715_v17 }
 0x198   : > { %v588_v9 = vpop.xlane.xlu0 %587  ;;  %v8505_v26 = vpack.c.bf16 %v1055_v1, %v1054_v2  ;;  %v980_v5 = vmul.f32 %v7047_v39, %v884_v60  ;;  %v887_v60 = vsub.f32 %v8254_v46, %v8476_v7 }
 0x199   : > { %v7049_v30 = vpop.eup %7048  ;;  %v856_v32 = vmax.f32 %v824_v8, 0.0  ;;  %v825_v52 = vsub.f32 %v761_v24, %v793_v19  ;;  %v8507_v37 = vmul.f32 0.0078125, %v588_v9 }
 0x19a   : > { %1335 = vmatmul.mubr.bf16.gmra.mrb[20].mxu0 %v8505_v26  ;;  %v590_v41 = vpop.xlane.xlu1 %589  ;;  %v981_v20 = vmul.f32 %v7049_v30, %v885_v14  ;;  %v1018_v33 = vmul.f32 %v8381_v63, %v980_v5 }
 0x19b   : > { %v920_v36 = vadd.f32 1e-05, %v856_v32  ;;  %v857_v23 = vmax.f32 %v825_v52, 0.0  ;;  %v794_v10 = vmul.f32 %v8507_v37, %v8507_v37  ;;  %1344 = vmatprep.mubr.bf16.mxu0 %v7832_v42  ;;  %v8516_v34 = vmul.f32 0.0078125, %v590_v41 }
 0x19c   : > { %v717_v38 = vpop.xlane.xlu0 %716  ;;  %v1019_v47 = vmul.f32 %v8381_v63, %v981_v20  ;;  %v1056_v48 = vadd.f32 %v8392_v31, %v1018_v33  ;;  %v888_v32 = vsub.f32 %v8263_v49, %v8487_v43 }
 0x19d   : > { %7054 = vrsqrt.f32 %v920_v36  ;;  %v921_v51 = vadd.f32 1e-05, %v857_v23  ;;  %v762_v55 = vmul.f32 0.0078125, %v717_v38  ;;  %v795_v16 = vmul.f32 %v8516_v34, %v8516_v34 }
 0x19e   : > { %v719_v13 = vpop.xlane.xlu1 %718  ;;  %v1057_v2 = vadd.f32 %v8392_v31, %v1019_v47 }
 0x19f   : > { %v7051_v45 = vpop.eup %7050  ;;  %7056 = vrsqrt.f32 %v921_v51  ;;  %v826_v25 = vsub.f32 %v762_v55, %v794_v10  ;;  %v763_v27 = vmul.f32 0.0078125, %v719_v13  ;;  %v889_v10 = vsub.f32 %v8266_v50, %v8496_v59 }
 0x1a0   : > { %v592_v4 = vpop.xlane.xlu0 %591  ;;  %v8525_v14 = vpack.c.bf16 %v1057_v2, %v1056_v48  ;;  %v982_v19 = vmul.f32 %v7051_v45, %v886_v40 }
 0x1a1   : > { %v7053_v17 = vpop.eup %7052  ;;  %v858_v1 = vmax.f32 %v826_v25, 0.0  ;;  %v827_v39 = vsub.f32 %v763_v27, %v795_v16  ;;  %v8527_v8 = vmul.f32 0.0078125, %v592_v4 }
 0x1a2   : > { %1345 = vmatmul.mubr.bf16.gmra.mrb[24].mxu0 %v8525_v14  ;;  %v594_v46 = vpop.xlane.xlu1 %593  ;;  %v983_v7 = vmul.f32 %v7053_v17, %v887_v60  ;;  %v1020_v24 = vmul.f32 %v8381_v63, %v982_v19  ;;  %v890_v17 = vsub.f32 %v8275_v53, %v8507_v37 }
 0x1a3   : > { %v922_v9 = vadd.f32 1e-05, %v858_v1  ;;  %v859_v5 = vmax.f32 %v827_v39, 0.0  ;;  %v796_v30 = vmul.f32 %v8527_v8, %v8527_v8  ;;  %1354 = vmatprep.mubr.bf16.mxu0 %v7832_v42  ;;  %v8536_v52 = vmul.f32 0.0078125, %v594_v46 }
 0x1a4   : > { %v721_v41 = vpop.xlane.xlu0 %720  ;;  %v1021_v20 = vmul.f32 %v8381_v63, %v983_v7  ;;  %v1058_v33 = vadd.f32 %v8392_v31, %v1020_v24 }
 0x1a5   : > { %7058 = vrsqrt.f32 %v922_v9  ;;  %v923_v36 = vadd.f32 1e-05, %v859_v5  ;;  %v764_v23 = vmul.f32 0.0078125, %v721_v41  ;;  %v797_v40 = vmul.f32 %v8536_v52, %v8536_v52 }
 0x1a6   : > { %v723_v38 = vpop.xlane.xlu1 %722  ;;  %v1059_v47 = vadd.f32 %v8392_v31, %v1021_v20  ;;  %v891_v5 = vsub.f32 %v8278_v54, %v8516_v34 }
 0x1a7   : > { %v7055_v49 = vpop.eup %7054  ;;  %7060 = vrsqrt.f32 %v923_v36  ;;  %v828_v43 = vsub.f32 %v764_v23, %v796_v30  ;;  %v765_v48 = vmul.f32 0.0078125, %v723_v38 }
 0x1a8   : > { %v596_v51 = vpop.xlane.xlu0 %595  ;;  %v8545_v55 = vpack.c.bf16 %v1059_v47, %v1058_v33  ;;  %v984_v60 = vmul.f32 %v7055_v49, %v888_v32 }
 0x1a9   : > { %v7057_v16 = vpop.eup %7056  ;;  %v860_v13 = vmax.f32 %v828_v43, 0.0  ;;  %v829_v2 = vsub.f32 %v765_v48, %v797_v40  ;;  %v8547_v45 = vmul.f32 0.0078125, %v596_v51 }
 0x1aa   : > { %1355 = vmatmul.mubr.bf16.gmra.mrb[28].mxu0 %v8545_v55  ;;  %v598_v50 = vpop.xlane.xlu1 %597  ;;  %v985_v59 = vmul.f32 %v7057_v16, %v889_v10  ;;  %v1022_v25 = vmul.f32 %v8381_v63, %v984_v60  ;;  %v892_v60 = vsub.f32 %v8287_v57, %v8527_v8 }
 0x1ab   : > { %v924_v27 = vadd.f32 1e-05, %v860_v13  ;;  %v861_v4 = vmax.f32 %v829_v2, 0.0  ;;  %v798_v19 = vmul.f32 %v8547_v45, %v8547_v45  ;;  %1364 = vmatprep.mubr.bf16.mxu0 %v7832_v42  ;;  %v8556_v1 = vmul.f32 0.0078125, %v598_v50 }
 0x1ac   : > { %v725_v39 = vpop.xlane.xlu0 %724  ;;  %v1023_v46 = vmul.f32 %v8381_v63, %v985_v59  ;;  %v1060_v7 = vadd.f32 %v8392_v31, %v1022_v25 }
 0x1ad   : > { %7062 = vrsqrt.f32 %v924_v27  ;;  %v925_v24 = vadd.f32 1e-05, %v861_v4  ;;  %v766_v9 = vmul.f32 0.0078125, %v725_v39  ;;  %v799_v30 = vmul.f32 %v8556_v1, %v8556_v1 }
 0x1ae   : > { %v727_v32 = vpop.xlane.xlu1 %726  ;;  %v1061_v41 = vadd.f32 %v8392_v31, %v1023_v46  ;;  %v893_v27 = vsub.f32 %v8290_v58, %v8536_v52 }
 0x1af   : > { %v7059_v53 = vpop.eup %7058  ;;  %7064 = vrsqrt.f32 %v925_v24  ;;  %v830_v37 = vsub.f32 %v766_v9, %v798_v19  ;;  %v767_v20 = vmul.f32 0.0078125, %v727_v32 }
 0x1b0   : > { %v600_v33 = vpop.xlane.xlu0 %599  ;;  %v8565_v36 = vpack.c.bf16 %v1061_v41, %v1060_v7  ;;  %v986_v23 = vmul.f32 %v7059_v53, %v890_v17 }
 0x1b1   : > { %v7061_v10 = vpop.eup %7060  ;;  %v862_v40 = vmax.f32 %v830_v37, 0.0  ;;  %v831_v38 = vsub.f32 %v767_v20, %v799_v30  ;;  %v8567_v47 = vmul.f32 0.0078125, %v600_v33  ;;  %v894_v33 = vsub.f32 %v8299_v61, %v8547_v45 }
 0x1b2   : > { %1365 = vmatmul.mubr.bf16.gmra.mrb[32].mxu0 %v8565_v36  ;;  %v602_v54 = vpop.xlane.xlu1 %601  ;;  %v987_v34 = vmul.f32 %v7061_v10, %v891_v5  ;;  %v1024_v49 = vmul.f32 %v8381_v63, %v986_v23 }
 0x1b3   : > { %v926_v43 = vadd.f32 1e-05, %v862_v40  ;;  %v863_v48 = vmax.f32 %v831_v38, 0.0  ;;  %v800_v51 = vmul.f32 %v8567_v47, %v8567_v47  ;;  %1374 = vmatprep.mubr.bf16.mxu0 %v7832_v42  ;;  %v8576_v16 = vmul.f32 0.0078125, %v602_v54 }
 0x1b4   : > { %v729_v13 = vpop.xlane.xlu0 %728  ;;  %v1025_v2 = vmul.f32 %v8381_v63, %v987_v34  ;;  %v1062_v50 = vadd.f32 %v8392_v31, %v1024_v49  ;;  %v895_v49 = vsub.f32 %v8302_v62, %v8556_v1 }
 0x1b5   : > { %7066 = vrsqrt.f32 %v926_v43  ;;  %v927_v59 = vadd.f32 1e-05, %v863_v48  ;;  %v768_v25 = vmul.f32 0.0078125, %v729_v13  ;;  %v801_v4 = vmul.f32 %v8576_v16, %v8576_v16 }
 0x1b6   : > { %v731_v19 = vpop.xlane.xlu1 %730  ;;  %v1063_v17 = vadd.f32 %v8392_v31, %v1025_v2 }
 0x1b7   : > { %v7063_v57 = vpop.eup %7062  ;;  %7068 = vrsqrt.f32 %v927_v59  ;;  %v832_v8 = vsub.f32 %v768_v25, %v800_v51  ;;  %v769_v39 = vmul.f32 0.0078125, %v731_v19 }
 0x1b8   : > { %v604_v46 = vpop.xlane.xlu0 %603  ;;  %v8585_v7 = vpack.c.bf16 %v1063_v17, %v1062_v50  ;;  %v988_v24 = vmul.f32 %v7063_v57, %v892_v60 }
 0x1b9   : > { %v7065_v9 = vpop.eup %7064  ;;  %v864_v5 = vmax.f32 %v832_v8, 0.0  ;;  %v833_v30 = vsub.f32 %v769_v39, %v801_v4  ;;  %v8587_v32 = vmul.f32 0.0078125, %v604_v46  ;;  %v896_v39 = vsub.f32 %v8311_v3, %v8567_v47 }
 0x1ba   : > { %1375 = vmatmul.mubr.bf16.gmra.mrb[36].mxu0 %v8585_v7  ;;  %v606_v58 = vpop.xlane.xlu1 %605  ;;  %v989_v52 = vmul.f32 %v7065_v9, %v893_v27  ;;  %v1026_v41 = vmul.f32 %v8381_v63, %v988_v24 }
 0x1bb   : > { %v928_v53 = vadd.f32 1e-05, %v864_v5  ;;  %v865_v37 = vmax.f32 %v833_v30, 0.0  ;;  %v802_v20 = vmul.f32 %v8587_v32, %v8587_v32  ;;  %1384 = vmatprep.mubr.bf16.mxu0 %v7832_v42  ;;  %v8596_v23 = vmul.f32 0.0078125, %v606_v58 }
 0x1bc   : > { %v733_v10 = vpop.xlane.xlu0 %732  ;;  %v1027_v40 = vmul.f32 %v8381_v63, %v989_v52  ;;  %v1064_v38 = vadd.f32 %v8392_v31, %v1026_v41  ;;  %v897_v52 = vsub.f32 %v8314_v6, %v8576_v16 }
 0x1bd   : > { %7070 = vrsqrt.f32 %v928_v53  ;;  %v929_v54 = vadd.f32 1e-05, %v865_v37  ;;  %v770_v34 = vmul.f32 0.0078125, %v733_v10  ;;  %v803_v43 = vmul.f32 %v8596_v23, %v8596_v23 }
 0x1be   : > { %v735_v48 = vpop.xlane.xlu1 %734  ;;  %v1065_v51 = vadd.f32 %v8392_v31, %v1027_v40 }
 0x1bf   : > { %v7067_v61 = vpop.eup %7066  ;;  %7072 = vrsqrt.f32 %v929_v54  ;;  %v834_v45 = vsub.f32 %v770_v34, %v802_v20  ;;  %v771_v60 = vmul.f32 0.0078125, %v735_v48 }
 0x1c0   : > { %v608_v13 = vpop.xlane.xlu0 %607  ;;  %v8605_v2 = vpack.c.bf16 %v1065_v51, %v1064_v38  ;;  %v990_v50 = vmul.f32 %v7067_v61, %v894_v33 }
 0x1c1   : > { %v7069_v59 = vpop.eup %7068  ;;  %v866_v25 = vmax.f32 %v834_v45, 0.0  ;;  %v835_v27 = vsub.f32 %v771_v60, %v803_v43  ;;  %v8607_v4 = vmul.f32 0.0078125, %v608_v13  ;;  %v898_v45 = vsub.f32 %v8323_v11, %v8587_v32 }
 0x1c2   : > { %1385 = vmatmul.mubr.bf16.gmra.mrb[40].mxu0 %v8605_v2  ;;  %v610_v62 = vpop.xlane.xlu1 %609  ;;  %v991_v1 = vmul.f32 %v7069_v59, %v895_v49  ;;  %v1028_v19 = vmul.f32 %v8381_v63, %v990_v50 }
 0x1c3   : > { %v930_v17 = vadd.f32 1e-05, %v866_v25  ;;  %v867_v57 = vmax.f32 %v835_v27, 0.0  ;;  %v804_v8 = vmul.f32 %v8607_v4, %v8607_v4  ;;  %1394 = vmatprep.mubr.bf16.mxu0 %v7832_v42  ;;  %v8616_v46 = vmul.f32 0.0078125, %v610_v62 }
 0x1c4   : > { %v737_v24 = vpop.xlane.xlu0 %736  ;;  %v1029_v9 = vmul.f32 %v8381_v63, %v991_v1  ;;  %v1066_v5 = vadd.f32 %v8392_v31, %v1028_v19  ;;  %v899_v62 = vsub.f32 %v8326_v12, %v8596_v23 }
 0x1c5   : > { %7074 = vrsqrt.f32 %v930_v17  ;;  %v931_v30 = vadd.f32 1e-05, %v867_v57  ;;  %v772_v58 = vmul.f32 0.0078125, %v737_v24  ;;  %v805_v41 = vmul.f32 %v8616_v46, %v8616_v46 }
 0x1c6   : > { %v739_v53 = vpop.xlane.xlu1 %738  ;;  %v1067_v37 = vadd.f32 %v8392_v31, %v1029_v9 }
 0x1c7   : > { %v7071_v3 = vpop.eup %7070  ;;  %7076 = vrsqrt.f32 %v931_v30  ;;  %v836_v47 = vsub.f32 %v772_v58, %v804_v8  ;;  %v773_v20 = vmul.f32 0.0078125, %v739_v53 }
 0x1c8   : > { %v612_v33 = vpop.xlane.xlu0 %611  ;;  %v8625_v10 = vpack.c.bf16 %v1067_v37, %v1066_v5  ;;  %v992_v40 = vmul.f32 %v7071_v3, %v896_v39  ;;  %v6927_v39 = vld [vmem:[#allocation7 + $0x20] ss:$12 sps:$4 sm:$0xff]   ;;  %v6928_v3 = vld [vmem:[#allocation7 + $0x38] ss:$12 sps:$4 sm:$0xff]  }
 0x1c9   : > { %v7073_v38 = vpop.eup %7072  ;;  %v868_v54 = vmax.f32 %v836_v47, 0.0  ;;  %v837_v34 = vsub.f32 %v773_v20, %v805_v41  ;;  %v8627_v49 = vmul.f32 0.0078125, %v612_v33  ;;  %v900_v41 = vsub.f32 %v8335_v15, %v8607_v4 }
 0x1ca   : > { %1395 = vmatmul.mubr.bf16.gmra.mrb[44].mxu0 %v8625_v10  ;;  %v614_v6 = vpop.xlane.xlu1 %613  ;;  %v993_v16 = vmul.f32 %v7073_v38, %v897_v52  ;;  %v1030_v43 = vmul.f32 %v8381_v63, %v992_v40  ;;  %v901_v20 = vsub.f32 %v8338_v18, %v8616_v46  ;;  %v6929_v38 = vld [vmem:[#allocation7 + $0x50] ss:$12 sps:$4 sm:$0xff]  }
 0x1cb   : > { %v932_v48 = vadd.f32 1e-05, %v868_v54  ;;  %v869_v51 = vmax.f32 %v837_v34, 0.0  ;;  %v806_v61 = vmul.f32 %v8627_v49, %v8627_v49  ;;  %v8635_v60 = vmul.f32 0.0078125, %v614_v6 }
 0x1cc   : > { %v741_v13 = vpop.xlane.xlu0 %740  ;;  %v1031_v50 = vmul.f32 %v8381_v63, %v993_v16  ;;  %v1068_v59 = vadd.f32 %v8392_v31, %v1030_v43  ;;  %v902_v18 = vsub.f32 %v8347_v21, %v8627_v49  ;;  %v6930_v16 = vld [vmem:[#allocation7 + $0x68] ss:$12 sps:$4 sm:$0xff]  }
 0x1cd   : > { %7078 = vrsqrt.f32 %v932_v48  ;;  %v933_v25 = vadd.f32 1e-05, %v869_v51  ;;  %v774_v27 = vmul.f32 0.0078125, %v741_v13  ;;  %v807_v1 = vmul.f32 %v8635_v60, %v8635_v60 }
 0x1ce   : > { %v743_v19 = vpop.xlane.xlu1 %742  ;;  %v1069_v17 = vadd.f32 %v8392_v31, %v1031_v50  ;;  %v903_v43 = vsub.f32 %v8350_v22, %v8635_v60  ;;  %v6932_v60 = vld [vmem:[#allocation7 + $0x98] ss:$12 sps:$4 sm:$0xff]  }
 0x1cf   : > { %v7075_v11 = vpop.eup %7074  ;;  %7080 = vrsqrt.f32 %v933_v25  ;;  %v838_v32 = vsub.f32 %v774_v27, %v806_v61  ;;  %v775_v57 = vmul.f32 0.0078125, %v743_v19 }
 0x1d0   : > { %v8644_v8 = vpack.c.bf16 %v1069_v17, %v1068_v59  ;;  %v994_v24 = vmul.f32 %v7075_v11, %v898_v45  ;;  %v6931_v45 = vld [vmem:[#allocation7 + $0x80] ss:$12 sps:$4 sm:$0xff]  }
 0x1d1   : > { %v7077_v9 = vpop.eup %7076  ;;  %v870_v5 = vmax.f32 %v838_v32, 0.0  ;;  %v839_v30 = vsub.f32 %v775_v57, %v807_v1 }
 0x1d2   : > { %1405 = vmatmul.mubr.bf16.vlgmr.msra.gmra.mrb[0].mxu1 %v8644_v8  ;;  %v995_v12 = vmul.f32 %v7077_v9, %v899_v62  ;;  %v1032_v23 = vmul.f32 %v8381_v63, %v994_v24  ;;  %v6933_v62 = vld [vmem:[#allocation7 + $0xb0] ss:$12 sps:$4 sm:$0xff]  }
 0x1d3   : > { %v934_v58 = vadd.f32 1e-05, %v870_v5  ;;  %v871_v52 = vmax.f32 %v839_v30, 0.0  ;;  %6555 = vmatpush3.bf16.msra.mxu1 %v8358_v29  ;;  %1414 = vmatprep.mubr.bf16.mxu1 %v7832_v42 }
 0x1d4   : > { %6556 = vmatprep.subr.bf16.mxu1 %v6927_v39  ;;  %v1033_v53 = vmul.f32 %v8381_v63, %v995_v12  ;;  %v1070_v37 = vadd.f32 %v8392_v31, %v1032_v23 }
 0x1d5   : > { %7082 = vrsqrt.f32 %v934_v58  ;;  %v935_v47 = vadd.f32 1e-05, %v871_v52 }
 0x1d6   : > { %v1071_v33 = vadd.f32 %v8392_v31, %v1033_v53 }
 0x1d7   : > { %v7079_v40 = vpop.eup %7078  ;;  %7084 = vrsqrt.f32 %v935_v47  ;;  %6557 = vmatpush3.bf16.msra.mxu1 %v6927_v39 }
 0x1d8   : > { %v1089_v29 = vpack.c.bf16 %v1071_v33, %v1070_v37  ;;  %6558 = vmatprep.subr.bf16.mxu1 %v6928_v3  ;;  %v996_v15 = vmul.f32 %v7079_v40, %v900_v41 }
 0x1d9   : > { %v7081_v4 = vpop.eup %7080 }
 0x1da   : > { %1415 = vmatmul.mubr.bf16.gmra.mrb[4].mxu1 %v1089_v29  ;;  %v997_v54 = vmul.f32 %v7081_v4, %v901_v20  ;;  %v1034_v34 = vmul.f32 %v8381_v63, %v996_v15 }
 0x1db   : > { %6559 = vmatpush3.bf16.msra.mxu1 %v6928_v3  ;;  %1424 = vmatprep.mubr.bf16.mxu1 %v7832_v42 }
 0x1dc   : > { %6560 = vmatprep.subr.bf16.mxu1 %v6929_v38  ;;  %v1035_v46 = vmul.f32 %v8381_v63, %v997_v54  ;;  %v1072_v6 = vadd.f32 %v8392_v31, %v1034_v34 }
 0x1de   : > { %v1073_v48 = vadd.f32 %v8392_v31, %v1035_v46 }
 0x1df   : > { %v7083_v51 = vpop.eup %7082  ;;  %6561 = vmatpush3.bf16.msra.mxu1 %v6929_v38 }
 0x1e0   : > { %v1090_v61 = vpack.c.bf16 %v1073_v48, %v1072_v6  ;;  %6562 = vmatprep.subr.bf16.mxu1 %v6930_v16  ;;  %v998_v13 = vmul.f32 %v7083_v51, %v902_v18 }
 0x1e1   : > { %v7085_v50 = vpop.eup %7084 }
 0x1e2   : > { %1425 = vmatmul.mubr.bf16.gmra.mrb[8].mxu1 %v1090_v61  ;;  %v999_v21 = vmul.f32 %v7085_v50, %v903_v43  ;;  %v1036_v49 = vmul.f32 %v8381_v63, %v998_v13 }
 0x1e3   : > { %6563 = vmatpush3.bf16.msra.mxu1 %v6930_v16  ;;  %1434 = vmatprep.mubr.bf16.mxu1 %v7832_v42 }
 0x1e4   : > { %6564 = vmatprep.subr.bf16.mxu1 %v6931_v45  ;;  %v1037_v59 = vmul.f32 %v8381_v63, %v999_v21  ;;  %v1074_v22 = vadd.f32 %v8392_v31, %v1036_v49 }
 0x1e6   : > { %v1075_v25 = vadd.f32 %v8392_v31, %v1037_v59 }
 0x1e7   : > { %6565 = vmatpush3.bf16.msra.mxu1 %v6931_v45 }
 0x1e8   : > { %v1091_v27 = vpack.c.bf16 %v1075_v25, %v1074_v22  ;;  %6566 = vmatprep.subr.bf16.mxu1 %v6932_v60 }
 0x1ea   : > { %1435 = vmatmul.mubr.bf16.gmra.mrb[12].mxu1 %v1091_v27 }
 0x1eb   : > { %6567 = vmatpush3.bf16.msra.mxu1 %v6932_v60  ;;  %6570 = vmatprep.mubr.bf16.mxu1 %v8405_v28 }
 0x1ec   : > { %6568 = vmatprep.subr.bf16.mxu1 %v6933_v62 }
 0x1ef   : > { %6569 = vmatpush3.bf16.msra.mxu1 %v6933_v62 }
 0x1f2   : > { %6571 = vmatmul.mubr.bf16.vlgmr.msra.gmra.mrb[16].mxu1 %v8425_v0 }
 0x1f3   : > { %6574 = vmatprep.mubr.bf16.mxu1 %v8445_v56 }
 0x1fa   : > { %6575 = vmatmul.mubr.bf16.gmra.mrb[20].mxu1 %v8465_v44 }
 0x1fb   : > { %6578 = vmatprep.mubr.bf16.mxu1 %v8485_v35 }
 0x202   : > { %6579 = vmatmul.mubr.bf16.gmra.mrb[24].mxu1 %v8505_v26 }
 0x203   : > { %6582 = vmatprep.mubr.bf16.mxu1 %v8525_v14 }
 0x20a   : > { %6583 = vmatmul.mubr.bf16.gmra.mrb[28].mxu1 %v8545_v55 }
 0x20b   : > { %6586 = vmatprep.mubr.bf16.mxu1 %v8565_v36 }
 0x212   : > { %6587 = vmatmul.mubr.bf16.gmra.mrb[32].mxu1 %v8585_v7 }
 0x213   : > { %6590 = vmatprep.mubr.bf16.mxu1 %v8605_v2 }
 0x21a   : > { %6591 = vmatmul.mubr.bf16.gmra.mrb[36].mxu1 %v8625_v10 }
 0x21b   : > { %6594 = vmatprep.mubr.bf16.mxu1 %v8644_v8 }
 0x222   : > { %6595 = vmatmul.mubr.bf16.gmra.mrb[40].mxu1 %v1089_v29 }
 0x223   : > { %6598 = vmatprep.mubr.bf16.mxu1 %v1090_v61 }
 0x22a   : > { %6599 = vmatmul.mubr.bf16.gmra.mrb[44].mxu1 %v1091_v27 }
 0x245   : > { %v1286_v63 = vpop.f32.mrb[0].mxu0 }
 0x246   : > { %v1288_v31 = vpop.f32.mrb[1].mxu0 }
 0x247   : > { %v1290_v28 = vpop.f32.mrb[2].mxu0 }
 0x248   : > { %v1606_v0 = vpack.c.bf16 %v1290_v28, %v1286_v63  ;;  %v1292_v56 = vpop.f32.mrb[3].mxu0 }
 0x249   : > { %v1622_v44 = vpack.c.bf16 %v1292_v56, %v1288_v31 }
 0x24a   : > { %6610 = vmatprep.mubr.bf16.mxu1 %v1606_v0 }
 0x24b   : > { %6602 = vmatprep.subr.bf16.mxu1 %v1622_v44 }
 0x24c   : > { %6603 = vmatpush3.bf16.xpose.msra.mxu1 %v1622_v44 }
 0x24d   : > { %v1296_v35 = vpop.f32.mrb[4].mxu0 }
 0x24e   : > { %v1298_v26 = vpop.f32.mrb[5].mxu0 }
 0x24f   : > { %v1300_v14 = vpop.f32.mrb[6].mxu0 }
 0x250   : > { %v1607_v55 = vpack.c.bf16 %v1300_v14, %v1296_v35  ;;  %v1302_v36 = vpop.f32.mrb[7].mxu0 }
 0x251   : > { %v1623_v7 = vpack.c.bf16 %v1302_v36, %v1298_v26 }
 0x253   : > { %6604 = vmatprep.subr.bf16.mxu1 %v1623_v7 }
 0x254   : > { %6605 = vmatpush3.bf16.xpose.msra.mxu1 %v1623_v7 }
 0x255   : > { %v1306_v2 = vpop.f32.mrb[8].mxu0 }
 0x256   : > { %v1308_v10 = vpop.f32.mrb[9].mxu0 }
 0x257   : > { %v1310_v1 = vpop.f32.mrb[10].mxu0 }
 0x258   : > { %v1608_v19 = vpack.c.bf16 %v1310_v1, %v1306_v2  ;;  %v1312_v17 = vpop.f32.mrb[11].mxu0 }
 0x259   : > { %v1624_v11 = vpack.c.bf16 %v1312_v17, %v1308_v10 }
 0x25b   : > { %6606 = vmatprep.subr.bf16.mxu1 %v1624_v11 }
 0x25c   : > { %6607 = vmatpush3.bf16.xpose.msra.mxu1 %v1624_v11 }
 0x25d   : > { %v1316_v32 = vpop.f32.mrb[12].mxu0 }
 0x25e   : > { %v1318_v57 = vpop.f32.mrb[13].mxu0 }
 0x25f   : > { %v1320_v8 = vpop.f32.mrb[14].mxu0 }
 0x260   : > { %v1609_v39 = vpack.c.bf16 %v1320_v8, %v1316_v32  ;;  %v1322_v24 = vpop.f32.mrb[15].mxu0 }
 0x261   : > { %v1625_v9 = vpack.c.bf16 %v1322_v24, %v1318_v57 }
 0x263   : > { %6608 = vmatprep.subr.bf16.mxu1 %v1625_v9 }
 0x264   : > { %6609 = vmatpush3.bf16.xpose.msra.mxu1 %v1625_v9 }
 0x265   : > { %v1326_v5 = vpop.f32.mrb[16].mxu0 }
 0x266   : > { %v1328_v30 = vpop.f32.mrb[17].mxu0 }
 0x267   : > { %v1330_v12 = vpop.f32.mrb[18].mxu0 }
 0x268   : > { %v1610_v23 = vpack.c.bf16 %v1330_v12, %v1326_v5  ;;  %v1332_v58 = vpop.f32.mrb[19].mxu0 }
 0x269   : > { %v1626_v52 = vpack.c.bf16 %v1332_v58, %v1328_v30 }
 0x26b   : > { %6611 = vmatmul.mubr.bf16.vlgmr.msra.gmra.mrb[48].mxu1 %v1607_v55  ;;  %6618 = vmatprep.subr.bf16.mxu1 %v1626_v52 }
 0x26c   : > { %6614 = vmatprep.mubr.bf16.mxu1 %v1608_v19  ;;  %6619 = vmatpush3.bf16.xpose.msra.mxu1 %v1626_v52 }
 0x26d   : > { %v1336_v41 = vpop.f32.mrb[20].mxu0 }
 0x26e   : > { %v1338_v53 = vpop.f32.mrb[21].mxu0 }
 0x26f   : > { %v1340_v37 = vpop.f32.mrb[22].mxu0 }
 0x270   : > { %v1611_v3 = vpack.c.bf16 %v1340_v37, %v1336_v41  ;;  %v1342_v47 = vpop.f32.mrb[23].mxu0 }
 0x271   : > { %v1627_v20 = vpack.c.bf16 %v1342_v47, %v1338_v53 }
 0x273   : > { %6615 = vmatmul.mubr.bf16.gmra.mrb[52].mxu1 %v1609_v39  ;;  %6620 = vmatprep.subr.bf16.mxu1 %v1627_v20 }
 0x274   : > { %6621 = vmatpush3.bf16.xpose.msra.mxu1 %v1627_v20  ;;  %6626 = vmatprep.mubr.bf16.mxu1 %v1610_v23 }
 0x275   : > { %v1346_v33 = vpop.f32.mrb[24].mxu0 }
 0x276   : > { %v1348_v40 = vpop.f32.mrb[25].mxu0 }
 0x277   : > { %v1350_v29 = vpop.f32.mrb[26].mxu0 }
 0x278   : > { %v1612_v38 = vpack.c.bf16 %v1350_v29, %v1346_v33  ;;  %v1352_v15 = vpop.f32.mrb[27].mxu0 }
 0x279   : > { %v1628_v4 = vpack.c.bf16 %v1352_v15, %v1348_v40 }
 0x27b   : > { %6622 = vmatprep.subr.bf16.mxu1 %v1628_v4 }
 0x27c   : > { %6623 = vmatpush3.bf16.xpose.msra.mxu1 %v1628_v4 }
 0x27d   : > { %v1356_v54 = vpop.f32.mrb[28].mxu0 }
 0x27e   : > { %v1358_v34 = vpop.f32.mrb[29].mxu0 }
 0x27f   : > { %v1360_v18 = vpop.f32.mrb[30].mxu0 }
 0x280   : > { %v1613_v46 = vpack.c.bf16 %v1360_v18, %v1356_v54  ;;  %v1362_v6 = vpop.f32.mrb[31].mxu0 }
 0x281   : > { %v1629_v16 = vpack.c.bf16 %v1362_v6, %v1358_v34 }
 0x283   : > { %6624 = vmatprep.subr.bf16.mxu1 %v1629_v16 }
 0x284   : > { %6625 = vmatpush3.bf16.xpose.msra.mxu1 %v1629_v16 }
 0x285   : > { %v1366_v43 = vpop.f32.mrb[32].mxu0 }
 0x286   : > { %v1368_v48 = vpop.f32.mrb[33].mxu0 }
 0x287   : > { %v1370_v51 = vpop.f32.mrb[34].mxu0 }
 0x288   : > { %v1614_v61 = vpack.c.bf16 %v1370_v51, %v1366_v43  ;;  %v1372_v45 = vpop.f32.mrb[35].mxu0 }
 0x289   : > { %v1630_v13 = vpack.c.bf16 %v1372_v45, %v1368_v48 }
 0x28a   : > { %6642 = vmatprep.mubr.bf16.mxu0 %v1614_v61 }
 0x28b   : > { %6627 = vmatmul.mubr.bf16.vlgmr.msra.gmra.mrb[56].mxu1 %v1611_v3  ;;  %6634 = vmatprep.subr.bf16.mxu0 %v1630_v13 }
 0x28c   : > { %6630 = vmatprep.mubr.bf16.mxu1 %v1612_v38  ;;  %6635 = vmatpush3.bf16.xpose.msra.mxu0 %v1630_v13 }
 0x28d   : > { %v1376_v50 = vpop.f32.mrb[36].mxu0 }
 0x28e   : > { %v1378_v21 = vpop.f32.mrb[37].mxu0 }
 0x28f   : > { %v1380_v49 = vpop.f32.mrb[38].mxu0 }
 0x290   : > { %v1615_v59 = vpack.c.bf16 %v1380_v49, %v1376_v50  ;;  %v1382_v22 = vpop.f32.mrb[39].mxu0 }
 0x291   : > { %v1631_v60 = vpack.c.bf16 %v1382_v22, %v1378_v21 }
 0x293   : > { %6631 = vmatmul.mubr.bf16.gmra.mrb[60].mxu1 %v1613_v46  ;;  %6636 = vmatprep.subr.bf16.mxu0 %v1631_v60 }
 0x294   : > { %6637 = vmatpush3.bf16.xpose.msra.mxu0 %v1631_v60 }
 0x295   : > { %v1386_v25 = vpop.f32.mrb[40].mxu0 }
 0x296   : > { %v1388_v27 = vpop.f32.mrb[41].mxu0 }
 0x297   : > { %v1390_v62 = vpop.f32.mrb[42].mxu0 }
 0x298   : > { %v1616_v63 = vpack.c.bf16 %v1390_v62, %v1386_v25  ;;  %v1392_v31 = vpop.f32.mrb[43].mxu0 }
 0x299   : > { %v1632_v28 = vpack.c.bf16 %v1392_v31, %v1388_v27 }
 0x29b   : > { %6638 = vmatprep.subr.bf16.mxu0 %v1632_v28 }
 0x29c   : > { %6639 = vmatpush3.bf16.xpose.msra.mxu0 %v1632_v28 }
 0x29d   : > { %v1396_v0 = vpop.f32.mrb[44].mxu0 }
 0x29e   : > { %v1398_v56 = vpop.f32.mrb[45].mxu0 }
 0x29f   : > { %v1400_v44 = vpop.f32.mrb[46].mxu0 }
 0x2a0   : > { %v1617_v35 = vpack.c.bf16 %v1400_v44, %v1396_v0  ;;  %v1402_v26 = vpop.f32.mrb[47].mxu0 }
 0x2a1   : > { %v1633_v14 = vpack.c.bf16 %v1402_v26, %v1398_v56 }
 0x2a3   : > { %6640 = vmatprep.subr.bf16.mxu0 %v1633_v14 }
 0x2a4   : > { %6641 = vmatpush3.bf16.xpose.msra.mxu0 %v1633_v14 }
 0x2a5   : > { %v1406_v55 = vpop.f32.mrb[0].mxu1 }
 0x2a6   : > { %v1408_v36 = vpop.f32.mrb[1].mxu1 }
 0x2a7   : > { %v1410_v7 = vpop.f32.mrb[2].mxu1 }
 0x2a8   : > { %v1618_v2 = vpack.c.bf16 %v1410_v7, %v1406_v55  ;;  %v1412_v10 = vpop.f32.mrb[3].mxu1 }
 0x2a9   : > { %v1634_v1 = vpack.c.bf16 %v1412_v10, %v1408_v36 }
 0x2aa   : > { %6658 = vmatprep.mubr.bf16.mxu1 %v1618_v2 }
 0x2ab   : > { %6643 = vmatmul.mubr.bf16.vlgmr.msra.gmra.mrb[48].mxu0 %v1615_v59  ;;  %6650 = vmatprep.subr.bf16.mxu1 %v1634_v1 }
 0x2ac   : > { %6646 = vmatprep.mubr.bf16.mxu0 %v1616_v63  ;;  %6651 = vmatpush3.bf16.xpose.msra.mxu1 %v1634_v1 }
 0x2ad   : > { %v1416_v19 = vpop.f32.mrb[4].mxu1 }
 0x2ae   : > { %v1418_v17 = vpop.f32.mrb[5].mxu1 }
 0x2af   : > { %v1420_v11 = vpop.f32.mrb[6].mxu1 }
 0x2b0   : > { %v1619_v32 = vpack.c.bf16 %v1420_v11, %v1416_v19  ;;  %v1422_v57 = vpop.f32.mrb[7].mxu1 }
 0x2b1   : > { %v1635_v8 = vpack.c.bf16 %v1422_v57, %v1418_v17 }
 0x2b3   : > { %6647 = vmatmul.mubr.bf16.gmra.mrb[52].mxu0 %v1617_v35  ;;  %6652 = vmatprep.subr.bf16.mxu1 %v1635_v8 }
 0x2b4   : > { %6653 = vmatpush3.bf16.xpose.msra.mxu1 %v1635_v8  ;;  %v8702_v8 = vld [vmem:[#allocation5] sm:$0xff] }
 0x2b5   : > { %v1426_v39 = vpop.f32.mrb[8].mxu1 }
 0x2b6   : > { %v1428_v24 = vpop.f32.mrb[9].mxu1 }
 0x2b7   : > { %v1430_v9 = vpop.f32.mrb[10].mxu1 }
 0x2b8   : > { %v1620_v5 = vpack.c.bf16 %v1430_v9, %v1426_v39  ;;  %v1432_v30 = vpop.f32.mrb[11].mxu1 }
 0x2b9   : > { %v1636_v12 = vpack.c.bf16 %v1432_v30, %v1428_v24  ;;  %v8704_v30 = vld [vmem:[#allocation5 + $0x8] sm:$0xff] }
 0x2bb   : > { %6654 = vmatprep.subr.bf16.mxu1 %v1636_v12 }
 0x2bc   : > { %6655 = vmatpush3.bf16.xpose.msra.mxu1 %v1636_v12  ;;  %v8706_v12 = vld [vmem:[#allocation5 + $0x10] sm:$0xff] }
 0x2bd   : > { %v1436_v23 = vpop.f32.mrb[12].mxu1 }
 0x2be   : > { %v1438_v58 = vpop.f32.mrb[13].mxu1 }
 0x2bf   : > { %v1440_v52 = vpop.f32.mrb[14].mxu1 }
 0x2c0   : > { %v1621_v41 = vpack.c.bf16 %v1440_v52, %v1436_v23  ;;  %v1442_v53 = vpop.f32.mrb[15].mxu1 }
 0x2c1   : > { %v1637_v37 = vpack.c.bf16 %v1442_v53, %v1438_v58 }
 0x2c3   : > { %6656 = vmatprep.subr.bf16.mxu1 %v1637_v37 }
 0x2c4   : > { %6657 = vmatpush3.bf16.xpose.msra.mxu1 %v1637_v37 }
 0x2c5   : > { %v6572_v3 = vpop.f32.mrb[16].mxu1 }
 0x2c6   : > { %v1479_v47 = vpop.f32.mrb[17].mxu1 }
 0x2c7   : > { %v6573_v20 = vpop.f32.mrb[18].mxu1 }
 0x2c8   : > { %v1639_v33 = vpack.c.bf16 %v6573_v20, %v6572_v3  ;;  %v1482_v40 = vpop.f32.mrb[19].mxu1 }
 0x2c9   : > { %v1638_v29 = vpack.c.bf16 %v1482_v40, %v1479_v47 }
 0x2cb   : > { %6666 = vmatprep.subr.bf16.mxu0 %v1638_v29  ;;  %6659 = vmatmul.mubr.bf16.vlgmr.msra.gmra.mrb[64].mxu1 %v1619_v32 }
 0x2cc   : > { %6667 = vmatpush3.bf16.msra.mxu0 %v1638_v29  ;;  %6662 = vmatprep.mubr.bf16.mxu1 %v1620_v5  ;;  %v8726_v29 = vld [vmem:[#allocation5 + $0x20] sm:$0xff] }
 0x2cd   : > { %v6576_v38 = vpop.f32.mrb[20].mxu1  ;;  %6668 = vmatprep.subr.bf16.mxu0 %v1639_v33 }
 0x2ce   : > { %v1495_v15 = vpop.f32.mrb[21].mxu1 }
 0x2cf   : > { %v6577_v4 = vpop.f32.mrb[22].mxu1 }
 0x2d0   : > { %v1641_v54 = vpack.c.bf16 %v6577_v4, %v6576_v38  ;;  %v1498_v34 = vpop.f32.mrb[23].mxu1  ;;  %6669 = vmatpush3.bf16.msra.mxu0 %v1639_v33 }
 0x2d1   : > { %v1640_v18 = vpack.c.bf16 %v1498_v34, %v1495_v15 }
 0x2d3   : > { %6670 = vmatprep.subr.bf16.mxu0 %v1640_v18  ;;  %6663 = vmatmul.mubr.bf16.gmra.mrb[68].mxu1 %v1621_v41  ;;  %v8711_v41 = vld [vmem:[#allocation5 + $0x18] sm:$0xff] }
 0x2d4   : > { %6671 = vmatpush3.bf16.msra.mxu0 %v1640_v18  ;;  %v8730_v18 = vld [vmem:[#allocation5 + $0x28] sm:$0xff] }
 0x2d5   : > { %v6580_v46 = vpop.f32.mrb[24].mxu1  ;;  %6672 = vmatprep.subr.bf16.mxu0 %v1641_v54 }
 0x2d6   : > { %v1511_v6 = vpop.f32.mrb[25].mxu1 }
 0x2d7   : > { %v6581_v16 = vpop.f32.mrb[26].mxu1 }
 0x2d8   : > { %v1643_v43 = vpack.c.bf16 %v6581_v16, %v6580_v46  ;;  %v1514_v48 = vpop.f32.mrb[27].mxu1  ;;  %6673 = vmatpush3.bf16.msra.mxu0 %v1641_v54  ;;  %v8732_v46 = vld [vmem:[#allocation5 + $0x30] sm:$0xff] }
 0x2d9   : > { %v1642_v51 = vpack.c.bf16 %v1514_v48, %v1511_v6 }
 0x2db   : > { %6682 = vmatprep.subr.bf16.mxu1 %v1642_v51 }
 0x2dc   : > { %6683 = vmatpush3.bf16.msra.mxu1 %v1642_v51  ;;  %v8739_v51 = vld [vmem:[#allocation5 + $0x38] sm:$0xff] }
 0x2dd   : > { %v6584_v61 = vpop.f32.mrb[28].mxu1  ;;  %6684 = vmatprep.subr.bf16.mxu1 %v1643_v43 }
 0x2de   : > { %v1527_v45 = vpop.f32.mrb[29].mxu1 }
 0x2df   : > { %v6585_v13 = vpop.f32.mrb[30].mxu1 }
 0x2e0   : > { %v1645_v50 = vpack.c.bf16 %v6585_v13, %v6584_v61  ;;  %v1530_v21 = vpop.f32.mrb[31].mxu1  ;;  %6685 = vmatpush3.bf16.msra.mxu1 %v1643_v43 }
 0x2e1   : > { %v1644_v49 = vpack.c.bf16 %v1530_v21, %v1527_v45 }
 0x2e3   : > { %6686 = vmatprep.subr.bf16.mxu1 %v1644_v49 }
 0x2e4   : > { %6687 = vmatpush3.bf16.msra.mxu1 %v1644_v49 }
 0x2e5   : > { %v6588_v59 = vpop.f32.mrb[32].mxu1  ;;  %6688 = vmatprep.subr.bf16.mxu1 %v1645_v50 }
 0x2e6   : > { %v1543_v22 = vpop.f32.mrb[33].mxu1 }
 0x2e7   : > { %v6589_v60 = vpop.f32.mrb[34].mxu1 }
 0x2e8   : > { %v8684_v25 = vpack.c.bf16 %v6589_v60, %v6588_v59  ;;  %v1546_v27 = vpop.f32.mrb[35].mxu1  ;;  %6689 = vmatpush3.bf16.msra.mxu1 %v1645_v50 }
 0x2e9   : > { %v8686_v62 = vpack.c.bf16 %v1546_v27, %v1543_v22 }
 0x2eb   : > { %6698 = vmatprep.subr.bf16.mxu0 %v8686_v62 }
 0x2ed   : > { %v6592_v63 = vpop.f32.mrb[36].mxu1 }
 0x2ee   : > { %v1559_v31 = vpop.f32.mrb[37].mxu1 }
 0x2ef   : > { %v6593_v28 = vpop.f32.mrb[38].mxu1 }
 0x2f0   : > { %v8689_v0 = vpack.c.bf16 %v6593_v28, %v6592_v63  ;;  %v1562_v56 = vpop.f32.mrb[39].mxu1 }
 0x2f1   : > { %v8691_v44 = vpack.c.bf16 %v1562_v56, %v1559_v31 }
 0x2f5   : > { %v6596_v35 = vpop.f32.mrb[40].mxu1 }
 0x2f6   : > { %v1575_v26 = vpop.f32.mrb[41].mxu1 }
 0x2f7   : > { %v6597_v14 = vpop.f32.mrb[42].mxu1 }
 0x2f8   : > { %v8693_v55 = vpack.c.bf16 %v6597_v14, %v6596_v35  ;;  %v1578_v36 = vpop.f32.mrb[43].mxu1 }
 0x2f9   : > { %v8695_v7 = vpack.c.bf16 %v1578_v36, %v1575_v26 }
 0x2fb   : > { %6714 = vmatprep.subr.bf16.mxu1 %v8695_v7 }
 0x2fd   : > { %v6600_v2 = vpop.f32.mrb[44].mxu1 }
 0x2fe   : > { %v1591_v10 = vpop.f32.mrb[45].mxu1 }
 0x2ff   : > { %v6601_v1 = vpop.f32.mrb[46].mxu1 }
 0x300   : > { %v8698_v19 = vpack.c.bf16 %v6601_v1, %v6600_v2  ;;  %v1594_v17 = vpop.f32.mrb[47].mxu1 }
 0x301   : > { %v8700_v11 = vpack.c.bf16 %v1594_v17, %v1591_v10 }
 0x33e   : > { %v6612_v32 = vpop.f32.mrb[48].mxu1 }
 0x33f   : > { %v1688_v57 = vpop.f32.mrb[49].mxu1  ;;  %v1916_v39 = vmul.f32 0.088388346, %v6612_v32 }
 0x340   : > { %v1914_v24 = vmul.f32 0.088388346, %v1688_v57  ;;  %v6613_v9 = vpop.f32.mrb[50].mxu1 }
 0x341   : > { %v1691_v5 = vpop.f32.mrb[51].mxu1  ;;  %v1917_v23 = vmul.f32 0.088388346, %v6613_v9  ;;  %v8719_v3 = vadd.f32 %v1916_v39, %v8706_v12 }
 0x342   : > { %v1915_v58 = vmul.f32 0.088388346, %v1691_v5  ;;  %v8709_v52 = vadd.f32 %v1914_v24, %v8702_v8 }
 0x343   : > { %v8724_v33 = vadd.f32 %v1917_v23, %v8711_v41  ;;  %v1985_v54 = vsel %vm1978_vm0, %v8719_v3, -inf }
 0x344   : > { %v1979_v53 = vsel %vm1978_vm0, %v8709_v52, -inf  ;;  %v8716_v37 = vadd.f32 %v1915_v58, %v8704_v30 }
 0x345   : > { %1980 = vmax.xlane.f32.xlu0 %v1979_v53  ;;  %v1988_v43 = vsel %vm1978_vm0, %v8724_v33, -inf }
 0x346   : > { %v6616_v47 = vpop.f32.mrb[52].mxu1  ;;  %v1982_v20 = vsel %vm1978_vm0, %v8716_v37, -inf }
 0x347   : > { %1983 = vmax.xlane.f32.xlu1 %v1982_v20  ;;  %v1704_v40 = vpop.f32.mrb[53].mxu1  ;;  %v1920_v38 = vmul.f32 0.088388346, %v6616_v47 }
 0x348   : > { %v1918_v15 = vmul.f32 0.088388346, %v1704_v40  ;;  %v6617_v4 = vpop.f32.mrb[54].mxu1 }
 0x349   : > { %1986 = vmax.xlane.f32.xlu0 %v1985_v54  ;;  %v1707_v34 = vpop.f32.mrb[55].mxu1  ;;  %v1921_v6 = vmul.f32 0.088388346, %v6617_v4  ;;  %v8747_v13 = vadd.f32 %v1920_v38, %v8732_v46 }
 0x34a   : > { %v1919_v16 = vmul.f32 0.088388346, %v1707_v34  ;;  %v8737_v48 = vadd.f32 %v1918_v15, %v8726_v29 }
 0x34b   : > { %1989 = vmax.xlane.f32.xlu1 %v1988_v43  ;;  %v8752_v21 = vadd.f32 %v1921_v6, %v8739_v51  ;;  %v1997_v49 = vsel %vm1978_vm0, %v8747_v13, -inf }
 0x34c   : > { %v1991_v61 = vsel %vm1978_vm0, %v8737_v48, -inf  ;;  %v8744_v45 = vadd.f32 %v1919_v16, %v8730_v18 }
 0x34d   : > { %1992 = vmax.xlane.f32.xlu0 %v1991_v61  ;;  %v2000_v59 = vsel %vm1978_vm0, %v8752_v21, -inf }
 0x34e   : > { %v1994_v50 = vsel %vm1978_vm0, %v8744_v45, -inf }
 0x34f   : > { %1995 = vmax.xlane.f32.xlu1 %v1994_v50 }
 0x351   : > { %1998 = vmax.xlane.f32.xlu0 %v1997_v49 }
 0x353   : > { %2001 = vmax.xlane.f32.xlu1 %v2000_v59 }
 0x35e   : > { %v6628_v22 = vpop.f32.mrb[56].mxu1 }
 0x35f   : > { %v1924_v60 = vmul.f32 0.088388346, %v6628_v22  ;;  %v1753_v27 = vpop.f32.mrb[57].mxu1 }
 0x360   : > { %v1922_v63 = vmul.f32 0.088388346, %v1753_v27  ;;  %v6629_v31 = vpop.f32.mrb[58].mxu1 }
 0x361   : > { %v1925_v28 = vmul.f32 0.088388346, %v6629_v31  ;;  %v1756_v56 = vpop.f32.mrb[59].mxu1  ;;  %v8762_v14 = vadd.f32 %v1924_v60, %v8706_v12 }
 0x362   : > { %v1923_v35 = vmul.f32 0.088388346, %v1756_v56  ;;  %v8759_v26 = vadd.f32 %v1922_v63, %v8702_v8 }
 0x363   : > { %v8770_v10 = vadd.f32 %v1925_v28, %v8711_v41  ;;  %v2009_v32 = vsel %vm1978_vm0, %v8762_v14, -inf }
 0x364   : > { %v2003_v36 = vsel %vm1978_vm0, %v8759_v26, -inf  ;;  %v8767_v2 = vadd.f32 %v1923_v35, %v8704_v30 }
 0x365   : > { %2004 = vmax.xlane.f32.xlu0 %v2003_v36  ;;  %v2012_v5 = vsel %vm1978_vm0, %v8770_v10, -inf }
 0x366   : > { %v6632_v1 = vpop.f32.mrb[60].mxu1  ;;  %v2006_v17 = vsel %vm1978_vm0, %v8767_v2, -inf }
 0x367   : > { %v1928_v57 = vmul.f32 0.088388346, %v6632_v1  ;;  %2007 = vmax.xlane.f32.xlu1 %v2006_v17  ;;  %v1769_v39 = vpop.f32.mrb[61].mxu1 }
 0x368   : > { %v1926_v24 = vmul.f32 0.088388346, %v1769_v39  ;;  %v6633_v9 = vpop.f32.mrb[62].mxu1 }
 0x369   : > { %v1929_v23 = vmul.f32 0.088388346, %v6633_v9  ;;  %2010 = vmax.xlane.f32.xlu0 %v2009_v32  ;;  %v1772_v58 = vpop.f32.mrb[63].mxu1  ;;  %v8782_v20 = vadd.f32 %v1928_v57, %v8732_v46 }
 0x36a   : > { %v1927_v53 = vmul.f32 0.088388346, %v1772_v58  ;;  %v8779_v47 = vadd.f32 %v1926_v24, %v8726_v29 }
 0x36b   : > { %2013 = vmax.xlane.f32.xlu1 %v2012_v5  ;;  %v8790_v15 = vadd.f32 %v1929_v23, %v8739_v51  ;;  %v2021_v54 = vsel %vm1978_vm0, %v8782_v20, -inf }
 0x36c   : > { %v2015_v40 = vsel %vm1978_vm0, %v8779_v47, -inf  ;;  %v8787_v38 = vadd.f32 %v1927_v53, %v8730_v18 }
 0x36d   : > { %2016 = vmax.xlane.f32.xlu0 %v2015_v40  ;;  %v2024_v34 = vsel %vm1978_vm0, %v8790_v15, -inf }
 0x36e   : > { %v2018_v4 = vsel %vm1978_vm0, %v8787_v38, -inf }
 0x36f   : > { %2019 = vmax.xlane.f32.xlu1 %v2018_v4 }
 0x371   : > { %2022 = vmax.xlane.f32.xlu0 %v2021_v54 }
 0x373   : > { %2025 = vmax.xlane.f32.xlu1 %v2024_v34 }
 0x37e   : > { %v6644_v6 = vpop.f32.mrb[48].mxu0 }
 0x37f   : > { %v1932_v16 = vmul.f32 0.088388346, %v6644_v6  ;;  %v1818_v43 = vpop.f32.mrb[49].mxu0 }
 0x380   : > { %v1930_v61 = vmul.f32 0.088388346, %v1818_v43  ;;  %v6645_v50 = vpop.f32.mrb[50].mxu0 }
 0x381   : > { %v1933_v49 = vmul.f32 0.088388346, %v6645_v50  ;;  %v1821_v59 = vpop.f32.mrb[51].mxu0  ;;  %v8802_v27 = vadd.f32 %v1932_v16, %v8706_v12 }
 0x382   : > { %v1931_v22 = vmul.f32 0.088388346, %v1821_v59  ;;  %v8799_v60 = vadd.f32 %v1930_v61, %v8702_v8 }
 0x383   : > { %v8810_v28 = vadd.f32 %v1933_v49, %v8711_v41  ;;  %v2033_v36 = vsel %vm1978_vm0, %v8802_v27, -inf }
 0x384   : > { %v2027_v63 = vsel %vm1978_vm0, %v8799_v60, -inf  ;;  %v8807_v31 = vadd.f32 %v1931_v22, %v8704_v30 }
 0x385   : > { %2028 = vmax.xlane.f32.xlu0 %v2027_v63  ;;  %v2036_v39 = vsel %vm1978_vm0, %v8810_v28, -inf }
 0x386   : > { %v6648_v56 = vpop.f32.mrb[52].mxu0  ;;  %v2030_v35 = vsel %vm1978_vm0, %v8807_v31, -inf }
 0x387   : > { %v1936_v1 = vmul.f32 0.088388346, %v6648_v56  ;;  %v1834_v17 = vpop.f32.mrb[53].mxu0  ;;  %2031 = vmax.xlane.f32.xlu1 %v2030_v35 }
 0x388   : > { %v1934_v32 = vmul.f32 0.088388346, %v1834_v17  ;;  %v6649_v57 = vpop.f32.mrb[54].mxu0 }
 0x389   : > { %v1937_v24 = vmul.f32 0.088388346, %v6649_v57  ;;  %v1837_v9 = vpop.f32.mrb[55].mxu0  ;;  %2034 = vmax.xlane.f32.xlu0 %v2033_v36  ;;  %v8822_v58 = vadd.f32 %v1936_v1, %v8732_v46 }
 0x38a   : > { %v1935_v5 = vmul.f32 0.088388346, %v1837_v9  ;;  %v8819_v23 = vadd.f32 %v1934_v32, %v8726_v29 }
 0x38b   : > { %2037 = vmax.xlane.f32.xlu1 %v2036_v39  ;;  %v8830_v4 = vadd.f32 %v1937_v24, %v8739_v51  ;;  %v2045_v34 = vsel %vm1978_vm0, %v8822_v58, -inf }
 0x38c   : > { %v2039_v53 = vsel %vm1978_vm0, %v8819_v23, -inf  ;;  %v8827_v40 = vadd.f32 %v1935_v5, %v8730_v18 }
 0x38d   : > { %2040 = vmax.xlane.f32.xlu0 %v2039_v53  ;;  %v2048_v6 = vsel %vm1978_vm0, %v8830_v4, -inf }
 0x38e   : > { %v2042_v54 = vsel %vm1978_vm0, %v8827_v40, -inf }
 0x38f   : > { %2043 = vmax.xlane.f32.xlu1 %v2042_v54 }
 0x391   : > { %2046 = vmax.xlane.f32.xlu0 %v2045_v34 }
 0x393   : > { %2049 = vmax.xlane.f32.xlu1 %v2048_v6 }
 0x39e   : > { %v6660_v16 = vpop.f32.mrb[64].mxu1 }
 0x39f   : > { %v1883_v43 = vpop.f32.mrb[65].mxu1 }
 0x3a0   : > { %v6661_v61 = vpop.f32.mrb[66].mxu1 }
 0x3a1   : > { %v1886_v50 = vpop.f32.mrb[67].mxu1 }
 0x3a6   : > { %v8838_v49 = vpop.f32.mrb[68].mxu1 }
 0x3a7   : > { %v8840_v59 = vpop.f32.mrb[69].mxu1 }
 0x3a8   : > { %v8842_v22 = vpop.f32.mrb[70].mxu1 }
 0x3a9   : > { %v8844_v63 = vpop.f32.mrb[71].mxu1 }
 0x3d2   : > { %v1981_v56 = vpop.xlane.xlu0 %1980 }
 0x3d3   : > { %v2075_v35 = vsub.f32 %v8709_v52, %v1981_v56 }
 0x3d4   : > { %v1984_v36 = vpop.xlane.xlu1 %1983 }
 0x3d5   : > { %v2107_v1 = vmul.f32 1.442695, %v2075_v35  ;;  %v2076_v17 = vsub.f32 %v8716_v37, %v1984_v36 }
 0x3d6   : > { %v1987_v32 = vpop.xlane.xlu0 %1986 }
 0x3d7   : > { %7086 = vpow2.f32 %v2107_v1  ;;  %v2109_v57 = vmul.f32 1.442695, %v2076_v17  ;;  %v2077_v39 = vsub.f32 %v8719_v3, %v1987_v32  ;;  %v1938_v1 = vmul.f32 0.088388346, %v1883_v43 }
 0x3d8   : > { %v1990_v24 = vpop.xlane.xlu1 %1989 }
 0x3d9   : > { %7088 = vpow2.f32 %v2109_v57  ;;  %v2111_v9 = vmul.f32 1.442695, %v2077_v39  ;;  %v2078_v5 = vsub.f32 %v8724_v33, %v1990_v24 }
 0x3da   : > { %v1993_v53 = vpop.xlane.xlu0 %1992 }
 0x3db   : > { %7090 = vpow2.f32 %v2111_v9  ;;  %v2113_v54 = vmul.f32 1.442695, %v2078_v5  ;;  %v2079_v52 = vsub.f32 %v8737_v48, %v1993_v53  ;;  %v1939_v48 = vmul.f32 0.088388346, %v1886_v50 }
 0x3dc   : > { %v1996_v34 = vpop.xlane.xlu1 %1995  ;;  %v8867_v9 = vadd.f32 %v1938_v1, %v8702_v8  ;;  %v1941_v50 = vmul.f32 0.088388346, %v6661_v61  ;;  %v1943_v1 = vmul.f32 0.088388346, %v8844_v63 }
 0x3dd   : > { %7092 = vpow2.f32 %v2113_v54  ;;  %v2080_v37 = vsub.f32 %v8744_v45, %v1996_v34  ;;  %v2115_v36 = vmul.f32 1.442695, %v2079_v52  ;;  %v8874_v54 = vadd.f32 %v1939_v48, %v8704_v30 }
 0x3de   : > { %v1999_v6 = vpop.xlane.xlu0 %1998  ;;  %v8884_v61 = vadd.f32 %v1941_v50, %v8711_v41  ;;  %v8915_v50 = vadd.f32 %v1943_v1, %v8730_v18 }
 0x3df   : > { %v2081_v3 = vsub.f32 %v8747_v13, %v1999_v6  ;;  %v2117_v32 = vmul.f32 1.442695, %v2080_v37  ;;  %7094 = vpow2.f32 %v2115_v36  ;;  %v1940_v13 = vmul.f32 0.088388346, %v6660_v16 }
 0x3e0   : > { %v2002_v56 = vpop.xlane.xlu1 %2001  ;;  %v2051_v16 = vsel %vm1978_vm0, %v8867_v9, -inf  ;;  %v2054_v34 = vsel %vm1978_vm0, %v8874_v54, -inf  ;;  %v2060_v6 = vsel %vm1978_vm0, %v8884_v61, -inf  ;;  %v1942_v37 = vmul.f32 0.088388346, %v8840_v59 }
 0x3e1   : > { %v8852_v35 = vpop.eup %7086  ;;  %v2082_v57 = vsub.f32 %v8752_v21, %v2002_v56  ;;  %v2119_v24 = vmul.f32 1.442695, %v2081_v3  ;;  %7096 = vpow2.f32 %v2117_v32  ;;  %v8879_v8 = vadd.f32 %v1940_v13, %v8706_v12 }
 0x3e2   : > { %v2171_v33 = vsel %vm1978_vm0, %v8852_v35, 0.0 }
 0x3e3   : > { %v8857_v17 = vpop.eup %7088  ;;  %2172 = vadd.xlane.f32.xlu0 %v2171_v33  ;;  %v2121_v21 = vmul.f32 1.442695, %v2082_v57  ;;  %7098 = vpow2.f32 %v2119_v24  ;;  %v2057_v30 = vsel %vm1978_vm0, %v8879_v8, -inf  ;;  %v8908_v24 = vadd.f32 %v1942_v37, %v8726_v29 }
 0x3e4   : > { %v2174_v45 = vsel %vm1978_vm0, %v8857_v17, 0.0 }
 0x3e5   : > { %v8862_v39 = vpop.eup %7090  ;;  %2175 = vadd.xlane.f32.xlu1 %v2174_v45  ;;  %7100 = vpow2.f32 %v2121_v21  ;;  %v1944_v45 = vmul.f32 0.088388346, %v8838_v49  ;;  %v1945_v21 = vmul.f32 0.088388346, %v8842_v22 }
 0x3e6   : > { %v2177_v43 = vsel %vm1978_vm0, %v8862_v39, 0.0 }
 0x3e7   : > { %v8869_v5 = vpop.eup %7092  ;;  %2178 = vadd.xlane.f32.xlu0 %v2177_v43 }
 0x3e8   : > { %v2180_v53 = vsel %vm1978_vm0, %v8869_v5, 0.0 }
 0x3e9   : > { %2181 = vadd.xlane.f32.xlu1 %v2180_v53  ;;  %v8888_v52 = vpop.eup %7094 }
 0x3ea   : > { %v2183_v41 = vsel %vm1978_vm0, %v8888_v52, 0.0 }
 0x3eb   : > { %2052 = vmax.xlane.f32.xlu0 %v2051_v16  ;;  %v8892_v12 = vpop.eup %7096  ;;  %v8921_v16 = vadd.f32 %v1944_v45, %v8732_v46 }
 0x3ec   : > { %v2186_v32 = vsel %vm1978_vm0, %v8892_v12, 0.0 }
 0x3ed   : > { %2055 = vmax.xlane.f32.xlu1 %v2054_v34  ;;  %v8897_v36 = vpop.eup %7098 }
 0x3ef   : > { %2058 = vmax.xlane.f32.xlu0 %v2057_v30  ;;  %v8903_v57 = vpop.eup %7100  ;;  %v8927_v30 = vadd.f32 %v1945_v21, %v8739_v51 }
 0x3f0   : > { %v2192_v49 = vsel %vm1978_vm0, %v8903_v57, 0.0 }
 0x3f1   : > { %2061 = vmax.xlane.f32.xlu1 %v2060_v6  ;;  %v2072_v1 = vsel %vm1978_vm0, %v8927_v30, -inf }
 0x3f2   : > { %v2005_v56 = vpop.xlane.xlu0 %2004 }
 0x3f3   : > { %v2083_v3 = vsub.f32 %v8759_v26, %v2005_v56  ;;  %2184 = vadd.xlane.f32.xlu0 %v2183_v41  ;;  %v2189_v26 = vsel %vm1978_vm0, %v8897_v36, 0.0  ;;  %v2069_v41 = vsel %vm1978_vm0, %v8921_v16, -inf }
 0x3f4   : > { %v2008_v33 = vpop.xlane.xlu1 %2007 }
 0x3f5   : > { %v2123_v48 = vmul.f32 1.442695, %v2083_v3  ;;  %v2084_v59 = vsub.f32 %v8767_v2, %v2008_v33  ;;  %2187 = vadd.xlane.f32.xlu1 %v2186_v32 }
 0x3f6   : > { %v2011_v13 = vpop.xlane.xlu0 %2010 }
 0x3f7   : > { %7102 = vpow2.f32 %v2123_v48  ;;  %v2125_v63 = vmul.f32 1.442695, %v2084_v59  ;;  %v2085_v43 = vsub.f32 %v8762_v14, %v2011_v13  ;;  %2190 = vadd.xlane.f32.xlu0 %v2189_v26  ;;  %v2063_v14 = vsel %vm1978_vm0, %v8908_v24, -inf }
 0x3f8   : > { %v2014_v2 = vpop.xlane.xlu1 %2013 }
 0x3f9   : > { %7104 = vpow2.f32 %v2125_v63  ;;  %v2127_v29 = vmul.f32 1.442695, %v2085_v43  ;;  %v2086_v53 = vsub.f32 %v8770_v10, %v2014_v2  ;;  %2193 = vadd.xlane.f32.xlu1 %v2192_v49  ;;  %v2066_v10 = vsel %vm1978_vm0, %v8915_v50, -inf }
 0x3fa   : > { %v2017_v34 = vpop.xlane.xlu0 %2016 }
 0x3fb   : > { %7106 = vpow2.f32 %v2127_v29  ;;  %v2129_v22 = vmul.f32 1.442695, %v2086_v53  ;;  %v2087_v18 = vsub.f32 %v8779_v47, %v2017_v34  ;;  %2064 = vmax.xlane.f32.xlu0 %v2063_v14 }
 0x3fc   : > { %v2020_v6 = vpop.xlane.xlu1 %2019 }
 0x3fd   : > { %7108 = vpow2.f32 %v2129_v22  ;;  %v2131_v37 = vmul.f32 1.442695, %v2087_v18  ;;  %v2088_v46 = vsub.f32 %v8787_v38, %v2020_v6  ;;  %2067 = vmax.xlane.f32.xlu1 %v2066_v10 }
 0x3fe   : > { %v2023_v56 = vpop.xlane.xlu0 %2022 }
 0x3ff   : > { %7110 = vpow2.f32 %v2131_v37  ;;  %v2133_v3 = vmul.f32 1.442695, %v2088_v46  ;;  %v2089_v47 = vsub.f32 %v8782_v20, %v2023_v56  ;;  %2070 = vmax.xlane.f32.xlu0 %v2069_v41 }
 0x400   : > { %v2026_v51 = vpop.xlane.xlu1 %2025 }
 0x401   : > { %v8937_v33 = vpop.eup %7102  ;;  %7112 = vpow2.f32 %v2133_v3  ;;  %v2135_v32 = vmul.f32 1.442695, %v2089_v47  ;;  %v2090_v38 = vsub.f32 %v8790_v15, %v2026_v51  ;;  %2073 = vmax.xlane.f32.xlu1 %v2072_v1 }
 0x402   : > { %v2195_v48 = vsel %vm1978_vm0, %v8937_v33, 0.0 }
 0x403   : > { %v8942_v59 = vpop.eup %7104  ;;  %7114 = vpow2.f32 %v2135_v32  ;;  %v2137_v45 = vmul.f32 1.442695, %v2090_v38  ;;  %2196 = vadd.xlane.f32.xlu0 %v2195_v48 }
 0x404   : > { %v2198_v20 = vsel %vm1978_vm0, %v8942_v59, 0.0 }
 0x405   : > { %v8946_v13 = vpop.eup %7106  ;;  %7116 = vpow2.f32 %v2137_v45  ;;  %2199 = vadd.xlane.f32.xlu1 %v2198_v20 }
 0x406   : > { %v2201_v26 = vsel %vm1978_vm0, %v8946_v13, 0.0 }
 0x407   : > { %v8950_v15 = vpop.eup %7108  ;;  %2202 = vadd.xlane.f32.xlu0 %v2201_v26 }
 0x408   : > { %v2204_v63 = vsel %vm1978_vm0, %v8950_v15, 0.0 }
 0x409   : > { %v8954_v43 = vpop.eup %7110  ;;  %2205 = vadd.xlane.f32.xlu1 %v2204_v63 }
 0x40a   : > { %v2207_v21 = vsel %vm1978_vm0, %v8954_v43, 0.0 }
 0x40b   : > { %v8958_v2 = vpop.eup %7112  ;;  %2208 = vadd.xlane.f32.xlu0 %v2207_v21 }
 0x40c   : > { %v2210_v49 = vsel %vm1978_vm0, %v8958_v2, 0.0 }
 0x40d   : > { %v8962_v29 = vpop.eup %7114  ;;  %2211 = vadd.xlane.f32.xlu1 %v2210_v49 }
 0x40e   : > { %v2213_v53 = vsel %vm1978_vm0, %v8962_v29, 0.0 }
 0x40f   : > { %v8966_v34 = vpop.eup %7116  ;;  %2214 = vadd.xlane.f32.xlu0 %v2213_v53 }
 0x410   : > { %v2216_v14 = vsel %vm1978_vm0, %v8966_v34, 0.0 }
 0x411   : > { %2217 = vadd.xlane.f32.xlu1 %v2216_v14 }
 0x412   : > { %v2029_v22 = vpop.xlane.xlu0 %2028 }
 0x413   : > { %v2091_v18 = vsub.f32 %v8799_v60, %v2029_v22 }
 0x414   : > { %v2032_v6 = vpop.xlane.xlu1 %2031 }
 0x415   : > { %v2139_v10 = vmul.f32 1.442695, %v2091_v18  ;;  %v2092_v37 = vsub.f32 %v8807_v31, %v2032_v6 }
 0x416   : > { %v2035_v46 = vpop.xlane.xlu0 %2034 }
 0x417   : > { %7118 = vpow2.f32 %v2139_v10  ;;  %v2141_v56 = vmul.f32 1.442695, %v2092_v37  ;;  %v2093_v41 = vsub.f32 %v8802_v27, %v2035_v46 }
 0x418   : > { %v2038_v3 = vpop.xlane.xlu1 %2037 }
 0x419   : > { %7120 = vpow2.f32 %v2141_v56  ;;  %v2143_v47 = vmul.f32 1.442695, %v2093_v41  ;;  %v2094_v51 = vsub.f32 %v8810_v28, %v2038_v3 }
 0x41a   : > { %v2041_v1 = vpop.xlane.xlu0 %2040 }
 0x41b   : > { %7122 = vpow2.f32 %v2143_v47  ;;  %v2145_v32 = vmul.f32 1.442695, %v2094_v51  ;;  %v2095_v38 = vsub.f32 %v8819_v23, %v2041_v1 }
 0x41c   : > { %v2044_v60 = vpop.xlane.xlu1 %2043 }
 0x41d   : > { %7124 = vpow2.f32 %v2145_v32  ;;  %v2147_v48 = vmul.f32 1.442695, %v2095_v38  ;;  %v2096_v31 = vsub.f32 %v8827_v40, %v2044_v60 }
 0x41e   : > { %v2047_v45 = vpop.xlane.xlu0 %2046 }
 0x41f   : > { %7126 = vpow2.f32 %v2147_v48  ;;  %v2149_v20 = vmul.f32 1.442695, %v2096_v31  ;;  %v2097_v27 = vsub.f32 %v8822_v58, %v2047_v45 }
 0x420   : > { %v2050_v26 = vpop.xlane.xlu1 %2049 }
 0x421   : > { %v8977_v63 = vpop.eup %7118  ;;  %7128 = vpow2.f32 %v2149_v20  ;;  %v2151_v28 = vmul.f32 1.442695, %v2097_v27  ;;  %v2098_v21 = vsub.f32 %v8830_v4, %v2050_v26 }
 0x422   : > { %v2219_v23 = vsel %vm1978_vm0, %v8977_v63, 0.0 }
 0x423   : > { %v8982_v49 = vpop.eup %7120  ;;  %7130 = vpow2.f32 %v2151_v28  ;;  %v2153_v53 = vmul.f32 1.442695, %v2098_v21  ;;  %2220 = vadd.xlane.f32.xlu0 %v2219_v23 }
 0x424   : > { %v2222_v40 = vsel %vm1978_vm0, %v8982_v49, 0.0 }
 0x425   : > { %v8986_v14 = vpop.eup %7122  ;;  %7132 = vpow2.f32 %v2153_v53  ;;  %2223 = vadd.xlane.f32.xlu1 %v2222_v40 }
 0x426   : > { %v2225_v58 = vsel %vm1978_vm0, %v8986_v14, 0.0 }
 0x427   : > { %v8990_v22 = vpop.eup %7124  ;;  %2226 = vadd.xlane.f32.xlu0 %v2225_v58 }
 0x428   : > { %v2228_v4 = vsel %vm1978_vm0, %v8990_v22, 0.0 }
 0x429   : > { %v8994_v18 = vpop.eup %7126  ;;  %2229 = vadd.xlane.f32.xlu1 %v2228_v4 }
 0x42a   : > { %v2231_v6 = vsel %vm1978_vm0, %v8994_v18, 0.0 }
 0x42b   : > { %v8998_v10 = vpop.eup %7128  ;;  %2232 = vadd.xlane.f32.xlu0 %v2231_v6 }
 0x42c   : > { %v2234_v37 = vsel %vm1978_vm0, %v8998_v10, 0.0 }
 0x42d   : > { %v9002_v46 = vpop.eup %7130  ;;  %2235 = vadd.xlane.f32.xlu1 %v2234_v37 }
 0x42e   : > { %v2237_v56 = vsel %vm1978_vm0, %v9002_v46, 0.0 }
 0x42f   : > { %v9006_v41 = vpop.eup %7132  ;;  %2238 = vadd.xlane.f32.xlu0 %v2237_v56 }
 0x430   : > { %v2240_v3 = vsel %vm1978_vm0, %v9006_v41, 0.0 }
 0x431   : > { %2241 = vadd.xlane.f32.xlu1 %v2240_v3 }
 0x470   : > { %v2173_v47 = vpop.xlane.xlu0 %2172 }
 0x471   : > { %7134 = vrcp.f32 %v2173_v47 }
 0x472   : > { %v2176_v51 = vpop.xlane.xlu1 %2175 }
 0x473   : > { %7136 = vrcp.f32 %v2176_v51 }
 0x474   : > { %v2179_v1 = vpop.xlane.xlu0 %2178 }
 0x475   : > { %7138 = vrcp.f32 %v2179_v1 }
 0x476   : > { %v2182_v32 = vpop.xlane.xlu1 %2181 }
 0x477   : > { %7140 = vrcp.f32 %v2182_v32 }
 0x478   : > { %v2053_v38 = vpop.xlane.xlu0 %2052 }
 0x479   : > { %v2099_v60 = vsub.f32 %v8867_v9, %v2053_v38 }
 0x47a   : > { %v2056_v48 = vpop.xlane.xlu1 %2055 }
 0x47b   : > { %v7135_v31 = vpop.eup %7134  ;;  %v2155_v45 = vmul.f32 1.442695, %v2099_v60  ;;  %v2100_v20 = vsub.f32 %v8874_v54, %v2056_v48 }
 0x47c   : > { %v2059_v27 = vpop.xlane.xlu0 %2058  ;;  %v2268_v53 = vmul.f32 %v7135_v31, %v8852_v35 }
 0x47d   : > { %v7137_v26 = vpop.eup %7136  ;;  %7142 = vpow2.f32 %v2155_v45  ;;  %v2157_v28 = vmul.f32 1.442695, %v2100_v20  ;;  %v2101_v21 = vsub.f32 %v8879_v8, %v2059_v27 }
 0x47e   : > { %v2062_v23 = vpop.xlane.xlu1 %2061  ;;  %v2270_v40 = vmul.f32 %v7137_v26, %v8857_v17 }
 0x47f   : > { %v7139_v58 = vpop.eup %7138  ;;  %7144 = vpow2.f32 %v2157_v28  ;;  %v2159_v4 = vmul.f32 1.442695, %v2101_v21  ;;  %v2102_v9 = vsub.f32 %v8884_v61, %v2062_v23 }
 0x480   : > { %v2185_v6 = vpop.xlane.xlu0 %2184  ;;  %v2331_v37 = vpack.c.bf16 %v2270_v40, %v2268_v53  ;;  %v2272_v3 = vmul.f32 %v7139_v58, %v8862_v39 }
 0x481   : > { %v7141_v56 = vpop.eup %7140  ;;  %7146 = vpow2.f32 %v2159_v4  ;;  %v2161_v54 = vmul.f32 1.442695, %v2102_v9 }
 0x482   : > { %v2274_v47 = vmul.f32 %v7141_v56, %v8869_v5  ;;  %7148 = vrcp.f32 %v2185_v6  ;;  %6674 = vmatprep.mubr.msk.bf16.mxu0 %vm1978_vm0, %v2331_v37  ;;  %v2188_v35 = vpop.xlane.xlu1 %2187 }
 0x483   : > { %7150 = vpow2.f32 %v2161_v54 }
 0x484   : > { %v2332_v17 = vpack.c.bf16 %v2274_v47, %v2272_v3  ;;  %7152 = vrcp.f32 %v2188_v35  ;;  %v2191_v8 = vpop.xlane.xlu0 %2190 }
 0x485   : > { %7154 = vrcp.f32 %v2191_v8 }
 0x486   : > { %6675 = vmatmul.mubr.msk.bf16.vlgmr.msra.gmra.mrb[56].mxu0 %vm1978_vm0, %v2332_v17  ;;  %v2194_v61 = vpop.xlane.xlu1 %2193 }
 0x487   : > { %v9020_v51 = vpop.eup %7142  ;;  %6699 = vmatpush3.bf16.msra.mxu0 %v8686_v62  ;;  %7156 = vrcp.f32 %v2194_v61 }
 0x488   : > { %6700 = vmatprep.subr.bf16.mxu0 %v8684_v25  ;;  %v2065_v39 = vpop.xlane.xlu0 %2064  ;;  %v2243_v5 = vsel %vm1978_vm0, %v9020_v51, 0.0 }
 0x489   : > { %v9026_v1 = vpop.eup %7144  ;;  %v2103_v32 = vsub.f32 %v8908_v24, %v2065_v39  ;;  %2244 = vadd.xlane.f32.xlu0 %v2243_v5 }
 0x48a   : > { %v2068_v38 = vpop.xlane.xlu1 %2067  ;;  %v2246_v60 = vsel %vm1978_vm0, %v9026_v1, 0.0 }
 0x48b   : > { %v9031_v48 = vpop.eup %7146  ;;  %v2163_v31 = vmul.f32 1.442695, %v2103_v32  ;;  %6701 = vmatpush3.bf16.msra.mxu0 %v8684_v25  ;;  %v2104_v62 = vsub.f32 %v8915_v50, %v2068_v38  ;;  %2247 = vadd.xlane.f32.xlu1 %v2246_v60 }
 0x48c   : > { %v7149_v45 = vpop.eup %7148  ;;  %6702 = vmatprep.subr.bf16.mxu0 %v8691_v44  ;;  %v2071_v20 = vpop.xlane.xlu0 %2070  ;;  %v2249_v24 = vsel %vm1978_vm0, %v9031_v48, 0.0 }
 0x48d   : > { %v9038_v27 = vpop.eup %7150  ;;  %7158 = vpow2.f32 %v2163_v31  ;;  %v2165_v26 = vmul.f32 1.442695, %v2104_v62  ;;  %v2105_v28 = vsub.f32 %v8921_v16, %v2071_v20  ;;  %2250 = vadd.xlane.f32.xlu0 %v2249_v24  ;;  %v2276_v50 = vmul.f32 %v7149_v45, %v8888_v52 }
 0x48e   : > { %v7153_v21 = vpop.eup %7152  ;;  %v2074_v23 = vpop.xlane.xlu1 %2073  ;;  %v2252_v25 = vsel %vm1978_vm0, %v9038_v27, 0.0 }
 0x48f   : > { %v7155_v53 = vpop.eup %7154  ;;  %7160 = vpow2.f32 %v2165_v26  ;;  %v2167_v40 = vmul.f32 1.442695, %v2105_v28  ;;  %6703 = vmatpush3.bf16.msra.mxu0 %v8691_v44  ;;  %v2106_v58 = vsub.f32 %v8927_v30, %v2074_v23  ;;  %2253 = vadd.xlane.f32.xlu1 %v2252_v25  ;;  %v2278_v4 = vmul.f32 %v7153_v21, %v8892_v12 }
 0x490   : > { %6704 = vmatprep.subr.bf16.mxu0 %v8689_v0  ;;  %v2197_v16 = vpop.xlane.xlu0 %2196  ;;  %v2280_v52 = vmul.f32 %v7155_v53, %v8897_v36 }
 0x491   : > { %v7157_v9 = vpop.eup %7156  ;;  %7162 = vpow2.f32 %v2167_v40  ;;  %v2169_v6 = vmul.f32 1.442695, %v2106_v58  ;;  %v2333_v37 = vpack.c.bf16 %v2278_v4, %v2276_v50 }
 0x492   : > { %7164 = vrcp.f32 %v2197_v16  ;;  %v2200_v56 = vpop.xlane.xlu1 %2199  ;;  %v2282_v54 = vmul.f32 %v7157_v9, %v8903_v57  ;;  %v6934_v9 = vld [vmem:[#allocation8] sm:$0xff]  }
 0x493   : > { %7166 = vpow2.f32 %v2169_v6  ;;  %6678 = vmatprep.mubr.msk.bf16.mxu0 %vm1978_vm0, %v2333_v37  ;;  %6705 = vmatpush3.bf16.msra.mxu0 %v8689_v0 }
 0x494   : > { %7168 = vrcp.f32 %v2200_v56  ;;  %v2203_v44 = vpop.xlane.xlu0 %2202  ;;  %v2334_v12 = vpack.c.bf16 %v2282_v54, %v2280_v52  ;;  %6730 = vmatprep.subr.bf16.mxu0 %v6934_v9 }
 0x495   : > { %7170 = vrcp.f32 %v2203_v44 }
 0x496   : > { %6679 = vmatmul.mubr.msk.bf16.gmra.mrb[60].mxu0 %vm1978_vm0, %v2334_v12  ;;  %v2206_v30 = vpop.xlane.xlu1 %2205 }
 0x497   : > { %v9053_v3 = vpop.eup %7158  ;;  %7172 = vrcp.f32 %v2206_v30 }
 0x498   : > { %v2209_v47 = vpop.xlane.xlu0 %2208  ;;  %v2255_v36 = vsel %vm1978_vm0, %v9053_v3, 0.0 }
 0x499   : > { %v9057_v57 = vpop.eup %7160  ;;  %7174 = vrcp.f32 %v2209_v47  ;;  %2256 = vadd.xlane.f32.xlu0 %v2255_v36  ;;  %v6935_v36 = vld [vmem:[#allocation8 + $0x8] sm:$0xff]  }
 0x49a   : > { %v2212_v35 = vpop.xlane.xlu1 %2211  ;;  %v2258_v0 = vsel %vm1978_vm0, %v9057_v57, 0.0 }
 0x49b   : > { %v9061_v17 = vpop.eup %7162  ;;  %7176 = vrcp.f32 %v2212_v35  ;;  %2259 = vadd.xlane.f32.xlu1 %v2258_v0 }
 0x49c   : > { %v7165_v8 = vpop.eup %7164  ;;  %v2215_v61 = vpop.xlane.xlu0 %2214  ;;  %v2261_v39 = vsel %vm1978_vm0, %v9061_v17, 0.0 }
 0x49d   : > { %v9065_v5 = vpop.eup %7166  ;;  %7178 = vrcp.f32 %v2215_v61  ;;  %2262 = vadd.xlane.f32.xlu0 %v2261_v39  ;;  %v2284_v62 = vmul.f32 %v7165_v8, %v8937_v33  ;;  %v6936_v61 = vld [vmem:[#allocation8 + $0x10] sm:$0xff]  }
 0x49e   : > { %v7169_v32 = vpop.eup %7168  ;;  %v2218_v38 = vpop.xlane.xlu1 %2217  ;;  %v2264_v60 = vsel %vm1978_vm0, %v9065_v5, 0.0 }
 0x49f   : > { %v7171_v31 = vpop.eup %7170  ;;  %7180 = vrcp.f32 %v2218_v38  ;;  %2265 = vadd.xlane.f32.xlu1 %v2264_v60  ;;  %v2286_v45 = vmul.f32 %v7169_v32, %v8942_v59  ;;  %v6937_v38 = vld [vmem:[#allocation8 + $0x18] sm:$0xff]   ;;  %v6940_v60 = vld [vmem:[#allocation8 + $0x30] sm:$0xff]  }
 0x4a0   : > { %v2288_v26 = vmul.f32 %v7171_v31, %v8946_v13 }
 0x4a1   : > { %v7173_v20 = vpop.eup %7172  ;;  %v2335_v24 = vpack.c.bf16 %v2286_v45, %v2284_v62 }
 0x4a2   : > { %v2290_v28 = vmul.f32 %v7173_v20, %v8950_v15 }
 0x4a3   : > { %v7175_v21 = vpop.eup %7174  ;;  %6690 = vmatprep.mubr.msk.bf16.mxu1 %vm1978_vm0, %v2335_v24 }
 0x4a4   : > { %v2336_v23 = vpack.c.bf16 %v2290_v28, %v2288_v26  ;;  %v2292_v50 = vmul.f32 %v7175_v21, %v8954_v43 }
 0x4a5   : > { %v7177_v25 = vpop.eup %7176 }
 0x4a6   : > { %6691 = vmatmul.mubr.msk.bf16.vlgmr.msra.gmra.mrb[72].mxu1 %vm1978_vm0, %v2336_v23  ;;  %v2294_v53 = vmul.f32 %v7177_v25, %v8958_v2 }
 0x4a7   : > { %v7179_v33 = vpop.eup %7178  ;;  %6715 = vmatpush3.bf16.msra.mxu1 %v8695_v7 }
 0x4a8   : > { %6716 = vmatprep.subr.bf16.mxu1 %v8693_v55  ;;  %v2337_v59 = vpack.c.bf16 %v2294_v53, %v2292_v50  ;;  %v2296_v15 = vmul.f32 %v7179_v33, %v8962_v29 }
 0x4a9   : > { %v7181_v13 = vpop.eup %7180 }
 0x4aa   : > { %6694 = vmatprep.mubr.msk.bf16.mxu1 %vm1978_vm0, %v2337_v59  ;;  %v2298_v40 = vmul.f32 %v7181_v13, %v8966_v34 }
 0x4ab   : > { %6717 = vmatpush3.bf16.msra.mxu1 %v8693_v55 }
 0x4ac   : > { %6718 = vmatprep.subr.bf16.mxu1 %v8700_v11  ;;  %v2338_v43 = vpack.c.bf16 %v2298_v40, %v2296_v15 }
 0x4ae   : > { %6695 = vmatmul.mubr.msk.bf16.gmra.mrb[76].mxu1 %vm1978_vm0, %v2338_v43 }
 0x4af   : > { %6719 = vmatpush3.bf16.msra.mxu1 %v8700_v11 }
 0x4b0   : > { %6720 = vmatprep.subr.bf16.mxu1 %v8698_v19  ;;  %v2221_v7 = vpop.xlane.xlu0 %2220 }
 0x4b1   : > { %7182 = vrcp.f32 %v2221_v7 }
 0x4b2   : > { %v2224_v2 = vpop.xlane.xlu1 %2223 }
 0x4b3   : > { %7184 = vrcp.f32 %v2224_v2  ;;  %6721 = vmatpush3.bf16.msra.mxu1 %v8698_v19 }
 0x4b4   : > { %v2227_v29 = vpop.xlane.xlu0 %2226 }
 0x4b5   : > { %7186 = vrcp.f32 %v2227_v29 }
 0x4b6   : > { %v2230_v34 = vpop.xlane.xlu1 %2229 }
 0x4b7   : > { %7188 = vrcp.f32 %v2230_v34 }
 0x4b8   : > { %v2233_v55 = vpop.xlane.xlu0 %2232 }
 0x4b9   : > { %7190 = vrcp.f32 %v2233_v55 }
 0x4ba   : > { %v2236_v58 = vpop.xlane.xlu1 %2235 }
 0x4bb   : > { %v7183_v4 = vpop.eup %7182  ;;  %7192 = vrcp.f32 %v2236_v58 }
 0x4bc   : > { %v2239_v16 = vpop.xlane.xlu0 %2238  ;;  %v2300_v37 = vmul.f32 %v7183_v4, %v8977_v63 }
 0x4bd   : > { %v7185_v11 = vpop.eup %7184  ;;  %7194 = vrcp.f32 %v2239_v16 }
 0x4be   : > { %v2242_v6 = vpop.xlane.xlu1 %2241  ;;  %v2302_v56 = vmul.f32 %v7185_v11, %v8982_v49 }
 0x4bf   : > { %v7187_v19 = vpop.eup %7186  ;;  %7196 = vrcp.f32 %v2242_v6 }
 0x4c0   : > { %v2339_v52 = vpack.c.bf16 %v2302_v56, %v2300_v37  ;;  %v2304_v44 = vmul.f32 %v7187_v19, %v8986_v14 }
 0x4c1   : > { %v7189_v54 = vpop.eup %7188 }
 0x4c2   : > { %v2306_v12 = vmul.f32 %v7189_v54, %v8990_v22  ;;  %6706 = vmatprep.mubr.msk.bf16.mxu0 %vm1978_vm0, %v2339_v52 }
 0x4c3   : > { %v7191_v30 = vpop.eup %7190 }
 0x4c4   : > { %v2340_v47 = vpack.c.bf16 %v2306_v12, %v2304_v44  ;;  %v2308_v63 = vmul.f32 %v7191_v30, %v8994_v18  ;;  %v6938_v18 = vld [vmem:[#allocation8 + $0x20] sm:$0xff]  }
 0x4c5   : > { %v7193_v35 = vpop.eup %7192 }
 0x4c6   : > { %6707 = vmatmul.mubr.msk.bf16.vlgmr.msra.gmra.mrb[64].mxu0 %vm1978_vm0, %v2340_v47  ;;  %v2310_v49 = vmul.f32 %v7193_v35, %v8998_v10  ;;  %v6939_v10 = vld [vmem:[#allocation8 + $0x28] sm:$0xff]  }
 0x4c7   : > { %v7195_v0 = vpop.eup %7194  ;;  %6731 = vmatpush3.bf16.msra.mxu0 %v6934_v9 }
 0x4c8   : > { %v2341_v8 = vpack.c.bf16 %v2310_v49, %v2308_v63  ;;  %6732 = vmatprep.subr.bf16.mxu0 %v6935_v36  ;;  %v2312_v22 = vmul.f32 %v7195_v0, %v9002_v46  ;;  %v6941_v46 = vld [vmem:[#allocation8 + $0x38] sm:$0xff]  }
 0x4c9   : > { %v7197_v14 = vpop.eup %7196 }
 0x4ca   : > { %6710 = vmatprep.mubr.msk.bf16.mxu0 %vm1978_vm0, %v2341_v8  ;;  %v2314_v39 = vmul.f32 %v7197_v14, %v9006_v41 }
 0x4cb   : > { %6733 = vmatpush3.bf16.msra.mxu0 %v6935_v36 }
 0x4cc   : > { %v2342_v32 = vpack.c.bf16 %v2314_v39, %v2312_v22  ;;  %6734 = vmatprep.subr.bf16.mxu0 %v6936_v61 }
 0x4ce   : > { %6711 = vmatmul.mubr.msk.bf16.gmra.mrb[68].mxu0 %vm1978_vm0, %v2342_v32 }
 0x4cf   : > { %6735 = vmatpush3.bf16.msra.mxu0 %v6936_v61 }
 0x4d0   : > { %6736 = vmatprep.subr.bf16.mxu0 %v6937_v38 }
 0x4d3   : > { %6737 = vmatpush3.bf16.msra.mxu0 %v6937_v38 }
 0x4d4   : > { %6738 = vmatprep.subr.bf16.mxu0 %v6938_v18 }
 0x4d7   : > { %6739 = vmatpush3.bf16.msra.mxu0 %v6938_v18 }
 0x4d8   : > { %6740 = vmatprep.subr.bf16.mxu0 %v6939_v10 }
 0x4db   : > { %6741 = vmatpush3.bf16.msra.mxu0 %v6939_v10 }
 0x4dc   : > { %6742 = vmatprep.subr.bf16.mxu0 %v6940_v60 }
 0x4df   : > { %6743 = vmatpush3.bf16.msra.mxu0 %v6940_v60 }
 0x4e0   : > { %6744 = vmatprep.subr.bf16.mxu0 %v6941_v46 }
 0x4e3   : > { %6745 = vmatpush3.bf16.msra.mxu0 %v6941_v46 }
 0x516   : > { %v2245_v41 = vpop.xlane.xlu0 %2244 }
 0x517   : > { %7198 = vrcp.f32 %v2245_v41 }
 0x518   : > { %v2248_v31 = vpop.xlane.xlu1 %2247 }
 0x519   : > { %7200 = vrcp.f32 %v2248_v31 }
 0x51a   : > { %v2251_v62 = vpop.xlane.xlu0 %2250 }
 0x51b   : > { %7202 = vrcp.f32 %v2251_v62 }
 0x51c   : > { %v2254_v45 = vpop.xlane.xlu1 %2253 }
 0x51d   : > { %7204 = vrcp.f32 %v2254_v45 }
 0x521   : > { %v7199_v20 = vpop.eup %7198 }
 0x522   : > { %v2316_v26 = vmul.f32 %v7199_v20, %v9020_v51 }
 0x523   : > { %v7201_v24 = vpop.eup %7200 }
 0x524   : > { %v2318_v28 = vmul.f32 %v7201_v24, %v9026_v1 }
 0x525   : > { %v7203_v21 = vpop.eup %7202 }
 0x526   : > { %v2257_v23 = vpop.xlane.xlu0 %2256  ;;  %v2343_v25 = vpack.c.bf16 %v2318_v28, %v2316_v26  ;;  %v2320_v53 = vmul.f32 %v7203_v21, %v9031_v48 }
 0x527   : > { %v7205_v50 = vpop.eup %7204  ;;  %7206 = vrcp.f32 %v2257_v23 }
 0x528   : > { %v2322_v33 = vmul.f32 %v7205_v50, %v9038_v27  ;;  %6722 = vmatprep.mubr.msk.bf16.mxu1 %vm1978_vm0, %v2343_v25  ;;  %v2260_v59 = vpop.xlane.xlu1 %2259 }
 0x529   : > { %7208 = vrcp.f32 %v2260_v59 }
 0x52a   : > { %v2344_v13 = vpack.c.bf16 %v2322_v33, %v2320_v53  ;;  %v2263_v15 = vpop.xlane.xlu0 %2262 }
 0x52b   : > { %7210 = vrcp.f32 %v2263_v15 }
 0x52c   : > { %v2266_v40 = vpop.xlane.xlu1 %2265  ;;  %6723 = vmatmul.mubr.msk.bf16.vlgmr.msra.gmra.mrb[80].mxu1 %vm1978_vm0, %v2344_v13  ;;  %v7534_v13 = vld [vmem:[%s8146_s13] sm:$0xff] }
 0x52d   : > { %7212 = vrcp.f32 %v2266_v40 }
 0x531   : > { %v7207_v51 = vpop.eup %7206 }
 0x532   : > { %v2324_v43 = vmul.f32 %v7207_v51, %v9053_v3 }
 0x533   : > { %v7209_v1 = vpop.eup %7208 }
 0x534   : > { %v2326_v7 = vmul.f32 %v7209_v1, %v9057_v57  ;;  %v7535_v1 = vld [vmem:[%s8146_s13 + $0x8] sm:$0xff] }
 0x535   : > { %v7211_v48 = vpop.eup %7210 }
 0x536   : > { %v2345_v2 = vpack.c.bf16 %v2326_v7, %v2324_v43  ;;  %v2328_v29 = vmul.f32 %v7211_v48, %v9061_v17 }
 0x537   : > { %v7213_v27 = vpop.eup %7212 }
 0x538   : > { %6726 = vmatprep.mubr.msk.bf16.mxu1 %vm1978_vm0, %v2345_v2  ;;  %v2330_v34 = vmul.f32 %v7213_v27, %v9065_v5  ;;  %v7536_v2 = vld [vmem:[%s8146_s13 + $0x10] sm:$0xff] }
 0x53a   : > { %v2346_v55 = vpack.c.bf16 %v2330_v34, %v2328_v29  ;;  %v7537_v29 = vld [vmem:[%s8146_s13 + $0x18] sm:$0xff] }
 0x53c   : > { %6727 = vmatmul.mubr.msk.bf16.gmra.mrb[84].mxu1 %vm1978_vm0, %v2346_v55 }
 0x53d   : > { %3716 = vmatprep.mubr.bf16.mxu1 %v7832_v42 }
 0x559   : > { %v6676_v58 = vpop.f32.mrb[56].mxu0 }
 0x55a   : > { %v2393_v4 = vpop.f32.mrb[57].mxu0 }
 0x55b   : > { %v6677_v16 = vpop.f32.mrb[58].mxu0 }
 0x55c   : > { %v2656_v3 = vpack.c.bf16 %v6677_v16, %v6676_v58  ;;  %v2396_v9 = vpop.f32.mrb[59].mxu0 }
 0x55d   : > { %v2655_v57 = vpack.c.bf16 %v2396_v9, %v2393_v4 }
 0x55f   : > { %6746 = vmatprep.mubr.bf16.mxu0 %v2655_v57 }
 0x560   : > { %6747 = vmatmul.mubr.bf16.vlgmr.msra.gmra.mrb[72].mxu0 %v2656_v3  ;;  %v7538_v3 = vld [vmem:[%s8146_s13 + $0x20] sm:$0xff] }
 0x569   : > { %v6680_v11 = vpop.f32.mrb[60].mxu0 }
 0x56a   : > { %v2409_v6 = vpop.f32.mrb[61].mxu0 }
 0x56b   : > { %v6681_v37 = vpop.f32.mrb[62].mxu0 }
 0x56c   : > { %v2658_v56 = vpack.c.bf16 %v6681_v37, %v6680_v11  ;;  %v2412_v17 = vpop.f32.mrb[63].mxu0  ;;  %v6944_v11 = vld [vmem:[#allocation10 + $0xc] ss:$16 sps:$4 sm:$0xff]  }
 0x56d   : > { %v2657_v19 = vpack.c.bf16 %v2412_v17, %v2409_v6  ;;  %v6947_v6 = vld [vmem:[#allocation10 + $0x4] ss:$16 sps:$4 sm:$0xff]   ;;  %v6945_v17 = vld [vmem:[#allocation10] ss:$16 sps:$4 sm:$0xff]   ;;  %3877 = vmatprep.subr.bf16.mxu0 %v6944_v11  ;;  %v6986_v11 = vld [vmem:[#allocation10 + $0xec] ss:$16 sps:$4 sm:$0xff]  }
 0x56e   : > { %3684 = vmatprep.subr.bf16.mxu1 %v6947_v6  ;;  %v6989_v6 = vld [vmem:[#allocation10 + $0xe4] ss:$16 sps:$4 sm:$0xff]  }
 0x56f   : > { %6750 = vmatprep.mubr.bf16.mxu0 %v2657_v19  ;;  %v7539_v19 = vld [vmem:[%s8146_s13 + $0x28] sm:$0xff]  ;;  %3685 = vmatpush1.bf16.msra.mxu1 %v6945_v17 }
 0x570   : > { %6751 = vmatmul.mubr.bf16.gmra.mrb[76].mxu0 %v2658_v56  ;;  %v6942_v56 = vld [vmem:[#allocation10 + $0x8] ss:$16 sps:$4 sm:$0xff]  }
 0x571   : > { %3878 = vmatpush1.bf16.msra.mxu0 %v6942_v56  ;;  %v6987_v56 = vld [vmem:[#allocation10 + $0xe0] ss:$16 sps:$4 sm:$0xff]  }
 0x579   : > { %v6692_v5 = vpop.f32.mrb[72].mxu1 }
 0x57a   : > { %v2470_v52 = vpop.f32.mrb[73].mxu1 }
 0x57b   : > { %v6693_v54 = vpop.f32.mrb[74].mxu1 }
 0x57c   : > { %v2660_v44 = vpack.c.bf16 %v6693_v54, %v6692_v5  ;;  %v2473_v12 = vpop.f32.mrb[75].mxu1  ;;  %v6950_v54 = vld [vmem:[#allocation10 + $0x2c] ss:$16 sps:$4 sm:$0xff]  }
 0x57d   : > { %v2659_v30 = vpack.c.bf16 %v2473_v12, %v2470_v52  ;;  %v6948_v12 = vld [vmem:[#allocation10 + $0x28] ss:$16 sps:$4 sm:$0xff]   ;;  %3879 = vmatprep.subr.bf16.mxu0 %v6950_v54 }
 0x57e   : > { %3880 = vmatpush1.bf16.msra.mxu0 %v6948_v12  ;;  %v7547_v54 = vld [vmem:[%s8146_s13 + $0x68] sm:$0xff] }
 0x57f   : > { %6754 = vmatprep.mubr.bf16.mxu0 %v2659_v30  ;;  %v6951_v30 = vld [vmem:[#allocation10 + $0x20] ss:$16 sps:$4 sm:$0xff]  }
 0x580   : > { %6755 = vmatmul.mubr.bf16.gmra.mrb[80].mxu0 %v2660_v44  ;;  %v6953_v44 = vld [vmem:[#allocation10 + $0x24] ss:$16 sps:$4 sm:$0xff]  }
 0x581   : > { %v6696_v47 = vpop.f32.mrb[76].mxu1  ;;  %3686 = vmatprep.subr.bf16.mxu1 %v6953_v44 }
 0x582   : > { %v2486_v36 = vpop.f32.mrb[77].mxu1  ;;  %3687 = vmatpush1.bf16.msra.mxu1 %v6951_v30 }
 0x583   : > { %v6697_v35 = vpop.f32.mrb[78].mxu1 }
 0x584   : > { %v2662_v63 = vpack.c.bf16 %v6697_v35, %v6696_v47  ;;  %v2489_v49 = vpop.f32.mrb[79].mxu1 }
 0x585   : > { %v2661_v0 = vpack.c.bf16 %v2489_v49, %v2486_v36  ;;  %v7540_v36 = vld [vmem:[%s8146_s13 + $0x30] sm:$0xff] }
 0x586   : > { %v6959_v49 = vld [vmem:[#allocation10 + $0x44] ss:$16 sps:$4 sm:$0xff]  }
 0x587   : > { %6758 = vmatprep.mubr.bf16.mxu0 %v2661_v0  ;;  %v6954_v0 = vld [vmem:[#allocation10 + $0x48] ss:$16 sps:$4 sm:$0xff]   ;;  %3688 = vmatprep.subr.bf16.mxu1 %v6959_v49 }
 0x588   : > { %6759 = vmatmul.mubr.bf16.gmra.mrb[84].mxu0 %v2662_v63  ;;  %v6956_v63 = vld [vmem:[#allocation10 + $0x4c] ss:$16 sps:$4 sm:$0xff]  }
 0x589   : > { %3881 = vmatprep.subr.bf16.mxu0 %v6956_v63  ;;  %v7549_v63 = vld [vmem:[%s8146_s13 + $0x78] sm:$0xff] }
 0x58a   : > { %3882 = vmatpush1.bf16.msra.mxu0 %v6954_v0 }
 0x599   : > { %v6708_v8 = vpop.f32.mrb[64].mxu0 }
 0x59a   : > { %v2547_v61 = vpop.f32.mrb[65].mxu0 }
 0x59b   : > { %v6709_v14 = vpop.f32.mrb[66].mxu0 }
 0x59c   : > { %v2664_v22 = vpack.c.bf16 %v6709_v14, %v6708_v8  ;;  %v2550_v39 = vpop.f32.mrb[67].mxu0  ;;  %v6957_v8 = vld [vmem:[#allocation10 + $0x40] ss:$16 sps:$4 sm:$0xff]  }
 0x59d   : > { %v2663_v32 = vpack.c.bf16 %v2550_v39, %v2547_v61  ;;  %v7541_v61 = vld [vmem:[%s8146_s13 + $0x38] sm:$0xff]  ;;  %3689 = vmatpush1.bf16.msra.mxu1 %v6957_v8 }
 0x59e   : > { %v6962_v39 = vld [vmem:[#allocation10 + $0x6c] ss:$16 sps:$4 sm:$0xff]  }
 0x59f   : > { %6762 = vmatprep.mubr.bf16.mxu0 %v2663_v32  ;;  %v6965_v32 = vld [vmem:[#allocation10 + $0x64] ss:$16 sps:$4 sm:$0xff]   ;;  %3883 = vmatprep.subr.bf16.mxu0 %v6962_v39 }
 0x5a0   : > { %6763 = vmatmul.mubr.bf16.gmra.mrb[88].mxu0 %v2664_v22  ;;  %3690 = vmatprep.subr.bf16.mxu1 %v6965_v32  ;;  %v7550_v39 = vld [vmem:[%s8146_s13 + $0x80] sm:$0xff] }
 0x5a1   : > { %v6712_v38 = vpop.f32.mrb[68].mxu0 }
 0x5a2   : > { %v2563_v18 = vpop.f32.mrb[69].mxu0 }
 0x5a3   : > { %v6713_v10 = vpop.f32.mrb[70].mxu0 }
 0x5a4   : > { %v2666_v60 = vpack.c.bf16 %v6713_v10, %v6712_v38  ;;  %v2566_v46 = vpop.f32.mrb[71].mxu0  ;;  %v6960_v38 = vld [vmem:[#allocation10 + $0x68] ss:$16 sps:$4 sm:$0xff]  }
 0x5a5   : > { %v2665_v41 = vpack.c.bf16 %v2566_v46, %v2563_v18  ;;  %v6963_v18 = vld [vmem:[#allocation10 + $0x60] ss:$16 sps:$4 sm:$0xff]   ;;  %3884 = vmatpush1.bf16.msra.mxu0 %v6960_v38 }
 0x5a6   : > { %3691 = vmatpush1.bf16.msra.mxu1 %v6963_v18 }
 0x5a7   : > { %6766 = vmatprep.mubr.bf16.mxu0 %v2665_v41  ;;  %v7542_v41 = vld [vmem:[%s8146_s13 + $0x40] sm:$0xff] }
 0x5a8   : > { %6767 = vmatmul.mubr.bf16.gmra.mrb[92].mxu0 %v2666_v60 }
 0x5ff   : > { %v6724_v31 = vpop.f32.mrb[80].mxu1 }
 0x600   : > { %v2624_v62 = vpop.f32.mrb[81].mxu1 }
 0x601   : > { %v6725_v45 = vpop.f32.mrb[82].mxu1 }
 0x602   : > { %v2668_v20 = vpack.c.bf16 %v6725_v45, %v6724_v31  ;;  %v2627_v24 = vpop.f32.mrb[83].mxu1  ;;  %v6968_v45 = vld [vmem:[#allocation10 + $0x8c] ss:$16 sps:$4 sm:$0xff]  }
 0x603   : > { %v2667_v26 = vpack.c.bf16 %v2627_v24, %v2624_v62  ;;  %3885 = vmatprep.subr.bf16.mxu0 %v6968_v45 }
 0x605   : > { %6770 = vmatprep.mubr.bf16.mxu0 %v2667_v26  ;;  %v6966_v26 = vld [vmem:[#allocation10 + $0x88] ss:$16 sps:$4 sm:$0xff]  }
 0x606   : > { %6771 = vmatmul.mubr.bf16.gmra.mrb[96].mxu0 %v2668_v20  ;;  %v6971_v20 = vld [vmem:[#allocation10 + $0x84] ss:$16 sps:$4 sm:$0xff]  }
 0x607   : > { %3692 = vmatprep.subr.bf16.mxu1 %v6971_v20  ;;  %3886 = vmatpush1.bf16.msra.mxu0 %v6966_v26  ;;  %v7552_v20 = vld [vmem:[%s8146_s13 + $0x90] sm:$0xff] }
 0x60f   : > { %v6728_v28 = vpop.f32.mrb[84].mxu1 }
 0x610   : > { %v2640_v21 = vpop.f32.mrb[85].mxu1 }
 0x611   : > { %v6729_v23 = vpop.f32.mrb[86].mxu1 }
 0x612   : > { %v2670_v25 = vpack.c.bf16 %v6729_v23, %v6728_v28  ;;  %v2643_v50 = vpop.f32.mrb[87].mxu1  ;;  %v6969_v28 = vld [vmem:[#allocation10 + $0x80] ss:$16 sps:$4 sm:$0xff]  }
 0x613   : > { %v2669_v53 = vpack.c.bf16 %v2643_v50, %v2640_v21  ;;  %v7543_v21 = vld [vmem:[%s8146_s13 + $0x48] sm:$0xff]  ;;  %3693 = vmatpush1.bf16.msra.mxu1 %v6969_v28 }
 0x614   : > { %v6974_v50 = vld [vmem:[#allocation10 + $0xac] ss:$16 sps:$4 sm:$0xff]  }
 0x615   : > { %6774 = vmatprep.mubr.bf16.mxu0 %v2669_v53  ;;  %v6977_v53 = vld [vmem:[#allocation10 + $0xa4] ss:$16 sps:$4 sm:$0xff]   ;;  %3887 = vmatprep.subr.bf16.mxu0 %v6974_v50 }
 0x616   : > { %6775 = vmatmul.mubr.bf16.gmra.mrb[100].mxu0 %v2670_v25  ;;  %3694 = vmatprep.subr.bf16.mxu1 %v6977_v53 }
 0x617   : > { %3909 = vmatprep.mubr.bf16.mxu0 %v7832_v42 }
 0x633   : > { %v6748_v33 = vpop.f32.mrb[72].mxu0 }
 0x634   : > { %v2769_v59 = vpop.f32.mrb[73].mxu0  ;;  %v9127_v27 = vadd.f32 %v7536_v2, %v6748_v33  ;;  %v6972_v33 = vld [vmem:[#allocation10 + $0xa8] ss:$16 sps:$4 sm:$0xff]   ;;  %v6980_v2 = vld [vmem:[#allocation10 + $0xcc] ss:$16 sps:$4 sm:$0xff]  }
 0x635   : > { %v9115_v15 = vadd.f32 %v7534_v13, %v2769_v59  ;;  %v6749_v40 = vpop.f32.mrb[74].mxu0  ;;  %v6975_v59 = vld [vmem:[#allocation10 + $0xa0] ss:$16 sps:$4 sm:$0xff]   ;;  %3888 = vmatpush1.bf16.msra.mxu0 %v6972_v33 }
 0x636   : > { %v2772_v51 = vpop.f32.mrb[75].mxu0  ;;  %12051 = vst [vmem:[#allocation21_spill] sm:$0xff] %v9127_v27  ;;  %v9130_v34 = vadd.f32 %v7537_v29, %v6749_v40  ;;  %v3028_v55 = vmul.f32 %v9127_v27, %v9127_v27  ;;  %3695 = vmatpush1.bf16.msra.mxu1 %v6975_v59  ;;  %v6983_v29 = vld [vmem:[#allocation10 + $0xc4] ss:$16 sps:$4 sm:$0xff]   ;;  %3889 = vmatprep.subr.bf16.mxu0 %v6980_v2 }
 0x637   : > { %12049 = vst [vmem:[#allocation19_spill] sm:$0xff] %v9115_v15  ;;  %v9118_v43 = vadd.f32 %v7535_v1, %v2772_v51  ;;  %2930 = vadd.xlane.f32.xlu0 %v9115_v15  ;;  %v3026_v7 = vmul.f32 %v9115_v15, %v9115_v15  ;;  %v7544_v1 = vld [vmem:[%s8146_s13 + $0x50] sm:$0xff]  ;;  %3696 = vmatprep.subr.bf16.mxu1 %v6983_v29  ;;  %v7554_v33 = vld [vmem:[%s8146_s13 + $0xa0] sm:$0xff]  ;;  %v7557_v29 = vld [vmem:[%s8146_s13 + $0xb8] sm:$0xff] }
 0x638   : > { %12052 = vst [vmem:[#allocation22_spill] sm:$0xff] %v9130_v34  ;;  %v3029_v4 = vmul.f32 %v9130_v34, %v9130_v34 }
 0x639   : > { %12050 = vst [vmem:[#allocation20_spill] sm:$0xff] %v9118_v43  ;;  %2932 = vadd.xlane.f32.xlu1 %v9118_v43  ;;  %v3027_v48 = vmul.f32 %v9118_v43, %v9118_v43 }
 0x63b   : > { %3058 = vadd.xlane.f32.xlu0 %v3026_v7 }
 0x63d   : > { %3060 = vadd.xlane.f32.xlu1 %v3027_v48 }
 0x63f   : > { %2934 = vadd.xlane.f32.xlu0 %v9127_v27 }
 0x641   : > { %2936 = vadd.xlane.f32.xlu1 %v9130_v34 }
 0x643   : > { %3062 = vadd.xlane.f32.xlu0 %v3028_v55  ;;  %v6752_v58 = vpop.f32.mrb[76].mxu0 }
 0x644   : > { %v2785_v16 = vpop.f32.mrb[77].mxu0  ;;  %v9151_v35 = vadd.f32 %v7540_v36, %v6752_v58  ;;  %v6978_v58 = vld [vmem:[#allocation10 + $0xc8] ss:$16 sps:$4 sm:$0xff]  }
 0x645   : > { %v9139_v9 = vadd.f32 %v7538_v3, %v2785_v16  ;;  %3064 = vadd.xlane.f32.xlu1 %v3029_v4  ;;  %v6753_v57 = vpop.f32.mrb[78].mxu0  ;;  %v6981_v4 = vld [vmem:[#allocation10 + $0xc0] ss:$16 sps:$4 sm:$0xff]   ;;  %v7545_v16 = vld [vmem:[%s8146_s13 + $0x58] sm:$0xff]  ;;  %3890 = vmatpush1.bf16.msra.mxu0 %v6978_v58 }
 0x646   : > { %v2788_v37 = vpop.f32.mrb[79].mxu0  ;;  %12055 = vst [vmem:[#allocation25_spill] sm:$0xff] %v9151_v35  ;;  %v9154_v14 = vadd.f32 %v7541_v61, %v6753_v57  ;;  %v3032_v22 = vmul.f32 %v9151_v35, %v9151_v35  ;;  %3697 = vmatpush1.bf16.msra.mxu1 %v6981_v4  ;;  %3891 = vmatprep.subr.bf16.mxu0 %v6986_v11 }
 0x647   : > { %12053 = vst [vmem:[#allocation23_spill] sm:$0xff] %v9139_v9  ;;  %v9142_v5 = vadd.f32 %v7539_v19, %v2788_v37  ;;  %2938 = vadd.xlane.f32.xlu0 %v9139_v9  ;;  %v3030_v52 = vmul.f32 %v9139_v9, %v9139_v9  ;;  %v6984_v37 = vld [vmem:[#allocation10 + $0xe8] ss:$16 sps:$4 sm:$0xff]   ;;  %3698 = vmatprep.subr.bf16.mxu1 %v6989_v6  ;;  %v7546_v19 = vld [vmem:[%s8146_s13 + $0x60] sm:$0xff] }
 0x648   : > { %12056 = vst [vmem:[#allocation26_spill] sm:$0xff] %v9154_v14  ;;  %v3033_v60 = vmul.f32 %v9154_v14, %v9154_v14 }
 0x649   : > { %12054 = vst [vmem:[#allocation24_spill] sm:$0xff] %v9142_v5  ;;  %2940 = vadd.xlane.f32.xlu1 %v9142_v5  ;;  %v3031_v47 = vmul.f32 %v9142_v5, %v9142_v5  ;;  %3892 = vmatpush1.bf16.msra.mxu0 %v6984_v37 }
 0x64a   : > { %3699 = vmatpush1.bf16.msra.mxu1 %v6987_v56 }
 0x64b   : > { %3066 = vadd.xlane.f32.xlu0 %v3030_v52 }
 0x64d   : > { %3068 = vadd.xlane.f32.xlu1 %v3031_v47  ;;  %v7548_v47 = vld [vmem:[%s8146_s13 + $0x70] sm:$0xff] }
 0x64f   : > { %2942 = vadd.xlane.f32.xlu0 %v9151_v35 }
 0x651   : > { %2944 = vadd.xlane.f32.xlu1 %v9154_v14 }
 0x653   : > { %3070 = vadd.xlane.f32.xlu0 %v3032_v22  ;;  %v6756_v10 = vpop.f32.mrb[80].mxu0 }
 0x654   : > { %v2801_v46 = vpop.f32.mrb[81].mxu0  ;;  %v9175_v7 = vadd.f32 %v7544_v1, %v6756_v10  ;;  %v7551_v10 = vld [vmem:[%s8146_s13 + $0x88] sm:$0xff] }
 0x655   : > { %v9163_v31 = vadd.f32 %v7542_v41, %v2801_v46  ;;  %3072 = vadd.xlane.f32.xlu1 %v3033_v60  ;;  %v6757_v62 = vpop.f32.mrb[82].mxu0 }
 0x656   : > { %v2804_v24 = vpop.f32.mrb[83].mxu0  ;;  %12059 = vst [vmem:[#allocation29_spill] sm:$0xff] %v9175_v7  ;;  %v9178_v3 = vadd.f32 %v7545_v16, %v6757_v62  ;;  %v3036_v57 = vmul.f32 %v9175_v7, %v9175_v7 }
 0x657   : > { %12057 = vst [vmem:[#allocation27_spill] sm:$0xff] %v9163_v31  ;;  %v9166_v23 = vadd.f32 %v7543_v21, %v2804_v24  ;;  %2946 = vadd.xlane.f32.xlu0 %v9163_v31  ;;  %v3034_v25 = vmul.f32 %v9163_v31, %v9163_v31  ;;  %v7553_v21 = vld [vmem:[%s8146_s13 + $0x98] sm:$0xff] }
 0x658   : > { %12060 = vst [vmem:[#allocation30_spill] sm:$0xff] %v9178_v3  ;;  %v3037_v17 = vmul.f32 %v9178_v3, %v9178_v3 }
 0x659   : > { %12058 = vst [vmem:[#allocation28_spill] sm:$0xff] %v9166_v23  ;;  %2948 = vadd.xlane.f32.xlu1 %v9166_v23  ;;  %v3035_v40 = vmul.f32 %v9166_v23, %v9166_v23 }
 0x65b   : > { %3074 = vadd.xlane.f32.xlu0 %v3034_v25  ;;  %v6760_v13 = vpop.f32.mrb[84].mxu0 }
 0x65c   : > { %v2817_v51 = vpop.f32.mrb[85].mxu0  ;;  %v9199_v36 = vadd.f32 %v7548_v47, %v6760_v13  ;;  %v7555_v13 = vld [vmem:[%s8146_s13 + $0xa8] sm:$0xff] }
 0x65d   : > { %3076 = vadd.xlane.f32.xlu1 %v3035_v40  ;;  %v6761_v48 = vpop.f32.mrb[86].mxu0  ;;  %v9187_v52 = vadd.f32 %v7546_v19, %v2817_v51 }
 0x65e   : > { %v2820_v55 = vpop.f32.mrb[87].mxu0  ;;  %12063 = vst [vmem:[#allocation33_spill] sm:$0xff] %v9199_v36  ;;  %v9202_v49 = vadd.f32 %v7549_v63, %v6761_v48  ;;  %v3040_v0 = vmul.f32 %v9199_v36, %v9199_v36  ;;  %v7556_v48 = vld [vmem:[%s8146_s13 + $0xb0] sm:$0xff] }
 0x65f   : > { %2950 = vadd.xlane.f32.xlu0 %v9175_v7  ;;  %12061 = vst [vmem:[#allocation31_spill] sm:$0xff] %v9187_v52  ;;  %v9190_v44 = vadd.f32 %v7547_v54, %v2820_v55  ;;  %v3038_v12 = vmul.f32 %v9187_v52, %v9187_v52 }
 0x660   : > { %12064 = vst [vmem:[#allocation34_spill] sm:$0xff] %v9202_v49  ;;  %v3041_v61 = vmul.f32 %v9202_v49, %v9202_v49 }
 0x661   : > { %2952 = vadd.xlane.f32.xlu1 %v9178_v3  ;;  %12062 = vst [vmem:[#allocation32_spill] sm:$0xff] %v9190_v44  ;;  %v3039_v30 = vmul.f32 %v9190_v44, %v9190_v44 }
 0x663   : > { %3078 = vadd.xlane.f32.xlu0 %v3036_v57 }
 0x665   : > { %3080 = vadd.xlane.f32.xlu1 %v3037_v17 }
 0x667   : > { %2954 = vadd.xlane.f32.xlu0 %v9187_v52 }
 0x669   : > { %2956 = vadd.xlane.f32.xlu1 %v9190_v44 }
 0x66b   : > { %3082 = vadd.xlane.f32.xlu0 %v3038_v12 }
 0x66d   : > { %3084 = vadd.xlane.f32.xlu1 %v3039_v30 }
 0x66f   : > { %2958 = vadd.xlane.f32.xlu0 %v9199_v36 }
 0x671   : > { %2960 = vadd.xlane.f32.xlu1 %v9202_v49 }
 0x673   : > { %3086 = vadd.xlane.f32.xlu0 %v3040_v0  ;;  %v6764_v8 = vpop.f32.mrb[88].mxu0 }
 0x674   : > { %v2833_v22 = vpop.f32.mrb[89].mxu0  ;;  %v9223_v24 = vadd.f32 %v7552_v20, %v6764_v8 }
 0x675   : > { %v9211_v32 = vadd.f32 %v7550_v39, %v2833_v22  ;;  %3088 = vadd.xlane.f32.xlu1 %v3041_v61  ;;  %v6765_v38 = vpop.f32.mrb[90].mxu0 }
 0x676   : > { %v2836_v18 = vpop.f32.mrb[91].mxu0  ;;  %12067 = vst [vmem:[#allocation37_spill] sm:$0xff] %v9223_v24  ;;  %v9226_v25 = vadd.f32 %v7553_v21, %v6765_v38  ;;  %v3044_v50 = vmul.f32 %v9223_v24, %v9223_v24 }
 0x677   : > { %12065 = vst [vmem:[#allocation35_spill] sm:$0xff] %v9211_v32  ;;  %v9214_v60 = vadd.f32 %v7551_v10, %v2836_v18  ;;  %2962 = vadd.xlane.f32.xlu0 %v9211_v32  ;;  %v3042_v46 = vmul.f32 %v9211_v32, %v9211_v32 }
 0x678   : > { %12068 = vst [vmem:[#allocation38_spill] sm:$0xff] %v9226_v25  ;;  %v3045_v53 = vmul.f32 %v9226_v25, %v9226_v25 }
 0x679   : > { %12066 = vst [vmem:[#allocation36_spill] sm:$0xff] %v9214_v60  ;;  %2964 = vadd.xlane.f32.xlu1 %v9214_v60  ;;  %v3043_v62 = vmul.f32 %v9214_v60, %v9214_v60 }
 0x67b   : > { %3090 = vadd.xlane.f32.xlu0 %v3042_v46  ;;  %v6768_v41 = vpop.f32.mrb[92].mxu0 }
 0x67c   : > { %v2849_v45 = vpop.f32.mrb[93].mxu0  ;;  %v9247_v2 = vadd.f32 %v7556_v48, %v6768_v41 }
 0x67d   : > { %3092 = vadd.xlane.f32.xlu1 %v3043_v62  ;;  %v6769_v26 = vpop.f32.mrb[94].mxu0  ;;  %v9235_v59 = vadd.f32 %v7554_v33, %v2849_v45 }
 0x67e   : > { %v2852_v28 = vpop.f32.mrb[95].mxu0  ;;  %12071 = vst [vmem:[#allocation41_spill] sm:$0xff] %v9247_v2  ;;  %v9250_v55 = vadd.f32 %v7557_v29, %v6769_v26  ;;  %v3048_v58 = vmul.f32 %v9247_v2, %v9247_v2 }
 0x67f   : > { %2966 = vadd.xlane.f32.xlu0 %v9223_v24  ;;  %12069 = vst [vmem:[#allocation39_spill] sm:$0xff] %v9235_v59  ;;  %v9238_v40 = vadd.f32 %v7555_v13, %v2852_v28  ;;  %v3046_v51 = vmul.f32 %v9235_v59, %v9235_v59 }
 0x680   : > { %12072 = vst [vmem:[#allocation42_spill] sm:$0xff] %v9250_v55  ;;  %v3049_v4 = vmul.f32 %v9250_v55, %v9250_v55 }
 0x681   : > { %2968 = vadd.xlane.f32.xlu1 %v9226_v25  ;;  %12070 = vst [vmem:[#allocation40_spill] sm:$0xff] %v9238_v40  ;;  %v3047_v1 = vmul.f32 %v9238_v40, %v9238_v40 }
 0x683   : > { %3094 = vadd.xlane.f32.xlu0 %v3044_v50 }
 0x685   : > { %3096 = vadd.xlane.f32.xlu1 %v3045_v53 }
 0x687   : > { %2970 = vadd.xlane.f32.xlu0 %v9235_v59 }
 0x689   : > { %2972 = vadd.xlane.f32.xlu1 %v9238_v40 }
 0x68b   : > { %3098 = vadd.xlane.f32.xlu0 %v3046_v51 }
 0x68d   : > { %3100 = vadd.xlane.f32.xlu1 %v3047_v1 }
 0x68f   : > { %2974 = vadd.xlane.f32.xlu0 %v9247_v2 }
 0x691   : > { %2976 = vadd.xlane.f32.xlu1 %v9250_v55 }
 0x693   : > { %3102 = vadd.xlane.f32.xlu0 %v3048_v58 }
 0x695   : > { %3104 = vadd.xlane.f32.xlu1 %v3049_v4 }
 0x6c4   : > { %v2931_v16 = vpop.xlane.xlu0 %2930 }
 0x6c5   : > { %v2994_v57 = vmul.f32 0.0078125, %v2931_v16 }
 0x6c6   : > { %v2933_v11 = vpop.xlane.xlu1 %2932 }
 0x6c7   : > { %v9258_v6 = vmul.f32 0.0078125, %v2933_v11  ;;  %v3154_v56 = vmul.f32 %v2994_v57, %v2994_v57  ;;  %v3250_v11 = vsub.f32 %v9115_v15, %v2994_v57 }
 0x6c8   : > { %v3059_v37 = vpop.xlane.xlu0 %3058 }
 0x6c9   : > { %v3122_v17 = vmul.f32 0.0078125, %v3059_v37  ;;  %v3155_v54 = vmul.f32 %v9258_v6, %v9258_v6  ;;  %v3251_v57 = vsub.f32 %v9118_v43, %v9258_v6 }
 0x6ca   : > { %v3061_v19 = vpop.xlane.xlu1 %3060 }
 0x6cb   : > { %v3186_v12 = vsub.f32 %v3122_v17, %v3154_v56  ;;  %v3123_v30 = vmul.f32 0.0078125, %v3061_v19 }
 0x6cc   : > { %v2935_v47 = vpop.xlane.xlu0 %2934 }
 0x6cd   : > { %v3218_v63 = vmax.f32 %v3186_v12, 0.0  ;;  %v3187_v0 = vsub.f32 %v3123_v30, %v3155_v54  ;;  %v9262_v8 = vmul.f32 0.0078125, %v2935_v47  ;;  %v7558_v30 = vld [vmem:[%s8146_s13 + $0xc0] sm:$0xff] }
 0x6ce   : > { %v2937_v61 = vpop.xlane.xlu1 %2936 }
 0x6cf   : > { %v3282_v22 = vadd.f32 1e-05, %v3218_v63  ;;  %v3219_v39 = vmax.f32 %v3187_v0, 0.0  ;;  %v9264_v38 = vmul.f32 0.0078125, %v2937_v61  ;;  %v3156_v46 = vmul.f32 %v9262_v8, %v9262_v8  ;;  %v9285_v0 = vld [vmem:[%s11864_s6] ss:$0 sm:$0xff] }
 0x6d0   : > { %v3063_v18 = vpop.xlane.xlu0 %3062 }
 0x6d1   : > { %7214 = vrsqrt.f32 %v3282_v22  ;;  %v3283_v10 = vadd.f32 1e-05, %v3219_v39  ;;  %v3124_v41 = vmul.f32 0.0078125, %v3063_v18  ;;  %v3157_v45 = vmul.f32 %v9264_v38, %v9264_v38 }
 0x6d2   : > { %v3065_v62 = vpop.xlane.xlu1 %3064 }
 0x6d3   : > { %7216 = vrsqrt.f32 %v3283_v10  ;;  %v3188_v20 = vsub.f32 %v3124_v41, %v3156_v46  ;;  %v3125_v26 = vmul.f32 0.0078125, %v3065_v62  ;;  %v7559_v62 = vld [vmem:[%s8146_s13 + $0xc8] sm:$0xff] }
 0x6d4   : > { %v2939_v28 = vpop.xlane.xlu0 %2938 }
 0x6d5   : > { %v3220_v21 = vmax.f32 %v3188_v20, 0.0  ;;  %v3189_v50 = vsub.f32 %v3125_v26, %v3157_v45  ;;  %v9270_v53 = vmul.f32 0.0078125, %v2939_v28 }
 0x6d6   : > { %v2941_v33 = vpop.xlane.xlu1 %2940 }
 0x6d7   : > { %v3284_v13 = vadd.f32 1e-05, %v3220_v21  ;;  %v3221_v51 = vmax.f32 %v3189_v50, 0.0  ;;  %v9272_v1 = vmul.f32 0.0078125, %v2941_v33  ;;  %v3158_v58 = vmul.f32 %v9270_v53, %v9270_v53  ;;  %v9302_v33 = vld [vmem:[%s12075_s29] ss:$0 sm:$0xff] }
 0x6d8   : > { %v3067_v48 = vpop.xlane.xlu0 %3066 }
 0x6d9   : > { %7218 = vrsqrt.f32 %v3284_v13  ;;  %v3285_v29 = vadd.f32 1e-05, %v3221_v51  ;;  %v3126_v4 = vmul.f32 0.0078125, %v3067_v48  ;;  %v6772_v16 = vpop.f32.mrb[96].mxu0  ;;  %v3159_v37 = vmul.f32 %v9272_v1, %v9272_v1 }
 0x6da   : > { %v3069_v56 = vpop.xlane.xlu1 %3068  ;;  %v2865_v17 = vpop.f32.mrb[97].mxu0 }
 0x6db   : > { %v7215_v19 = vpop.eup %7214  ;;  %7220 = vrsqrt.f32 %v3285_v29  ;;  %v3190_v54 = vsub.f32 %v3126_v4, %v3158_v58  ;;  %v3127_v12 = vmul.f32 0.0078125, %v3069_v56  ;;  %v9280_v47 = vadd.f32 %v7558_v30, %v2865_v17  ;;  %v6773_v63 = vpop.f32.mrb[98].mxu0  ;;  %v7560_v56 = vld [vmem:[%s8146_s13 + $0xd0] sm:$0xff] }
 0x6dc   : > { %v3346_v61 = vmul.f32 %v7215_v19, %v3250_v11  ;;  %v2943_v22 = vpop.xlane.xlu0 %2942  ;;  %v2868_v39 = vpop.f32.mrb[99].mxu0  ;;  %v9314_v17 = vadd.f32 %v7560_v56, %v6772_v16 }
 0x6dd   : > { %12073 = vst [vmem:[#allocation43_spill] sm:$0xff] %v9280_v47  ;;  %v7217_v18 = vpop.eup %7216  ;;  %v3222_v10 = vmax.f32 %v3190_v54, 0.0  ;;  %v3191_v46 = vsub.f32 %v3127_v12, %v3159_v37  ;;  %v9289_v41 = vmul.f32 0.0078125, %v2943_v22  ;;  %v9292_v45 = vadd.f32 %v7559_v62, %v2868_v39  ;;  %2978 = vadd.xlane.f32.xlu0 %v9280_v47 }
 0x6de   : > { %v3347_v20 = vmul.f32 %v7217_v18, %v3251_v57  ;;  %v2945_v26 = vpop.xlane.xlu1 %2944  ;;  %v3384_v28 = vmul.f32 %v9285_v0, %v3346_v61  ;;  %v3050_v50 = vmul.f32 %v9280_v47, %v9280_v47  ;;  %v3252_v37 = vsub.f32 %v9127_v27, %v9262_v8  ;;  %12076 = vst [vmem:[#allocation45_spill] sm:$0xff] %v9314_v17  ;;  %v7561_v8 = vld [vmem:[%s8146_s13 + $0xd8] sm:$0xff] }
 0x6df   : > { %12074 = vst [vmem:[#allocation44_spill] sm:$0xff] %v9292_v45  ;;  %v3286_v21 = vadd.f32 1e-05, %v3222_v10  ;;  %v3223_v6 = vmax.f32 %v3191_v46, 0.0  ;;  %2980 = vadd.xlane.f32.xlu1 %v9292_v45  ;;  %v3160_v13 = vmul.f32 %v9289_v41, %v9289_v41  ;;  %v9306_v51 = vmul.f32 0.0078125, %v2945_v26 }
 0x6e0   : > { %v3071_v48 = vpop.xlane.xlu0 %3070  ;;  %v3385_v29 = vmul.f32 %v9285_v0, %v3347_v20  ;;  %v3051_v11 = vmul.f32 %v9292_v45, %v9292_v45  ;;  %v3422_v54 = vadd.f32 %v9302_v33, %v3384_v28  ;;  %v3253_v39 = vsub.f32 %v9130_v34, %v9264_v38 }
 0x6e1   : > { %7222 = vrsqrt.f32 %v3286_v21  ;;  %v3287_v58 = vadd.f32 1e-05, %v3223_v6  ;;  %v3128_v4 = vmul.f32 0.0078125, %v3071_v48  ;;  %3106 = vadd.xlane.f32.xlu0 %v3050_v50  ;;  %v3161_v57 = vmul.f32 %v9306_v51, %v9306_v51 }
 0x6e2   : > { %v3073_v19 = vpop.xlane.xlu1 %3072  ;;  %v3423_v12 = vadd.f32 %v9302_v33, %v3385_v29  ;;  %v9323_v18 = vadd.f32 %v7561_v8, %v6773_v63  ;;  %v3052_v63 = vmul.f32 %v9314_v17, %v9314_v17 }
 0x6e3   : > { %v7219_v30 = vpop.eup %7218  ;;  %7224 = vrsqrt.f32 %v3287_v58  ;;  %v3192_v61 = vsub.f32 %v3128_v4, %v3160_v13  ;;  %v3129_v22 = vmul.f32 0.0078125, %v3073_v19  ;;  %3108 = vadd.xlane.f32.xlu1 %v3051_v11 }
 0x6e4   : > { %12077 = vst [vmem:[#allocation46_spill] sm:$0xff] %v9323_v18  ;;  %v2947_v16 = vpop.xlane.xlu0 %2946  ;;  %v3454_v10 = vpack.c.bf16 %v3423_v12, %v3422_v54  ;;  %v3348_v46 = vmul.f32 %v7219_v30, %v3252_v37  ;;  %v3053_v58 = vmul.f32 %v9323_v18, %v9323_v18  ;;  %v3254_v54 = vsub.f32 %v9139_v9, %v9270_v53 }
 0x6e5   : > { %v7221_v62 = vpop.eup %7220  ;;  %v3224_v20 = vmax.f32 %v3192_v61, 0.0  ;;  %v3193_v26 = vsub.f32 %v3129_v22, %v3161_v57  ;;  %v9325_v28 = vmul.f32 0.0078125, %v2947_v16  ;;  %2982 = vadd.xlane.f32.xlu0 %v9314_v17  ;;  %v3255_v53 = vsub.f32 %v9142_v5, %v9272_v1 }
 0x6e6   : > { %v2949_v21 = vpop.xlane.xlu1 %2948  ;;  %3717 = vmatmul.mubr.bf16.vlgmr.msra.gmra.mrb[88].mxu1 %v3454_v10  ;;  %3910 = vmatmul.mubr.bf16.vlgmr.msra.gmra.mrb[104].mxu0 %v3454_v10  ;;  %v3349_v6 = vmul.f32 %v7221_v62, %v3253_v39  ;;  %v3386_v50 = vmul.f32 %v9285_v0, %v3348_v46  ;;  %v7562_v10 = vld [vmem:[%s8146_s13 + $0xe0] sm:$0xff] }
 0x6e7   : > { %v3288_v38 = vadd.f32 1e-05, %v3224_v20  ;;  %v3225_v13 = vmax.f32 %v3193_v26, 0.0  ;;  %2984 = vadd.xlane.f32.xlu1 %v9323_v18  ;;  %3726 = vmatprep.mubr.bf16.mxu1 %v7832_v42  ;;  %v9333_v48 = vmul.f32 0.0078125, %v2949_v21  ;;  %v3162_v37 = vmul.f32 %v9325_v28, %v9325_v28 }
 0x6e8   : > { %v3075_v29 = vpop.xlane.xlu0 %3074  ;;  %3919 = vmatprep.mubr.bf16.mxu0 %v7832_v42  ;;  %v3387_v4 = vmul.f32 %v9285_v0, %v3349_v6  ;;  %v3424_v61 = vadd.f32 %v9302_v33, %v3386_v50 }
 0x6e9   : > { %7226 = vrsqrt.f32 %v3288_v38  ;;  %v3289_v11 = vadd.f32 1e-05, %v3225_v13  ;;  %v3130_v56 = vmul.f32 0.0078125, %v3075_v29  ;;  %3110 = vadd.xlane.f32.xlu0 %v3052_v63  ;;  %v6776_v19 = vpop.f32.mrb[100].mxu0  ;;  %v3163_v12 = vmul.f32 %v9333_v48, %v9333_v48  ;;  %v7563_v29 = vld [vmem:[%s8146_s13 + $0xe8] sm:$0xff] }
 0x6ea   : > { %v3077_v30 = vpop.xlane.xlu1 %3076  ;;  %v2881_v57 = vpop.f32.mrb[101].mxu0  ;;  %v3425_v22 = vadd.f32 %v9302_v33, %v3387_v4 }
 0x6eb   : > { %v7223_v39 = vpop.eup %7222  ;;  %7228 = vrsqrt.f32 %v3289_v11  ;;  %v3194_v8 = vsub.f32 %v3130_v56, %v3162_v37  ;;  %v3131_v16 = vmul.f32 0.0078125, %v3077_v30  ;;  %v9348_v46 = vadd.f32 %v7562_v10, %v2881_v57  ;;  %3112 = vadd.xlane.f32.xlu1 %v3053_v58  ;;  %v6777_v62 = vpop.f32.mrb[102].mxu0  ;;  %v7564_v10 = vld [vmem:[%s8146_s13 + $0xf0] sm:$0xff] }
 0x6ec   : > { %v2951_v20 = vpop.xlane.xlu0 %2950  ;;  %v2884_v26 = vpop.f32.mrb[103].mxu0  ;;  %v3455_v21 = vpack.c.bf16 %v3425_v22, %v3424_v61  ;;  %v3350_v6 = vmul.f32 %v7223_v39, %v3254_v54 }
 0x6ed   : > { %12078 = vst [vmem:[#allocation47_spill] sm:$0xff] %v9348_v46  ;;  %v7225_v50 = vpop.eup %7224  ;;  %v3226_v38 = vmax.f32 %v3194_v8, 0.0  ;;  %v3195_v13 = vsub.f32 %v3131_v16, %v3163_v12  ;;  %v9352_v63 = vmul.f32 0.0078125, %v2951_v20  ;;  %v9355_v4 = vadd.f32 %v7563_v29, %v2884_v26  ;;  %2986 = vadd.xlane.f32.xlu0 %v9348_v46 }
 0x6ee   : > { %v2953_v11 = vpop.xlane.xlu1 %2952  ;;  %3727 = vmatmul.mubr.bf16.gmra.mrb[92].mxu1 %v3455_v21  ;;  %3920 = vmatmul.mubr.bf16.gmra.mrb[108].mxu0 %v3455_v21  ;;  %v3351_v58 = vmul.f32 %v7225_v50, %v3255_v53  ;;  %v3388_v1 = vmul.f32 %v9285_v0, %v3350_v6  ;;  %v3054_v54 = vmul.f32 %v9348_v46, %v9348_v46 }
 0x6ef   : > { %12079 = vst [vmem:[#allocation48_spill] sm:$0xff] %v9355_v4  ;;  %v3290_v37 = vadd.f32 1e-05, %v3226_v38  ;;  %v3227_v56 = vmax.f32 %v3195_v13, 0.0  ;;  %2988 = vadd.xlane.f32.xlu1 %v9355_v4  ;;  %3736 = vmatprep.mubr.bf16.mxu1 %v7832_v42  ;;  %v3164_v12 = vmul.f32 %v9352_v63, %v9352_v63  ;;  %v9365_v30 = vmul.f32 0.0078125, %v2953_v11 }
 0x6f0   : > { %v3079_v57 = vpop.xlane.xlu0 %3078  ;;  %3929 = vmatprep.mubr.bf16.mxu0 %v7832_v42  ;;  %v3389_v61 = vmul.f32 %v9285_v0, %v3351_v58  ;;  %v3055_v8 = vmul.f32 %v9355_v4, %v9355_v4  ;;  %v3256_v16 = vsub.f32 %v9151_v35, %v9289_v41  ;;  %v9374_v53 = vadd.f32 %v7564_v10, %v6776_v19  ;;  %v7565_v41 = vld [vmem:[%s8146_s13 + $0xf8] sm:$0xff]  ;;  %s5950_s13 = sshll.u32 %s11698_s9, 4  ;;  %s11811_s13 = int_to_ptr.vmem [resolvable:$true] %s5950_s13 }
 0x6f1   : > { %7230 = vrsqrt.f32 %v3290_v37  ;;  %v3291_v22 = vadd.f32 1e-05, %v3227_v56  ;;  %v3132_v39 = vmul.f32 0.0078125, %v3079_v57  ;;  %3114 = vadd.xlane.f32.xlu0 %v3054_v54  ;;  %v3426_v26 = vadd.f32 %v9302_v33, %v3388_v1  ;;  %s7738_s27 = scalar_lea.vmem %s11811_s13, 4096  ;;  %p7745_p11 = scmp.lt.s32.totalorder %s11811_s13, %s7743_s18 }
 0x6f2   : > { %12080 = vst [vmem:[#allocation49_spill] sm:$0xff] %v9374_v53  ;;  %v3081_v20 = vpop.xlane.xlu1 %3080  ;;  %v3427_v21 = vadd.f32 %v9302_v33, %v3389_v61  ;;  %v3165_v50 = vmul.f32 %v9365_v30, %v9365_v30  ;;  %v3257_v29 = vsub.f32 %v9154_v14, %v9306_v51  ;;  %v9383_v11 = vadd.f32 %v7565_v41, %v6777_v62  ;;  %p7739_p2 = scmp.ne.s32.totalorder %s11811_s13, %s7738_s27 }
 0x6f3   : > { %v7227_v6 = vpop.eup %7226  ;;  %7232 = vrsqrt.f32 %v3291_v22  ;;  %v3196_v38 = vsub.f32 %v3132_v39, %v3164_v12  ;;  %v3133_v13 = vmul.f32 0.0078125, %v3081_v20  ;;  %3116 = vadd.xlane.f32.xlu1 %v3055_v8  ;;  %v3056_v62 = vmul.f32 %v9374_v53, %v9374_v53 }
 0x6f4   : > { %12081 = vst [vmem:[#allocation50_spill] sm:$0xff] %v9383_v11  ;;  %v2955_v19 = vpop.xlane.xlu0 %2954  ;;  %v3456_v58 = vpack.c.bf16 %v3427_v21, %v3426_v26  ;;  %v3352_v37 = vmul.f32 %v7227_v6, %v3256_v16  ;;  %v3057_v10 = vmul.f32 %v9383_v11, %v9383_v11  ;;  %p7740_p10 = pnand %p7739_p2, %p12469_p7 }
 0x6f5   : > { %v7229_v1 = vpop.eup %7228  ;;  %v3228_v56 = vmax.f32 %v3196_v38, 0.0  ;;  %v3197_v54 = vsub.f32 %v3133_v13, %v3165_v50  ;;  %v9385_v57 = vmul.f32 0.0078125, %v2955_v19  ;;  %2990 = vadd.xlane.f32.xlu0 %v9374_v53  ;;  %v3258_v50 = vsub.f32 %v9163_v31, %v9325_v28 }
 0x6f6   : > { %v2957_v61 = vpop.xlane.xlu1 %2956  ;;  %3737 = vmatmul.mubr.bf16.gmra.mrb[96].mxu1 %v3456_v58  ;;  %3930 = vmatmul.mubr.bf16.gmra.mrb[112].mxu0 %v3456_v58  ;;  %v3353_v12 = vmul.f32 %v7229_v1, %v3257_v29  ;;  %v3390_v22 = vmul.f32 %v9285_v0, %v3352_v37  ;;  %v3259_v1 = vsub.f32 %v9166_v23, %v9333_v48  ;;  %p7741_p1 = pneg %p7740_p10 }
 0x6f7   : > { %v3292_v51 = vadd.f32 1e-05, %v3228_v56  ;;  %v3229_v39 = vmax.f32 %v3197_v54, 0.0  ;;  %2992 = vadd.xlane.f32.xlu1 %v9383_v11  ;;  %3746 = vmatprep.mubr.bf16.mxu1 %v7832_v42  ;;  %v9393_v8 = vmul.f32 0.0078125, %v2957_v61  ;;  %v3166_v21 = vmul.f32 %v9385_v57, %v9385_v57 }
 0x6f8   : > { %v3083_v16 = vpop.xlane.xlu0 %3082  ;;  %3939 = vmatprep.mubr.bf16.mxu0 %v7832_v42  ;;  %v3391_v20 = vmul.f32 %v9285_v0, %v3353_v12  ;;  %v3428_v13 = vadd.f32 %v9302_v33, %v3390_v22 }
 0x6f9   : > { %7234 = vrsqrt.f32 %v3292_v51  ;;  %v3293_v26 = vadd.f32 1e-05, %v3229_v39  ;;  %v3134_v6 = vmul.f32 0.0078125, %v3083_v16  ;;  %3118 = vadd.xlane.f32.xlu0 %v3056_v62  ;;  %v3167_v19 = vmul.f32 %v9393_v8, %v9393_v8 }
 0x6fa   : > { %v3085_v38 = vpop.xlane.xlu1 %3084  ;;  %v3429_v29 = vadd.f32 %v9302_v33, %v3391_v20 }
 0x6fb   : > { %v7231_v41 = vpop.eup %7230  ;;  %7236 = vrsqrt.f32 %v3293_v26  ;;  %v3198_v58 = vsub.f32 %v3134_v6, %v3166_v21  ;;  %v3135_v37 = vmul.f32 0.0078125, %v3085_v38  ;;  %3120 = vadd.xlane.f32.xlu1 %v3057_v10 }
 0x6fc   : > { %v2959_v56 = vpop.xlane.xlu0 %2958  ;;  %v3457_v54 = vpack.c.bf16 %v3429_v29, %v3428_v13  ;;  %v3354_v61 = vmul.f32 %v7231_v41, %v3258_v50  ;;  %v3260_v13 = vsub.f32 %v9175_v7, %v9352_v63 }
 0x6fd   : > { %v7233_v28 = vpop.eup %7232  ;;  %v3230_v12 = vmax.f32 %v3198_v58, 0.0  ;;  %v3199_v51 = vsub.f32 %v3135_v37, %v3167_v19  ;;  %v9409_v22 = vmul.f32 0.0078125, %v2959_v56 }
 0x6fe   : > { %v2961_v39 = vpop.xlane.xlu1 %2960  ;;  %3747 = vmatmul.mubr.bf16.gmra.mrb[100].mxu1 %v3457_v54  ;;  %3940 = vmatmul.mubr.bf16.gmra.mrb[116].mxu0 %v3457_v54  ;;  %v3355_v62 = vmul.f32 %v7233_v28, %v3259_v1  ;;  %v3392_v16 = vmul.f32 %v9285_v0, %v3354_v61  ;;  %v3261_v54 = vsub.f32 %v9178_v3, %v9365_v30 }
 0x6ff   : > { %v3294_v20 = vadd.f32 1e-05, %v3230_v12  ;;  %v3231_v26 = vmax.f32 %v3199_v51, 0.0  ;;  %3756 = vmatprep.mubr.bf16.mxu1 %v7832_v42  ;;  %3949 = vmatprep.mubr.bf16.mxu0 %v7832_v42  ;;  %v9414_v48 = vmul.f32 0.0078125, %v2961_v39  ;;  %v3168_v50 = vmul.f32 %v9409_v22, %v9409_v22 }
 0x700   : > { %v3087_v10 = vpop.xlane.xlu0 %3086  ;;  %v3393_v21 = vmul.f32 %v9285_v0, %v3355_v62  ;;  %v3430_v41 = vadd.f32 %v9302_v33, %v3392_v16 }
 0x701   : > { %7238 = vrsqrt.f32 %v3294_v20  ;;  %v3295_v6 = vadd.f32 1e-05, %v3231_v26  ;;  %v3136_v38 = vmul.f32 0.0078125, %v3087_v10  ;;  %v3169_v37 = vmul.f32 %v9414_v48, %v9414_v48 }
 0x702   : > { %v3089_v29 = vpop.xlane.xlu1 %3088  ;;  %v3431_v19 = vadd.f32 %v9302_v33, %v3393_v21 }
 0x703   : > { %v7235_v58 = vpop.eup %7234  ;;  %7240 = vrsqrt.f32 %v3295_v6  ;;  %v3200_v1 = vsub.f32 %v3136_v38, %v3168_v50  ;;  %v3137_v56 = vmul.f32 0.0078125, %v3089_v29 }
 0x704   : > { %v2963_v61 = vpop.xlane.xlu0 %2962  ;;  %v3458_v28 = vpack.c.bf16 %v3431_v19, %v3430_v41  ;;  %v3356_v12 = vmul.f32 %v7235_v58, %v3260_v13  ;;  %v3262_v41 = vsub.f32 %v9187_v52, %v9385_v57 }
 0x705   : > { %v7237_v51 = vpop.eup %7236  ;;  %v3232_v63 = vmax.f32 %v3200_v1, 0.0  ;;  %v3201_v39 = vsub.f32 %v3137_v56, %v3169_v37  ;;  %v9427_v62 = vmul.f32 0.0078125, %v2963_v61 }
 0x706   : > { %v2965_v16 = vpop.xlane.xlu1 %2964  ;;  %3757 = vmatmul.mubr.bf16.gmra.mrb[104].mxu1 %v3458_v28  ;;  %3950 = vmatmul.mubr.bf16.gmra.mrb[120].mxu0 %v3458_v28  ;;  %v3357_v20 = vmul.f32 %v7237_v51, %v3261_v54  ;;  %v3394_v26 = vmul.f32 %v9285_v0, %v3356_v12  ;;  %v3263_v28 = vsub.f32 %v9190_v44, %v9393_v8 }
 0x707   : > { %v3296_v10 = vadd.f32 1e-05, %v3232_v63  ;;  %v3233_v21 = vmax.f32 %v3201_v39, 0.0  ;;  %3766 = vmatprep.mubr.bf16.mxu1 %v7832_v42  ;;  %3959 = vmatprep.mubr.bf16.mxu0 %v7832_v42  ;;  %v9432_v30 = vmul.f32 0.0078125, %v2965_v16  ;;  %v3170_v13 = vmul.f32 %v9427_v62, %v9427_v62 }
 0x708   : > { %v3091_v6 = vpop.xlane.xlu0 %3090  ;;  %v3395_v50 = vmul.f32 %v9285_v0, %v3357_v20  ;;  %v3432_v58 = vadd.f32 %v9302_v33, %v3394_v26 }
 0x709   : > { %7242 = vrsqrt.f32 %v3296_v10  ;;  %v3297_v38 = vadd.f32 1e-05, %v3233_v21  ;;  %v3138_v29 = vmul.f32 0.0078125, %v3091_v6  ;;  %v3171_v56 = vmul.f32 %v9432_v30, %v9432_v30 }
 0x70a   : > { %v3093_v19 = vpop.xlane.xlu1 %3092  ;;  %v3433_v37 = vadd.f32 %v9302_v33, %v3395_v50 }
 0x70b   : > { %v7239_v1 = vpop.eup %7238  ;;  %7244 = vrsqrt.f32 %v3297_v38  ;;  %v3202_v54 = vsub.f32 %v3138_v29, %v3170_v13  ;;  %v3139_v61 = vmul.f32 0.0078125, %v3093_v19 }
 0x70c   : > { %v2967_v12 = vpop.xlane.xlu0 %2966  ;;  %v3459_v51 = vpack.c.bf16 %v3433_v37, %v3432_v58  ;;  %v3358_v63 = vmul.f32 %v7239_v1, %v3262_v41  ;;  %v3264_v58 = vsub.f32 %v9199_v36, %v9409_v22 }
 0x70d   : > { %v7241_v39 = vpop.eup %7240  ;;  %v3234_v57 = vmax.f32 %v3202_v54, 0.0  ;;  %v3203_v16 = vsub.f32 %v3139_v61, %v3171_v56  ;;  %v9445_v20 = vmul.f32 0.0078125, %v2967_v12 }
 0x70e   : > { %v2969_v26 = vpop.xlane.xlu1 %2968  ;;  %3767 = vmatmul.mubr.bf16.gmra.mrb[108].mxu1 %v3459_v51  ;;  %3960 = vmatmul.mubr.bf16.gmra.mrb[124].mxu0 %v3459_v51  ;;  %v3359_v10 = vmul.f32 %v7241_v39, %v3263_v28  ;;  %v3396_v21 = vmul.f32 %v9285_v0, %v3358_v63  ;;  %v3265_v51 = vsub.f32 %v9202_v49, %v9414_v48 }
 0x70f   : > { %v3298_v6 = vadd.f32 1e-05, %v3234_v57  ;;  %v3235_v50 = vmax.f32 %v3203_v16, 0.0  ;;  %3776 = vmatprep.mubr.bf16.mxu1 %v7832_v42  ;;  %3969 = vmatprep.mubr.bf16.mxu0 %v7832_v42  ;;  %v9450_v8 = vmul.f32 0.0078125, %v2969_v26  ;;  %v3172_v41 = vmul.f32 %v9445_v20, %v9445_v20 }
 0x710   : > { %v3095_v38 = vpop.xlane.xlu0 %3094  ;;  %v3397_v13 = vmul.f32 %v9285_v0, %v3359_v10  ;;  %v3434_v1 = vadd.f32 %v9302_v33, %v3396_v21 }
 0x711   : > { %7246 = vrsqrt.f32 %v3298_v6  ;;  %v3299_v29 = vadd.f32 1e-05, %v3235_v50  ;;  %v3140_v19 = vmul.f32 0.0078125, %v3095_v38  ;;  %v3173_v61 = vmul.f32 %v9450_v8, %v9450_v8 }
 0x712   : > { %v3097_v37 = vpop.xlane.xlu1 %3096  ;;  %v3435_v56 = vadd.f32 %v9302_v33, %v3397_v13 }
 0x713   : > { %v7243_v54 = vpop.eup %7242  ;;  %7248 = vrsqrt.f32 %v3299_v29  ;;  %v3204_v28 = vsub.f32 %v3140_v19, %v3172_v41  ;;  %v3141_v12 = vmul.f32 0.0078125, %v3097_v37 }
 0x714   : > { %v2971_v63 = vpop.xlane.xlu0 %2970  ;;  %v3460_v39 = vpack.c.bf16 %v3435_v56, %v3434_v1  ;;  %v3360_v57 = vmul.f32 %v7243_v54, %v3264_v58  ;;  %v3266_v1 = vsub.f32 %v9211_v32, %v9427_v62 }
 0x715   : > { %v7245_v16 = vpop.eup %7244  ;;  %v3236_v22 = vmax.f32 %v3204_v28, 0.0  ;;  %v3205_v26 = vsub.f32 %v3141_v12, %v3173_v61  ;;  %v9463_v10 = vmul.f32 0.0078125, %v2971_v63 }
 0x716   : > { %v2973_v21 = vpop.xlane.xlu1 %2972  ;;  %3777 = vmatmul.mubr.bf16.gmra.mrb[112].mxu1 %v3460_v39  ;;  %3970 = vmatmul.mubr.bf16.gmra.mrb[128].mxu0 %v3460_v39  ;;  %v3361_v6 = vmul.f32 %v7245_v16, %v3265_v51  ;;  %v3398_v50 = vmul.f32 %v9285_v0, %v3360_v57  ;;  %v3267_v39 = vsub.f32 %v9214_v60, %v9432_v30 }
 0x717   : > { %v3300_v38 = vadd.f32 1e-05, %v3236_v22  ;;  %v3237_v13 = vmax.f32 %v3205_v26, 0.0  ;;  %3786 = vmatprep.mubr.bf16.mxu1 %v7832_v42  ;;  %3979 = vmatprep.mubr.bf16.mxu0 %v7832_v42  ;;  %v9468_v48 = vmul.f32 0.0078125, %v2973_v21  ;;  %v3174_v58 = vmul.f32 %v9463_v10, %v9463_v10 }
 0x718   : > { %v3099_v29 = vpop.xlane.xlu0 %3098  ;;  %v3399_v41 = vmul.f32 %v9285_v0, %v3361_v6  ;;  %v3436_v54 = vadd.f32 %v9302_v33, %v3398_v50 }
 0x719   : > { %7250 = vrsqrt.f32 %v3300_v38  ;;  %v3301_v19 = vadd.f32 1e-05, %v3237_v13  ;;  %v3142_v37 = vmul.f32 0.0078125, %v3099_v29  ;;  %v3175_v12 = vmul.f32 %v9468_v48, %v9468_v48 }
 0x71a   : > { %v3101_v56 = vpop.xlane.xlu1 %3100  ;;  %v3437_v61 = vadd.f32 %v9302_v33, %v3399_v41 }
 0x71b   : > { %v7247_v28 = vpop.eup %7246  ;;  %7252 = vrsqrt.f32 %v3301_v19  ;;  %v3206_v51 = vsub.f32 %v3142_v37, %v3174_v58  ;;  %v3143_v63 = vmul.f32 0.0078125, %v3101_v56 }
 0x71c   : > { %v2975_v57 = vpop.xlane.xlu0 %2974  ;;  %v3461_v16 = vpack.c.bf16 %v3437_v61, %v3436_v54  ;;  %v3362_v22 = vmul.f32 %v7247_v28, %v3266_v1  ;;  %v3268_v54 = vsub.f32 %v9223_v24, %v9445_v20 }
 0x71d   : > { %v7249_v26 = vpop.eup %7248  ;;  %v3238_v62 = vmax.f32 %v3206_v51, 0.0  ;;  %v3207_v21 = vsub.f32 %v3143_v63, %v3175_v12  ;;  %v9481_v6 = vmul.f32 0.0078125, %v2975_v57 }
 0x71e   : > { %v2977_v50 = vpop.xlane.xlu1 %2976  ;;  %3787 = vmatmul.mubr.bf16.gmra.mrb[116].mxu1 %v3461_v16  ;;  %3980 = vmatmul.mubr.bf16.gmra.mrb[132].mxu0 %v3461_v16  ;;  %v3363_v38 = vmul.f32 %v7249_v26, %v3267_v39  ;;  %v3400_v13 = vmul.f32 %v9285_v0, %v3362_v22  ;;  %v3269_v16 = vsub.f32 %v9226_v25, %v9450_v8 }
 0x71f   : > { %v3302_v29 = vadd.f32 1e-05, %v3238_v62  ;;  %v3239_v41 = vmax.f32 %v3207_v21, 0.0  ;;  %3796 = vmatprep.mubr.bf16.mxu1 %v7832_v42  ;;  %3989 = vmatprep.mubr.bf16.mxu0 %v7832_v42  ;;  %v3017_v30 = vmul.f32 0.0078125, %v2977_v50  ;;  %v3176_v1 = vmul.f32 %v9481_v6, %v9481_v6 }
 0x720   : > { %v3103_v19 = vpop.xlane.xlu0 %3102  ;;  %v3401_v58 = vmul.f32 %v9285_v0, %v3363_v38  ;;  %v3438_v28 = vadd.f32 %v9302_v33, %v3400_v13 }
 0x721   : > { %7254 = vrsqrt.f32 %v3302_v29  ;;  %v3303_v37 = vadd.f32 1e-05, %v3239_v41  ;;  %v3144_v56 = vmul.f32 0.0078125, %v3103_v19  ;;  %v3177_v63 = vmul.f32 %v3017_v30, %v3017_v30 }
 0x722   : > { %v3105_v61 = vpop.xlane.xlu1 %3104  ;;  %v3439_v12 = vadd.f32 %v9302_v33, %v3401_v58  ;;  %v3270_v19 = vsub.f32 %v9235_v59, %v9463_v10 }
 0x723   : > { %v7251_v51 = vpop.eup %7250  ;;  %7256 = vrsqrt.f32 %v3303_v37  ;;  %v3208_v39 = vsub.f32 %v3144_v56, %v3176_v1  ;;  %v3145_v57 = vmul.f32 0.0078125, %v3105_v61  ;;  %v3271_v56 = vsub.f32 %v9238_v40, %v9468_v48 }
 0x724   : > { %v3462_v22 = vpack.c.bf16 %v3439_v12, %v3438_v28  ;;  %v3364_v26 = vmul.f32 %v7251_v51, %v3268_v54 }
 0x725   : > { %v7253_v62 = vpop.eup %7252  ;;  %v3240_v21 = vmax.f32 %v3208_v39, 0.0  ;;  %v3209_v50 = vsub.f32 %v3145_v57, %v3177_v63  ;;  %v3272_v63 = vsub.f32 %v9247_v2, %v9481_v6 }
 0x726   : > { %3797 = vmatmul.mubr.bf16.gmra.mrb[120].mxu1 %v3462_v22  ;;  %3990 = vmatmul.mubr.bf16.gmra.mrb[136].mxu0 %v3462_v22  ;;  %v3365_v20 = vmul.f32 %v7253_v62, %v3269_v16  ;;  %v3402_v38 = vmul.f32 %v9285_v0, %v3364_v26  ;;  %v3273_v16 = vsub.f32 %v9250_v55, %v3017_v30  ;;  %v6990_v30 = vld [vmem:[#allocation11 + $0x40] sm:$0xff]  }
 0x727   : > { %v3304_v13 = vadd.f32 1e-05, %v3240_v21  ;;  %v3241_v29 = vmax.f32 %v3209_v50, 0.0  ;;  %3806 = vmatprep.mubr.bf16.mxu1 %v7832_v42  ;;  %3999 = vmatprep.mubr.bf16.mxu0 %v7832_v42 }
 0x728   : > { %v3403_v41 = vmul.f32 %v9285_v0, %v3365_v20  ;;  %v3440_v58 = vadd.f32 %v9302_v33, %v3402_v38  ;;  %6330 = vmatprep.subr.bf16.mxu1 %v6990_v30  ;;  %v7019_v30 = vld [vmem:[#allocation11 + $0xf8] sm:$0xff]  }
 0x729   : > { %7258 = vrsqrt.f32 %v3304_v13  ;;  %v3305_v8 = vadd.f32 1e-05, %v3241_v29  ;;  %v6991_v29 = vld [vmem:[#allocation11 + $0xc0] sm:$0xff]  }
 0x72a   : > { %v3441_v37 = vadd.f32 %v9302_v33, %v3403_v41  ;;  %v6992_v41 = vld [vmem:[#allocation11] sm:$0xff]   ;;  %6442 = vmatprep.subr.bf16.mxu0 %v6991_v29  ;;  %v7020_v29 = vld [vmem:[#allocation11 + $0x38] sm:$0xff]  }
 0x72b   : > { %v7255_v1 = vpop.eup %7254  ;;  %7260 = vrsqrt.f32 %v3305_v8  ;;  %v6993_v8 = vld [vmem:[#allocation11 + $0x80] sm:$0xff]   ;;  %6331 = vmatpush3.bf16.msra.mxu1 %v6992_v41  ;;  %v7021_v41 = vld [vmem:[#allocation11 + $0xb8] sm:$0xff]  }
 0x72c   : > { %v3463_v54 = vpack.c.bf16 %v3441_v37, %v3440_v58  ;;  %v3366_v61 = vmul.f32 %v7255_v1, %v3270_v19  ;;  %v6994_v19 = vld [vmem:[#allocation11 + $0x48] sm:$0xff]   ;;  %6443 = vmatpush3.bf16.msra.mxu0 %v6993_v8 }
 0x72d   : > { %v7257_v28 = vpop.eup %7256  ;;  %v6995_v58 = vld [vmem:[#allocation11 + $0xc8] sm:$0xff]   ;;  %6332 = vmatprep.subr.bf16.mxu1 %v6994_v19 }
 0x72e   : > { %3807 = vmatmul.mubr.bf16.gmra.mrb[124].mxu1 %v3463_v54  ;;  %4000 = vmatmul.mubr.bf16.gmra.mrb[140].mxu0 %v3463_v54  ;;  %v3367_v12 = vmul.f32 %v7257_v28, %v3271_v56  ;;  %v3404_v51 = vmul.f32 %v9285_v0, %v3366_v61  ;;  %v6996_v37 = vld [vmem:[#allocation11 + $0x8] sm:$0xff]   ;;  %v6998_v56 = vld [vmem:[#allocation11 + $0x50] sm:$0xff]  }
 0x72f   : > { %3816 = vmatprep.mubr.bf16.mxu1 %v7832_v42  ;;  %4009 = vmatprep.mubr.bf16.mxu0 %v7832_v42  ;;  %v6997_v1 = vld [vmem:[#allocation11 + $0x88] sm:$0xff]   ;;  %v6999_v54 = vld [vmem:[#allocation11 + $0xd0] sm:$0xff]  }
 0x730   : > { %v3405_v10 = vmul.f32 %v9285_v0, %v3367_v12  ;;  %v3442_v39 = vadd.f32 %v9302_v33, %v3404_v51  ;;  %6444 = vmatprep.subr.bf16.mxu0 %v6995_v58  ;;  %6333 = vmatpush3.bf16.msra.mxu1 %v6996_v37  ;;  %v7000_v61 = vld [vmem:[#allocation11 + $0x10] sm:$0xff]   ;;  %v7002_v12 = vld [vmem:[#allocation11 + $0x58] sm:$0xff]  }
 0x731   : > { %6445 = vmatpush3.bf16.msra.mxu0 %v6997_v1  ;;  %6334 = vmatprep.subr.bf16.mxu1 %v6998_v56  ;;  %v7001_v28 = vld [vmem:[#allocation11 + $0x90] sm:$0xff]   ;;  %v7003_v51 = vld [vmem:[#allocation11 + $0xd8] sm:$0xff]  }
 0x732   : > { %v3443_v48 = vadd.f32 %v9302_v33, %v3405_v10  ;;  %6446 = vmatprep.subr.bf16.mxu0 %v6999_v54  ;;  %v7004_v10 = vld [vmem:[#allocation11 + $0x18] sm:$0xff]  }
 0x733   : > { %v7259_v57 = vpop.eup %7258 }
 0x734   : > { %v3464_v22 = vpack.c.bf16 %v3443_v48, %v3442_v39  ;;  %v3368_v26 = vmul.f32 %v7259_v57, %v3272_v63  ;;  %6335 = vmatpush3.bf16.msra.mxu1 %v7000_v61  ;;  %v7005_v63 = vld [vmem:[#allocation11 + $0x98] sm:$0xff]   ;;  %v7006_v39 = vld [vmem:[#allocation11 + $0x60] sm:$0xff]  }
 0x735   : > { %v7261_v62 = vpop.eup %7260  ;;  %6447 = vmatpush3.bf16.msra.mxu0 %v7001_v28  ;;  %6336 = vmatprep.subr.bf16.mxu1 %v7002_v12  ;;  %v7007_v48 = vld [vmem:[#allocation11 + $0xe0] sm:$0xff]  }
 0x736   : > { %3817 = vmatmul.mubr.bf16.gmra.mrb[128].mxu1 %v3464_v22  ;;  %4010 = vmatmul.mubr.bf16.gmra.mrb[144].mxu0 %v3464_v22  ;;  %v3369_v21 = vmul.f32 %v7261_v62, %v3273_v16  ;;  %v3406_v50 = vmul.f32 %v9285_v0, %v3368_v26  ;;  %v7008_v57 = vld [vmem:[#allocation11 + $0x20] sm:$0xff]   ;;  %v7010_v22 = vld [vmem:[#allocation11 + $0x68] sm:$0xff]  }
 0x737   : > { %3826 = vmatprep.mubr.bf16.mxu1 %v7832_v42  ;;  %4019 = vmatprep.mubr.bf16.mxu0 %v7832_v42  ;;  %v7009_v16 = vld [vmem:[#allocation11 + $0xa0] sm:$0xff]   ;;  %v7011_v26 = vld [vmem:[#allocation11 + $0xe8] sm:$0xff]  }
 0x738   : > { %v3407_v6 = vmul.f32 %v9285_v0, %v3369_v21  ;;  %v3444_v20 = vadd.f32 %v9302_v33, %v3406_v50  ;;  %6448 = vmatprep.subr.bf16.mxu0 %v7003_v51  ;;  %6337 = vmatpush3.bf16.msra.mxu1 %v7004_v10  ;;  %v7012_v62 = vld [vmem:[#allocation11 + $0x28] sm:$0xff]   ;;  %v7014_v50 = vld [vmem:[#allocation11 + $0x70] sm:$0xff]  }
 0x739   : > { %6449 = vmatpush3.bf16.msra.mxu0 %v7005_v63  ;;  %6338 = vmatprep.subr.bf16.mxu1 %v7006_v39  ;;  %v7013_v21 = vld [vmem:[#allocation11 + $0xa8] sm:$0xff]  }
 0x73a   : > { %v3445_v38 = vadd.f32 %v9302_v33, %v3407_v6  ;;  %6450 = vmatprep.subr.bf16.mxu0 %v7007_v48  ;;  %v7015_v6 = vld [vmem:[#allocation11 + $0xf0] sm:$0xff]  }
 0x73c   : > { %v3465_v13 = vpack.c.bf16 %v3445_v38, %v3444_v20  ;;  %6339 = vmatpush3.bf16.msra.mxu1 %v7008_v57  ;;  %v7016_v20 = vld [vmem:[#allocation11 + $0x30] sm:$0xff]  }
 0x73d   : > { %6451 = vmatpush3.bf16.msra.mxu0 %v7009_v16  ;;  %6340 = vmatprep.subr.bf16.mxu1 %v7010_v22  ;;  %v7017_v38 = vld [vmem:[#allocation11 + $0xb0] sm:$0xff]  }
 0x73e   : > { %3827 = vmatmul.mubr.bf16.gmra.mrb[132].mxu1 %v3465_v13  ;;  %4020 = vmatmul.mubr.bf16.gmra.mrb[148].mxu0 %v3465_v13  ;;  %v7018_v13 = vld [vmem:[#allocation11 + $0x78] sm:$0xff]  }
 0x73f   : > { %3836 = vmatprep.mubr.bf16.mxu1 %v7832_v42  ;;  %4029 = vmatprep.mubr.bf16.mxu0 %v7832_v42 }
 0x740   : > { %6452 = vmatprep.subr.bf16.mxu0 %v7011_v26  ;;  %6341 = vmatpush3.bf16.msra.mxu1 %v7012_v62 }
 0x741   : > { %6453 = vmatpush3.bf16.msra.mxu0 %v7013_v21  ;;  %6342 = vmatprep.subr.bf16.mxu1 %v7014_v50 }
 0x742   : > { %6454 = vmatprep.subr.bf16.mxu0 %v7015_v6 }
 0x744   : > { %6343 = vmatpush3.bf16.msra.mxu1 %v7016_v20 }
 0x745   : > { %6455 = vmatpush3.bf16.msra.mxu0 %v7017_v38  ;;  %6344 = vmatprep.subr.bf16.mxu1 %v7018_v13 }
 0x746   : > { %6456 = vmatprep.subr.bf16.mxu0 %v7019_v30 }
 0x748   : > { %6345 = vmatpush3.bf16.msra.mxu1 %v7020_v29 }
 0x749   : > { %6457 = vmatpush3.bf16.msra.mxu0 %v7021_v41 }
 0x76a   : > { %v2979_v8 = vpop.xlane.xlu0 %2978 }
 0x76b   : > { %v3018_v19 = vmul.f32 0.0078125, %v2979_v8 }
 0x76c   : > { %v2981_v58 = vpop.xlane.xlu1 %2980 }
 0x76d   : > { %v3019_v37 = vmul.f32 0.0078125, %v2981_v58  ;;  %v3178_v56 = vmul.f32 %v3018_v19, %v3018_v19 }
 0x76e   : > { %v3107_v1 = vpop.xlane.xlu0 %3106 }
 0x76f   : > { %v3146_v54 = vmul.f32 0.0078125, %v3107_v1  ;;  %v3179_v28 = vmul.f32 %v3019_v37, %v3019_v37 }
 0x770   : > { %v3109_v61 = vpop.xlane.xlu1 %3108 }
 0x771   : > { %v3210_v12 = vsub.f32 %v3146_v54, %v3178_v56  ;;  %v3147_v51 = vmul.f32 0.0078125, %v3109_v61 }
 0x772   : > { %v2983_v10 = vpop.xlane.xlu0 %2982 }
 0x773   : > { %v3242_v63 = vmax.f32 %v3210_v12, 0.0  ;;  %v3211_v39 = vsub.f32 %v3147_v51, %v3179_v28  ;;  %v9522_v48 = vmul.f32 0.0078125, %v2983_v10 }
 0x774   : > { %v2985_v57 = vpop.xlane.xlu1 %2984 }
 0x775   : > { %v3306_v16 = vadd.f32 1e-05, %v3242_v63  ;;  %v3243_v22 = vmax.f32 %v3211_v39, 0.0  ;;  %v9524_v26 = vmul.f32 0.0078125, %v2985_v57  ;;  %v3180_v50 = vmul.f32 %v9522_v48, %v9522_v48 }
 0x776   : > { %v3111_v62 = vpop.xlane.xlu0 %3110  ;;  %v3274_v63 = vsub.f32 %v9280_v47, %v3018_v19 }
 0x777   : > { %7262 = vrsqrt.f32 %v3306_v16  ;;  %v3307_v21 = vadd.f32 1e-05, %v3243_v22  ;;  %v3148_v6 = vmul.f32 0.0078125, %v3111_v62  ;;  %v3181_v38 = vmul.f32 %v9524_v26, %v9524_v26 }
 0x778   : > { %v3113_v20 = vpop.xlane.xlu1 %3112 }
 0x779   : > { %7264 = vrsqrt.f32 %v3307_v21  ;;  %v3212_v13 = vsub.f32 %v3148_v6, %v3180_v50  ;;  %v3149_v30 = vmul.f32 0.0078125, %v3113_v20  ;;  %v3275_v21 = vsub.f32 %v9292_v45, %v3019_v37 }
 0x77a   : > { %v2987_v29 = vpop.xlane.xlu0 %2986 }
 0x77b   : > { %v3244_v41 = vmax.f32 %v3212_v13, 0.0  ;;  %v3213_v8 = vsub.f32 %v3149_v30, %v3181_v38  ;;  %v9530_v58 = vmul.f32 0.0078125, %v2987_v29 }
 0x77c   : > { %v2989_v1 = vpop.xlane.xlu1 %2988 }
 0x77d   : > { %v3308_v56 = vadd.f32 1e-05, %v3244_v41  ;;  %v3245_v54 = vmax.f32 %v3213_v8, 0.0  ;;  %v9532_v61 = vmul.f32 0.0078125, %v2989_v1  ;;  %v3182_v51 = vmul.f32 %v9530_v58, %v9530_v58 }
 0x77e   : > { %v3115_v28 = vpop.xlane.xlu0 %3114 }
 0x77f   : > { %7266 = vrsqrt.f32 %v3308_v56  ;;  %v3309_v12 = vadd.f32 1e-05, %v3245_v54  ;;  %v3150_v10 = vmul.f32 0.0078125, %v3115_v28  ;;  %v3183_v16 = vmul.f32 %v9532_v61, %v9532_v61  ;;  %v9546_v28 = vld [vmem:[%s11864_s6] ss:$0 sm:$0xff] }
 0x780   : > { %v3117_v39 = vpop.xlane.xlu1 %3116 }
 0x781   : > { %v7263_v57 = vpop.eup %7262  ;;  %7268 = vrsqrt.f32 %v3309_v12  ;;  %v3214_v22 = vsub.f32 %v3150_v10, %v3182_v51  ;;  %v3151_v62 = vmul.f32 0.0078125, %v3117_v39 }
 0x782   : > { %v2991_v50 = vpop.xlane.xlu0 %2990  ;;  %v3370_v6 = vmul.f32 %v7263_v57, %v3274_v63 }
 0x783   : > { %v7265_v20 = vpop.eup %7264  ;;  %v3246_v38 = vmax.f32 %v3214_v22, 0.0  ;;  %v3215_v13 = vsub.f32 %v3151_v62, %v3183_v16  ;;  %v9540_v30 = vmul.f32 0.0078125, %v2991_v50  ;;  %v3277_v50 = vsub.f32 %v9323_v18, %v9524_v26 }
 0x784   : > { %v2993_v29 = vpop.xlane.xlu1 %2992  ;;  %v3371_v41 = vmul.f32 %v7265_v20, %v3275_v21  ;;  %v3408_v19 = vmul.f32 %v9285_v0, %v3370_v6  ;;  %v3276_v0 = vsub.f32 %v9314_v17, %v9522_v48 }
 0x785   : > { %v3310_v8 = vadd.f32 1e-05, %v3246_v38  ;;  %v3247_v1 = vmax.f32 %v3215_v13, 0.0  ;;  %v3025_v56 = vmul.f32 0.0078125, %v2993_v29  ;;  %v3184_v51 = vmul.f32 %v9540_v30, %v9540_v30 }
 0x786   : > { %v3119_v54 = vpop.xlane.xlu0 %3118  ;;  %v3409_v37 = vmul.f32 %v9546_v28, %v3371_v41  ;;  %v3446_v39 = vadd.f32 %v9302_v33, %v3408_v19 }
 0x787   : > { %7270 = vrsqrt.f32 %v3310_v8  ;;  %v3311_v12 = vadd.f32 1e-05, %v3247_v1  ;;  %v3152_v10 = vmul.f32 0.0078125, %v3119_v54  ;;  %v3185_v22 = vmul.f32 %v3025_v56, %v3025_v56  ;;  %v7567_v54 = vld [vmem:[%s12075_s29] ss:$0 sm:$0xff] }
 0x788   : > { %v3121_v63 = vpop.xlane.xlu1 %3120  ;;  %v3447_v57 = vadd.f32 %v9302_v33, %v3409_v37  ;;  %v3278_v1 = vsub.f32 %v9348_v46, %v9530_v58 }
 0x789   : > { %v7267_v16 = vpop.eup %7266  ;;  %7272 = vrsqrt.f32 %v3311_v12  ;;  %v3216_v62 = vsub.f32 %v3152_v10, %v3184_v51  ;;  %v3153_v21 = vmul.f32 0.0078125, %v3121_v63  ;;  %v3279_v10 = vsub.f32 %v9355_v4, %v9532_v61 }
 0x78a   : > { %v3466_v6 = vpack.c.bf16 %v3447_v57, %v3446_v39  ;;  %v3372_v20 = vmul.f32 %v7267_v16, %v3276_v0 }
 0x78b   : > { %v7269_v38 = vpop.eup %7268  ;;  %v3248_v13 = vmax.f32 %v3216_v62, 0.0  ;;  %v3217_v29 = vsub.f32 %v3153_v21, %v3185_v22  ;;  %v3280_v22 = vsub.f32 %v9374_v53, %v9540_v30 }
 0x78c   : > { %3837 = vmatmul.mubr.bf16.gmra.mrb[136].mxu1 %v3466_v6  ;;  %4030 = vmatmul.mubr.bf16.gmra.mrb[152].mxu0 %v3466_v6  ;;  %v3373_v48 = vmul.f32 %v7269_v38, %v3277_v50  ;;  %v3410_v41 = vmul.f32 %v9546_v28, %v3372_v20  ;;  %v3281_v50 = vsub.f32 %v9383_v11, %v3025_v56  ;;  %v3504_v56 = vlaneseq }
 0x78d   : > { %v3312_v19 = vadd.f32 1e-05, %v3248_v13  ;;  %v3249_v33 = vmax.f32 %v3217_v29, 0.0  ;;  %3846 = vmatprep.mubr.bf16.mxu1 %v7832_v42  ;;  %4039 = vmatprep.mubr.bf16.mxu0 %v7832_v42 }
 0x78e   : > { %v3411_v8 = vmul.f32 %v9546_v28, %v3373_v48  ;;  %v3448_v37 = vadd.f32 %v7567_v54, %v3410_v41 }
 0x78f   : > { %7274 = vrsqrt.f32 %v3312_v19  ;;  %v3313_v26 = vadd.f32 1e-05, %v3249_v33  ;;  %v3505_v33 = vshrl.u32 %v3504_v56, 7 }
 0x790   : > { %v3449_v12 = vadd.f32 %v7567_v54, %v3411_v8 }
 0x791   : > { %v7271_v51 = vpop.eup %7270  ;;  %7276 = vrsqrt.f32 %v3313_v26  ;;  %v3506_v8 = vsub.s32 0, %v3505_v33  ;;  %v3514_v26 = vsub.s32 2, %v3505_v33 }
 0x792   : > { %v3467_v0 = vpack.c.bf16 %v3449_v12, %v3448_v37  ;;  %v3374_v63 = vmul.f32 %v7271_v51, %v3278_v1  ;;  %v3502_v1 = vld [vmem:[%s12082_s12] sm:$0xf]  ;;  %v3510_v37 = vsub.s32 1, %v3505_v33  ;;  %v3518_v12 = vsub.s32 3, %v3505_v33  ;;  %s5936_s12 = scalar_lea.sflag [#allocation4], %s8140_s11 }
 0x793   : > { %v7273_v39 = vpop.eup %7272  ;;  %v9582_v51 = vrot.slane %v3502_v1, %v3506_v8 }
 0x794   : > { %3847 = vmatmul.mubr.bf16.gmra.mrb[140].mxu1 %v3467_v0  ;;  %4040 = vmatmul.mubr.bf16.gmra.mrb[156].mxu0 %v3467_v0  ;;  %v3375_v57 = vmul.f32 %v7273_v39, %v3279_v10  ;;  %v3412_v16 = vmul.f32 %v9546_v28, %v3374_v63 }
 0x795   : > { %3856 = vmatprep.mubr.bf16.mxu1 %v7832_v42  ;;  %4049 = vmatprep.mubr.bf16.mxu0 %v7832_v42 }
 0x796   : > { %v3413_v58 = vmul.f32 %v9546_v28, %v3375_v57  ;;  %v3450_v62 = vadd.f32 %v7567_v54, %v3412_v16 }
 0x798   : > { %v3451_v21 = vadd.f32 %v7567_v54, %v3413_v58 }
 0x799   : > { %v7275_v61 = vpop.eup %7274 }
 0x79a   : > { %v3468_v6 = vpack.c.bf16 %v3451_v21, %v3450_v62  ;;  %v3376_v20 = vmul.f32 %v7275_v61, %v3280_v22 }
 0x79b   : > { %v7277_v38 = vpop.eup %7276 }
 0x79c   : > { %3857 = vmatmul.mubr.bf16.gmra.mrb[144].mxu1 %v3468_v6  ;;  %4050 = vmatmul.mubr.bf16.gmra.mrb[160].mxu0 %v3468_v6  ;;  %v3377_v13 = vmul.f32 %v7277_v38, %v3281_v50  ;;  %v3414_v29 = vmul.f32 %v9546_v28, %v3376_v20 }
 0x79d   : > { %3866 = vmatprep.mubr.bf16.mxu1 %v7832_v42  ;;  %4059 = vmatprep.mubr.bf16.mxu0 %v7832_v42  ;;  %v9584_v42 = vrot.slane %v3502_v1, %v3514_v26 }
 0x79e   : > { %v3415_v48 = vmul.f32 %v9546_v28, %v3377_v13  ;;  %v3452_v30 = vadd.f32 %v7567_v54, %v3414_v29  ;;  %v9586_v28 = vrot.slane %v3502_v1, %v3510_v37 }
 0x79f   : > { %12083 = vst [vmem:[#allocation51_spill] sm:$0xff] %v9584_v42 }
 0x7a0   : > { %v3453_v41 = vadd.f32 %v7567_v54, %v3415_v48  ;;  %12084 = vst [vmem:[#allocation52_spill] sm:$0xff] %v9586_v28  ;;  %v9588_v54 = vrot.slane %v3502_v1, %v3518_v12 }
 0x7a2   : > { %v3469_v19 = vpack.c.bf16 %v3453_v41, %v3452_v30  ;;  %12085 = vst [vmem:[#allocation53_spill] sm:$0xff] %v9588_v54 }
 0x7a4   : > { %3867 = vmatmul.mubr.bf16.gmra.mrb[148].mxu1 %v3469_v19  ;;  %4060 = vmatmul.mubr.bf16.gmra.mrb[164].mxu0 %v3469_v19 }
 0x7b9   : > { %v3718_v10 = vpop.f32.mrb[88].mxu1  ;;  %v3911_v0 = vpop.f32.mrb[104].mxu0 }
 0x7ba   : > { %v3719_v63 = vadd.f32 %v3718_v10, %v9582_v51  ;;  %v3912_v39 = vadd.f32 %v3911_v0, %v9584_v42  ;;  %v3720_v57 = vpop.f32.mrb[89].mxu1  ;;  %v3913_v16 = vpop.f32.mrb[105].mxu0 }
 0x7bb   : > { %v9593_v58 = vadd.f32 %v3720_v57, %v9586_v28  ;;  %v9596_v22 = vadd.f32 %v3913_v16, %v9588_v54  ;;  %v3722_v62 = vpop.f32.mrb[90].mxu1  ;;  %v3915_v21 = vpop.f32.mrb[106].mxu0 }
 0x7bc   : > { %v9598_v61 = vmul.f32 0.5, %v3719_v63  ;;  %v4198_v50 = vmul.f32 0.044715, %v3719_v63  ;;  %v9600_v6 = vmul.f32 0.5, %v3912_v39  ;;  %v4200_v20 = vmul.f32 0.044715, %v3912_v39 }
 0x7bd   : > { %v4199_v38 = vmul.f32 0.044715, %v9593_v58  ;;  %v4201_v13 = vmul.f32 0.044715, %v9596_v22  ;;  %v3723_v29 = vadd.f32 %v3722_v62, %v9582_v51  ;;  %v3916_v48 = vadd.f32 %v3915_v21, %v9584_v42  ;;  %v3724_v30 = vpop.f32.mrb[91].mxu1  ;;  %v3917_v41 = vpop.f32.mrb[107].mxu0 }
 0x7be   : > { %v4326_v19 = vmul.f32 %v4198_v50, %v3719_v63  ;;  %v4328_v56 = vmul.f32 %v4200_v20, %v3912_v39  ;;  %v9607_v33 = vadd.f32 %v3724_v30, %v9586_v28  ;;  %v9610_v8 = vadd.f32 %v3917_v41, %v9588_v54 }
 0x7bf   : > { %v4327_v26 = vmul.f32 %v4199_v38, %v9593_v58  ;;  %v4329_v1 = vmul.f32 %v4201_v13, %v9596_v22  ;;  %v9614_v37 = vmul.f32 0.5, %v3723_v29  ;;  %v4202_v12 = vmul.f32 0.044715, %v3723_v29 }
 0x7c0   : > { %v4454_v10 = vmul.f32 %v4326_v19, %v3719_v63  ;;  %v4456_v0 = vmul.f32 %v4328_v56, %v3912_v39  ;;  %v9616_v57 = vmul.f32 0.5, %v3916_v48  ;;  %v4204_v16 = vmul.f32 0.044715, %v3916_v48 }
 0x7c1   : > { %v9619_v62 = vmul.f32 %v4327_v26, %v9593_v58  ;;  %v9622_v21 = vmul.f32 %v4329_v1, %v9596_v22  ;;  %v4330_v50 = vmul.f32 %v4202_v12, %v3723_v29  ;;  %v4203_v20 = vmul.f32 0.044715, %v9607_v33  ;;  %v3728_v38 = vpop.f32.mrb[92].mxu1  ;;  %v3921_v30 = vpop.f32.mrb[108].mxu0 }
 0x7c2   : > { %v4582_v13 = vadd.f32 %v4454_v10, %v3719_v63  ;;  %v4584_v41 = vadd.f32 %v4456_v0, %v3912_v39  ;;  %v4332_v11 = vmul.f32 %v4204_v16, %v3916_v48  ;;  %v4205_v19 = vmul.f32 0.044715, %v9610_v8  ;;  %v3730_v56 = vpop.f32.mrb[93].mxu1  ;;  %v3923_v53 = vpop.f32.mrb[109].mxu0 }
 0x7c3   : > { %v4458_v4 = vmul.f32 %v4330_v50, %v3723_v29  ;;  %v4331_v46 = vmul.f32 %v4203_v20, %v9607_v33  ;;  %v9628_v26 = vadd.f32 %v3728_v38, %v9582_v51  ;;  %v9631_v1 = vadd.f32 %v3921_v30, %v9584_v42  ;;  %v3732_v12 = vpop.f32.mrb[94].mxu1  ;;  %v3925_v18 = vpop.f32.mrb[110].mxu0 }
 0x7c4   : > { %v4710_v17 = vmul.f32 0.7978846, %v4582_v13  ;;  %v4712_v45 = vmul.f32 0.7978846, %v4584_v41  ;;  %v4460_v63 = vmul.f32 %v4332_v11, %v3916_v48  ;;  %v4333_v39 = vmul.f32 %v4205_v19, %v9610_v8  ;;  %v3734_v10 = vpop.f32.mrb[95].mxu1  ;;  %v3927_v0 = vpop.f32.mrb[111].mxu0 }
 0x7c5   : > { %v4586_v16 = vadd.f32 %v4458_v4, %v3723_v29  ;;  %v9635_v50 = vmul.f32 %v4331_v46, %v9607_v33  ;;  %v4206_v20 = vmul.f32 0.044715, %v9628_v26  ;;  %v4208_v38 = vmul.f32 0.044715, %v9631_v1 }
 0x7c6   : > { %7278 = vtanh.f32 %v4710_v17  ;;  %v4588_v30 = vadd.f32 %v4460_v63, %v3916_v48  ;;  %v9640_v47 = vmul.f32 %v4333_v39, %v9610_v8  ;;  %v9643_v13 = vadd.f32 %v3730_v56, %v9586_v28 }
 0x7c7   : > { %7280 = vtanh.f32 %v4712_v45  ;;  %v4714_v11 = vmul.f32 0.7978846, %v4586_v16  ;;  %v4334_v41 = vmul.f32 %v4206_v20, %v9628_v26  ;;  %v4336_v4 = vmul.f32 %v4208_v38, %v9631_v1 }
 0x7c8   : > { %v4716_v46 = vmul.f32 0.7978846, %v4588_v30  ;;  %v4207_v29 = vmul.f32 0.044715, %v9643_v13  ;;  %v9649_v19 = vadd.f32 %v3923_v53, %v9588_v54  ;;  %v9652_v17 = vadd.f32 %v3732_v12, %v9582_v51 }
 0x7c9   : > { %7282 = vtanh.f32 %v4714_v11  ;;  %v9655_v48 = vmul.f32 %v4334_v41, %v9628_v26  ;;  %v9658_v45 = vmul.f32 %v4336_v4, %v9631_v1  ;;  %v9661_v56 = vadd.f32 %v3925_v18, %v9584_v42  ;;  %v3738_v63 = vpop.f32.mrb[96].mxu1  ;;  %v3931_v39 = vpop.f32.mrb[112].mxu0 }
 0x7ca   : > { %7284 = vtanh.f32 %v4716_v46  ;;  %v4335_v16 = vmul.f32 %v4207_v29, %v9643_v13  ;;  %v4209_v53 = vmul.f32 0.044715, %v9649_v19  ;;  %v4210_v12 = vmul.f32 0.044715, %v9652_v17  ;;  %v3740_v20 = vpop.f32.mrb[97].mxu1  ;;  %v3933_v38 = vpop.f32.mrb[113].mxu0 }
 0x7cb   : > { %v4212_v30 = vmul.f32 0.044715, %v9661_v56  ;;  %v9668_v11 = vadd.f32 %v3734_v10, %v9586_v28  ;;  %v9671_v41 = vadd.f32 %v3927_v0, %v9588_v54  ;;  %v9674_v18 = vadd.f32 %v3738_v63, %v9582_v51  ;;  %v3742_v4 = vpop.f32.mrb[98].mxu1  ;;  %v3935_v46 = vpop.f32.mrb[114].mxu0 }
 0x7cc   : > { %v9677_v29 = vmul.f32 %v4335_v16, %v9643_v13  ;;  %v4337_v55 = vmul.f32 %v4209_v53, %v9649_v19  ;;  %v4338_v2 = vmul.f32 %v4210_v12, %v9652_v17  ;;  %v9682_v40 = vadd.f32 %v3931_v39, %v9584_v42  ;;  %v3744_v10 = vpop.f32.mrb[99].mxu1  ;;  %v3937_v59 = vpop.f32.mrb[115].mxu0 }
 0x7cd   : > { %12086 = vst [vmem:[#allocation54_spill] sm:$0xff] %v9674_v18  ;;  %v4340_v0 = vmul.f32 %v4212_v30, %v9661_v56  ;;  %v4211_v25 = vmul.f32 0.044715, %v9668_v11  ;;  %v4213_v63 = vmul.f32 0.044715, %v9671_v41  ;;  %v9696_v39 = vadd.f32 %v3740_v20, %v9586_v28 }
 0x7ce   : > { %12087 = vst [vmem:[#allocation55_spill] sm:$0xff] %v9682_v40  ;;  %v4214_v24 = vmul.f32 0.044715, %v9674_v18  ;;  %v9689_v16 = vmul.f32 %v4337_v55, %v9649_v19  ;;  %v9692_v53 = vmul.f32 %v4338_v2, %v9652_v17  ;;  %v4216_v12 = vmul.f32 0.044715, %v9682_v40 }
 0x7cf   : > { %v9699_v60 = vmul.f32 %v4340_v0, %v9661_v56  ;;  %v4339_v30 = vmul.f32 %v4211_v25, %v9668_v11  ;;  %v4341_v32 = vmul.f32 %v4213_v63, %v9671_v41  ;;  %v4215_v2 = vmul.f32 0.044715, %v9696_v39 }
 0x7d0   : > { %v4342_v49 = vmul.f32 %v4214_v24, %v9674_v18  ;;  %v9704_v36 = vpop.eup %7278  ;;  %v4344_v55 = vmul.f32 %v4216_v12, %v9682_v40  ;;  %v9709_v44 = vadd.f32 %v3933_v38, %v9588_v54  ;;  %v9712_v20 = vadd.f32 %v3742_v4, %v9582_v51 }
 0x7d1   : > { %v9714_v0 = vpop.eup %7280  ;;  %v9717_v25 = vmul.f32 %v4339_v30, %v9668_v11  ;;  %v9720_v63 = vmul.f32 %v4341_v32, %v9671_v41  ;;  %v9726_v12 = vadd.f32 %v3935_v46, %v9584_v42  ;;  %v3748_v52 = vpop.f32.mrb[100].mxu1  ;;  %v4343_v4 = vmul.f32 %v4215_v2, %v9696_v39 }
 0x7d2   : > { %12088 = vst [vmem:[#allocation56_spill] sm:$0xff] %v9709_v44  ;;  %12089 = vst [vmem:[#allocation57_spill] sm:$0xff] %v9712_v20  ;;  %v9723_v24 = vmul.f32 %v4342_v49, %v9674_v18  ;;  %v3941_v38 = vpop.f32.mrb[116].mxu0  ;;  %v9729_v3 = vmul.f32 %v4344_v55, %v9682_v40  ;;  %v4217_v7 = vmul.f32 0.044715, %v9709_v44  ;;  %v3750_v23 = vpop.f32.mrb[101].mxu1  ;;  %v9738_v46 = vadd.f32 %v3744_v10, %v9586_v28 }
 0x7d3   : > { %12091 = vst [vmem:[#allocation59_spill] sm:$0xff] %v9726_v12  ;;  %v4218_v30 = vmul.f32 0.044715, %v9712_v20  ;;  %v3943_v32 = vpop.f32.mrb[117].mxu0  ;;  %v9734_v31 = vpop.eup %7282  ;;  %v4220_v49 = vmul.f32 0.044715, %v9726_v12  ;;  %v9741_v14 = vadd.f32 %v3937_v59, %v9588_v54  ;;  %v9744_v55 = vadd.f32 %v3748_v52, %v9582_v51 }
 0x7d4   : > { %12090 = vst [vmem:[#allocation58_spill] sm:$0xff] %v9723_v24  ;;  %12092 = vst [vmem:[#allocation60_spill] sm:$0xff] %v9729_v3  ;;  %v3752_v2 = vpop.f32.mrb[102].mxu1  ;;  %v3945_v35 = vpop.f32.mrb[118].mxu0  ;;  %v9749_v9 = vmul.f32 %v4343_v4, %v9696_v39  ;;  %v4345_v34 = vmul.f32 %v4217_v7, %v9709_v44  ;;  %v9754_v10 = vadd.f32 %v3941_v38, %v9584_v42  ;;  %v4219_v52 = vmul.f32 0.044715, %v9738_v46 }
 0x7d5   : > { %12093 = vst [vmem:[#allocation61_spill] sm:$0xff] %v9738_v46  ;;  %12094 = vst [vmem:[#allocation62_spill] sm:$0xff] %v9741_v14  ;;  %v9746_v5 = vpop.eup %7284  ;;  %v4346_v27 = vmul.f32 %v4218_v30, %v9712_v20  ;;  %v3754_v43 = vpop.f32.mrb[103].mxu1  ;;  %v4348_v15 = vmul.f32 %v4220_v49, %v9726_v12  ;;  %v4221_v3 = vmul.f32 0.044715, %v9741_v14  ;;  %v9768_v38 = vadd.f32 %v3750_v23, %v9586_v28 }
 0x7d6   : > { %12095 = vst [vmem:[#allocation63_spill] sm:$0xff] %v9744_v55  ;;  %12096 = vst [vmem:[#allocation64_spill] sm:$0xff] %v9749_v9  ;;  %v3947_v59 = vpop.f32.mrb[119].mxu0  ;;  %v4222_v40 = vmul.f32 0.044715, %v9744_v55  ;;  %v9761_v4 = vmul.f32 %v4345_v34, %v9709_v44  ;;  %v4347_v49 = vmul.f32 %v4219_v52, %v9738_v46 }
 0x7d7   : > { %12097 = vst [vmem:[#allocation65_spill] sm:$0xff] %v9754_v10  ;;  %v9764_v7 = vmul.f32 %v4346_v27, %v9712_v20  ;;  %v4224_v30 = vmul.f32 0.044715, %v9754_v10  ;;  %12100 = vst [vmem:[#allocation68_spill] sm:$0xff] %v9768_v38  ;;  %v9771_v24 = vmul.f32 %v4348_v15, %v9726_v12  ;;  %v4349_v18 = vmul.f32 %v4221_v3, %v9741_v14 }
 0x7d8   : > { %12098 = vst [vmem:[#allocation66_spill] sm:$0xff] %v9761_v4  ;;  %v4350_v9 = vmul.f32 %v4222_v40, %v9744_v55  ;;  %v4223_v4 = vmul.f32 0.044715, %v9768_v38  ;;  %v9779_v27 = vadd.f32 %v3943_v32, %v9588_v54  ;;  %v9785_v23 = vmul.f32 %v4347_v49, %v9738_v46 }
 0x7d9   : > { %12099 = vst [vmem:[#allocation67_spill] sm:$0xff] %v9764_v7  ;;  %12101 = vst [vmem:[#allocation69_spill] sm:$0xff] %v9771_v24  ;;  %v4352_v34 = vmul.f32 %v4224_v30, %v9754_v10  ;;  %v9782_v7 = vadd.f32 %v3752_v2, %v9582_v51  ;;  %v9788_v15 = vmul.f32 %v4349_v18, %v9741_v14  ;;  %v3758_v52 = vpop.f32.mrb[104].mxu1  ;;  %v3951_v30 = vpop.f32.mrb[120].mxu0 }
 0x7da   : > { %12102 = vst [vmem:[#allocation70_spill] sm:$0xff] %v9779_v27  ;;  %12104 = vst [vmem:[#allocation72_spill] sm:$0xff] %v9785_v23  ;;  %v9791_v3 = vmul.f32 %v4350_v9, %v9744_v55  ;;  %v9794_v40 = vadd.f32 %v3945_v35, %v9584_v42  ;;  %v4351_v2 = vmul.f32 %v4223_v4, %v9768_v38  ;;  %v4225_v24 = vmul.f32 0.044715, %v9779_v27  ;;  %v3760_v12 = vpop.f32.mrb[105].mxu1  ;;  %v3953_v18 = vpop.f32.mrb[121].mxu0 }
 0x7db   : > { %12103 = vst [vmem:[#allocation71_spill] sm:$0xff] %v9782_v7  ;;  %12105 = vst [vmem:[#allocation73_spill] sm:$0xff] %v9788_v15  ;;  %v9797_v32 = vmul.f32 %v4352_v34, %v9754_v10  ;;  %v4226_v49 = vmul.f32 0.044715, %v9782_v7  ;;  %v9804_v9 = vadd.f32 %v3754_v43, %v9586_v28  ;;  %v9807_v35 = vadd.f32 %v3947_v59, %v9588_v54  ;;  %v3762_v34 = vpop.f32.mrb[106].mxu1 }
 0x7dc   : > { %12106 = vst [vmem:[#allocation74_spill] sm:$0xff] %v9791_v3  ;;  %12107 = vst [vmem:[#allocation75_spill] sm:$0xff] %v9794_v40  ;;  %v4228_v20 = vmul.f32 0.044715, %v9794_v40  ;;  %v9810_v3 = vadd.f32 %v3758_v52, %v9582_v51  ;;  %v9813_v4 = vmul.f32 %v4351_v2, %v9768_v38  ;;  %v4353_v10 = vmul.f32 %v4225_v24, %v9779_v27  ;;  %v9820_v43 = vpop.f32.mrb[107].mxu1 }
 0x7dd   : > { %12108 = vst [vmem:[#allocation76_spill] sm:$0xff] %v9797_v32  ;;  %12109 = vst [vmem:[#allocation77_spill] sm:$0xff] %v9804_v9  ;;  %v3955_v32 = vpop.f32.mrb[122].mxu0  ;;  %v4354_v55 = vmul.f32 %v4226_v49, %v9782_v7  ;;  %v9818_v15 = vadd.f32 %v3951_v30, %v9584_v42  ;;  %v4227_v52 = vmul.f32 0.044715, %v9804_v9  ;;  %v9836_v49 = vadd.f32 %v3760_v12, %v9586_v28 }
 0x7de   : > { %12110 = vst [vmem:[#allocation78_spill] sm:$0xff] %v9807_v35  ;;  %12111 = vst [vmem:[#allocation79_spill] sm:$0xff] %v9810_v3  ;;  %v9822_v14 = vpop.f32.mrb[123].mxu0  ;;  %v4356_v59 = vmul.f32 %v4228_v20, %v9794_v40  ;;  %v4229_v44 = vmul.f32 0.044715, %v9807_v35 }
 0x7df   : > { %12112 = vst [vmem:[#allocation80_spill] sm:$0xff] %v9813_v4  ;;  %12113 = vst [vmem:[#allocation81_spill] sm:$0xff] %v9818_v15  ;;  %v4230_v2 = vmul.f32 0.044715, %v9810_v3  ;;  %v9829_v4 = vmul.f32 %v4353_v10, %v9779_v27  ;;  %v9832_v24 = vmul.f32 %v4354_v55, %v9782_v7  ;;  %v4232_v30 = vmul.f32 0.044715, %v9818_v15 }
 0x7e0   : > { %12116 = vst [vmem:[#allocation84_spill] sm:$0xff] %v9836_v49  ;;  %v9839_v38 = vmul.f32 %v4356_v59, %v9794_v40  ;;  %v4355_v20 = vmul.f32 %v4227_v52, %v9804_v9  ;;  %v4357_v23 = vmul.f32 %v4229_v44, %v9807_v35  ;;  %v9847_v55 = vadd.f32 %v3953_v18, %v9588_v54 }
 0x7e1   : > { %12114 = vst [vmem:[#allocation82_spill] sm:$0xff] %v9829_v4  ;;  %12115 = vst [vmem:[#allocation83_spill] sm:$0xff] %v9832_v24  ;;  %v4358_v46 = vmul.f32 %v4230_v2, %v9810_v3  ;;  %v4360_v10 = vmul.f32 %v4232_v30, %v9818_v15  ;;  %v4231_v4 = vmul.f32 0.044715, %v9836_v49  ;;  %v9850_v24 = vmul.f32 0.5, %v9593_v58  ;;  %v3768_v2 = vpop.f32.mrb[108].mxu1 }
 0x7e2   : > { %12117 = vst [vmem:[#allocation85_spill] sm:$0xff] %v9839_v38  ;;  %12118 = vst [vmem:[#allocation86_spill] sm:$0xff] %v9847_v55  ;;  %v9853_v12 = vmul.f32 %v4355_v20, %v9804_v9  ;;  %v9856_v59 = vmul.f32 %v4357_v23, %v9807_v35  ;;  %v9862_v52 = vmul.f32 0.5, %v9607_v33  ;;  %v3961_v30 = vpop.f32.mrb[124].mxu0  ;;  %v4233_v40 = vmul.f32 0.044715, %v9847_v55 }
 0x7e3   : > { %v9859_v44 = vmul.f32 %v4358_v46, %v9810_v3  ;;  %v9865_v18 = vmul.f32 %v4360_v10, %v9818_v15  ;;  %v4359_v38 = vmul.f32 %v4231_v4, %v9836_v49  ;;  %v4583_v20 = vadd.f32 %v9619_v62, %v9593_v58  ;;  %v3770_v23 = vpop.f32.mrb[109].mxu1  ;;  %v3963_v7 = vpop.f32.mrb[125].mxu0 }
 0x7e4   : > { %12119 = vst [vmem:[#allocation87_spill] sm:$0xff] %v9853_v12  ;;  %12120 = vst [vmem:[#allocation88_spill] sm:$0xff] %v9856_v59  ;;  %v4587_v46 = vadd.f32 %v9635_v50, %v9607_v33  ;;  %v9877_v3 = vmul.f32 0.5, %v9610_v8  ;;  %v4585_v10 = vadd.f32 %v9622_v21, %v9596_v22  ;;  %v9881_v4 = vpop.f32.mrb[110].mxu1  ;;  %v4361_v62 = vmul.f32 %v4233_v40, %v9847_v55 }
 0x7e5   : > { %12121 = vst [vmem:[#allocation89_spill] sm:$0xff] %v9859_v44  ;;  %12122 = vst [vmem:[#allocation90_spill] sm:$0xff] %v9865_v18  ;;  %v9874_v44 = vmul.f32 0.5, %v9596_v22  ;;  %v9883_v18 = vpop.f32.mrb[126].mxu0  ;;  %v9886_v58 = vmul.f32 %v4359_v38, %v9836_v49  ;;  %v4711_v15 = vmul.f32 0.7978846, %v4583_v20  ;;  %v4589_v33 = vadd.f32 %v9640_v47, %v9610_v8 }
 0x7e6   : > { %v9891_v50 = vpop.f32.mrb[111].mxu1  ;;  %v9893_v59 = vpop.f32.mrb[127].mxu0  ;;  %v4715_v35 = vmul.f32 0.7978846, %v4587_v46  ;;  %v4713_v27 = vmul.f32 0.7978846, %v4585_v10  ;;  %v9896_v22 = vadd.f32 %v3762_v34, %v9582_v51  ;;  %v9899_v21 = vadd.f32 %v3955_v32, %v9584_v42 }
 0x7e7   : > { %12123 = vst [vmem:[#allocation91_spill] sm:$0xff] %v9886_v58  ;;  %v9902_v38 = vmul.f32 %v4361_v62, %v9847_v55  ;;  %7286 = vtanh.f32 %v4711_v15  ;;  %v4717_v40 = vmul.f32 0.7978846, %v4589_v33  ;;  %v4966_v20 = vadd.f32 1.0, %v9704_v36 }
 0x7e8   : > { %12124 = vst [vmem:[#allocation92_spill] sm:$0xff] %v9896_v22  ;;  %12125 = vst [vmem:[#allocation93_spill] sm:$0xff] %v9899_v21  ;;  %7288 = vtanh.f32 %v4715_v35  ;;  %v4234_v47 = vmul.f32 0.044715, %v9896_v22  ;;  %v4236_v8 = vmul.f32 0.044715, %v9899_v21  ;;  %v4595_v49 = vadd.f32 %v9717_v25, %v9668_v11 }
 0x7e9   : > { %12126 = vst [vmem:[#allocation94_spill] sm:$0xff] %v9902_v38  ;;  %v4970_v46 = vadd.f32 1.0, %v9734_v31  ;;  %7290 = vtanh.f32 %v4713_v27  ;;  %v9909_v34 = vmul.f32 %v4966_v20, %v9598_v61  ;;  %v4968_v32 = vadd.f32 1.0, %v9714_v0  ;;  %v9918_v62 = vpop.f32.mrb[112].mxu1  ;;  %v9920_v33 = vpop.f32.mrb[128].mxu0 }
 0x7ea   : > { %v4972_v10 = vadd.f32 1.0, %v9746_v5  ;;  %7292 = vtanh.f32 %v4717_v40  ;;  %v4362_v15 = vmul.f32 %v4234_v47, %v9896_v22  ;;  %v4364_v36 = vmul.f32 %v4236_v8, %v9899_v21  ;;  %v9938_v27 = vpop.f32.mrb[129].mxu0 }
 0x7eb   : > { %v9916_v35 = vmul.f32 %v4970_v46, %v9614_v37  ;;  %v9923_v31 = vmul.f32 %v4968_v32, %v9600_v6  ;;  %v9930_v5 = vadd.f32 %v9820_v43, %v9586_v28  ;;  %v9934_v0 = vadd.f32 %v9822_v14, %v9588_v54  ;;  %v9936_v37 = vpop.f32.mrb[113].mxu1  ;;  %v9953_v14 = vpop.f32.mrb[130].mxu0 }
 0x7ec   : > { %v9926_v61 = vmul.f32 %v4972_v10, %v9616_v57  ;;  %v9941_v40 = vmul.f32 %v4362_v15, %v9896_v22  ;;  %v9944_v6 = vmul.f32 %v4364_v36, %v9899_v21  ;;  %v9949_v43 = vadd.f32 %v3768_v2, %v9582_v51  ;;  %v9951_v20 = vpop.f32.mrb[114].mxu1  ;;  %v9964_v15 = vpop.f32.mrb[131].mxu0 }
 0x7ed   : > { %12127 = vst [vmem:[#allocation95_spill] sm:$0xff] %v9934_v0  ;;  %v4235_v8 = vmul.f32 0.044715, %v9930_v5  ;;  %v4237_v46 = vmul.f32 0.044715, %v9934_v0  ;;  %v9960_v32 = vadd.f32 %v3961_v30, %v9584_v42  ;;  %v9962_v10 = vpop.f32.mrb[115].mxu1  ;;  %v9968_v36 = vadd.f32 %v3770_v23, %v9586_v28 }
 0x7ee   : > { %12128 = vst [vmem:[#allocation96_spill] sm:$0xff] %v9941_v40  ;;  %12129 = vst [vmem:[#allocation97_spill] sm:$0xff] %v9944_v6  ;;  %v4238_v2 = vmul.f32 0.044715, %v9949_v43  ;;  %v9971_v57 = vadd.f32 %v3963_v7, %v9588_v54  ;;  %v9974_v47 = vmul.f32 0.5, %v9643_v13  ;;  %v9980_v40 = vmul.f32 0.5, %v9668_v11 }
 0x7ef   : > { %12130 = vst [vmem:[#allocation98_spill] sm:$0xff] %v9949_v43  ;;  %12131 = vst [vmem:[#allocation99_spill] sm:$0xff] %v9960_v32  ;;  %v4363_v6 = vmul.f32 %v4235_v8, %v9930_v5  ;;  %v4365_v30 = vmul.f32 %v4237_v46, %v9934_v0  ;;  %v4240_v21 = vmul.f32 0.044715, %v9960_v32  ;;  %v4239_v23 = vmul.f32 0.044715, %v9968_v36 }
 0x7f0   : > { %12132 = vst [vmem:[#allocation100_spill] sm:$0xff] %v9964_v15  ;;  %12133 = vst [vmem:[#allocation101_spill] sm:$0xff] %v9971_v57  ;;  %v4366_v22 = vmul.f32 %v4238_v2, %v9949_v43  ;;  %v4241_v38 = vmul.f32 0.044715, %v9971_v57  ;;  %v4591_v7 = vadd.f32 %v9677_v29, %v9643_v13  ;;  %v4723_v11 = vmul.f32 0.7978846, %v4595_v49 }
 0x7f1   : > { %v7287_v55 = vpop.eup %7286  ;;  %v9988_v58 = vmul.f32 %v4363_v6, %v9930_v5  ;;  %v9991_v8 = vmul.f32 %v4365_v30, %v9934_v0  ;;  %v4368_v46 = vmul.f32 %v4240_v21, %v9960_v32  ;;  %v4367_v15 = vmul.f32 %v4239_v23, %v9968_v36  ;;  %v10001_v29 = vpop.f32.mrb[116].mxu1 }
 0x7f2   : > { %v7289_v2 = vpop.eup %7288  ;;  %v4967_v12 = vadd.f32 1.0, %v7287_v55  ;;  %v9997_v9 = vmul.f32 %v4366_v22, %v9949_v43  ;;  %v4369_v13 = vmul.f32 %v4241_v38, %v9971_v57  ;;  %v10003_v6 = vpop.f32.mrb[132].mxu0  ;;  %v4719_v0 = vmul.f32 0.7978846, %v4591_v7 }
 0x7f3   : > { %12134 = vst [vmem:[#allocation102_spill] sm:$0xff] %v9991_v8  ;;  %v7291_v30 = vpop.eup %7290  ;;  %v4971_v8 = vadd.f32 1.0, %v7289_v2  ;;  %v10006_v21 = vmul.f32 %v4368_v46, %v9960_v32  ;;  %v10008_v25 = vpop.f32.mrb[117].mxu1  ;;  %v10012_v23 = vmul.f32 %v4367_v15, %v9968_v36  ;;  %v10023_v49 = vmul.f32 0.5, %v9649_v19 }
 0x7f4   : > { %12135 = vst [vmem:[#allocation103_spill] sm:$0xff] %v9997_v9  ;;  %v7293_v55 = vpop.eup %7292  ;;  %v5095_v22 = vmul.f32 %v4967_v12, %v9850_v24  ;;  %v4969_v9 = vadd.f32 1.0, %v7291_v30  ;;  %v10015_v38 = vmul.f32 %v4369_v13, %v9971_v57  ;;  %v10017_v43 = vpop.f32.mrb[133].mxu0  ;;  %7294 = vtanh.f32 %v4719_v0 }
 0x7f5   : > { %12136 = vst [vmem:[#allocation104_spill] sm:$0xff] %v10006_v21  ;;  %v10019_v2 = vpop.f32.mrb[118].mxu1  ;;  %v5099_v46 = vmul.f32 %v4971_v8, %v9862_v52  ;;  %v4973_v7 = vadd.f32 1.0, %v7293_v55  ;;  %v10025_v21 = vpop.f32.mrb[134].mxu0  ;;  %7296 = vtanh.f32 %v4723_v11  ;;  %v10031_v15 = vmul.f32 0.5, %v9671_v41 }
 0x7f6   : > { %12137 = vst [vmem:[#allocation105_spill] sm:$0xff] %v10015_v38  ;;  %v10027_v24 = vpop.f32.mrb[119].mxu1  ;;  %v5097_v12 = vmul.f32 %v4969_v9, %v9874_v44  ;;  %v4593_v13 = vadd.f32 %v9689_v16, %v9649_v19  ;;  %v10035_v30 = vpop.f32.mrb[135].mxu0  ;;  %v4597_v8 = vadd.f32 %v9720_v63, %v9671_v41  ;;  %v10042_v55 = vadd.f32 %v9881_v4, %v9582_v51 }
 0x7f7   : > { %v5223_v52 = vpack.c.bf16 %v5099_v46, %v5095_v22  ;;  %v5101_v0 = vmul.f32 %v4973_v7, %v9877_v3  ;;  %v10046_v44 = vadd.f32 %v9883_v18, %v9584_v42  ;;  %v10049_v11 = vmul.f32 0.5, %v9628_v26 }
 0x7f8   : > { %12138 = vst [vmem:[#allocation106_spill] sm:$0xff] %v10042_v55  ;;  %v4721_v9 = vmul.f32 0.7978846, %v4593_v13  ;;  %v10052_v19 = vmul.f32 0.5, %v9652_v17  ;;  %v4725_v3 = vmul.f32 0.7978846, %v4597_v8  ;;  %v4590_v63 = vadd.f32 %v9655_v48, %v9628_v26 }
 0x7f9   : > { %12139 = vst [vmem:[#allocation107_spill] sm:$0xff] %v10046_v44  ;;  %5581 = vmatprep.mubr.bf16.mxu1 %v5223_v52  ;;  %v5225_v16 = vpack.c.bf16 %v5101_v0, %v5097_v12  ;;  %v4242_v41 = vmul.f32 0.044715, %v10042_v55  ;;  %v12140_v4 = vpack.c.bf16 %v9916_v35, %v9909_v34  ;;  %v4244_v18 = vmul.f32 0.044715, %v10046_v44  ;;  %v10066_v7 = vpop.f32.mrb[120].mxu1 }
 0x7fa   : > { %7298 = vtanh.f32 %v4721_v9  ;;  %v4594_v22 = vadd.f32 %v9692_v53, %v9652_v17  ;;  %v10064_v46 = vmul.f32 0.5, %v9631_v1  ;;  %v10068_v12 = vpop.f32.mrb[136].mxu0  ;;  %v4718_v48 = vmul.f32 0.7978846, %v4590_v63  ;;  %v10074_v35 = vpop.f32.mrb[121].mxu1 }
 0x7fb   : > { %5582 = vmatmul.mubr.bf16.vlgmr.msra.gmra.mrb[152].mxu1 %v12140_v4  ;;  %5742 = vmatprep.mubr.bf16.mxu0 %v5225_v16  ;;  %7300 = vtanh.f32 %v4725_v3  ;;  %v4370_v26 = vmul.f32 %v4242_v41, %v10042_v55  ;;  %v10072_v34 = vmul.f32 0.5, %v9661_v56  ;;  %v10076_v13 = vpop.f32.mrb[137].mxu0  ;;  %v12141_v17 = vpack.c.bf16 %v9926_v61, %v9923_v31  ;;  %v10086_v9 = vpop.f32.mrb[122].mxu1 }
 0x7fc   : > { %v4372_v53 = vmul.f32 %v4244_v18, %v10046_v44  ;;  %v4722_v52 = vmul.f32 0.7978846, %v4594_v22  ;;  %v4592_v0 = vadd.f32 %v9658_v45, %v9631_v1  ;;  %v4596_v8 = vadd.f32 %v9699_v60, %v9661_v56  ;;  %v10088_v16 = vpop.f32.mrb[138].mxu0  ;;  %v10101_v1 = vpop.f32.mrb[123].mxu1 }
 0x7fd   : > { %5743 = vmatmul.mubr.bf16.vlgmr.msra.gmra.mrb[168].mxu0 %v12141_v17  ;;  %v10091_v3 = vmul.f32 %v4370_v26, %v10042_v55  ;;  %7302 = vtanh.f32 %v4718_v48  ;;  %v10095_v31 = vadd.f32 %v9891_v50, %v9586_v28  ;;  %v10099_v61 = vadd.f32 %v9893_v59, %v9588_v54  ;;  %v10103_v45 = vpop.f32.mrb[139].mxu0  ;;  %v12150_v55 = vld [vmem:[#allocation61_spill] sm:$0xff] }
 0x7fe   : > { %v10106_v60 = vmul.f32 %v4372_v53, %v10046_v44  ;;  %7304 = vtanh.f32 %v4722_v52  ;;  %v4720_v56 = vmul.f32 0.7978846, %v4592_v0  ;;  %v4724_v41 = vmul.f32 0.7978846, %v4596_v8  ;;  %v7295_v63 = vpop.eup %7294 }
 0x7ff   : > { %12142 = vst [vmem:[#allocation108_spill] sm:$0xff] %v10091_v3  ;;  %12143 = vst [vmem:[#allocation109_spill] sm:$0xff] %v10099_v61  ;;  %v4243_v4 = vmul.f32 0.044715, %v10095_v31  ;;  %v4245_v50 = vmul.f32 0.044715, %v10099_v61  ;;  %v10112_v18 = vadd.f32 %v9918_v62, %v9582_v51  ;;  %v10116_v59 = vadd.f32 %v9920_v33, %v9584_v42  ;;  %v7297_v22 = vpop.eup %7296 }
 0x800   : > { %12144 = vst [vmem:[#allocation110_spill] sm:$0xff] %v10106_v60  ;;  %v4975_v26 = vadd.f32 1.0, %v7295_v63  ;;  %7306 = vtanh.f32 %v4720_v56  ;;  %v10120_v48 = vadd.f32 %v9936_v37, %v9586_v28  ;;  %v10124_v17 = vadd.f32 %v9938_v27, %v9588_v54 }
 0x801   : > { %12145 = vst [vmem:[#allocation111_spill] sm:$0xff] %v10112_v18  ;;  %12146 = vst [vmem:[#allocation112_spill] sm:$0xff] %v10116_v59  ;;  %v4979_v53 = vadd.f32 1.0, %v7297_v22  ;;  %7308 = vtanh.f32 %v4724_v41  ;;  %v4371_v62 = vmul.f32 %v4243_v4, %v10095_v31  ;;  %v4373_v52 = vmul.f32 %v4245_v50, %v10099_v61  ;;  %v10140_v4 = vpop.f32.mrb[124].mxu1  ;;  %v10142_v50 = vpop.f32.mrb[140].mxu0 }
 0x802   : > { %12147 = vst [vmem:[#allocation113_spill] sm:$0xff] %v10120_v48  ;;  %12148 = vst [vmem:[#allocation114_spill] sm:$0xff] %v10124_v17  ;;  %v5103_v33 = vmul.f32 %v4975_v26, %v9974_v47  ;;  %v4246_v0 = vmul.f32 0.044715, %v10112_v18  ;;  %v4248_v8 = vmul.f32 0.044715, %v10116_v59 }
 0x803   : > { %v4247_v56 = vmul.f32 0.044715, %v10120_v48  ;;  %v5107_v37 = vmul.f32 %v4979_v53, %v9980_v40  ;;  %v10134_v63 = vmul.f32 %v4371_v62, %v10095_v31  ;;  %v10137_v27 = vmul.f32 %v4373_v52, %v10099_v61  ;;  %v10150_v53 = vpop.f32.mrb[125].mxu1  ;;  %v10152_v62 = vpop.f32.mrb[141].mxu0 }
 0x804   : > { %v4249_v41 = vmul.f32 0.044715, %v10124_v17  ;;  %v7299_v47 = vpop.eup %7298  ;;  %v4374_v22 = vmul.f32 %v4246_v0, %v10112_v18  ;;  %v4376_v26 = vmul.f32 %v4248_v8, %v10116_v59  ;;  %v10148_v40 = vmul.f32 0.5, %v9696_v39  ;;  %v10158_v0 = vpop.f32.mrb[126].mxu1 }
 0x805   : > { %12149 = vst [vmem:[#allocation115_spill] sm:$0xff] %v10137_v27  ;;  %v4375_v60 = vmul.f32 %v4247_v56, %v10120_v48  ;;  %v7301_v52 = vpop.eup %7300  ;;  %v5227_v44 = vpack.c.bf16 %v5107_v37, %v5103_v33  ;;  %v4977_v32 = vadd.f32 1.0, %v7299_v47  ;;  %v10156_v27 = vmul.f32 0.5, %v12150_v55  ;;  %v10160_v8 = vpop.f32.mrb[142].mxu0 }
 0x806   : > { %v4377_v3 = vmul.f32 %v4249_v41, %v10124_v17  ;;  %12151 = vst [vmem:[#allocation61_spill] sm:$0xff] %v10160_v8  ;;  %v4981_v56 = vadd.f32 1.0, %v7301_v52  ;;  %v10163_v38 = vmul.f32 %v4374_v22, %v10112_v18  ;;  %v10166_v61 = vmul.f32 %v4376_v26, %v10116_v59  ;;  %v10171_v33 = vpop.f32.mrb[127].mxu1  ;;  %v10173_v37 = vpop.f32.mrb[143].mxu0  ;;  %v12157_v22 = vld [vmem:[#allocation64_spill] sm:$0xff] }
 0x807   : > { %v10169_v57 = vmul.f32 %v4375_v60, %v10120_v48  ;;  %12155 = vst [vmem:[#allocation119_spill] sm:$0xff] %v10173_v37  ;;  %v7303_v41 = vpop.eup %7302  ;;  %5589 = vmatprep.mubr.bf16.mxu1 %v5227_v44  ;;  %v5105_v47 = vmul.f32 %v4977_v32, %v10023_v49  ;;  %v4599_v52 = vadd.f32 %v12157_v22, %v9696_v39  ;;  %v12158_v26 = vld [vmem:[#allocation72_spill] sm:$0xff]  ;;  %v12160_v48 = vld [vmem:[#allocation62_spill] sm:$0xff] }
 0x808   : > { %12152 = vst [vmem:[#allocation116_spill] sm:$0xff] %v10163_v38  ;;  %12153 = vst [vmem:[#allocation117_spill] sm:$0xff] %v10166_v61  ;;  %v10177_v8 = vmul.f32 %v4377_v3, %v10124_v17  ;;  %v4603_v61 = vadd.f32 %v12158_v26, %v12150_v55  ;;  %v7305_v59 = vpop.eup %7304  ;;  %v5109_v60 = vmul.f32 %v4981_v56, %v10031_v15  ;;  %v4974_v38 = vadd.f32 1.0, %v7303_v41  ;;  %v12159_v18 = vld [vmem:[#allocation56_spill] sm:$0xff]  ;;  %v12162_v26 = vld [vmem:[#allocation73_spill] sm:$0xff] }
 0x809   : > { %12154 = vst [vmem:[#allocation118_spill] sm:$0xff] %v10169_v57  ;;  %v10185_v57 = vmul.f32 0.5, %v12159_v18  ;;  %v10188_v44 = vmul.f32 0.5, %v12160_v48  ;;  %v4978_v32 = vadd.f32 1.0, %v7305_v59  ;;  %v4727_v49 = vmul.f32 0.7978846, %v4599_v52 }
 0x80a   : > { %12156 = vst [vmem:[#allocation120_spill] sm:$0xff] %v10177_v8  ;;  %v4731_v3 = vmul.f32 0.7978846, %v4603_v61  ;;  %v12161_v8 = vld [vmem:[#allocation66_spill] sm:$0xff]  ;;  %v7307_v39 = vpop.eup %7306  ;;  %v5229_v22 = vpack.c.bf16 %v5109_v60, %v5105_v47  ;;  %v5102_v55 = vmul.f32 %v4974_v38, %v10049_v11  ;;  %v4605_v15 = vadd.f32 %v12162_v26, %v12160_v48  ;;  %v10199_v41 = vpop.f32.mrb[128].mxu1 }
 0x80b   : > { %v4601_v17 = vadd.f32 %v12161_v8, %v12159_v18  ;;  %v10197_v56 = vadd.f32 %v9951_v20, %v9582_v51  ;;  %v10201_v37 = vpop.f32.mrb[144].mxu0  ;;  %v7309_v59 = vpop.eup %7308  ;;  %v5106_v61 = vmul.f32 %v4978_v32, %v10052_v19  ;;  %v4976_v52 = vadd.f32 1.0, %v7307_v39  ;;  %v12169_v39 = vld [vmem:[#allocation54_spill] sm:$0xff] }
 0x80c   : > { %7310 = vtanh.f32 %v4727_v49  ;;  %v10204_v8 = vpop.f32.mrb[129].mxu1  ;;  %v10206_v38 = vpop.f32.mrb[145].mxu0  ;;  %5750 = vmatprep.mubr.bf16.mxu0 %v5229_v22  ;;  %v4980_v11 = vadd.f32 1.0, %v7309_v59  ;;  %v4733_v48 = vmul.f32 0.7978846, %v4605_v15  ;;  %v10214_v19 = vadd.f32 %v9953_v14, %v9584_v42  ;;  %v12171_v15 = vld [vmem:[#allocation57_spill] sm:$0xff] }
 0x80d   : > { %12163 = vst [vmem:[#allocation64_spill] sm:$0xff] %v10197_v56  ;;  %v4729_v18 = vmul.f32 0.7978846, %v4601_v17  ;;  %12164 = vst [vmem:[#allocation72_spill] sm:$0xff] %v10206_v38  ;;  %7312 = vtanh.f32 %v4731_v3  ;;  %v4250_v20 = vmul.f32 0.044715, %v10197_v56  ;;  %v5226_v60 = vpack.c.bf16 %v5106_v61, %v5102_v55 }
 0x80e   : > { %v10209_v47 = vpop.f32.mrb[130].mxu1  ;;  %v5104_v26 = vmul.f32 %v4976_v52, %v10064_v46  ;;  %12166 = vst [vmem:[#allocation62_spill] sm:$0xff] %v10214_v19  ;;  %v10216_v17 = vpop.f32.mrb[146].mxu0  ;;  %v5108_v49 = vmul.f32 %v4980_v11, %v10072_v34  ;;  %v10223_v22 = vmul.f32 0.5, %v12169_v39  ;;  %v4252_v46 = vmul.f32 0.044715, %v10214_v19 }
 0x80f   : > { %12165 = vst [vmem:[#allocation56_spill] sm:$0xff] %v10209_v47  ;;  %7314 = vtanh.f32 %v4729_v18  ;;  %12167 = vst [vmem:[#allocation66_spill] sm:$0xff] %v10216_v17  ;;  %v10218_v32 = vpop.f32.mrb[131].mxu1  ;;  %v4378_v3 = vmul.f32 %v4250_v20, %v10197_v56  ;;  %v10225_v55 = vpop.f32.mrb[147].mxu0  ;;  %5590 = vmatmul.mubr.bf16.gmra.mrb[156].mxu1 %v5226_v60  ;;  %v10229_v14 = vmul.f32 0.5, %v12171_v15  ;;  %v12172_v59 = vld [vmem:[#allocation58_spill] sm:$0xff] }
 0x810   : > { %12168 = vst [vmem:[#allocation73_spill] sm:$0xff] %v10218_v32  ;;  %7316 = vtanh.f32 %v4733_v48  ;;  %12170 = vst [vmem:[#allocation54_spill] sm:$0xff] %v10225_v55  ;;  %v4598_v61 = vadd.f32 %v12172_v59, %v12169_v39  ;;  %v12173_v52 = vld [vmem:[#allocation67_spill] sm:$0xff]  ;;  %v5228_v18 = vpack.c.bf16 %v5108_v49, %v5104_v26  ;;  %v4380_v32 = vmul.f32 %v4252_v46, %v10214_v19  ;;  %v12177_v38 = vld [vmem:[#allocation60_spill] sm:$0xff] }
 0x811   : > { %v4602_v34 = vadd.f32 %v12173_v52, %v12171_v15  ;;  %v10236_v11 = vmul.f32 %v4378_v3, %v10197_v56  ;;  %v12175_v48 = vld [vmem:[#allocation55_spill] sm:$0xff]  ;;  %v12178_v15 = vld [vmem:[#allocation69_spill] sm:$0xff]  ;;  %v10251_v49 = vadd.f32 %v9962_v10, %v9586_v28  ;;  %v12179_v3 = vld [vmem:[#allocation100_spill] sm:$0xff]  ;;  %v10259_v46 = vadd.f32 %v10001_v29, %v9582_v51  ;;  %v10263_v52 = vpop.f32.mrb[148].mxu0 }
 0x812   : > { %v10239_v20 = vmul.f32 0.5, %v12175_v48  ;;  %v12176_v55 = vld [vmem:[#allocation59_spill] sm:$0xff]  ;;  %v4726_v17 = vmul.f32 0.7978846, %v4598_v61  ;;  %v4600_v39 = vadd.f32 %v12177_v38, %v12175_v48  ;;  %5751 = vmatmul.mubr.bf16.gmra.mrb[172].mxu0 %v5228_v18  ;;  %v10255_v59 = vadd.f32 %v12179_v3, %v9588_v54  ;;  %v10261_v61 = vpop.f32.mrb[132].mxu1  ;;  %12182 = vst [vmem:[#allocation55_spill] sm:$0xff] %v10263_v52 }
 0x813   : > { %12174 = vst [vmem:[#allocation57_spill] sm:$0xff] %v10236_v11  ;;  %v10242_v60 = vmul.f32 0.5, %v12176_v55  ;;  %v4730_v47 = vmul.f32 0.7978846, %v4602_v34  ;;  %v4604_v26 = vadd.f32 %v12178_v15, %v12176_v55  ;;  %12180 = vst [vmem:[#allocation58_spill] sm:$0xff] %v10259_v46  ;;  %v10266_v38 = vmul.f32 %v4380_v32, %v10214_v19  ;;  %v10272_v34 = vpop.f32.mrb[133].mxu1 }
 0x814   : > { %12181 = vst [vmem:[#allocation67_spill] sm:$0xff] %v10261_v61  ;;  %7318 = vtanh.f32 %v4726_v17  ;;  %v4728_v55 = vmul.f32 0.7978846, %v4600_v39  ;;  %v10270_v10 = vadd.f32 %v10003_v6, %v9584_v42  ;;  %12185 = vst [vmem:[#allocation69_spill] sm:$0xff] %v10272_v34  ;;  %v10274_v18 = vpop.f32.mrb[149].mxu0  ;;  %v10282_v6 = vadd.f32 %v10008_v25, %v9586_v28  ;;  %v10284_v39 = vpop.f32.mrb[134].mxu1 }
 0x815   : > { %12183 = vst [vmem:[#allocation59_spill] sm:$0xff] %v10266_v38  ;;  %12186 = vst [vmem:[#allocation100_spill] sm:$0xff] %v10274_v18  ;;  %7320 = vtanh.f32 %v4730_v47  ;;  %v4732_v29 = vmul.f32 0.7978846, %v4604_v26  ;;  %v4251_v48 = vmul.f32 0.044715, %v10251_v49 }
 0x816   : > { %12184 = vst [vmem:[#allocation60_spill] sm:$0xff] %v10270_v10  ;;  %v4253_v15 = vmul.f32 0.044715, %v10255_v59  ;;  %v7311_v3 = vpop.eup %7310  ;;  %7322 = vtanh.f32 %v4728_v55  ;;  %v4254_v32 = vmul.f32 0.044715, %v10259_v46  ;;  %12187 = vst [vmem:[#allocation121_spill] sm:$0xff] %v10282_v6 }
 0x817   : > { %v4256_v17 = vmul.f32 0.044715, %v10270_v10  ;;  %12188 = vst [vmem:[#allocation122_spill] sm:$0xff] %v10284_v39  ;;  %v10286_v34 = vpop.f32.mrb[150].mxu0  ;;  %v7313_v47 = vpop.eup %7312  ;;  %v4983_v26 = vadd.f32 1.0, %v7311_v3  ;;  %7324 = vtanh.f32 %v4732_v29  ;;  %v4379_v18 = vmul.f32 %v4251_v48, %v10251_v49 }
 0x818   : > { %12189 = vst [vmem:[#allocation123_spill] sm:$0xff] %v10286_v34  ;;  %v4381_v52 = vmul.f32 %v4253_v15, %v10255_v59  ;;  %v10290_v55 = vpop.f32.mrb[135].mxu1  ;;  %v10292_v61 = vpop.f32.mrb[151].mxu0  ;;  %v4987_v19 = vadd.f32 1.0, %v7313_v47  ;;  %v4382_v25 = vmul.f32 %v4254_v32, %v10259_v46  ;;  %v4255_v39 = vmul.f32 0.044715, %v10282_v6 }
 0x819   : > { %12190 = vst [vmem:[#allocation124_spill] sm:$0xff] %v10290_v55  ;;  %12191 = vst [vmem:[#allocation125_spill] sm:$0xff] %v10292_v61  ;;  %v7315_v38 = vpop.eup %7314  ;;  %v4384_v11 = vmul.f32 %v4256_v17, %v10270_v10  ;;  %v5111_v3 = vmul.f32 %v4983_v26, %v10148_v40  ;;  %v10299_v48 = vmul.f32 %v4379_v18, %v10251_v49  ;;  %v12195_v18 = vld [vmem:[#allocation68_spill] sm:$0xff] }
 0x81a   : > { %v7317_v34 = vpop.eup %7316  ;;  %v4985_v29 = vadd.f32 1.0, %v7315_v38  ;;  %v10302_v15 = vmul.f32 %v4381_v52, %v10255_v59  ;;  %v5115_v61 = vmul.f32 %v4987_v19, %v10156_v27  ;;  %v10306_v47 = vmul.f32 %v4382_v25, %v10259_v46  ;;  %v12196_v19 = vld [vmem:[#allocation77_spill] sm:$0xff] }
 0x81b   : > { %v4989_v55 = vadd.f32 1.0, %v7317_v34  ;;  %v10309_v32 = vmul.f32 %v4384_v11, %v10270_v10  ;;  %v4383_v40 = vmul.f32 %v4255_v39, %v10282_v6  ;;  %v10315_v38 = vadd.f32 %v10017_v43, %v9588_v54  ;;  %v12197_v11 = vld [vmem:[#allocation80_spill] sm:$0xff]  ;;  %v12199_v43 = vld [vmem:[#allocation87_spill] sm:$0xff] }
 0x81c   : > { %12192 = vst [vmem:[#allocation126_spill] sm:$0xff] %v10302_v15  ;;  %12193 = vst [vmem:[#allocation127_spill] sm:$0xff] %v10306_v47  ;;  %v5113_v17 = vmul.f32 %v4985_v29, %v10185_v57  ;;  %v10318_v52 = vmul.f32 0.5, %v12195_v18  ;;  %v5231_v26 = vpack.c.bf16 %v5115_v61, %v5111_v3  ;;  %v10322_v34 = vmul.f32 0.5, %v12196_v19  ;;  %v12201_v3 = vld [vmem:[#allocation78_spill] sm:$0xff] }
 0x81d   : > { %12194 = vst [vmem:[#allocation128_spill] sm:$0xff] %v10309_v32  ;;  %v5117_v27 = vmul.f32 %v4989_v55, %v10188_v44  ;;  %v4607_v25 = vadd.f32 %v12197_v11, %v12195_v18  ;;  %v10327_v57 = vmul.f32 %v4383_v40, %v10282_v6  ;;  %v4257_v39 = vmul.f32 0.044715, %v10315_v38  ;;  %v12200_v32 = vld [vmem:[#allocation70_spill] sm:$0xff] }
 0x81e   : > { %v4611_v29 = vadd.f32 %v12199_v43, %v12196_v19  ;;  %v10333_v10 = vmul.f32 0.5, %v12200_v32  ;;  %v7319_v61 = vpop.eup %7318  ;;  %5597 = vmatprep.mubr.bf16.mxu1 %v5231_v26  ;;  %v10336_v47 = vmul.f32 0.5, %v12201_v3  ;;  %v12202_v18 = vld [vmem:[#allocation82_spill] sm:$0xff]  ;;  %v12203_v19 = vld [vmem:[#allocation88_spill] sm:$0xff]  ;;  %v10345_v26 = vadd.f32 %v10019_v2, %v9582_v51 }
 0x81f   : > { %12198 = vst [vmem:[#allocation68_spill] sm:$0xff] %v10327_v57  ;;  %v5233_v44 = vpack.c.bf16 %v5117_v27, %v5113_v17  ;;  %v4735_v55 = vmul.f32 0.7978846, %v4607_v25  ;;  %v4609_v11 = vadd.f32 %v12202_v18, %v12200_v32  ;;  %v7321_v40 = vpop.eup %7320  ;;  %v4982_v46 = vadd.f32 1.0, %v7319_v61  ;;  %v12205_v18 = vld [vmem:[#allocation63_spill] sm:$0xff] }
 0x820   : > { %v4385_v57 = vmul.f32 %v4257_v39, %v10315_v38  ;;  %v4739_v6 = vmul.f32 0.7978846, %v4611_v29  ;;  %v4613_v43 = vadd.f32 %v12203_v19, %v12201_v3  ;;  %v7323_v56 = vpop.eup %7322  ;;  %v4986_v15 = vadd.f32 1.0, %v7321_v40 }
 0x821   : > { %5758 = vmatprep.mubr.bf16.mxu0 %v5233_v44  ;;  %7326 = vtanh.f32 %v4735_v55  ;;  %v4737_v17 = vmul.f32 0.7978846, %v4609_v11  ;;  %v7325_v27 = vpop.eup %7324  ;;  %v5110_v32 = vmul.f32 %v4982_v46, %v10223_v22  ;;  %v4984_v25 = vadd.f32 1.0, %v7323_v56 }
 0x822   : > { %v10349_v61 = vmul.f32 %v4385_v57, %v10315_v38  ;;  %7328 = vtanh.f32 %v4739_v6  ;;  %v5114_v39 = vmul.f32 %v4986_v15, %v10229_v14  ;;  %v4988_v29 = vadd.f32 1.0, %v7325_v27  ;;  %v12206_v6 = vld [vmem:[#allocation71_spill] sm:$0xff]  ;;  %v12207_v57 = vld [vmem:[#allocation74_spill] sm:$0xff] }
 0x823   : > { %v4741_v3 = vmul.f32 0.7978846, %v4613_v43  ;;  %7330 = vtanh.f32 %v4737_v17  ;;  %v5112_v44 = vmul.f32 %v4984_v25, %v10239_v20  ;;  %v4258_v55 = vmul.f32 0.044715, %v10345_v26  ;;  %v12209_v43 = vld [vmem:[#allocation65_spill] sm:$0xff] }
 0x824   : > { %v10356_v2 = vadd.f32 %v10025_v21, %v9584_v42  ;;  %v10359_v22 = vmul.f32 0.5, %v12205_v18  ;;  %v5230_v56 = vpack.c.bf16 %v5114_v39, %v5110_v32  ;;  %v5116_v46 = vmul.f32 %v4988_v29, %v10242_v60  ;;  %v12208_v21 = vld [vmem:[#allocation83_spill] sm:$0xff]  ;;  %v12211_v32 = vld [vmem:[#allocation76_spill] sm:$0xff] }
 0x825   : > { %7332 = vtanh.f32 %v4741_v3  ;;  %v10363_v14 = vmul.f32 0.5, %v12206_v6  ;;  %v4386_v15 = vmul.f32 %v4258_v55, %v10345_v26  ;;  %v4606_v11 = vadd.f32 %v12207_v57, %v12205_v18  ;;  %v12210_v60 = vld [vmem:[#allocation75_spill] sm:$0xff]  ;;  %v12212_v18 = vld [vmem:[#allocation85_spill] sm:$0xff] }
 0x826   : > { %12204 = vst [vmem:[#allocation77_spill] sm:$0xff] %v10356_v2  ;;  %v4260_v20 = vmul.f32 0.044715, %v10356_v2  ;;  %v4610_v40 = vadd.f32 %v12208_v21, %v12206_v6  ;;  %5598 = vmatmul.mubr.bf16.gmra.mrb[160].mxu1 %v5230_v56  ;;  %v5232_v19 = vpack.c.bf16 %v5116_v46, %v5112_v44  ;;  %v10372_v17 = vmul.f32 0.5, %v12209_v43 }
 0x827   : > { %v10375_v27 = vmul.f32 0.5, %v12210_v60  ;;  %v4608_v25 = vadd.f32 %v12211_v32, %v12209_v43  ;;  %v10380_v39 = vmul.f32 %v4386_v15, %v10345_v26  ;;  %v4734_v3 = vmul.f32 0.7978846, %v4606_v11 }
 0x828   : > { %v4388_v29 = vmul.f32 %v4260_v20, %v10356_v2  ;;  %v4738_v55 = vmul.f32 0.7978846, %v4610_v40  ;;  %5759 = vmatmul.mubr.bf16.gmra.mrb[176].mxu0 %v5232_v19  ;;  %v4612_v44 = vadd.f32 %v12212_v18, %v12210_v60  ;;  %v10387_v46 = vadd.f32 %v10027_v24, %v9586_v28 }
 0x829   : > { %v4736_v56 = vmul.f32 0.7978846, %v4608_v25  ;;  %v10391_v6 = vadd.f32 %v10035_v30, %v9588_v54  ;;  %7334 = vtanh.f32 %v4734_v3  ;;  %v10398_v20 = vadd.f32 %v10066_v7, %v9582_v51 }
 0x82a   : > { %v10394_v15 = vmul.f32 %v4388_v29, %v10356_v2  ;;  %v10402_v57 = vadd.f32 %v10068_v12, %v9584_v42  ;;  %7336 = vtanh.f32 %v4738_v55  ;;  %v4740_v24 = vmul.f32 0.7978846, %v4612_v44 }
 0x82b   : > { %12214 = vst [vmem:[#allocation87_spill] sm:$0xff] %v10398_v20  ;;  %v7327_v11 = vpop.eup %7326  ;;  %v4259_v21 = vmul.f32 0.044715, %v10387_v46  ;;  %v4261_v30 = vmul.f32 0.044715, %v10391_v6  ;;  %7338 = vtanh.f32 %v4736_v56 }
 0x82c   : > { %12213 = vst [vmem:[#allocation80_spill] sm:$0xff] %v10394_v15  ;;  %12215 = vst [vmem:[#allocation70_spill] sm:$0xff] %v10402_v57  ;;  %v7329_v40 = vpop.eup %7328  ;;  %v4991_v19 = vadd.f32 1.0, %v7327_v11  ;;  %v4262_v43 = vmul.f32 0.044715, %v10398_v20  ;;  %7340 = vtanh.f32 %v4740_v24  ;;  %v10422_v24 = vadd.f32 %v10074_v35, %v9586_v28 }
 0x82d   : > { %v4264_v60 = vmul.f32 0.044715, %v10402_v57  ;;  %v7331_v7 = vpop.eup %7330  ;;  %v4995_v32 = vadd.f32 1.0, %v7329_v40  ;;  %v4387_v12 = vmul.f32 %v4259_v21, %v10387_v46  ;;  %v4389_v25 = vmul.f32 %v4261_v30, %v10391_v6 }
 0x82e   : > { %v5119_v29 = vmul.f32 %v4991_v19, %v10318_v52  ;;  %v4993_v3 = vadd.f32 1.0, %v7331_v7  ;;  %v4390_v55 = vmul.f32 %v4262_v43, %v10398_v20  ;;  %v4263_v43 = vmul.f32 0.044715, %v10422_v24  ;;  %v12218_v7 = vld [vmem:[#allocation84_spill] sm:$0xff] }
 0x82f   : > { %v4392_v18 = vmul.f32 %v4264_v60, %v10402_v57  ;;  %v7333_v44 = vpop.eup %7332  ;;  %v5123_v56 = vmul.f32 %v4995_v32, %v10322_v34  ;;  %v10415_v11 = vmul.f32 %v4387_v12, %v10387_v46  ;;  %v10418_v40 = vmul.f32 %v4389_v25, %v10391_v6  ;;  %v12219_v12 = vld [vmem:[#allocation91_spill] sm:$0xff] }
 0x830   : > { %v4997_v21 = vadd.f32 1.0, %v7333_v44  ;;  %v5121_v52 = vmul.f32 %v4993_v3, %v10333_v10  ;;  %v10426_v30 = vmul.f32 %v4390_v55, %v10398_v20  ;;  %v10434_v60 = vadd.f32 %v10076_v13, %v9588_v54  ;;  %v12220_v55 = vld [vmem:[#allocation86_spill] sm:$0xff]  ;;  %v12221_v44 = vld [vmem:[#allocation95_spill] sm:$0xff] }
 0x831   : > { %v10429_v19 = vmul.f32 %v4392_v18, %v10402_v57  ;;  %v5235_v34 = vpack.c.bf16 %v5123_v56, %v5119_v29  ;;  %v10437_v32 = vmul.f32 0.5, %v12218_v7  ;;  %v10441_v10 = vmul.f32 0.5, %v9930_v5 }
 0x832   : > { %12216 = vst [vmem:[#allocation78_spill] sm:$0xff] %v10426_v30  ;;  %v5125_v35 = vmul.f32 %v4997_v21, %v10336_v47  ;;  %v4615_v25 = vadd.f32 %v12219_v12, %v12218_v7  ;;  %v4619_v29 = vadd.f32 %v9988_v58, %v9930_v5  ;;  %v4391_v3 = vmul.f32 %v4263_v43, %v10422_v24  ;;  %v12222_v7 = vld [vmem:[#allocation94_spill] sm:$0xff] }
 0x833   : > { %12217 = vst [vmem:[#allocation82_spill] sm:$0xff] %v10429_v19  ;;  %5605 = vmatprep.mubr.bf16.mxu1 %v5235_v34  ;;  %v4265_v13 = vmul.f32 0.044715, %v10434_v60  ;;  %v10450_v18 = vmul.f32 0.5, %v12220_v55  ;;  %v10453_v56 = vmul.f32 0.5, %v12221_v44  ;;  %v7335_v47 = vpop.eup %7334  ;;  %v4617_v12 = vadd.f32 %v12222_v7, %v12220_v55  ;;  %v12223_v43 = vld [vmem:[#allocation102_spill] sm:$0xff] }
 0x834   : > { %v5237_v21 = vpack.c.bf16 %v5125_v35, %v5121_v52  ;;  %v4743_v19 = vmul.f32 0.7978846, %v4615_v25  ;;  %v4747_v57 = vmul.f32 0.7978846, %v4619_v29  ;;  %v7337_v30 = vpop.eup %7336  ;;  %v4990_v58 = vadd.f32 1.0, %v7335_v47 }
 0x835   : > { %v10458_v5 = vmul.f32 %v4391_v3, %v10422_v24  ;;  %v4393_v34 = vmul.f32 %v4265_v13, %v10434_v60  ;;  %v4621_v20 = vadd.f32 %v12223_v43, %v12221_v44  ;;  %v7339_v15 = vpop.eup %7338  ;;  %v4994_v2 = vadd.f32 1.0, %v7337_v30  ;;  %v12228_v43 = vld [vmem:[#allocation81_spill] sm:$0xff] }
 0x836   : > { %5766 = vmatprep.mubr.bf16.mxu0 %v5237_v21  ;;  %7342 = vtanh.f32 %v4743_v19  ;;  %v4745_v52 = vmul.f32 0.7978846, %v4617_v12  ;;  %v10465_v35 = vadd.f32 %v10086_v9, %v9582_v51  ;;  %v7341_v25 = vpop.eup %7340  ;;  %v5118_v29 = vmul.f32 %v4990_v58, %v10359_v22  ;;  %v12224_v21 = vld [vmem:[#allocation79_spill] sm:$0xff] }
 0x837   : > { %v4992_v55 = vadd.f32 1.0, %v7339_v15  ;;  %v10469_v3 = vmul.f32 %v4393_v34, %v10434_v60  ;;  %7344 = vtanh.f32 %v4747_v57  ;;  %v5122_v13 = vmul.f32 %v4994_v2, %v10363_v14  ;;  %v12225_v57 = vld [vmem:[#allocation92_spill] sm:$0xff] }
 0x838   : > { %v4996_v44 = vadd.f32 1.0, %v7341_v25  ;;  %v4749_v47 = vmul.f32 0.7978846, %v4621_v20  ;;  %7346 = vtanh.f32 %v4745_v52  ;;  %v4266_v19 = vmul.f32 0.044715, %v10465_v35  ;;  %v12226_v20 = vld [vmem:[#allocation89_spill] sm:$0xff] }
 0x839   : > { %v5120_v30 = vmul.f32 %v4992_v55, %v10372_v17  ;;  %v10476_v9 = vadd.f32 %v10088_v16, %v9584_v42  ;;  %v10479_v22 = vmul.f32 0.5, %v12224_v21  ;;  %v5234_v15 = vpack.c.bf16 %v5122_v13, %v5118_v29  ;;  %v12227_v16 = vld [vmem:[#allocation96_spill] sm:$0xff]  ;;  %v12230_v29 = vld [vmem:[#allocation90_spill] sm:$0xff] }
 0x83a   : > { %v5124_v7 = vmul.f32 %v4996_v44, %v10375_v27  ;;  %7348 = vtanh.f32 %v4749_v47  ;;  %v10483_v2 = vmul.f32 0.5, %v12225_v57  ;;  %v4394_v14 = vmul.f32 %v4266_v19, %v10465_v35  ;;  %v12229_v27 = vld [vmem:[#allocation93_spill] sm:$0xff] }
 0x83b   : > { %v4268_v17 = vmul.f32 0.044715, %v10476_v9  ;;  %v4614_v12 = vadd.f32 %v12226_v20, %v12224_v21  ;;  %v4618_v58 = vadd.f32 %v12227_v16, %v12225_v57  ;;  %5606 = vmatmul.mubr.bf16.gmra.mrb[164].mxu1 %v5234_v15  ;;  %v10492_v52 = vmul.f32 0.5, %v12228_v43  ;;  %v12231_v21 = vld [vmem:[#allocation97_spill] sm:$0xff] }
 0x83c   : > { %v5236_v34 = vpack.c.bf16 %v5124_v7, %v5120_v30  ;;  %v10495_v25 = vmul.f32 0.5, %v12229_v27  ;;  %v4616_v55 = vadd.f32 %v12230_v29, %v12228_v43  ;;  %v10500_v13 = vmul.f32 %v4394_v14, %v10465_v35 }
 0x83d   : > { %v4396_v44 = vmul.f32 %v4268_v17, %v10476_v9  ;;  %v4742_v47 = vmul.f32 0.7978846, %v4614_v12  ;;  %v4746_v19 = vmul.f32 0.7978846, %v4618_v58  ;;  %v4620_v30 = vadd.f32 %v12231_v21, %v12229_v27 }
 0x83e   : > { %5767 = vmatmul.mubr.bf16.gmra.mrb[180].mxu0 %v5236_v34  ;;  %v4744_v15 = vmul.f32 0.7978846, %v4616_v55  ;;  %v10507_v7 = vadd.f32 %v10101_v1, %v9586_v28  ;;  %v10511_v57 = vadd.f32 %v10103_v45, %v9588_v54  ;;  %v10518_v17 = vadd.f32 %v10140_v4, %v9582_v51 }
 0x83f   : > { %v10514_v14 = vmul.f32 %v4396_v44, %v10476_v9  ;;  %7350 = vtanh.f32 %v4742_v47  ;;  %v10522_v20 = vadd.f32 %v10142_v50, %v9584_v42  ;;  %v4748_v1 = vmul.f32 0.7978846, %v4620_v30 }
 0x840   : > { %12232 = vst [vmem:[#allocation88_spill] sm:$0xff] %v10518_v17  ;;  %v7343_v12 = vpop.eup %7342  ;;  %7352 = vtanh.f32 %v4746_v19  ;;  %v4267_v16 = vmul.f32 0.044715, %v10507_v7  ;;  %v4269_v45 = vmul.f32 0.044715, %v10511_v57 }
 0x841   : > { %12233 = vst [vmem:[#allocation63_spill] sm:$0xff] %v10522_v20  ;;  %v7345_v58 = vpop.eup %7344  ;;  %v4999_v34 = vadd.f32 1.0, %v7343_v12  ;;  %7354 = vtanh.f32 %v4744_v15  ;;  %v4270_v43 = vmul.f32 0.044715, %v10518_v17  ;;  %v4272_v27 = vmul.f32 0.044715, %v10522_v20 }
 0x842   : > { %v7347_v4 = vpop.eup %7346  ;;  %v5003_v29 = vadd.f32 1.0, %v7345_v58  ;;  %7356 = vtanh.f32 %v4748_v1  ;;  %v4395_v50 = vmul.f32 %v4267_v16, %v10507_v7  ;;  %v4397_v55 = vmul.f32 %v4269_v45, %v10511_v57 }
 0x843   : > { %v5127_v44 = vmul.f32 %v4999_v34, %v10437_v32  ;;  %v5001_v47 = vadd.f32 1.0, %v7347_v4  ;;  %v4398_v19 = vmul.f32 %v4270_v43, %v10518_v17  ;;  %v4400_v21 = vmul.f32 %v4272_v27, %v10522_v20 }
 0x844   : > { %v7349_v30 = vpop.eup %7348  ;;  %v5131_v15 = vmul.f32 %v5003_v29, %v10441_v10  ;;  %v10535_v12 = vmul.f32 %v4395_v50, %v10507_v7  ;;  %v10538_v58 = vmul.f32 %v4397_v55, %v10511_v57  ;;  %v10542_v1 = vadd.f32 %v10150_v53, %v9586_v28 }
 0x845   : > { %v5005_v16 = vadd.f32 1.0, %v7349_v30  ;;  %v5129_v32 = vmul.f32 %v5001_v47, %v10450_v18  ;;  %v10546_v45 = vmul.f32 %v4398_v19, %v10518_v17  ;;  %v10549_v34 = vmul.f32 %v4400_v21, %v10522_v20  ;;  %v12237_v19 = vld [vmem:[#allocation109_spill] sm:$0xff] }
 0x846   : > { %v5239_v10 = vpack.c.bf16 %v5131_v15, %v5127_v44  ;;  %v4271_v43 = vmul.f32 0.044715, %v10542_v1  ;;  %v10554_v27 = vadd.f32 %v10152_v62, %v9588_v54  ;;  %v10557_v4 = vmul.f32 0.5, %v9968_v36  ;;  %v12236_v44 = vld [vmem:[#allocation101_spill] sm:$0xff] }
 0x847   : > { %12234 = vst [vmem:[#allocation71_spill] sm:$0xff] %v10546_v45  ;;  %12235 = vst [vmem:[#allocation74_spill] sm:$0xff] %v10549_v34  ;;  %v5133_v53 = vmul.f32 %v5005_v16, %v10453_v56  ;;  %v10561_v18 = vmul.f32 0.5, %v10095_v31  ;;  %v4623_v29 = vadd.f32 %v10012_v23, %v9968_v36  ;;  %v4627_v50 = vadd.f32 %v10134_v63, %v10095_v31  ;;  %v12238_v36 = vld [vmem:[#allocation105_spill] sm:$0xff] }
 0x848   : > { %5613 = vmatprep.mubr.bf16.mxu1 %v5239_v10  ;;  %v4399_v55 = vmul.f32 %v4271_v43, %v10542_v1  ;;  %v4273_v62 = vmul.f32 0.044715, %v10554_v27  ;;  %v10570_v47 = vmul.f32 0.5, %v12236_v44  ;;  %v10573_v21 = vmul.f32 0.5, %v12237_v19  ;;  %v12239_v43 = vld [vmem:[#allocation115_spill] sm:$0xff] }
 0x849   : > { %v7351_v56 = vpop.eup %7350  ;;  %v5241_v30 = vpack.c.bf16 %v5133_v53, %v5129_v32  ;;  %v4751_v15 = vmul.f32 0.7978846, %v4623_v29  ;;  %v4755_v16 = vmul.f32 0.7978846, %v4627_v50  ;;  %v4625_v23 = vadd.f32 %v12238_v36, %v12236_v44  ;;  %v12243_v36 = vld [vmem:[#allocation98_spill] sm:$0xff] }
 0x84a   : > { %v7353_v34 = vpop.eup %7352  ;;  %v4998_v31 = vadd.f32 1.0, %v7351_v56  ;;  %v10578_v63 = vmul.f32 %v4399_v55, %v10542_v1  ;;  %v4401_v10 = vmul.f32 %v4273_v62, %v10554_v27  ;;  %v4629_v20 = vadd.f32 %v12239_v43, %v12237_v19 }
 0x84b   : > { %v7355_v45 = vpop.eup %7354  ;;  %5774 = vmatprep.mubr.bf16.mxu0 %v5241_v30  ;;  %v5002_v17 = vadd.f32 1.0, %v7353_v34  ;;  %7358 = vtanh.f32 %v4751_v15  ;;  %v4753_v32 = vmul.f32 0.7978846, %v4625_v23  ;;  %v10585_v53 = vadd.f32 %v10158_v0, %v9582_v51  ;;  %v12241_v0 = vld [vmem:[#allocation61_spill] sm:$0xff] }
 0x84c   : > { %v7357_v29 = vpop.eup %7356  ;;  %v5126_v50 = vmul.f32 %v4998_v31, %v10479_v22  ;;  %v5000_v44 = vadd.f32 1.0, %v7355_v45  ;;  %v10589_v55 = vmul.f32 %v4401_v10, %v10554_v27  ;;  %7360 = vtanh.f32 %v4755_v16  ;;  %v12244_v16 = vld [vmem:[#allocation106_spill] sm:$0xff]  ;;  %v12246_v10 = vld [vmem:[#allocation108_spill] sm:$0xff] }
 0x84d   : > { %12240 = vst [vmem:[#allocation83_spill] sm:$0xff] %v10585_v53  ;;  %v5130_v62 = vmul.f32 %v5002_v17, %v10483_v2  ;;  %v5004_v19 = vadd.f32 1.0, %v7357_v29  ;;  %v4757_v56 = vmul.f32 0.7978846, %v4629_v20  ;;  %7362 = vtanh.f32 %v4753_v32  ;;  %v12245_v20 = vld [vmem:[#allocation103_spill] sm:$0xff] }
 0x84e   : > { %v5128_v34 = vmul.f32 %v5000_v44, %v10492_v52  ;;  %v4274_v30 = vmul.f32 0.044715, %v10585_v53  ;;  %v10596_v15 = vadd.f32 %v12241_v0, %v9584_v42  ;;  %v10599_v22 = vmul.f32 0.5, %v12243_v36  ;;  %v12247_v29 = vld [vmem:[#allocation99_spill] sm:$0xff] }
 0x84f   : > { %v5238_v45 = vpack.c.bf16 %v5130_v62, %v5126_v50  ;;  %v5132_v23 = vmul.f32 %v5004_v19, %v10495_v25  ;;  %7364 = vtanh.f32 %v4757_v56  ;;  %v10603_v2 = vmul.f32 0.5, %v12244_v16  ;;  %v12248_v25 = vld [vmem:[#allocation107_spill] sm:$0xff]  ;;  %v12249_v62 = vld [vmem:[#allocation104_spill] sm:$0xff] }
 0x850   : > { %12242 = vst [vmem:[#allocation65_spill] sm:$0xff] %v10596_v15  ;;  %v4402_v17 = vmul.f32 %v4274_v30, %v10585_v53  ;;  %v4276_v52 = vmul.f32 0.044715, %v10596_v15  ;;  %v4622_v31 = vadd.f32 %v12245_v20, %v12243_v36  ;;  %v4626_v43 = vadd.f32 %v12246_v10, %v12244_v16  ;;  %v12252_v20 = vld [vmem:[#allocation119_spill] sm:$0xff] }
 0x851   : > { %5614 = vmatmul.mubr.bf16.gmra.mrb[168].mxu1 %v5238_v45  ;;  %v5240_v32 = vpack.c.bf16 %v5132_v23, %v5128_v34  ;;  %v10612_v50 = vmul.f32 0.5, %v12247_v29  ;;  %v10615_v44 = vmul.f32 0.5, %v12248_v25  ;;  %v4624_v19 = vadd.f32 %v12249_v62, %v12247_v29  ;;  %v12251_v45 = vld [vmem:[#allocation110_spill] sm:$0xff] }
 0x852   : > { %v10620_v56 = vmul.f32 %v4402_v17, %v10585_v53  ;;  %v4404_v30 = vmul.f32 %v4276_v52, %v10596_v15  ;;  %v4750_v0 = vmul.f32 0.7978846, %v4622_v31  ;;  %v4754_v36 = vmul.f32 0.7978846, %v4626_v43 }
 0x853   : > { %5775 = vmatmul.mubr.bf16.gmra.mrb[184].mxu0 %v5240_v32  ;;  %v4628_v34 = vadd.f32 %v12251_v45, %v12248_v25  ;;  %v4752_v23 = vmul.f32 0.7978846, %v4624_v19  ;;  %v10627_v16 = vadd.f32 %v10171_v33, %v9586_v28  ;;  %v10631_v10 = vadd.f32 %v12252_v20, %v9588_v54 }
 0x854   : > { %12250 = vst [vmem:[#allocation75_spill] sm:$0xff] %v10620_v56  ;;  %v10634_v17 = vmul.f32 %v4404_v30, %v10596_v15  ;;  %7366 = vtanh.f32 %v4750_v0  ;;  %v10638_v52 = vadd.f32 %v10199_v41, %v9582_v51  ;;  %v10642_v31 = vadd.f32 %v10201_v37, %v9584_v42 }
 0x855   : > { %v7359_v43 = vpop.eup %7358  ;;  %7368 = vtanh.f32 %v4754_v36  ;;  %v4756_v33 = vmul.f32 0.7978846, %v4628_v34  ;;  %v4275_v32 = vmul.f32 0.044715, %v10627_v16  ;;  %v4277_v29 = vmul.f32 0.044715, %v10631_v10 }
 0x856   : > { %12253 = vst [vmem:[#allocation76_spill] sm:$0xff] %v10634_v17  ;;  %12254 = vst [vmem:[#allocation85_spill] sm:$0xff] %v10638_v52  ;;  %v7361_v25 = vpop.eup %7360  ;;  %v5007_v62 = vadd.f32 1.0, %v7359_v43  ;;  %7370 = vtanh.f32 %v4752_v23  ;;  %v4278_v19 = vmul.f32 0.044715, %v10638_v52 }
 0x857   : > { %12255 = vst [vmem:[#allocation84_spill] sm:$0xff] %v10642_v31  ;;  %v4280_v30 = vmul.f32 0.044715, %v10642_v31  ;;  %v7363_v41 = vpop.eup %7362  ;;  %v5011_v0 = vadd.f32 1.0, %v7361_v25  ;;  %7372 = vtanh.f32 %v4756_v33  ;;  %v4403_v37 = vmul.f32 %v4275_v32, %v10627_v16 }
 0x858   : > { %v4405_v45 = vmul.f32 %v4277_v29, %v10631_v10  ;;  %v5135_v36 = vmul.f32 %v5007_v62, %v10557_v4  ;;  %v5009_v34 = vadd.f32 1.0, %v7363_v41  ;;  %v4406_v20 = vmul.f32 %v4278_v19, %v10638_v52 }
 0x859   : > { %v4408_v17 = vmul.f32 %v4280_v30, %v10642_v31  ;;  %v7365_v43 = vpop.eup %7364  ;;  %v5139_v23 = vmul.f32 %v5011_v0, %v10561_v18  ;;  %v10655_v15 = vmul.f32 %v4403_v37, %v10627_v16  ;;  %v10662_v33 = vadd.f32 %v10204_v8, %v9586_v28  ;;  %v12258_v30 = vld [vmem:[#allocation72_spill] sm:$0xff]  ;;  %v12260_v0 = vld [vmem:[#allocation113_spill] sm:$0xff] }
 0x85a   : > { %v10658_v25 = vmul.f32 %v4405_v45, %v10631_v10  ;;  %v5013_v32 = vadd.f32 1.0, %v7365_v43  ;;  %v5137_v4 = vmul.f32 %v5009_v34, %v10570_v47  ;;  %v10666_v29 = vmul.f32 %v4406_v20, %v10638_v52  ;;  %v12261_v45 = vld [vmem:[#allocation118_spill] sm:$0xff] }
 0x85b   : > { %v10669_v62 = vmul.f32 %v4408_v17, %v10642_v31  ;;  %v5243_v18 = vpack.c.bf16 %v5139_v23, %v5135_v36  ;;  %v4279_v19 = vmul.f32 0.044715, %v10662_v33  ;;  %v10674_v41 = vadd.f32 %v12258_v30, %v9588_v54  ;;  %v12262_v43 = vld [vmem:[#allocation114_spill] sm:$0xff] }
 0x85c   : > { %12256 = vst [vmem:[#allocation91_spill] sm:$0xff] %v10666_v29  ;;  %v10677_v37 = vmul.f32 0.5, %v12260_v0  ;;  %v5141_v8 = vmul.f32 %v5013_v32, %v10573_v21  ;;  %v10681_v47 = vmul.f32 0.5, %v10251_v49  ;;  %v4631_v34 = vadd.f32 %v12261_v45, %v12260_v0  ;;  %v12263_v0 = vld [vmem:[#allocation120_spill] sm:$0xff] }
 0x85d   : > { %12257 = vst [vmem:[#allocation86_spill] sm:$0xff] %v10669_v62  ;;  %12259 = vst [vmem:[#allocation95_spill] sm:$0xff] %v10674_v41  ;;  %v4635_v17 = vadd.f32 %v10299_v48, %v10251_v49  ;;  %5621 = vmatprep.mubr.bf16.mxu1 %v5243_v18  ;;  %v4407_v36 = vmul.f32 %v4279_v19, %v10662_v33  ;;  %v4281_v20 = vmul.f32 0.044715, %v10674_v41  ;;  %v10690_v23 = vmul.f32 0.5, %v12262_v43  ;;  %v12265_v19 = vld [vmem:[#allocation126_spill] sm:$0xff] }
 0x85e   : > { %v10693_v30 = vmul.f32 0.5, %v10255_v59  ;;  %v7367_v21 = vpop.eup %7366  ;;  %v5245_v32 = vpack.c.bf16 %v5141_v8, %v5137_v4  ;;  %v4759_v62 = vmul.f32 0.7978846, %v4631_v34  ;;  %v4633_v45 = vadd.f32 %v12263_v0, %v12262_v43  ;;  %v12266_v8 = vld [vmem:[#allocation56_spill] sm:$0xff] }
 0x85f   : > { %v4763_v31 = vmul.f32 0.7978846, %v4635_v17  ;;  %v7369_v29 = vpop.eup %7368  ;;  %v5006_v49 = vadd.f32 1.0, %v7367_v21  ;;  %v10698_v48 = vmul.f32 %v4407_v36, %v10662_v33  ;;  %v4409_v18 = vmul.f32 %v4281_v20, %v10674_v41 }
 0x860   : > { %v4637_v52 = vadd.f32 %v12265_v19, %v10255_v59  ;;  %v7371_v56 = vpop.eup %7370  ;;  %5782 = vmatprep.mubr.bf16.mxu0 %v5245_v32  ;;  %v5010_v53 = vadd.f32 1.0, %v7369_v29  ;;  %7374 = vtanh.f32 %v4759_v62  ;;  %v4761_v4 = vmul.f32 0.7978846, %v4633_v45  ;;  %v10712_v29 = vpop.f32.mrb[136].mxu1  ;;  %v12276_v19 = vld [vmem:[#allocation64_spill] sm:$0xff] }
 0x861   : > { %12264 = vst [vmem:[#allocation94_spill] sm:$0xff] %v10698_v48  ;;  %v10705_v34 = vadd.f32 %v12266_v8, %v9582_v51  ;;  %v7373_v17 = vpop.eup %7372  ;;  %v5134_v43 = vmul.f32 %v5006_v49, %v10599_v22  ;;  %v5008_v21 = vadd.f32 1.0, %v7371_v56  ;;  %v10709_v36 = vmul.f32 %v4409_v18, %v10674_v41  ;;  %12269 = vst [vmem:[#allocation92_spill] sm:$0xff] %v10712_v29  ;;  %v10714_v62 = vpop.f32.mrb[152].mxu0  ;;  %v12271_v22 = vld [vmem:[#allocation66_spill] sm:$0xff]  ;;  %v12273_v49 = vld [vmem:[#allocation111_spill] sm:$0xff] }
 0x862   : > { %7376 = vtanh.f32 %v4763_v31  ;;  %v5138_v20 = vmul.f32 %v5010_v53, %v10603_v2  ;;  %v5012_v59 = vadd.f32 1.0, %v7373_v17  ;;  %v4765_v0 = vmul.f32 0.7978846, %v4637_v52  ;;  %12270 = vst [vmem:[#allocation89_spill] sm:$0xff] %v10714_v62  ;;  %v10725_v31 = vpop.f32.mrb[137].mxu1  ;;  %v10727_v53 = vpop.f32.mrb[153].mxu0 }
 0x863   : > { %12267 = vst [vmem:[#allocation102_spill] sm:$0xff] %v10705_v34  ;;  %12268 = vst [vmem:[#allocation79_spill] sm:$0xff] %v10709_v36  ;;  %7378 = vtanh.f32 %v4761_v4  ;;  %v5136_v32 = vmul.f32 %v5008_v21, %v10612_v50  ;;  %v4282_v45 = vmul.f32 0.044715, %v10705_v34  ;;  %v10720_v56 = vadd.f32 %v12271_v22, %v9584_v42  ;;  %v10733_v50 = vpop.f32.mrb[138].mxu1  ;;  %v10735_v8 = vpop.f32.mrb[154].mxu0 }
 0x864   : > { %v10723_v18 = vmul.f32 0.5, %v12273_v49  ;;  %12274 = vst [vmem:[#allocation81_spill] sm:$0xff] %v10725_v31  ;;  %12275 = vst [vmem:[#allocation93_spill] sm:$0xff] %v10727_v53  ;;  %v5242_v2 = vpack.c.bf16 %v5138_v20, %v5134_v43  ;;  %v5140_v52 = vmul.f32 %v5012_v59, %v10615_v44  ;;  %7380 = vtanh.f32 %v4765_v0  ;;  %v12279_v22 = vld [vmem:[#allocation116_spill] sm:$0xff]  ;;  %v12280_v53 = vld [vmem:[#allocation57_spill] sm:$0xff]  ;;  %v10743_v20 = vpop.f32.mrb[139].mxu1 }
 0x865   : > { %12272 = vst [vmem:[#allocation96_spill] sm:$0xff] %v10720_v56  ;;  %v10731_v4 = vmul.f32 0.5, %v12276_v19  ;;  %12277 = vst [vmem:[#allocation90_spill] sm:$0xff] %v10733_v50  ;;  %v4410_v17 = vmul.f32 %v4282_v45, %v10705_v34  ;;  %v4284_v21 = vmul.f32 0.044715, %v10720_v56  ;;  %v4630_v31 = vadd.f32 %v12279_v22, %v12273_v49  ;;  %v10745_v44 = vpop.f32.mrb[155].mxu0 }
 0x866   : > { %12278 = vst [vmem:[#allocation97_spill] sm:$0xff] %v10735_v8  ;;  %v4634_v43 = vadd.f32 %v12280_v53, %v12276_v19  ;;  %12281 = vst [vmem:[#allocation101_spill] sm:$0xff] %v10743_v20  ;;  %5622 = vmatmul.mubr.bf16.gmra.mrb[172].mxu1 %v5242_v2  ;;  %v5244_v59 = vpack.c.bf16 %v5140_v52, %v5136_v32  ;;  %v12283_v0 = vld [vmem:[#allocation112_spill] sm:$0xff]  ;;  %v12284_v8 = vld [vmem:[#allocation62_spill] sm:$0xff] }
 0x867   : > { %12282 = vst [vmem:[#allocation109_spill] sm:$0xff] %v10745_v44  ;;  %v10748_v50 = vmul.f32 0.5, %v12283_v0  ;;  %v10751_v62 = vmul.f32 0.5, %v12284_v8  ;;  %v12285_v45 = vld [vmem:[#allocation117_spill] sm:$0xff]  ;;  %v10756_v49 = vmul.f32 %v4410_v17, %v10705_v34  ;;  %v4412_v53 = vmul.f32 %v4284_v21, %v10720_v56  ;;  %v12287_v2 = vld [vmem:[#allocation59_spill] sm:$0xff]  ;;  %v12289_v36 = vld [vmem:[#allocation54_spill] sm:$0xff] }
 0x868   : > { %v4632_v29 = vadd.f32 %v12285_v45, %v12283_v0  ;;  %v4758_v19 = vmul.f32 0.7978846, %v4630_v31  ;;  %v4762_v22 = vmul.f32 0.7978846, %v4634_v43  ;;  %5783 = vmatmul.mubr.bf16.gmra.mrb[188].mxu0 %v5244_v59  ;;  %v4636_v32 = vadd.f32 %v12287_v2, %v12284_v8  ;;  %v12288_v44 = vld [vmem:[#allocation73_spill] sm:$0xff]  ;;  %v12291_v31 = vld [vmem:[#allocation67_spill] sm:$0xff] }
 0x869   : > { %12286 = vst [vmem:[#allocation105_spill] sm:$0xff] %v10756_v49  ;;  %v10763_v20 = vadd.f32 %v12288_v44, %v9586_v28  ;;  %v10767_v41 = vadd.f32 %v12289_v36, %v9588_v54  ;;  %v10770_v17 = vmul.f32 %v4412_v53, %v10720_v56  ;;  %v10774_v21 = vadd.f32 %v12291_v31, %v9582_v51  ;;  %v12292_v43 = vld [vmem:[#allocation55_spill] sm:$0xff]  ;;  %v10784_v2 = vpop.f32.mrb[140].mxu1 }
 0x86a   : > { %v4760_v52 = vmul.f32 0.7978846, %v4632_v29  ;;  %7382 = vtanh.f32 %v4758_v19  ;;  %v10778_v8 = vadd.f32 %v12292_v43, %v9584_v42  ;;  %v7375_v29 = vpop.eup %7374  ;;  %v4764_v44 = vmul.f32 0.7978846, %v4636_v32  ;;  %12294 = vst [vmem:[#allocation98_spill] sm:$0xff] %v10784_v2  ;;  %v10788_v32 = vpop.f32.mrb[156].mxu0 }
 0x86b   : > { %12290 = vst [vmem:[#allocation115_spill] sm:$0xff] %v10770_v17  ;;  %7384 = vtanh.f32 %v4762_v22  ;;  %v4283_v59 = vmul.f32 0.044715, %v10763_v20  ;;  %v4285_v36 = vmul.f32 0.044715, %v10767_v41  ;;  %v5015_v45 = vadd.f32 1.0, %v7375_v29 }
 0x86c   : > { %12293 = vst [vmem:[#allocation61_spill] sm:$0xff] %v10778_v8  ;;  %v7377_v0 = vpop.eup %7376  ;;  %7386 = vtanh.f32 %v4760_v52  ;;  %v4286_v53 = vmul.f32 0.044715, %v10774_v21  ;;  %v4288_v19 = vmul.f32 0.044715, %v10778_v8  ;;  %12295 = vst [vmem:[#allocation106_spill] sm:$0xff] %v10788_v32 }
 0x86d   : > { %v7379_v31 = vpop.eup %7378  ;;  %v5019_v17 = vadd.f32 1.0, %v7377_v0  ;;  %7388 = vtanh.f32 %v4764_v44  ;;  %v4411_v43 = vmul.f32 %v4283_v59, %v10763_v20  ;;  %v4413_v22 = vmul.f32 %v4285_v36, %v10767_v41  ;;  %v10790_v56 = vpop.f32.mrb[141].mxu1 }
 0x86e   : > { %12296 = vst [vmem:[#allocation103_spill] sm:$0xff] %v10790_v56  ;;  %v5143_v29 = vmul.f32 %v5015_v45, %v10677_v37  ;;  %v5017_v52 = vadd.f32 1.0, %v7379_v31  ;;  %v4414_v49 = vmul.f32 %v4286_v53, %v10774_v21  ;;  %v4416_v34 = vmul.f32 %v4288_v19, %v10778_v8  ;;  %v10795_v48 = vpop.f32.mrb[157].mxu0  ;;  %v10797_v2 = vpop.f32.mrb[142].mxu1  ;;  %v12299_v37 = vld [vmem:[#allocation69_spill] sm:$0xff] }
 0x86f   : > { %12297 = vst [vmem:[#allocation108_spill] sm:$0xff] %v10795_v48  ;;  %12298 = vst [vmem:[#allocation99_spill] sm:$0xff] %v10797_v2  ;;  %v7381_v44 = vpop.eup %7380  ;;  %v5147_v59 = vmul.f32 %v5019_v17, %v10681_v47  ;;  %v10801_v36 = vmul.f32 %v4411_v43, %v10763_v20  ;;  %v10804_v0 = vmul.f32 %v4413_v22, %v10767_v41  ;;  %v10810_v53 = vpop.f32.mrb[158].mxu0 }
 0x870   : > { %v10808_v45 = vadd.f32 %v12299_v37, %v9586_v28  ;;  %12300 = vst [vmem:[#allocation107_spill] sm:$0xff] %v10810_v53  ;;  %v10812_v19 = vpop.f32.mrb[143].mxu1  ;;  %v5021_v31 = vadd.f32 1.0, %v7381_v44  ;;  %v5145_v2 = vmul.f32 %v5017_v52, %v10690_v23  ;;  %v10816_v48 = vmul.f32 %v4414_v49, %v10774_v21  ;;  %v10821_v17 = vpop.f32.mrb[159].mxu0  ;;  %v12305_v37 = vld [vmem:[#allocation100_spill] sm:$0xff]  ;;  %v12306_v53 = vld [vmem:[#allocation121_spill] sm:$0xff] }
 0x871   : > { %12301 = vst [vmem:[#allocation104_spill] sm:$0xff] %v10812_v19  ;;  %v10819_v47 = vmul.f32 %v4416_v34, %v10778_v8  ;;  %12304 = vst [vmem:[#allocation72_spill] sm:$0xff] %v10821_v17  ;;  %v5247_v43 = vpack.c.bf16 %v5147_v59, %v5143_v29  ;;  %v10826_v56 = vadd.f32 %v12305_v37, %v9588_v54  ;;  %v10829_v19 = vmul.f32 0.5, %v12306_v53  ;;  %v12307_v34 = vld [vmem:[#allocation68_spill] sm:$0xff] }
 0x872   : > { %12302 = vst [vmem:[#allocation110_spill] sm:$0xff] %v10816_v48  ;;  %v4287_v22 = vmul.f32 0.044715, %v10808_v45  ;;  %v5149_v23 = vmul.f32 %v5021_v31, %v10693_v30  ;;  %v10833_v49 = vmul.f32 0.5, %v10387_v46  ;;  %v4639_v52 = vadd.f32 %v12307_v34, %v12306_v53  ;;  %v10847_v30 = vpop.f32.mrb[144].mxu1  ;;  %v10849_v31 = vpop.f32.mrb[160].mxu0 }
 0x873   : > { %12303 = vst [vmem:[#allocation119_spill] sm:$0xff] %v10819_v47  ;;  %v4643_v29 = vadd.f32 %v10415_v11, %v10387_v46  ;;  %5629 = vmatprep.mubr.bf16.mxu1 %v5247_v43  ;;  %v4289_v59 = vmul.f32 0.044715, %v10826_v56  ;;  %v10842_v37 = vmul.f32 0.5, %v10315_v38  ;;  %v10845_v17 = vmul.f32 0.5, %v10391_v6  ;;  %12308 = vst [vmem:[#allocation113_spill] sm:$0xff] %v10847_v30 }
 0x874   : > { %v4415_v44 = vmul.f32 %v4287_v22, %v10808_v45  ;;  %12309 = vst [vmem:[#allocation118_spill] sm:$0xff] %v10849_v31  ;;  %v7383_v32 = vpop.eup %7382  ;;  %v5249_v53 = vpack.c.bf16 %v5149_v23, %v5145_v2  ;;  %v4767_v34 = vmul.f32 0.7978846, %v4639_v52  ;;  %v4641_v46 = vadd.f32 %v10349_v61, %v10315_v38  ;;  %v10853_v11 = vpop.f32.mrb[145].mxu1 }
 0x875   : > { %v4771_v47 = vmul.f32 0.7978846, %v4643_v29  ;;  %12310 = vst [vmem:[#allocation114_spill] sm:$0xff] %v10853_v11  ;;  %v10855_v43 = vpop.f32.mrb[161].mxu0  ;;  %v7385_v22 = vpop.eup %7384  ;;  %v5014_v8 = vadd.f32 1.0, %v7383_v32  ;;  %v4417_v30 = vmul.f32 %v4289_v59, %v10826_v56  ;;  %v4645_v31 = vadd.f32 %v10418_v40, %v10391_v6  ;;  %v12314_v29 = vld [vmem:[#allocation122_spill] sm:$0xff] }
 0x876   : > { %12311 = vst [vmem:[#allocation120_spill] sm:$0xff] %v10855_v43  ;;  %v10858_v48 = vmul.f32 %v4415_v44, %v10808_v45  ;;  %v10863_v2 = vpop.f32.mrb[146].mxu1  ;;  %v10865_v23 = vpop.f32.mrb[162].mxu0  ;;  %5790 = vmatprep.mubr.bf16.mxu0 %v5249_v53  ;;  %v5018_v38 = vadd.f32 1.0, %v7385_v22  ;;  %7390 = vtanh.f32 %v4767_v34  ;;  %v4769_v61 = vmul.f32 0.7978846, %v4641_v46 }
 0x877   : > { %12312 = vst [vmem:[#allocation126_spill] sm:$0xff] %v10863_v2  ;;  %12313 = vst [vmem:[#allocation56_spill] sm:$0xff] %v10865_v23  ;;  %v7387_v52 = vpop.eup %7386  ;;  %v10869_v32 = vadd.f32 %v12314_v29, %v9582_v51  ;;  %v10871_v44 = vpop.f32.mrb[147].mxu1  ;;  %v5142_v6 = vmul.f32 %v5014_v8, %v10723_v18  ;;  %v10877_v2 = vmul.f32 %v4417_v30, %v10826_v56  ;;  %7392 = vtanh.f32 %v4771_v47  ;;  %v12318_v23 = vld [vmem:[#allocation58_spill] sm:$0xff] }
 0x878   : > { %12315 = vst [vmem:[#allocation66_spill] sm:$0xff] %v10871_v44  ;;  %v10873_v43 = vpop.f32.mrb[163].mxu0  ;;  %v7389_v59 = vpop.eup %7388  ;;  %v5016_v40 = vadd.f32 1.0, %v7387_v52  ;;  %v5146_v53 = vmul.f32 %v5018_v38, %v10731_v4  ;;  %v4773_v46 = vmul.f32 0.7978846, %v4645_v31  ;;  %7394 = vtanh.f32 %v4769_v61  ;;  %v12317_v44 = vld [vmem:[#allocation123_spill] sm:$0xff] }
 0x879   : > { %12316 = vst [vmem:[#allocation111_spill] sm:$0xff] %v10873_v43  ;;  %v5020_v34 = vadd.f32 1.0, %v7389_v59  ;;  %v4290_v29 = vmul.f32 0.044715, %v10869_v32  ;;  %v10884_v43 = vadd.f32 %v12317_v44, %v9584_v42  ;;  %v10887_v18 = vmul.f32 0.5, %v12318_v23  ;;  %v12319_v31 = vld [vmem:[#allocation127_spill] sm:$0xff] }
 0x87a   : > { %v5144_v22 = vmul.f32 %v5016_v40, %v10748_v50  ;;  %v5246_v8 = vpack.c.bf16 %v5146_v53, %v5142_v6  ;;  %7396 = vtanh.f32 %v4773_v46  ;;  %v10891_v4 = vmul.f32 0.5, %v10345_v26  ;;  %v10899_v61 = vpop.f32.mrb[148].mxu1  ;;  %v10901_v44 = vpop.f32.mrb[164].mxu0  ;;  %v12322_v59 = vld [vmem:[#allocation60_spill] sm:$0xff]  ;;  %v12323_v40 = vld [vmem:[#allocation77_spill] sm:$0xff] }
 0x87b   : > { %v5148_v30 = vmul.f32 %v5020_v34, %v10751_v62  ;;  %v4418_v47 = vmul.f32 %v4290_v29, %v10869_v32  ;;  %v4292_v50 = vmul.f32 0.044715, %v10884_v43  ;;  %v4638_v52 = vadd.f32 %v12319_v31, %v12318_v23  ;;  %12320 = vst [vmem:[#allocation64_spill] sm:$0xff] %v10899_v61  ;;  %12321 = vst [vmem:[#allocation116_spill] sm:$0xff] %v10901_v44  ;;  %v12324_v34 = vld [vmem:[#allocation128_spill] sm:$0xff]  ;;  %v10911_v29 = vpop.f32.mrb[149].mxu1 }
 0x87c   : > { %v4642_v38 = vadd.f32 %v10380_v39, %v10345_v26  ;;  %5630 = vmatmul.mubr.bf16.gmra.mrb[176].mxu1 %v5246_v8  ;;  %v10904_v6 = vmul.f32 0.5, %v12322_v59  ;;  %v10907_v53 = vmul.f32 0.5, %v12323_v40  ;;  %v4640_v46 = vadd.f32 %v12324_v34, %v12322_v59  ;;  %12325 = vst [vmem:[#allocation57_spill] sm:$0xff] %v10911_v29  ;;  %v10913_v23 = vpop.f32.mrb[165].mxu0  ;;  %v12329_v44 = vld [vmem:[#allocation80_spill] sm:$0xff] }
 0x87d   : > { %v5248_v62 = vpack.c.bf16 %v5148_v30, %v5144_v22  ;;  %12326 = vst [vmem:[#allocation112_spill] sm:$0xff] %v10913_v23  ;;  %v10916_v26 = vmul.f32 %v4418_v47, %v10869_v32  ;;  %v4420_v39 = vmul.f32 %v4292_v50, %v10884_v43  ;;  %v4766_v8 = vmul.f32 0.7978846, %v4638_v52  ;;  %v10919_v30 = vpop.f32.mrb[150].mxu1  ;;  %v10921_v31 = vpop.f32.mrb[166].mxu0  ;;  %v12330_v34 = vld [vmem:[#allocation124_spill] sm:$0xff] }
 0x87e   : > { %v4770_v22 = vmul.f32 0.7978846, %v4642_v38  ;;  %12327 = vst [vmem:[#allocation62_spill] sm:$0xff] %v10919_v30  ;;  %12328 = vst [vmem:[#allocation117_spill] sm:$0xff] %v10921_v31  ;;  %v4644_v61 = vadd.f32 %v12329_v44, %v12323_v40  ;;  %v4768_v59 = vmul.f32 0.7978846, %v4640_v46  ;;  %v10927_v29 = vadd.f32 %v12330_v34, %v9586_v28 }
 0x87f   : > { %5791 = vmatmul.mubr.bf16.gmra.mrb[192].mxu0 %v5248_v62  ;;  %v12331_v47 = vld [vmem:[#allocation125_spill] sm:$0xff]  ;;  %v10933_v50 = vpop.f32.mrb[151].mxu1  ;;  %v10935_v52 = vpop.f32.mrb[167].mxu0  ;;  %v10938_v38 = vmul.f32 %v4420_v39, %v10884_v43  ;;  %7398 = vtanh.f32 %v4766_v8  ;;  %v10941_v62 = vmul.f32 0.5, %v10422_v24  ;;  %v10944_v44 = vmul.f32 0.5, %v10507_v7 }
 0x880   : > { %v10931_v23 = vadd.f32 %v12331_v47, %v9588_v54  ;;  %12332 = vst [vmem:[#allocation59_spill] sm:$0xff] %v10933_v50  ;;  %12333 = vst [vmem:[#allocation73_spill] sm:$0xff] %v10935_v52  ;;  %v7391_v40 = vpop.eup %7390  ;;  %7400 = vtanh.f32 %v4770_v22  ;;  %v4772_v46 = vmul.f32 0.7978846, %v4644_v61  ;;  %v4291_v34 = vmul.f32 0.044715, %v10927_v29 }
 0x881   : > { %v7393_v50 = vpop.eup %7392  ;;  %v5023_v31 = vadd.f32 1.0, %v7391_v40  ;;  %7402 = vtanh.f32 %v4768_v59  ;;  %v4647_v39 = vadd.f32 %v10458_v5, %v10422_v24  ;;  %v4651_v8 = vadd.f32 %v10535_v12, %v10507_v7 }
 0x882   : > { %v4293_v47 = vmul.f32 0.044715, %v10931_v23  ;;  %v7395_v52 = vpop.eup %7394  ;;  %v5027_v30 = vadd.f32 1.0, %v7393_v50  ;;  %7404 = vtanh.f32 %v4772_v46  ;;  %v4419_v11 = vmul.f32 %v4291_v34, %v10927_v29 }
 0x883   : > { %v5151_v22 = vmul.f32 %v5023_v31, %v10829_v19  ;;  %v5025_v54 = vadd.f32 1.0, %v7395_v52  ;;  %v4775_v28 = vmul.f32 0.7978846, %v4647_v39  ;;  %v4779_v42 = vmul.f32 0.7978846, %v4651_v8  ;;  %v12334_v52 = vld [vmem:[#allocation87_spill] sm:$0xff] }
 0x884   : > { %v4421_v61 = vmul.f32 %v4293_v47, %v10931_v23  ;;  %v7397_v40 = vpop.eup %7396  ;;  %v5155_v59 = vmul.f32 %v5027_v30, %v10833_v49  ;;  %v10957_v24 = vmul.f32 %v4419_v11, %v10927_v29  ;;  %v10963_v7 = vmul.f32 0.5, %v10434_v60  ;;  %v12337_v8 = vld [vmem:[#allocation82_spill] sm:$0xff] }
 0x885   : > { %v5029_v12 = vadd.f32 1.0, %v7397_v40  ;;  %v5153_v50 = vmul.f32 %v5025_v54, %v10842_v37  ;;  %7406 = vtanh.f32 %v4775_v28  ;;  %v10967_v19 = vmul.f32 0.5, %v10511_v57  ;;  %v12335_v28 = vld [vmem:[#allocation78_spill] sm:$0xff] }
 0x886   : > { %v10960_v5 = vmul.f32 %v4421_v61, %v10931_v23  ;;  %v5251_v31 = vpack.c.bf16 %v5155_v59, %v5151_v22  ;;  %7408 = vtanh.f32 %v4779_v42  ;;  %v4649_v49 = vadd.f32 %v10469_v3, %v10434_v60  ;;  %v12336_v3 = vld [vmem:[#allocation70_spill] sm:$0xff] }
 0x887   : > { %v4653_v11 = vadd.f32 %v10538_v58, %v10511_v57  ;;  %v5157_v30 = vmul.f32 %v5029_v12, %v10845_v17  ;;  %v10975_v46 = vmul.f32 0.5, %v12334_v52  ;;  %v10978_v34 = vmul.f32 0.5, %v10465_v35 }
 0x888   : > { %v4646_v54 = vadd.f32 %v12335_v28, %v12334_v52  ;;  %5637 = vmatprep.mubr.bf16.mxu1 %v5251_v31  ;;  %v4777_v37 = vmul.f32 0.7978846, %v4649_v49  ;;  %v4650_v60 = vadd.f32 %v10500_v13, %v10465_v35  ;;  %v10985_v47 = vmul.f32 0.5, %v12336_v3 }
 0x889   : > { %v4781_v42 = vmul.f32 0.7978846, %v4653_v11  ;;  %v7399_v57 = vpop.eup %7398  ;;  %v5253_v58 = vpack.c.bf16 %v5157_v30, %v5153_v50  ;;  %v10988_v39 = vmul.f32 0.5, %v10476_v9  ;;  %v4648_v61 = vadd.f32 %v12337_v8, %v12336_v3 }
 0x88a   : > { %v4774_v17 = vmul.f32 0.7978846, %v4646_v54  ;;  %v7401_v22 = vpop.eup %7400  ;;  %v5022_v40 = vadd.f32 1.0, %v7399_v57  ;;  %7410 = vtanh.f32 %v4777_v37  ;;  %v4778_v59 = vmul.f32 0.7978846, %v4650_v60 }
 0x88b   : > { %v4652_v12 = vadd.f32 %v10514_v14, %v10476_v9  ;;  %v7403_v35 = vpop.eup %7402  ;;  %5798 = vmatprep.mubr.bf16.mxu0 %v5253_v58  ;;  %v5026_v13 = vadd.f32 1.0, %v7401_v22  ;;  %7412 = vtanh.f32 %v4781_v42  ;;  %v4776_v31 = vmul.f32 0.7978846, %v4648_v61  ;;  %v12338_v61 = vld [vmem:[#allocation88_spill] sm:$0xff] }
 0x88c   : > { %v10995_v50 = vmul.f32 0.5, %v10542_v1  ;;  %v7405_v49 = vpop.eup %7404  ;;  %v5150_v11 = vmul.f32 %v5022_v40, %v10887_v18  ;;  %v5024_v30 = vadd.f32 1.0, %v7403_v35  ;;  %7414 = vtanh.f32 %v4774_v17  ;;  %v12339_v40 = vld [vmem:[#allocation83_spill] sm:$0xff] }
 0x88d   : > { %v4780_v52 = vmul.f32 0.7978846, %v4652_v12  ;;  %v5154_v28 = vmul.f32 %v5026_v13, %v10891_v4  ;;  %v5028_v54 = vadd.f32 1.0, %v7405_v49  ;;  %7416 = vtanh.f32 %v4778_v59 }
 0x88e   : > { %v11000_v9 = vmul.f32 0.5, %v10627_v16  ;;  %v5152_v14 = vmul.f32 %v5024_v30, %v10904_v6  ;;  %7418 = vtanh.f32 %v4776_v31  ;;  %v4655_v37 = vadd.f32 %v10578_v63, %v10542_v1 }
 0x88f   : > { %v4659_v42 = vadd.f32 %v10655_v15, %v10627_v16  ;;  %v7407_v18 = vpop.eup %7406  ;;  %v5250_v60 = vpack.c.bf16 %v5154_v28, %v5150_v11  ;;  %v5156_v3 = vmul.f32 %v5028_v54, %v10907_v53  ;;  %7420 = vtanh.f32 %v4780_v52  ;;  %v12343_v11 = vld [vmem:[#allocation65_spill] sm:$0xff] }
 0x890   : > { %v11009_v4 = vmul.f32 0.5, %v10554_v27  ;;  %v7409_v57 = vpop.eup %7408  ;;  %v5031_v58 = vadd.f32 1.0, %v7407_v18  ;;  %v4783_v17 = vmul.f32 0.7978846, %v4655_v37  ;;  %v11012_v6 = vmul.f32 0.5, %v10631_v10 }
 0x891   : > { %v4787_v8 = vmul.f32 0.7978846, %v4659_v42  ;;  %5638 = vmatmul.mubr.bf16.gmra.mrb[180].mxu1 %v5250_v60  ;;  %v5252_v1 = vpack.c.bf16 %v5156_v3, %v5152_v14  ;;  %v5035_v63 = vadd.f32 1.0, %v7409_v57  ;;  %v4657_v15 = vadd.f32 %v10589_v55, %v10554_v27  ;;  %v12340_v27 = vld [vmem:[#allocation71_spill] sm:$0xff] }
 0x892   : > { %v4661_v16 = vadd.f32 %v10658_v25, %v10631_v10  ;;  %v5159_v53 = vmul.f32 %v5031_v58, %v10941_v62  ;;  %7422 = vtanh.f32 %v4783_v17  ;;  %v11020_v22 = vmul.f32 0.5, %v12338_v61  ;;  %v12341_v10 = vld [vmem:[#allocation75_spill] sm:$0xff]  ;;  %v12345_v17 = vld [vmem:[#allocation76_spill] sm:$0xff] }
 0x893   : > { %v11023_v59 = vmul.f32 0.5, %v12339_v40  ;;  %5799 = vmatmul.mubr.bf16.gmra.mrb[196].mxu0 %v5252_v1  ;;  %v5163_v12 = vmul.f32 %v5035_v63, %v10944_v44  ;;  %7424 = vtanh.f32 %v4787_v8  ;;  %v4785_v35 = vmul.f32 0.7978846, %v4657_v15  ;;  %v12342_v62 = vld [vmem:[#allocation63_spill] sm:$0xff]  ;;  %v12344_v44 = vld [vmem:[#allocation74_spill] sm:$0xff] }
 0x894   : > { %v4789_v13 = vmul.f32 0.7978846, %v4661_v16  ;;  %v7411_v31 = vpop.eup %7410  ;;  %v4654_v55 = vadd.f32 %v12340_v27, %v12338_v61  ;;  %v4658_v25 = vadd.f32 %v12341_v10, %v12339_v40  ;;  %v11031_v49 = vmul.f32 0.5, %v12342_v62 }
 0x895   : > { %v11034_v30 = vmul.f32 0.5, %v12343_v11  ;;  %v7413_v52 = vpop.eup %7412  ;;  %v5255_v28 = vpack.c.bf16 %v5163_v12, %v5159_v53  ;;  %v5033_v54 = vadd.f32 1.0, %v7411_v31  ;;  %7426 = vtanh.f32 %v4785_v35 }
 0x896   : > { %v4656_v14 = vadd.f32 %v12344_v44, %v12342_v62  ;;  %v7415_v37 = vpop.eup %7414  ;;  %v5037_v42 = vadd.f32 1.0, %v7413_v52  ;;  %7428 = vtanh.f32 %v4789_v13  ;;  %v4782_v18 = vmul.f32 0.7978846, %v4654_v55  ;;  %v12346_v55 = vld [vmem:[#allocation94_spill] sm:$0xff] }
 0x897   : > { %v4786_v60 = vmul.f32 0.7978846, %v4658_v25  ;;  %v7417_v3 = vpop.eup %7416  ;;  %5645 = vmatprep.mubr.bf16.mxu1 %v5255_v28  ;;  %v5161_v57 = vmul.f32 %v5033_v54, %v10963_v7  ;;  %v5030_v58 = vadd.f32 1.0, %v7415_v37  ;;  %v4660_v8 = vadd.f32 %v12345_v17, %v12343_v11 }
 0x898   : > { %v4784_v1 = vmul.f32 0.7978846, %v4656_v14  ;;  %v7419_v63 = vpop.eup %7418  ;;  %v5165_v15 = vmul.f32 %v5037_v42, %v10967_v19  ;;  %v5034_v16 = vadd.f32 1.0, %v7417_v3  ;;  %7430 = vtanh.f32 %v4782_v18  ;;  %v12348_v14 = vld [vmem:[#allocation79_spill] sm:$0xff]  ;;  %v12349_v3 = vld [vmem:[#allocation85_spill] sm:$0xff] }
 0x899   : > { %v11043_v53 = vmul.f32 0.5, %v10662_v33  ;;  %v7421_v61 = vpop.eup %7420  ;;  %v5158_v40 = vmul.f32 %v5030_v58, %v10975_v46  ;;  %v5032_v12 = vadd.f32 1.0, %v7419_v63  ;;  %7432 = vtanh.f32 %v4786_v60 }
 0x89a   : > { %v4788_v35 = vmul.f32 0.7978846, %v4660_v8  ;;  %v5257_v7 = vpack.c.bf16 %v5165_v15, %v5161_v57  ;;  %v5162_v13 = vmul.f32 %v5034_v16, %v10978_v34  ;;  %v5036_v31 = vadd.f32 1.0, %v7421_v61  ;;  %v12347_v34 = vld [vmem:[#allocation95_spill] sm:$0xff]  ;;  %v12350_v15 = vld [vmem:[#allocation102_spill] sm:$0xff] }
 0x89b   : > { %7434 = vtanh.f32 %v4784_v1  ;;  %v5160_v27 = vmul.f32 %v5032_v12, %v10985_v47  ;;  %v11049_v19 = vmul.f32 0.5, %v10763_v20  ;;  %v4663_v10 = vadd.f32 %v12346_v55, %v10662_v33  ;;  %v12352_v12 = vld [vmem:[#allocation105_spill] sm:$0xff] }
 0x89c   : > { %7436 = vtanh.f32 %v4788_v35  ;;  %v7423_v25 = vpop.eup %7422  ;;  %5806 = vmatprep.mubr.bf16.mxu0 %v5257_v7  ;;  %v5254_v46 = vpack.c.bf16 %v5162_v13, %v5158_v40  ;;  %v5164_v62 = vmul.f32 %v5036_v31, %v10988_v39  ;;  %v4667_v11 = vadd.f32 %v10801_v36, %v10763_v20 }
 0x89d   : > { %v11057_v52 = vmul.f32 0.5, %v12347_v34  ;;  %v7425_v28 = vpop.eup %7424  ;;  %v5039_v47 = vadd.f32 1.0, %v7423_v25  ;;  %v4791_v54 = vmul.f32 0.7978846, %v4663_v10  ;;  %v11060_v44 = vmul.f32 0.5, %v10767_v41 }
 0x89e   : > { %v4665_v33 = vadd.f32 %v12348_v14, %v12347_v34  ;;  %5646 = vmatmul.mubr.bf16.gmra.mrb[184].mxu1 %v5254_v46  ;;  %v5256_v37 = vpack.c.bf16 %v5164_v62, %v5160_v27  ;;  %v5043_v42 = vadd.f32 1.0, %v7425_v28  ;;  %v4795_v18 = vmul.f32 0.7978846, %v4667_v11  ;;  %v12353_v27 = vld [vmem:[#allocation84_spill] sm:$0xff] }
 0x89f   : > { %v4669_v39 = vadd.f32 %v10804_v0, %v10767_v41  ;;  %v7427_v20 = vpop.eup %7426  ;;  %v5167_v36 = vmul.f32 %v5039_v47, %v10995_v50  ;;  %7438 = vtanh.f32 %v4791_v54  ;;  %v11068_v57 = vmul.f32 0.5, %v12349_v3  ;;  %v12351_v41 = vld [vmem:[#allocation91_spill] sm:$0xff]  ;;  %v12354_v62 = vld [vmem:[#allocation96_spill] sm:$0xff] }
 0x8a0   : > { %v4793_v60 = vmul.f32 0.7978846, %v4665_v33  ;;  %v7429_v58 = vpop.eup %7428  ;;  %5807 = vmatmul.mubr.bf16.gmra.mrb[200].mxu0 %v5256_v37  ;;  %v5171_v17 = vmul.f32 %v5043_v42, %v11000_v9  ;;  %v5041_v8 = vadd.f32 1.0, %v7427_v20  ;;  %7440 = vtanh.f32 %v4795_v18  ;;  %v12356_v37 = vld [vmem:[#allocation115_spill] sm:$0xff] }
 0x8a1   : > { %v4797_v1 = vmul.f32 0.7978846, %v4669_v39  ;;  %v5045_v63 = vadd.f32 1.0, %v7429_v58  ;;  %v11072_v16 = vmul.f32 0.5, %v12350_v15  ;;  %v4662_v0 = vadd.f32 %v12351_v41, %v12349_v3 }
 0x8a2   : > { %7442 = vtanh.f32 %v4793_v60  ;;  %v7431_v50 = vpop.eup %7430  ;;  %v5259_v61 = vpack.c.bf16 %v5171_v17, %v5167_v36  ;;  %v5169_v40 = vmul.f32 %v5041_v8, %v11009_v4  ;;  %v4666_v35 = vadd.f32 %v12352_v12, %v12350_v15  ;;  %v12355_v4 = vld [vmem:[#allocation86_spill] sm:$0xff] }
 0x8a3   : > { %7444 = vtanh.f32 %v4797_v1  ;;  %v7433_v9 = vpop.eup %7432  ;;  %v5173_v7 = vmul.f32 %v5045_v63, %v11012_v6  ;;  %v5038_v13 = vadd.f32 1.0, %v7431_v50  ;;  %v4790_v31 = vmul.f32 0.7978846, %v4662_v0 }
 0x8a4   : > { %v11081_v55 = vmul.f32 0.5, %v12353_v27  ;;  %5653 = vmatprep.mubr.bf16.mxu1 %v5259_v61  ;;  %v5042_v25 = vadd.f32 1.0, %v7433_v9  ;;  %v4794_v46 = vmul.f32 0.7978846, %v4666_v35  ;;  %v11084_v11 = vmul.f32 0.5, %v12354_v62 }
 0x8a5   : > { %v7435_v10 = vpop.eup %7434  ;;  %v4664_v34 = vadd.f32 %v12355_v4, %v12353_v27  ;;  %v5261_v47 = vpack.c.bf16 %v5173_v7, %v5169_v40  ;;  %v5166_v54 = vmul.f32 %v5038_v13, %v11020_v22  ;;  %7446 = vtanh.f32 %v4790_v31 }
 0x8a6   : > { %v7437_v28 = vpop.eup %7436  ;;  %v5040_v6 = vadd.f32 1.0, %v7435_v10  ;;  %v5170_v14 = vmul.f32 %v5042_v25, %v11023_v59  ;;  %7448 = vtanh.f32 %v4794_v46  ;;  %v4668_v42 = vadd.f32 %v12356_v37, %v12354_v62  ;;  %v12362_v37 = vld [vmem:[#allocation89_spill] sm:$0xff] }
 0x8a7   : > { %v5044_v33 = vadd.f32 1.0, %v7437_v28  ;;  %5814 = vmatprep.mubr.bf16.mxu0 %v5261_v47  ;;  %v4792_v39 = vmul.f32 0.7978846, %v4664_v34  ;;  %v11094_v20 = vmul.f32 0.5, %v10808_v45  ;;  %v11097_v36 = vmul.f32 0.5, %v10927_v29  ;;  %v12359_v28 = vld [vmem:[#allocation119_spill] sm:$0xff] }
 0x8a8   : > { %v5168_v18 = vmul.f32 %v5040_v6, %v11031_v49  ;;  %v5258_v22 = vpack.c.bf16 %v5170_v14, %v5166_v54  ;;  %v4796_v3 = vmul.f32 0.7978846, %v4668_v42  ;;  %v4671_v59 = vadd.f32 %v10858_v48, %v10808_v45  ;;  %v12360_v6 = vld [vmem:[#allocation92_spill] sm:$0xff] }
 0x8a9   : > { %v5172_v60 = vmul.f32 %v5044_v33, %v11034_v30  ;;  %v7439_v58 = vpop.eup %7438  ;;  %7450 = vtanh.f32 %v4792_v39  ;;  %v4675_v17 = vadd.f32 %v10957_v24, %v10927_v29  ;;  %v11105_v49 = vmul.f32 0.5, %v10826_v56  ;;  %v12361_v33 = vld [vmem:[#allocation51_spill] sm:$0xff] }
 0x8aa   : > { %v11108_v8 = vmul.f32 0.5, %v10931_v23  ;;  %v7441_v1 = vpop.eup %7440  ;;  %5654 = vmatmul.mubr.bf16.gmra.mrb[188].mxu1 %v5258_v22  ;;  %v5047_v15 = vadd.f32 1.0, %v7439_v58  ;;  %7452 = vtanh.f32 %v4796_v3  ;;  %v4799_v30 = vmul.f32 0.7978846, %v4671_v59  ;;  %v12364_v3 = vld [vmem:[#allocation81_spill] sm:$0xff] }
 0x8ab   : > { %v5260_v63 = vpack.c.bf16 %v5172_v60, %v5168_v18  ;;  %v5051_v0 = vadd.f32 1.0, %v7441_v1  ;;  %v4803_v48 = vmul.f32 0.7978846, %v4675_v17  ;;  %v4673_v45 = vadd.f32 %v10877_v2, %v10826_v56  ;;  %v12363_v60 = vld [vmem:[#allocation52_spill] sm:$0xff] }
 0x8ac   : > { %v7443_v41 = vpop.eup %7442  ;;  %v4677_v29 = vadd.f32 %v10960_v5, %v10931_v23  ;;  %v5175_v50 = vmul.f32 %v5047_v15, %v11043_v53  ;;  %7454 = vtanh.f32 %v4799_v30  ;;  %v11116_v40 = vmul.f32 0.5, %v10774_v21  ;;  %v12357_v23 = vld [vmem:[#allocation110_spill] sm:$0xff]  ;;  %v12365_v15 = vld [vmem:[#allocation53_spill] sm:$0xff] }
 0x8ad   : > { %v7445_v24 = vpop.eup %7444  ;;  %5815 = vmatmul.mubr.bf16.gmra.mrb[204].mxu0 %v5260_v63  ;;  %v5049_v61 = vadd.f32 1.0, %v7443_v41  ;;  %v5179_v12 = vmul.f32 %v5051_v0, %v11049_v19  ;;  %7456 = vtanh.f32 %v4803_v48  ;;  %v4801_v9 = vmul.f32 0.7978846, %v4673_v45  ;;  %v12366_v30 = vld [vmem:[#allocation93_spill] sm:$0xff] }
 0x8ae   : > { %v5053_v35 = vadd.f32 1.0, %v7445_v24  ;;  %v4805_v56 = vmul.f32 0.7978846, %v4677_v29  ;;  %v11121_v2 = vmul.f32 0.5, %v10869_v32  ;;  %v4670_v5 = vadd.f32 %v12357_v23, %v10774_v21 }
 0x8af   : > { %v5177_v7 = vmul.f32 %v5049_v61, %v11057_v52  ;;  %v7447_v53 = vpop.eup %7446  ;;  %v5263_v13 = vpack.c.bf16 %v5179_v12, %v5175_v50  ;;  %7458 = vtanh.f32 %v4801_v9  ;;  %v4674_v19 = vadd.f32 %v10916_v26, %v10869_v32  ;;  %v12358_v52 = vld [vmem:[#allocation61_spill] sm:$0xff] }
 0x8b0   : > { %v5181_v31 = vmul.f32 %v5053_v35, %v11060_v44  ;;  %v7449_v27 = vpop.eup %7448  ;;  %v5046_v10 = vadd.f32 1.0, %v7447_v53  ;;  %7460 = vtanh.f32 %v4805_v56  ;;  %v4798_v25 = vmul.f32 0.7978846, %v4670_v5 }
 0x8b1   : > { %v11129_v46 = vmul.f32 0.5, %v12358_v52  ;;  %5661 = vmatprep.mubr.bf16.mxu1 %v5263_v13  ;;  %v5050_v4 = vadd.f32 1.0, %v7449_v27  ;;  %v4802_v34 = vmul.f32 0.7978846, %v4674_v19  ;;  %v11132_v21 = vmul.f32 0.5, %v10884_v43 }
 0x8b2   : > { %v5265_v62 = vpack.c.bf16 %v5181_v31, %v5177_v7  ;;  %v5174_v44 = vmul.f32 %v5046_v10, %v11068_v57  ;;  %7462 = vtanh.f32 %v4798_v25  ;;  %v4672_v32 = vadd.f32 %v12359_v28, %v12358_v52  ;;  %v12368_v10 = vld [vmem:[#allocation97_spill] sm:$0xff] }
 0x8b3   : > { %v4676_v26 = vadd.f32 %v10938_v38, %v10884_v43  ;;  %v7451_v47 = vpop.eup %7450  ;;  %v5178_v54 = vmul.f32 %v5050_v4, %v11072_v16  ;;  %7464 = vtanh.f32 %v4802_v34  ;;  %v11142_v14 = vadd.f32 %v12360_v6, %v9582_v51  ;;  %v12369_v4 = vld [vmem:[#allocation101_spill] sm:$0xff] }
 0x8b4   : > { %5822 = vmatprep.mubr.bf16.mxu0 %v5265_v62  ;;  %v11146_v42 = vadd.f32 %v12362_v37, %v12361_v33  ;;  %v7453_v57 = vpop.eup %7452  ;;  %v5048_v18 = vadd.f32 1.0, %v7451_v47  ;;  %v4800_v39 = vmul.f32 0.7978846, %v4672_v32  ;;  %v11150_v43 = vadd.f32 %v12364_v3, %v12363_v60 }
 0x8b5   : > { %v4804_v22 = vmul.f32 0.7978846, %v4676_v26  ;;  %v5262_v38 = vpack.c.bf16 %v5178_v54, %v5174_v44  ;;  %v5052_v59 = vadd.f32 1.0, %v7453_v57  ;;  %v4294_v16 = vmul.f32 0.044715, %v11142_v14  ;;  %v12370_v44 = vld [vmem:[#allocation109_spill] sm:$0xff] }
 0x8b6   : > { %v4296_v58 = vmul.f32 0.044715, %v11146_v42  ;;  %v7455_v17 = vpop.eup %7454  ;;  %v5176_v1 = vmul.f32 %v5048_v18, %v11081_v55  ;;  %7466 = vtanh.f32 %v4800_v39  ;;  %v4295_v63 = vmul.f32 0.044715, %v11150_v43  ;;  %v12371_v18 = vld [vmem:[#allocation98_spill] sm:$0xff] }
 0x8b7   : > { %v11158_v41 = vadd.f32 %v12366_v30, %v12365_v15  ;;  %v7457_v0 = vpop.eup %7456  ;;  %5662 = vmatmul.mubr.bf16.gmra.mrb[192].mxu1 %v5262_v38  ;;  %v5180_v48 = vmul.f32 %v5052_v59, %v11084_v11  ;;  %v5055_v45 = vadd.f32 1.0, %v7455_v17  ;;  %7468 = vtanh.f32 %v4804_v22  ;;  %v12367_v11 = vld [vmem:[#allocation90_spill] sm:$0xff] }
 0x8b8   : > { %v4422_v29 = vmul.f32 %v4294_v16, %v11142_v14  ;;  %v5059_v24 = vadd.f32 1.0, %v7457_v0  ;;  %v4424_v50 = vmul.f32 %v4296_v58, %v11146_v42  ;;  %v4423_v55 = vmul.f32 %v4295_v63, %v11150_v43 }
 0x8b9   : > { %v4297_v61 = vmul.f32 0.044715, %v11158_v41  ;;  %v7459_v12 = vpop.eup %7458  ;;  %v5264_v35 = vpack.c.bf16 %v5180_v48, %v5176_v1  ;;  %v5183_v9 = vmul.f32 %v5055_v45, %v11094_v20  ;;  %v11171_v56 = vadd.f32 %v12367_v11, %v9582_v51  ;;  %v12373_v45 = vld [vmem:[#allocation103_spill] sm:$0xff] }
 0x8ba   : > { %v11167_v7 = vmul.f32 %v4422_v29, %v11142_v14  ;;  %v7461_v23 = vpop.eup %7460  ;;  %v5187_v5 = vmul.f32 %v5059_v24, %v11097_v36  ;;  %v5057_v53 = vadd.f32 1.0, %v7459_v12  ;;  %v11175_v13 = vmul.f32 %v4424_v50, %v11146_v42 }
 0x8bb   : > { %v11178_v31 = vmul.f32 %v4423_v55, %v11150_v43  ;;  %5823 = vmatmul.mubr.bf16.gmra.mrb[208].mxu0 %v5264_v35  ;;  %v5061_v19 = vadd.f32 1.0, %v7461_v23  ;;  %v4425_v20 = vmul.f32 %v4297_v61, %v11158_v41  ;;  %v4298_v27 = vmul.f32 0.044715, %v11171_v56 }
 0x8bc   : > { %v11184_v25 = vadd.f32 %v12368_v10, %v12361_v33  ;;  %v7463_v52 = vpop.eup %7462  ;;  %v5267_v62 = vpack.c.bf16 %v5187_v5, %v5183_v9  ;;  %v5185_v36 = vmul.f32 %v5057_v53, %v11105_v49  ;;  %v11189_v34 = vadd.f32 %v12369_v4, %v12363_v60  ;;  %v12374_v5 = vld [vmem:[#allocation108_spill] sm:$0xff]  ;;  %v12376_v10 = vld [vmem:[#allocation107_spill] sm:$0xff] }
 0x8bd   : > { %v11193_v28 = vadd.f32 %v12370_v44, %v12365_v15  ;;  %v7465_v32 = vpop.eup %7464  ;;  %v5189_v26 = vmul.f32 %v5061_v19, %v11108_v8  ;;  %v5054_v47 = vadd.f32 1.0, %v7463_v52  ;;  %v11197_v54 = vmul.f32 %v4425_v20, %v11158_v41  ;;  %v12375_v19 = vld [vmem:[#allocation99_spill] sm:$0xff] }
 0x8be   : > { %v4426_v6 = vmul.f32 %v4298_v27, %v11171_v56  ;;  %5669 = vmatprep.mubr.bf16.mxu1 %v5267_v62  ;;  %v5058_v37 = vadd.f32 1.0, %v7465_v32  ;;  %v4300_v49 = vmul.f32 0.044715, %v11184_v25  ;;  %v4299_v57 = vmul.f32 0.044715, %v11189_v34 }
 0x8bf   : > { %v11204_v39 = vadd.f32 %v12371_v18, %v9582_v51  ;;  %v5269_v22 = vpack.c.bf16 %v5189_v26, %v5185_v36  ;;  %v5182_v3 = vmul.f32 %v5054_v47, %v11116_v40  ;;  %v4301_v38 = vmul.f32 0.044715, %v11193_v28  ;;  %v12372_v40 = vld [vmem:[#allocation106_spill] sm:$0xff] }
 0x8c0   : > { %v11208_v8 = vmul.f32 %v4426_v6, %v11171_v56  ;;  %v7467_v59 = vpop.eup %7466  ;;  %v5186_v16 = vmul.f32 %v5058_v37, %v11121_v2  ;;  %v4428_v58 = vmul.f32 %v4300_v49, %v11184_v25  ;;  %v4427_v17 = vmul.f32 %v4299_v57, %v11189_v34  ;;  %v12378_v37 = vld [vmem:[#allocation72_spill] sm:$0xff] }
 0x8c1   : > { %v4302_v1 = vmul.f32 0.044715, %v11204_v39  ;;  %v7469_v63 = vpop.eup %7468  ;;  %5830 = vmatprep.mubr.bf16.mxu0 %v5269_v22  ;;  %v5056_v30 = vadd.f32 1.0, %v7467_v59  ;;  %v4429_v0 = vmul.f32 %v4301_v38, %v11193_v28  ;;  %v11218_v48 = vadd.f32 %v12372_v40, %v12361_v33  ;;  %v12382_v40 = vld [vmem:[#allocation114_spill] sm:$0xff] }
 0x8c2   : > { %v11222_v29 = vadd.f32 %v12373_v45, %v12363_v60  ;;  %v5266_v2 = vpack.c.bf16 %v5186_v16, %v5182_v3  ;;  %v5060_v24 = vadd.f32 1.0, %v7469_v63  ;;  %v11225_v50 = vmul.f32 %v4428_v58, %v11184_v25  ;;  %v12379_v3 = vld [vmem:[#allocation113_spill] sm:$0xff] }
 0x8c3   : > { %v11228_v55 = vmul.f32 %v4427_v17, %v11189_v34  ;;  %v5184_v61 = vmul.f32 %v5056_v30, %v11129_v46  ;;  %v11232_v12 = vmul.f32 %v4429_v0, %v11193_v28  ;;  %v4430_v35 = vmul.f32 %v4302_v1, %v11204_v39  ;;  %v12380_v17 = vld [vmem:[#allocation118_spill] sm:$0xff] }
 0x8c4   : > { %v4304_v9 = vmul.f32 0.044715, %v11218_v48  ;;  %5670 = vmatmul.mubr.bf16.gmra.mrb[196].mxu1 %v5266_v2  ;;  %v5188_v11 = vmul.f32 %v5060_v24, %v11132_v21  ;;  %v4303_v23 = vmul.f32 0.044715, %v11222_v29  ;;  %v11240_v53 = vadd.f32 %v12374_v5, %v12365_v15  ;;  %v12377_v21 = vld [vmem:[#allocation104_spill] sm:$0xff] }
 0x8c5   : > { %v11244_v20 = vadd.f32 %v12375_v19, %v9582_v51  ;;  %v11247_v46 = vmul.f32 %v4430_v35, %v11204_v39  ;;  %v11252_v52 = vadd.f32 %v12376_v10, %v12361_v33  ;;  %v11256_v62 = vadd.f32 %v12377_v21, %v12363_v60  ;;  %v12384_v19 = vld [vmem:[#allocation126_spill] sm:$0xff] }
 0x8c6   : > { %v4432_v27 = vmul.f32 %v4304_v9, %v11218_v48  ;;  %v5268_v36 = vpack.c.bf16 %v5188_v11, %v5184_v61  ;;  %v4431_v4 = vmul.f32 %v4303_v23, %v11222_v29  ;;  %v4305_v44 = vmul.f32 0.044715, %v11240_v53  ;;  %v12383_v23 = vld [vmem:[#allocation120_spill] sm:$0xff] }
 0x8c7   : > { %v4306_v32 = vmul.f32 0.044715, %v11244_v20  ;;  %v4308_v47 = vmul.f32 0.044715, %v11252_v52  ;;  %v4307_v6 = vmul.f32 0.044715, %v11256_v62  ;;  %v11268_v49 = vadd.f32 %v12378_v37, %v12365_v15 }
 0x8c8   : > { %v11262_v26 = vmul.f32 %v4432_v27, %v11218_v48  ;;  %5831 = vmatmul.mubr.bf16.gmra.mrb[212].mxu0 %v5268_v36  ;;  %v11271_v57 = vmul.f32 %v4431_v4, %v11222_v29  ;;  %v4433_v18 = vmul.f32 %v4305_v44, %v11240_v53  ;;  %v11277_v38 = vadd.f32 %v12379_v3, %v9582_v51  ;;  %v12385_v36 = vld [vmem:[#allocation56_spill] sm:$0xff]  ;;  %v12387_v44 = vld [vmem:[#allocation66_spill] sm:$0xff] }
 0x8c9   : > { %v4434_v22 = vmul.f32 %v4306_v32, %v11244_v20  ;;  %v4436_v59 = vmul.f32 %v4308_v47, %v11252_v52  ;;  %v4435_v16 = vmul.f32 %v4307_v6, %v11256_v62  ;;  %v4309_v58 = vmul.f32 0.044715, %v11268_v49 }
 0x8ca   : > { %v11284_v1 = vadd.f32 %v12380_v17, %v12361_v33  ;;  %v11287_v63 = vmul.f32 %v4433_v18, %v11240_v53  ;;  %v4310_v0 = vmul.f32 0.044715, %v11277_v38  ;;  %v11295_v45 = vadd.f32 %v12382_v40, %v12363_v60 }
 0x8cb   : > { %v11290_v30 = vmul.f32 %v4434_v22, %v11244_v20  ;;  %v11298_v2 = vmul.f32 %v4436_v59, %v11252_v52  ;;  %v11301_v24 = vmul.f32 %v4435_v16, %v11256_v62  ;;  %v4437_v61 = vmul.f32 %v4309_v58, %v11268_v49  ;;  %v12389_v16 = vld [vmem:[#allocation111_spill] sm:$0xff] }
 0x8cc   : > { %12381 = vst [vmem:[#allocation54_spill] sm:$0xff] %v11284_v1  ;;  %v4312_v35 = vmul.f32 0.044715, %v11284_v1  ;;  %v4438_v9 = vmul.f32 %v4310_v0, %v11277_v38  ;;  %v4311_v11 = vmul.f32 0.044715, %v11295_v45  ;;  %v11309_v5 = vadd.f32 %v12383_v23, %v12365_v15 }
 0x8cd   : > { %v11313_v27 = vadd.f32 %v12384_v19, %v9582_v51  ;;  %v11316_v10 = vmul.f32 %v4437_v61, %v11268_v49  ;;  %v11321_v4 = vadd.f32 %v12385_v36, %v12361_v33  ;;  %v11325_v32 = vadd.f32 %v12387_v44, %v12363_v60  ;;  %v12390_v61 = vld [vmem:[#allocation64_spill] sm:$0xff] }
 0x8ce   : > { %v4440_v21 = vmul.f32 %v4312_v35, %v11284_v1  ;;  %v11328_v47 = vmul.f32 %v4438_v9, %v11277_v38  ;;  %v4439_v6 = vmul.f32 %v4311_v11, %v11295_v45  ;;  %v4313_v37 = vmul.f32 0.044715, %v11309_v5  ;;  %v11351_v9 = vpop.f32.mrb[152].mxu1 }
 0x8cf   : > { %12386 = vst [vmem:[#allocation67_spill] sm:$0xff] %v11321_v4  ;;  %v4314_v18 = vmul.f32 0.044715, %v11313_v27  ;;  %v4316_v3 = vmul.f32 0.044715, %v11321_v4  ;;  %v11340_v58 = vadd.f32 %v12389_v16, %v12365_v15  ;;  %v11349_v35 = vadd.f32 %v12390_v61, %v9582_v51  ;;  %12392 = vst [vmem:[#allocation100_spill] sm:$0xff] %v11351_v9 }
 0x8d0   : > { %v11334_v22 = vmul.f32 %v4440_v21, %v11284_v1  ;;  %v4315_v59 = vmul.f32 0.044715, %v11325_v32  ;;  %v11343_v17 = vmul.f32 %v4439_v6, %v11295_v45  ;;  %v4441_v0 = vmul.f32 %v4313_v37, %v11309_v5  ;;  %v12393_v21 = vld [vmem:[#allocation116_spill] sm:$0xff]  ;;  %v11360_v44 = vpop.f32.mrb[153].mxu1 }
 0x8d1   : > { %v4442_v40 = vmul.f32 %v4314_v18, %v11313_v27  ;;  %12391 = vst [vmem:[#allocation69_spill] sm:$0xff] %v11349_v35  ;;  %v4444_v11 = vmul.f32 %v4316_v3, %v11321_v4  ;;  %v4317_v19 = vmul.f32 0.044715, %v11340_v58  ;;  %v11358_v36 = vadd.f32 %v12393_v21, %v12361_v33  ;;  %12395 = vst [vmem:[#allocation68_spill] sm:$0xff] %v11360_v44  ;;  %v12397_v3 = vld [vmem:[#allocation57_spill] sm:$0xff]  ;;  %v11375_v61 = vpop.f32.mrb[154].mxu1 }
 0x8d2   : > { %12388 = vst [vmem:[#allocation55_spill] sm:$0xff] %v11334_v22  ;;  %v4443_v23 = vmul.f32 %v4315_v59, %v11325_v32  ;;  %v11363_v6 = vmul.f32 %v4441_v0, %v11309_v5  ;;  %v4318_v18 = vmul.f32 0.044715, %v11349_v35  ;;  %v11371_v16 = vadd.f32 %v12397_v3, %v12363_v60  ;;  %v11373_v59 = vpop.f32.mrb[168].mxu0  ;;  %12399 = vst [vmem:[#allocation58_spill] sm:$0xff] %v11375_v61  ;;  %v11387_v22 = vpop.f32.mrb[155].mxu1 }
 0x8d3   : > { %12394 = vst [vmem:[#allocation121_spill] sm:$0xff] %v11358_v36  ;;  %v11366_v37 = vmul.f32 %v4442_v40, %v11313_v27  ;;  %12398 = vst [vmem:[#allocation123_spill] sm:$0xff] %v11373_v59  ;;  %v11378_v21 = vmul.f32 %v4444_v11, %v11321_v4  ;;  %v4445_v0 = vmul.f32 %v4317_v19, %v11340_v58  ;;  %v4320_v40 = vmul.f32 0.044715, %v11358_v36  ;;  %v11385_v9 = vpop.f32.mrb[169].mxu0  ;;  %v12403_v61 = vld [vmem:[#allocation112_spill] sm:$0xff] }
 0x8d4   : > { %v11381_v44 = vmul.f32 %v4443_v23, %v11325_v32  ;;  %12401 = vst [vmem:[#allocation60_spill] sm:$0xff] %v11385_v9  ;;  %12402 = vst [vmem:[#allocation77_spill] sm:$0xff] %v11387_v22  ;;  %v4446_v3 = vmul.f32 %v4318_v18, %v11349_v35  ;;  %v4319_v59 = vmul.f32 0.044715, %v11371_v16  ;;  %v11393_v1 = vadd.f32 %v12403_v61, %v12365_v15  ;;  %v12404_v11 = vld [vmem:[#allocation62_spill] sm:$0xff]  ;;  %v12406_v22 = vld [vmem:[#allocation117_spill] sm:$0xff] }
 0x8d5   : > { %12396 = vst [vmem:[#allocation122_spill] sm:$0xff] %v11366_v37  ;;  %12400 = vst [vmem:[#allocation127_spill] sm:$0xff] %v11378_v21  ;;  %v11397_v23 = vadd.f32 %v12404_v11, %v9582_v51  ;;  %v11399_v21 = vpop.f32.mrb[170].mxu0  ;;  %v11402_v19 = vmul.f32 %v4445_v0, %v11340_v58  ;;  %v4448_v9 = vmul.f32 %v4320_v40, %v11358_v36  ;;  %v12407_v4 = vld [vmem:[#allocation59_spill] sm:$0xff] }
 0x8d6   : > { %12405 = vst [vmem:[#allocation128_spill] sm:$0xff] %v11399_v21  ;;  %v11407_v18 = vadd.f32 %v12406_v22, %v12361_v33  ;;  %v11411_v37 = vadd.f32 %v12407_v4, %v12363_v60  ;;  %v11413_v61 = vpop.f32.mrb[171].mxu0  ;;  %v11416_v51 = vmul.f32 %v4446_v3, %v11349_v35  ;;  %v4447_v11 = vmul.f32 %v4319_v59, %v11371_v16  ;;  %v12411_v60 = vld [vmem:[#allocation73_spill] sm:$0xff] }
 0x8d7   : > { %12408 = vst [vmem:[#allocation80_spill] sm:$0xff] %v11413_v61  ;;  %v4321_v0 = vmul.f32 0.044715, %v11393_v1  ;;  %v4322_v21 = vmul.f32 0.044715, %v11397_v23  ;;  %v11422_v40 = vmul.f32 %v4448_v9, %v11358_v36  ;;  %v11428_v4 = vadd.f32 %v12411_v60, %v12365_v15 }
 0x8d8   : > { %12409 = vst [vmem:[#allocation124_spill] sm:$0xff] %v11416_v51  ;;  %v4324_v33 = vmul.f32 0.044715, %v11407_v18  ;;  %v4323_v22 = vmul.f32 0.044715, %v11411_v37  ;;  %v11431_v3 = vmul.f32 %v4447_v11, %v11371_v16  ;;  %v11436_v51 = vmul.f32 0.5, %v11150_v43 }
 0x8d9   : > { %12410 = vst [vmem:[#allocation125_spill] sm:$0xff] %v11422_v40  ;;  %v4449_v59 = vmul.f32 %v4321_v0, %v11393_v1  ;;  %v4450_v61 = vmul.f32 %v4322_v21, %v11397_v23  ;;  %v4325_v36 = vmul.f32 0.044715, %v11428_v4  ;;  %v11442_v35 = vmul.f32 0.5, %v11189_v34 }
 0x8da   : > { %v4452_v9 = vmul.f32 %v4324_v33, %v11407_v18  ;;  %v4451_v40 = vmul.f32 %v4323_v22, %v11411_v37  ;;  %v4679_v21 = vadd.f32 %v11178_v31, %v11150_v43  ;;  %v4683_v0 = vadd.f32 %v11228_v55, %v11189_v34 }
 0x8db   : > { %v11445_v15 = vmul.f32 %v4449_v59, %v11393_v1  ;;  %v11448_v11 = vmul.f32 %v4450_v61, %v11397_v23  ;;  %v4453_v60 = vmul.f32 %v4325_v36, %v11428_v4  ;;  %v11462_v59 = vmul.f32 0.5, %v11158_v41 }
 0x8dc   : > { %v11455_v33 = vmul.f32 %v4452_v9, %v11407_v18  ;;  %v11458_v22 = vmul.f32 %v4451_v40, %v11411_v37  ;;  %v4811_v61 = vmul.f32 0.7978846, %v4683_v0  ;;  %v4681_v43 = vadd.f32 %v11197_v54, %v11158_v41 }
 0x8dd   : > { %12412 = vst [vmem:[#allocation87_spill] sm:$0xff] %v11445_v15  ;;  %12413 = vst [vmem:[#allocation78_spill] sm:$0xff] %v11448_v11  ;;  %v4807_v15 = vmul.f32 0.7978846, %v4679_v21  ;;  %v11465_v11 = vmul.f32 0.5, %v11193_v28  ;;  %v11470_v31 = vmul.f32 %v4453_v60, %v11428_v4  ;;  %v4685_v34 = vadd.f32 %v11232_v12, %v11193_v28 }
 0x8de   : > { %v11475_v55 = vmul.f32 0.5, %v11142_v14  ;;  %v11478_v36 = vmul.f32 0.5, %v11171_v56  ;;  %v4809_v40 = vmul.f32 0.7978846, %v4681_v43  ;;  %v4678_v9 = vadd.f32 %v11167_v7, %v11142_v14 }
 0x8df   : > { %7470 = vtanh.f32 %v4807_v15  ;;  %v4682_v41 = vadd.f32 %v11208_v8, %v11171_v56  ;;  %v4813_v54 = vmul.f32 0.7978846, %v4685_v34  ;;  %v11485_v21 = vmul.f32 0.5, %v11146_v42 }
 0x8e0   : > { %7472 = vtanh.f32 %v4811_v61  ;;  %v11488_v28 = vmul.f32 0.5, %v11184_v25  ;;  %v4806_v12 = vmul.f32 0.7978846, %v4678_v9  ;;  %v4680_v15 = vadd.f32 %v11175_v13, %v11146_v42 }
 0x8e1   : > { %7474 = vtanh.f32 %v4809_v40  ;;  %v4810_v0 = vmul.f32 0.7978846, %v4682_v41  ;;  %v4684_v14 = vadd.f32 %v11225_v50, %v11184_v25  ;;  %v11495_v7 = vmul.f32 0.5, %v11222_v29 }
 0x8e2   : > { %7476 = vtanh.f32 %v4813_v54  ;;  %v11498_v56 = vmul.f32 0.5, %v11256_v62  ;;  %v4808_v8 = vmul.f32 0.7978846, %v4680_v15  ;;  %v4687_v60 = vadd.f32 %v11271_v57, %v11222_v29 }
 0x8e3   : > { %7478 = vtanh.f32 %v4806_v12  ;;  %v4691_v61 = vadd.f32 %v11301_v24, %v11256_v62  ;;  %v4812_v42 = vmul.f32 0.7978846, %v4684_v14  ;;  %v11505_v13 = vmul.f32 0.5, %v11240_v53  ;;  %v11520_v24 = vpop.f32.mrb[156].mxu1 }
 0x8e4   : > { %7480 = vtanh.f32 %v4810_v0  ;;  %v11508_v25 = vmul.f32 0.5, %v11268_v49  ;;  %v4815_v50 = vmul.f32 0.7978846, %v4687_v60  ;;  %v4689_v34 = vadd.f32 %v11287_v63, %v11240_v53  ;;  %v11526_v63 = vpop.f32.mrb[157].mxu1 }
 0x8e5   : > { %7482 = vtanh.f32 %v4808_v8  ;;  %v4819_v43 = vmul.f32 0.7978846, %v4691_v61  ;;  %v4693_v29 = vadd.f32 %v11316_v10, %v11268_v49  ;;  %v11515_v62 = vmul.f32 0.5, %v11204_v39  ;;  %v11534_v54 = vpop.f32.mrb[158].mxu1 }
 0x8e6   : > { %7484 = vtanh.f32 %v4812_v42  ;;  %v11518_v57 = vmul.f32 0.5, %v11244_v20  ;;  %v4817_v40 = vmul.f32 0.7978846, %v4689_v34  ;;  %v4686_v9 = vadd.f32 %v11247_v46, %v11204_v39  ;;  %v11540_v46 = vpop.f32.mrb[159].mxu1 }
 0x8e7   : > { %7486 = vtanh.f32 %v4815_v50  ;;  %v4690_v53 = vadd.f32 %v11290_v30, %v11244_v20  ;;  %v4821_v49 = vmul.f32 0.7978846, %v4693_v29  ;;  %v11529_v10 = vmul.f32 0.5, %v11218_v48  ;;  %v11538_v20 = vpop.f32.mrb[172].mxu0 }
 0x8e8   : > { %7488 = vtanh.f32 %v4819_v43  ;;  %v11532_v41 = vmul.f32 0.5, %v11252_v52  ;;  %v4814_v0 = vmul.f32 0.7978846, %v4686_v9  ;;  %v4688_v39 = vadd.f32 %v11262_v26, %v11218_v48  ;;  %v11547_v61 = vpop.f32.mrb[173].mxu0 }
 0x8e9   : > { %v7471_v12 = vpop.eup %7470  ;;  %7490 = vtanh.f32 %v4817_v40  ;;  %v4818_v15 = vmul.f32 0.7978846, %v4690_v53  ;;  %v4692_v8 = vadd.f32 %v11298_v2, %v11252_v52  ;;  %v11545_v60 = vmul.f32 0.5, %v11295_v45  ;;  %v11552_v26 = vpop.f32.mrb[174].mxu0 }
 0x8ea   : > { %v7473_v30 = vpop.eup %7472  ;;  %v5063_v14 = vadd.f32 1.0, %v7471_v12  ;;  %7492 = vtanh.f32 %v4821_v49  ;;  %v4816_v43 = vmul.f32 0.7978846, %v4688_v39  ;;  %v11550_v48 = vmul.f32 0.5, %v11325_v32  ;;  %v11555_v2 = vpop.f32.mrb[175].mxu0 }
 0x8eb   : > { %v7475_v42 = vpop.eup %7474  ;;  %v5067_v50 = vadd.f32 1.0, %v7473_v30  ;;  %7494 = vtanh.f32 %v4814_v0  ;;  %v4820_v52 = vmul.f32 0.7978846, %v4692_v8  ;;  %12414 = vst [vmem:[#allocation70_spill] sm:$0xff] %v11555_v2  ;;  %v4695_v12 = vadd.f32 %v11343_v17, %v11295_v45 }
 0x8ec   : > { %v7477_v34 = vpop.eup %7476  ;;  %v5191_v29 = vmul.f32 %v5063_v14, %v11436_v51  ;;  %v5065_v40 = vadd.f32 1.0, %v7475_v42  ;;  %7496 = vtanh.f32 %v4818_v15  ;;  %v4699_v51 = vadd.f32 %v11381_v44, %v11325_v32 }
 0x8ed   : > { %v7479_v9 = vpop.eup %7478  ;;  %v5195_v53 = vmul.f32 %v5067_v50, %v11442_v35  ;;  %v5069_v49 = vadd.f32 1.0, %v7477_v34  ;;  %7498 = vtanh.f32 %v4816_v43  ;;  %v4823_v2 = vmul.f32 0.7978846, %v4695_v12 }
 0x8ee   : > { %v7481_v0 = vpop.eup %7480  ;;  %v5193_v39 = vmul.f32 %v5065_v40, %v11462_v59  ;;  %v5062_v30 = vadd.f32 1.0, %v7479_v9  ;;  %7500 = vtanh.f32 %v4820_v52  ;;  %v4827_v34 = vmul.f32 0.7978846, %v4699_v51 }
 0x8ef   : > { %v7483_v15 = vpop.eup %7482  ;;  %v5271_v14 = vpack.c.bf16 %v5195_v53, %v5191_v29  ;;  %v5197_v8 = vmul.f32 %v5069_v49, %v11465_v11  ;;  %v5066_v42 = vadd.f32 1.0, %v7481_v0  ;;  %v11566_v45 = vmul.f32 0.5, %v11309_v5 }
 0x8f0   : > { %v7485_v35 = vpop.eup %7484  ;;  %v5190_v50 = vmul.f32 %v5062_v30, %v11475_v55  ;;  %v5064_v43 = vadd.f32 1.0, %v7483_v15  ;;  %7502 = vtanh.f32 %v4823_v2  ;;  %v11571_v52 = vmul.f32 0.5, %v11340_v58 }
 0x8f1   : > { %v7487_v17 = vpop.eup %7486  ;;  %5677 = vmatprep.mubr.bf16.mxu1 %v5271_v14  ;;  %v5273_v59 = vpack.c.bf16 %v5197_v8, %v5193_v39  ;;  %v5194_v40 = vmul.f32 %v5066_v42, %v11478_v36  ;;  %v5068_v32 = vadd.f32 1.0, %v7485_v35  ;;  %7504 = vtanh.f32 %v4827_v34 }
 0x8f2   : > { %v7489_v44 = vpop.eup %7488  ;;  %v5192_v11 = vmul.f32 %v5064_v43, %v11485_v21  ;;  %v5071_v29 = vadd.f32 1.0, %v7487_v17  ;;  %v4697_v12 = vadd.f32 %v11363_v6, %v11309_v5  ;;  %v4701_v21 = vadd.f32 %v11402_v19, %v11340_v58 }
 0x8f3   : > { %v7491_v55 = vpop.eup %7490  ;;  %5838 = vmatprep.mubr.bf16.mxu0 %v5273_v59  ;;  %v5270_v9 = vpack.c.bf16 %v5194_v40, %v5190_v50  ;;  %v5196_v53 = vmul.f32 %v5068_v32, %v11488_v28  ;;  %v5075_v49 = vadd.f32 1.0, %v7489_v44  ;;  %v11580_v39 = vmul.f32 0.5, %v11277_v38  ;;  %v12415_v32 = vld [vmem:[#allocation122_spill] sm:$0xff] }
 0x8f4   : > { %v7493_v36 = vpop.eup %7492  ;;  %v5199_v2 = vmul.f32 %v5071_v29, %v11495_v7  ;;  %v5073_v0 = vadd.f32 1.0, %v7491_v55  ;;  %v4825_v14 = vmul.f32 0.7978846, %v4697_v12  ;;  %v4829_v42 = vmul.f32 0.7978846, %v4701_v21  ;;  %v12416_v29 = vld [vmem:[#allocation54_spill] sm:$0xff] }
 0x8f5   : > { %v7495_v30 = vpop.eup %7494  ;;  %5678 = vmatmul.mubr.bf16.gmra.mrb[200].mxu1 %v5270_v9  ;;  %v5272_v51 = vpack.c.bf16 %v5196_v53, %v5192_v11  ;;  %v5203_v15 = vmul.f32 %v5075_v49, %v11498_v56  ;;  %v5077_v28 = vadd.f32 1.0, %v7493_v36  ;;  %v11585_v7 = vmul.f32 0.5, %v11313_v27 }
 0x8f6   : > { %v7497_v8 = vpop.eup %7496  ;;  %v5201_v5 = vmul.f32 %v5073_v0, %v11505_v13  ;;  %v5070_v6 = vadd.f32 1.0, %v7495_v30  ;;  %7506 = vtanh.f32 %v4825_v14  ;;  %v4694_v13 = vadd.f32 %v11328_v47, %v11277_v38 }
 0x8f7   : > { %v7499_v35 = vpop.eup %7498  ;;  %5839 = vmatmul.mubr.bf16.gmra.mrb[216].mxu0 %v5272_v51  ;;  %v5275_v58 = vpack.c.bf16 %v5203_v15, %v5199_v2  ;;  %v5205_v19 = vmul.f32 %v5077_v28, %v11508_v25  ;;  %v5074_v50 = vadd.f32 1.0, %v7497_v8  ;;  %7508 = vtanh.f32 %v4829_v42 }
 0x8f8   : > { %v7501_v43 = vpop.eup %7500  ;;  %v5198_v56 = vmul.f32 %v5070_v6, %v11515_v62  ;;  %v5072_v34 = vadd.f32 1.0, %v7499_v35  ;;  %v4698_v44 = vadd.f32 %v12415_v32, %v11313_v27  ;;  %v4822_v11 = vmul.f32 0.7978846, %v4694_v13  ;;  %v12417_v62 = vld [vmem:[#allocation67_spill] sm:$0xff] }
 0x8f9   : > { %5685 = vmatprep.mubr.bf16.mxu1 %v5275_v58  ;;  %v5277_v17 = vpack.c.bf16 %v5205_v19, %v5201_v5  ;;  %v5202_v59 = vmul.f32 %v5074_v50, %v11518_v57  ;;  %v5076_v40 = vadd.f32 1.0, %v7501_v43  ;;  %v11596_v55 = vmul.f32 0.5, %v12416_v29  ;;  %v12418_v57 = vld [vmem:[#allocation55_spill] sm:$0xff]  ;;  %v11609_v21 = vpop.f32.mrb[160].mxu1 }
 0x8fa   : > { %v5200_v25 = vmul.f32 %v5072_v34, %v11529_v10  ;;  %v11599_v9 = vmul.f32 0.5, %v12417_v62  ;;  %v7503_v53 = vpop.eup %7502  ;;  %v4826_v49 = vmul.f32 0.7978846, %v4698_v44  ;;  %v4696_v12 = vadd.f32 %v12418_v57, %v12416_v29  ;;  %v12419_v10 = vld [vmem:[#allocation127_spill] sm:$0xff]  ;;  %v11611_v15 = vpop.f32.mrb[161].mxu1 }
 0x8fb   : > { %5846 = vmatprep.mubr.bf16.mxu0 %v5277_v17  ;;  %v5274_v38 = vpack.c.bf16 %v5202_v59, %v5198_v56  ;;  %v5204_v47 = vmul.f32 %v5076_v40, %v11532_v41  ;;  %v7505_v36 = vpop.eup %7504  ;;  %v5079_v27 = vadd.f32 1.0, %v7503_v53  ;;  %7510 = vtanh.f32 %v4822_v11  ;;  %v11619_v6 = vpop.f32.mrb[176].mxu0  ;;  %v12420_v43 = vld [vmem:[#allocation87_spill] sm:$0xff]  ;;  %v12421_v17 = vld [vmem:[#allocation69_spill] sm:$0xff] }
 0x8fc   : > { %v4700_v2 = vadd.f32 %v12419_v10, %v12417_v62  ;;  %v11607_v0 = vmul.f32 0.5, %v11371_v16  ;;  %v5083_v51 = vadd.f32 1.0, %v7505_v36  ;;  %7512 = vtanh.f32 %v4826_v49  ;;  %v11621_v42 = vpop.f32.mrb[162].mxu1  ;;  %v11629_v19 = vpop.f32.mrb[177].mxu0  ;;  %v12422_v62 = vld [vmem:[#allocation124_spill] sm:$0xff] }
 0x8fd   : > { %5686 = vmatmul.mubr.bf16.gmra.mrb[204].mxu1 %v5274_v38  ;;  %v5276_v30 = vpack.c.bf16 %v5204_v47, %v5200_v25  ;;  %v4824_v41 = vmul.f32 0.7978846, %v4696_v12  ;;  %v5207_v28 = vmul.f32 %v5079_v27, %v11545_v60  ;;  %v11615_v8 = vmul.f32 0.5, %v11411_v37  ;;  %v11631_v50 = vpop.f32.mrb[163].mxu1  ;;  %v12424_v47 = vld [vmem:[#allocation121_spill] sm:$0xff] }
 0x8fe   : > { %v4828_v14 = vmul.f32 0.7978846, %v4700_v2  ;;  %v4703_v5 = vadd.f32 %v11431_v3, %v11371_v16  ;;  %v5211_v35 = vmul.f32 %v5083_v51, %v11550_v48  ;;  %v4707_v58 = vadd.f32 %v11458_v22, %v11411_v37  ;;  %v11638_v48 = vpop.f32.mrb[178].mxu0  ;;  %v12425_v2 = vld [vmem:[#allocation125_spill] sm:$0xff]  ;;  %v12427_v51 = vld [vmem:[#allocation100_spill] sm:$0xff] }
 0x8ff   : > { %5847 = vmatmul.mubr.bf16.gmra.mrb[220].mxu0 %v5276_v30  ;;  %7514 = vtanh.f32 %v4824_v41  ;;  %v11627_v60 = vmul.f32 0.5, %v11393_v1  ;;  %v11634_v3 = vmul.f32 0.5, %v11428_v4  ;;  %v4705_v56 = vadd.f32 %v12420_v43, %v11393_v1  ;;  %v11645_v40 = vpop.f32.mrb[179].mxu0 }
 0x900   : > { %7516 = vtanh.f32 %v4828_v14  ;;  %v4831_v16 = vmul.f32 0.7978846, %v4703_v5  ;;  %v7507_v34 = vpop.eup %7506  ;;  %v5279_v13 = vpack.c.bf16 %v5211_v35, %v5207_v28  ;;  %v4835_v37 = vmul.f32 0.7978846, %v4707_v58  ;;  %v12429_v35 = vld [vmem:[#allocation123_spill] sm:$0xff]  ;;  %v12430_v58 = vld [vmem:[#allocation60_spill] sm:$0xff] }
 0x901   : > { %v4709_v22 = vadd.f32 %v11470_v31, %v11428_v4  ;;  %v11643_v59 = vmul.f32 0.5, %v12421_v17  ;;  %v7509_v32 = vpop.eup %7508  ;;  %v5081_v44 = vadd.f32 1.0, %v7507_v34  ;;  %v4833_v25 = vmul.f32 0.7978846, %v4705_v56  ;;  %v12423_v31 = vld [vmem:[#allocation78_spill] sm:$0xff] }
 0x902   : > { %7518 = vtanh.f32 %v4831_v16  ;;  %v11648_v11 = vmul.f32 0.5, %v11397_v23  ;;  %5693 = vmatprep.mubr.bf16.mxu1 %v5279_v13  ;;  %v5085_v1 = vadd.f32 1.0, %v7509_v32  ;;  %v4702_v53 = vadd.f32 %v12422_v62, %v12421_v17  ;;  %v12433_v32 = vld [vmem:[#allocation128_spill] sm:$0xff] }
 0x903   : > { %7520 = vtanh.f32 %v4835_v37  ;;  %v4837_v29 = vmul.f32 0.7978846, %v4709_v22  ;;  %v5209_v4 = vmul.f32 %v5081_v44, %v11566_v45  ;;  %v4706_v38 = vadd.f32 %v12423_v31, %v11397_v23  ;;  %v11669_v23 = vld [vmem:[%s12426_s19] ss:$0 sm:$0xff]  ;;  %v12431_v37 = vld [vmem:[#allocation58_spill] sm:$0xff]  ;;  %v12432_v22 = vld [vmem:[#allocation77_spill] sm:$0xff] }
 0x904   : > { %7522 = vtanh.f32 %v4833_v25  ;;  %v11656_v49 = vmul.f32 0.5, %v12424_v47  ;;  %v5213_v57 = vmul.f32 %v5085_v1, %v11571_v52  ;;  %v4830_v12 = vmul.f32 0.7978846, %v4702_v53  ;;  %v12428_v52 = vld [vmem:[#allocation68_spill] sm:$0xff]  ;;  %s7744_s19 = scalar_lea.vmem %s7743_s18, 8192 }
 0x905   : > { %7524 = vtanh.f32 %v4837_v29  ;;  %v11660_v36 = vmul.f32 0.5, %v11407_v18  ;;  %v7511_v27 = vpop.eup %7510  ;;  %v4834_v10 = vmul.f32 0.7978846, %v4706_v38  ;;  %v4704_v30 = vadd.f32 %v12425_v2, %v12424_v47  ;;  %v12434_v44 = vld [vmem:[#allocation80_spill] sm:$0xff]  ;;  %p7746_p12 = scmp.lt.s32.totalorder %s7744_s19, %s7738_s27 }
 0x906   : > { %v4708_v45 = vadd.f32 %v11455_v33, %v11407_v18  ;;  %v6348_v41 = vadd.f32 %v12428_v52, %v12427_v51  ;;  %v7513_v28 = vpop.eup %7512  ;;  %v5281_v14 = vpack.c.bf16 %v5213_v57, %v5209_v4  ;;  %v5078_v5 = vadd.f32 1.0, %v7511_v27 }
 0x907   : > { %7526 = vtanh.f32 %v4830_v12  ;;  %v6460_v16 = vadd.f32 %v12430_v58, %v12429_v35  ;;  %v5082_v43 = vadd.f32 1.0, %v7513_v28  ;;  %v4832_v56 = vmul.f32 0.7978846, %v4704_v30  ;;  %p7747_p13 = por %p7746_p12, %p7745_p11 }
 0x908   : > { %7528 = vtanh.f32 %v4834_v10  ;;  %v4836_v34 = vmul.f32 0.7978846, %v4708_v45  ;;  %5854 = vmatprep.mubr.bf16.mxu0 %v5281_v14  ;;  %v5206_v33 = vmul.f32 %v5078_v5, %v11580_v39  ;;  %v5584_v13 = vadd.f32 %v6348_v41, %v11669_v23  ;;  %v12436_v41 = vld [vmem:[#allocation70_spill] sm:$0xff] }
 0x909   : > { %v7515_v18 = vpop.eup %7514  ;;  %v6351_v17 = vadd.f32 %v12432_v22, %v12431_v37  ;;  %v6463_v25 = vadd.f32 %v12434_v44, %v12433_v32  ;;  %v5210_v29 = vmul.f32 %v5082_v43, %v11585_v7  ;;  %7530 = vtanh.f32 %v4832_v56  ;;  %p7748_p8 = pnand %p7747_p13, %p7741_p1 }
 0x90a   : > { %v7517_v1 = vpop.eup %7516  ;;  %v5080_v62 = vadd.f32 1.0, %v7515_v18  ;;  %v6354_v53 = vadd.f32 %v11526_v63, %v11520_v24  ;;  %7532 = vtanh.f32 %v4836_v34  ;;  %v5745_v31 = vadd.f32 %v6460_v16, %v5584_v13  ;;  %v12435_v24 = vld [vmem:[#allocation19_spill] sm:$0xff] }
 0x90b   : > { %v5084_v4 = vadd.f32 1.0, %v7517_v1  ;;  %v5587_v39 = vadd.f32 %v6351_v17, %v11669_v23  ;;  %v5278_v47 = vpack.c.bf16 %v5210_v29, %v5206_v33  ;;  %v6466_v27 = vadd.f32 %v11547_v61, %v11538_v20 }
 0x90c   : > { %v7519_v38 = vpop.eup %7518  ;;  %v5208_v57 = vmul.f32 %v5080_v62, %v11596_v55  ;;  %v5592_v12 = vadd.f32 %v6354_v53, %v11669_v23  ;;  %v5871_v63 = vadd.f32 %v5745_v31, %v12435_v24  ;;  %v6357_v55 = vadd.f32 %v11540_v46, %v11534_v54  ;;  %v12438_v46 = vld [vmem:[#allocation21_spill] sm:$0xff]  ;;  %v12441_v24 = vld [vmem:[#allocation24_spill] sm:$0xff] }
 0x90d   : > { %v7521_v7 = vpop.eup %7520  ;;  %v5212_v10 = vmul.f32 %v5084_v4, %v11599_v9  ;;  %v5087_v2 = vadd.f32 1.0, %v7519_v38  ;;  %v5748_v30 = vadd.f32 %v6463_v25, %v5587_v39  ;;  %5694 = vmatmul.mubr.bf16.gmra.mrb[208].mxu1 %v5278_v47  ;;  %v6469_v28 = vadd.f32 %v12436_v41, %v11552_v26  ;;  %v12437_v9 = vld [vmem:[#allocation20_spill] sm:$0xff]  ;;  %v12439_v25 = vld [vmem:[#allocation22_spill] sm:$0xff]  ;;  %v12442_v41 = vld [vmem:[#allocation25_spill] sm:$0xff] }
 0x90e   : > { %v7523_v45 = vpop.eup %7522  ;;  %v5091_v51 = vadd.f32 1.0, %v7521_v7  ;;  %v5753_v52 = vadd.f32 %v6466_v27, %v5592_v12  ;;  %5903 = vst [vmem:[%s11698_s9] sm:$0xff] %v5871_v63  ;;  %v5595_v26 = vadd.f32 %v6357_v55, %v11669_v23  ;;  %v6360_v56 = vadd.f32 %v11611_v15, %v11609_v21  ;;  %v6364_v18 = vpop.f32.mrb[164].mxu1 }
 0x90f   : > { %v7525_v14 = vpop.eup %7524  ;;  %v5280_v20 = vpack.c.bf16 %v5212_v10, %v5208_v57  ;;  %v5215_v61 = vmul.f32 %v5087_v2, %v11607_v0  ;;  %v5089_v5 = vadd.f32 1.0, %v7523_v45  ;;  %v5872_v35 = vadd.f32 %v5748_v30, %v12437_v9  ;;  %v6365_v32 = vpop.f32.mrb[165].mxu1  ;;  %v12440_v2 = vld [vmem:[#allocation23_spill] sm:$0xff] }
 0x910   : > { %v5219_v58 = vmul.f32 %v5091_v51, %v11615_v8  ;;  %v5093_v54 = vadd.f32 1.0, %v7525_v14  ;;  %v5873_v16 = vadd.f32 %v5753_v52, %v12438_v46  ;;  %v6472_v34 = vadd.f32 %v11629_v19, %v11619_v6  ;;  %v6367_v19 = vpop.f32.mrb[166].mxu1 }
 0x911   : > { %v7527_v43 = vpop.eup %7526  ;;  %5855 = vmatmul.mubr.bf16.gmra.mrb[224].mxu0 %v5280_v20  ;;  %v5217_v0 = vmul.f32 %v5089_v5, %v11627_v60  ;;  %5904 = vst [vmem:[%s11698_s9 + $0x8] sm:$0xff] %v5872_v35  ;;  %v6363_v8 = vadd.f32 %v11631_v50, %v11621_v42  ;;  %v5756_v17 = vadd.f32 %v6469_v28, %v5595_v26  ;;  %v6476_v6 = vpop.f32.mrb[180].mxu0 }
 0x912   : > { %v7529_v33 = vpop.eup %7528  ;;  %v5283_v13 = vpack.c.bf16 %v5219_v58, %v5215_v61  ;;  %v5221_v37 = vmul.f32 %v5093_v54, %v11634_v3  ;;  %v5086_v22 = vadd.f32 1.0, %v7527_v43  ;;  %5905 = vst [vmem:[%s11698_s9 + $0x10] sm:$0xff] %v5873_v16  ;;  %v5600_v44 = vadd.f32 %v6360_v56, %v11669_v23  ;;  %v6477_v62 = vpop.f32.mrb[181].mxu0 }
 0x913   : > { %v5090_v60 = vadd.f32 1.0, %v7529_v33  ;;  %v5603_v21 = vadd.f32 %v6363_v8, %v11669_v23  ;;  %v6475_v15 = vadd.f32 %v11645_v40, %v11638_v48  ;;  %v7531_v42 = vpop.eup %7530  ;;  %v5874_v1 = vadd.f32 %v5756_v17, %v12439_v25  ;;  %v6368_v53 = vpop.f32.mrb[167].mxu1 }
 0x914   : > { %5701 = vmatprep.mubr.bf16.mxu1 %v5283_v13  ;;  %v5285_v50 = vpack.c.bf16 %v5221_v37, %v5217_v0  ;;  %v5214_v3 = vmul.f32 %v5086_v22, %v11643_v59  ;;  %v6366_v29 = vadd.f32 %v6365_v32, %v6364_v18  ;;  %v7533_v4 = vpop.eup %7532  ;;  %v5088_v39 = vadd.f32 1.0, %v7531_v42  ;;  %v6479_v48 = vpop.f32.mrb[182].mxu0  ;;  %v12444_v18 = vld [vmem:[#allocation27_spill] sm:$0xff]  ;;  %v12445_v37 = vld [vmem:[#allocation28_spill] sm:$0xff] }
 0x915   : > { %v5218_v31 = vmul.f32 %v5090_v60, %v11648_v11  ;;  %v5761_v38 = vadd.f32 %v6472_v34, %v5600_v44  ;;  %v5764_v47 = vadd.f32 %v6475_v15, %v5603_v21  ;;  %v5092_v40 = vadd.f32 1.0, %v7533_v4  ;;  %5906 = vst [vmem:[%s11698_s9 + $0x18] sm:$0xff] %v5874_v1  ;;  %v6480_v27 = vpop.f32.mrb[183].mxu0 }
 0x916   : > { %5862 = vmatprep.mubr.bf16.mxu0 %v5285_v50  ;;  %v5608_v57 = vadd.f32 %v6366_v29, %v11669_v23  ;;  %v6478_v59 = vadd.f32 %v6477_v62, %v6476_v6  ;;  %v6369_v12 = vadd.f32 %v6368_v53, %v6367_v19  ;;  %v5216_v10 = vmul.f32 %v5088_v39, %v11656_v49  ;;  %v12443_v49 = vld [vmem:[#allocation26_spill] sm:$0xff]  ;;  %v12446_v53 = vld [vmem:[#allocation29_spill] sm:$0xff] }
 0x917   : > { %v5282_v7 = vpack.c.bf16 %v5218_v31, %v5214_v3  ;;  %v5875_v11 = vadd.f32 %v5761_v38, %v12440_v2  ;;  %v5876_v63 = vadd.f32 %v5764_v47, %v12441_v24  ;;  %v5220_v30 = vmul.f32 %v5092_v40, %v11660_v36  ;;  %v12447_v39 = vld [vmem:[#allocation30_spill] sm:$0xff] }
 0x918   : > { %v5769_v45 = vadd.f32 %v6478_v59, %v5608_v57  ;;  %v5611_v51 = vadd.f32 %v6369_v12, %v11669_v23  ;;  %v6481_v52 = vadd.f32 %v6480_v27, %v6479_v48 }
 0x919   : > { %5702 = vmatmul.mubr.bf16.gmra.mrb[212].mxu1 %v5282_v7  ;;  %5907 = vst [vmem:[%s11698_s9 + $0x20] sm:$0xff] %v5875_v11  ;;  %5908 = vst [vmem:[%s11698_s9 + $0x28] sm:$0xff] %v5876_v63  ;;  %v5284_v55 = vpack.c.bf16 %v5220_v30, %v5216_v10 }
 0x91a   : > { %v5877_v28 = vadd.f32 %v5769_v45, %v12442_v41  ;;  %v5772_v14 = vadd.f32 %v6481_v52, %v5611_v51  ;;  %v12448_v51 = vld [vmem:[#allocation31_spill] sm:$0xff]  ;;  %v12449_v41 = vld [vmem:[#allocation32_spill] sm:$0xff] }
 0x91b   : > { %5863 = vmatmul.mubr.bf16.gmra.mrb[228].mxu0 %v5284_v55 }
 0x91c   : > { %5909 = vst [vmem:[%s11698_s9 + $0x30] sm:$0xff] %v5877_v28  ;;  %v5878_v20 = vadd.f32 %v5772_v14, %v12443_v49 }
 0x91e   : > { %5910 = vst [vmem:[%s11698_s9 + $0x38] sm:$0xff] %v5878_v20 }
 0x924   : > { %v6370_v61 = vpop.f32.mrb[168].mxu1 }
 0x925   : > { %v6371_v5 = vpop.f32.mrb[169].mxu1 }
 0x926   : > { %v6482_v36 = vpop.f32.mrb[184].mxu0  ;;  %v6372_v9 = vadd.f32 %v6371_v5, %v6370_v61  ;;  %v6373_v35 = vpop.f32.mrb[170].mxu1 }
 0x927   : > { %v6483_v58 = vpop.f32.mrb[185].mxu0  ;;  %v6374_v54 = vpop.f32.mrb[171].mxu1 }
 0x928   : > { %v5616_v46 = vadd.f32 %v6372_v9, %v11669_v23  ;;  %v6484_v16 = vadd.f32 %v6483_v58, %v6482_v36  ;;  %v6485_v26 = vpop.f32.mrb[186].mxu0  ;;  %v6375_v43 = vadd.f32 %v6374_v54, %v6373_v35 }
 0x929   : > { %v6486_v0 = vpop.f32.mrb[187].mxu0 }
 0x92a   : > { %v5777_v56 = vadd.f32 %v6484_v16, %v5616_v46  ;;  %v5619_v34 = vadd.f32 %v6375_v43, %v11669_v23  ;;  %v6487_v8 = vadd.f32 %v6486_v0, %v6485_v26 }
 0x92c   : > { %v5879_v33 = vadd.f32 %v5777_v56, %v12444_v18  ;;  %v5780_v13 = vadd.f32 %v6487_v8, %v5619_v34  ;;  %v12450_v56 = vld [vmem:[#allocation33_spill] sm:$0xff]  ;;  %v12451_v18 = vld [vmem:[#allocation34_spill] sm:$0xff] }
 0x92e   : > { %5911 = vst [vmem:[%s11698_s9 + $0x40] sm:$0xff] %v5879_v33  ;;  %v5880_v22 = vadd.f32 %v5780_v13, %v12445_v37 }
 0x930   : > { %5912 = vst [vmem:[%s11698_s9 + $0x48] sm:$0xff] %v5880_v22 }
 0x939   : > { %v6376_v17 = vpop.f32.mrb[172].mxu1 }
 0x93a   : > { %v6377_v32 = vpop.f32.mrb[173].mxu1 }
 0x93b   : > { %v6488_v60 = vpop.f32.mrb[188].mxu0  ;;  %v6378_v44 = vadd.f32 %v6377_v32, %v6376_v17  ;;  %v6379_v21 = vpop.f32.mrb[174].mxu1 }
 0x93c   : > { %v6489_v15 = vpop.f32.mrb[189].mxu0  ;;  %v6380_v6 = vpop.f32.mrb[175].mxu1 }
 0x93d   : > { %v5624_v19 = vadd.f32 %v6378_v44, %v11669_v23  ;;  %v6490_v42 = vadd.f32 %v6489_v15, %v6488_v60  ;;  %v6491_v50 = vpop.f32.mrb[190].mxu0  ;;  %v6381_v3 = vadd.f32 %v6380_v6, %v6379_v21 }
 0x93e   : > { %v6492_v25 = vpop.f32.mrb[191].mxu0 }
 0x93f   : > { %v5785_v1 = vadd.f32 %v6490_v42, %v5624_v19  ;;  %v5627_v29 = vadd.f32 %v6381_v3, %v11669_v23  ;;  %v6493_v62 = vadd.f32 %v6492_v25, %v6491_v50 }
 0x941   : > { %v5881_v4 = vadd.f32 %v5785_v1, %v12446_v53  ;;  %v5788_v31 = vadd.f32 %v6493_v62, %v5627_v29  ;;  %v12452_v1 = vld [vmem:[#allocation35_spill] sm:$0xff]  ;;  %v12453_v53 = vld [vmem:[#allocation36_spill] sm:$0xff] }
 0x943   : > { %5913 = vst [vmem:[%s11698_s9 + $0x50] sm:$0xff] %v5881_v4  ;;  %v5882_v38 = vadd.f32 %v5788_v31, %v12447_v39 }
 0x945   : > { %5914 = vst [vmem:[%s11698_s9 + $0x58] sm:$0xff] %v5882_v38 }
 0x94f   : > { %v6382_v47 = vpop.f32.mrb[176].mxu1 }
 0x950   : > { %v6383_v48 = vpop.f32.mrb[177].mxu1 }
 0x951   : > { %v6384_v57 = vadd.f32 %v6383_v48, %v6382_v47  ;;  %v6385_v59 = vpop.f32.mrb[178].mxu1 }
 0x952   : > { %v6494_v40 = vpop.f32.mrb[192].mxu0  ;;  %v6386_v27 = vpop.f32.mrb[179].mxu1 }
 0x953   : > { %v6495_v12 = vpop.f32.mrb[193].mxu0  ;;  %v5632_v7 = vadd.f32 %v6384_v57, %v11669_v23  ;;  %v6387_v11 = vadd.f32 %v6386_v27, %v6385_v59 }
 0x954   : > { %v6496_v10 = vadd.f32 %v6495_v12, %v6494_v40  ;;  %v6497_v2 = vpop.f32.mrb[194].mxu0 }
 0x955   : > { %v6498_v24 = vpop.f32.mrb[195].mxu0  ;;  %v5635_v30 = vadd.f32 %v6387_v11, %v11669_v23 }
 0x956   : > { %v5793_v63 = vadd.f32 %v6496_v10, %v5632_v7  ;;  %v6499_v45 = vadd.f32 %v6498_v24, %v6497_v2 }
 0x958   : > { %v5883_v52 = vadd.f32 %v5793_v63, %v12448_v51  ;;  %v5796_v55 = vadd.f32 %v6499_v45, %v5635_v30  ;;  %v12454_v63 = vld [vmem:[#allocation37_spill] sm:$0xff]  ;;  %v12455_v51 = vld [vmem:[#allocation38_spill] sm:$0xff] }
 0x95a   : > { %5915 = vst [vmem:[%s11698_s9 + $0x60] sm:$0xff] %v5883_v52  ;;  %v5884_v28 = vadd.f32 %v5796_v55, %v12449_v41 }
 0x95c   : > { %5916 = vst [vmem:[%s11698_s9 + $0x68] sm:$0xff] %v5884_v28 }
 0x964   : > { %v6388_v14 = vpop.f32.mrb[180].mxu1 }
 0x965   : > { %v6389_v49 = vpop.f32.mrb[181].mxu1 }
 0x966   : > { %v6500_v20 = vpop.f32.mrb[196].mxu0  ;;  %v6390_v61 = vadd.f32 %v6389_v49, %v6388_v14  ;;  %v6391_v5 = vpop.f32.mrb[182].mxu1 }
 0x967   : > { %v6501_v36 = vpop.f32.mrb[197].mxu0  ;;  %v6392_v9 = vpop.f32.mrb[183].mxu1 }
 0x968   : > { %v5640_v35 = vadd.f32 %v6390_v61, %v11669_v23  ;;  %v6502_v58 = vadd.f32 %v6501_v36, %v6500_v20  ;;  %v6503_v54 = vpop.f32.mrb[198].mxu0  ;;  %v6393_v46 = vadd.f32 %v6392_v9, %v6391_v5 }
 0x969   : > { %v6504_v16 = vpop.f32.mrb[199].mxu0 }
 0x96a   : > { %v5801_v26 = vadd.f32 %v6502_v58, %v5640_v35  ;;  %v5643_v43 = vadd.f32 %v6393_v46, %v11669_v23  ;;  %v6505_v0 = vadd.f32 %v6504_v16, %v6503_v54 }
 0x96c   : > { %v5885_v34 = vadd.f32 %v5801_v26, %v12450_v56  ;;  %v5804_v8 = vadd.f32 %v6505_v0, %v5643_v43  ;;  %v12456_v26 = vld [vmem:[#allocation39_spill] sm:$0xff]  ;;  %v12457_v56 = vld [vmem:[#allocation40_spill] sm:$0xff] }
 0x96e   : > { %5917 = vst [vmem:[%s11698_s9 + $0x70] sm:$0xff] %v5885_v34  ;;  %v5886_v33 = vadd.f32 %v5804_v8, %v12451_v18 }
 0x970   : > { %5918 = vst [vmem:[%s11698_s9 + $0x78] sm:$0xff] %v5886_v33 }
 0x971   : > { %v6394_v13 = vpop.f32.mrb[184].mxu1 }
 0x972   : > { %v6395_v37 = vpop.f32.mrb[185].mxu1 }
 0x973   : > { %v6506_v22 = vpop.f32.mrb[200].mxu0  ;;  %v6396_v17 = vadd.f32 %v6395_v37, %v6394_v13  ;;  %v6397_v32 = vpop.f32.mrb[186].mxu1 }
 0x974   : > { %v6507_v60 = vpop.f32.mrb[201].mxu0  ;;  %v6398_v44 = vpop.f32.mrb[187].mxu1 }
 0x975   : > { %v5648_v21 = vadd.f32 %v6396_v17, %v11669_v23  ;;  %v6508_v15 = vadd.f32 %v6507_v60, %v6506_v22  ;;  %v6509_v6 = vpop.f32.mrb[202].mxu0  ;;  %v6399_v19 = vadd.f32 %v6398_v44, %v6397_v32 }
 0x976   : > { %v6510_v42 = vpop.f32.mrb[203].mxu0 }
 0x977   : > { %v5809_v50 = vadd.f32 %v6508_v15, %v5648_v21  ;;  %v5651_v3 = vadd.f32 %v6399_v19, %v11669_v23  ;;  %v6511_v25 = vadd.f32 %v6510_v42, %v6509_v6 }
 0x979   : > { %v5887_v29 = vadd.f32 %v5809_v50, %v12452_v1  ;;  %v5812_v62 = vadd.f32 %v6511_v25, %v5651_v3  ;;  %v12458_v50 = vld [vmem:[#allocation41_spill] sm:$0xff]  ;;  %v12459_v1 = vld [vmem:[#allocation42_spill] sm:$0xff] }
 0x97b   : > { %5919 = vst [vmem:[%s11698_s9 + $0x80] sm:$0xff] %v5887_v29  ;;  %v5888_v4 = vadd.f32 %v5812_v62, %v12453_v53 }
 0x97d   : > { %5920 = vst [vmem:[%s11698_s9 + $0x88] sm:$0xff] %v5888_v4  ;;  %v6400_v31 = vpop.f32.mrb[188].mxu1 }
 0x97e   : > { %v6401_v39 = vpop.f32.mrb[189].mxu1 }
 0x97f   : > { %v6402_v47 = vadd.f32 %v6401_v39, %v6400_v31  ;;  %v6403_v48 = vpop.f32.mrb[190].mxu1 }
 0x980   : > { %v6512_v38 = vpop.f32.mrb[204].mxu0  ;;  %v6404_v57 = vpop.f32.mrb[191].mxu1 }
 0x981   : > { %v6513_v40 = vpop.f32.mrb[205].mxu0  ;;  %v5656_v59 = vadd.f32 %v6402_v47, %v11669_v23  ;;  %v6405_v7 = vadd.f32 %v6404_v57, %v6403_v48 }
 0x982   : > { %v6514_v12 = vadd.f32 %v6513_v40, %v6512_v38  ;;  %v6515_v27 = vpop.f32.mrb[206].mxu0 }
 0x983   : > { %v6516_v10 = vpop.f32.mrb[207].mxu0  ;;  %v5659_v11 = vadd.f32 %v6405_v7, %v11669_v23 }
 0x984   : > { %v5817_v2 = vadd.f32 %v6514_v12, %v5656_v59  ;;  %v6517_v24 = vadd.f32 %v6516_v10, %v6515_v27 }
 0x986   : > { %v5889_v30 = vadd.f32 %v5817_v2, %v12454_v63  ;;  %v5820_v45 = vadd.f32 %v6517_v24, %v5659_v11  ;;  %v12460_v2 = vld [vmem:[#allocation43_spill] sm:$0xff] }
 0x988   : > { %5921 = vst [vmem:[%s11698_s9 + $0x90] sm:$0xff] %v5889_v30  ;;  %v5890_v52 = vadd.f32 %v5820_v45, %v12455_v51  ;;  %v12461_v45 = vld [vmem:[#allocation44_spill] sm:$0xff] }
 0x98a   : > { %5922 = vst [vmem:[%s11698_s9 + $0x98] sm:$0xff] %v5890_v52  ;;  %v6406_v55 = vpop.f32.mrb[192].mxu1 }
 0x98b   : > { %v6407_v41 = vpop.f32.mrb[193].mxu1 }
 0x98c   : > { %v6408_v28 = vadd.f32 %v6407_v41, %v6406_v55  ;;  %v6409_v14 = vpop.f32.mrb[194].mxu1 }
 0x98d   : > { %v6410_v49 = vpop.f32.mrb[195].mxu1 }
 0x98e   : > { %v6518_v20 = vpop.f32.mrb[208].mxu0  ;;  %v5664_v61 = vadd.f32 %v6408_v28, %v11669_v23  ;;  %v6411_v5 = vadd.f32 %v6410_v49, %v6409_v14 }
 0x98f   : > { %v6519_v36 = vpop.f32.mrb[209].mxu0 }
 0x990   : > { %v6520_v9 = vadd.f32 %v6519_v36, %v6518_v20  ;;  %v6521_v35 = vpop.f32.mrb[210].mxu0  ;;  %v5667_v58 = vadd.f32 %v6411_v5, %v11669_v23 }
 0x991   : > { %v6522_v54 = vpop.f32.mrb[211].mxu0 }
 0x992   : > { %v5825_v46 = vadd.f32 %v6520_v9, %v5664_v61  ;;  %v6523_v16 = vadd.f32 %v6522_v54, %v6521_v35  ;;  %v12462_v54 = vld [vmem:[#allocation45_spill] sm:$0xff] }
 0x994   : > { %v5891_v43 = vadd.f32 %v5825_v46, %v12456_v26  ;;  %v5828_v0 = vadd.f32 %v6523_v16, %v5667_v58  ;;  %v12463_v26 = vld [vmem:[#allocation46_spill] sm:$0xff] }
 0x996   : > { %5923 = vst [vmem:[%s11698_s9 + $0xa0] sm:$0xff] %v5891_v43  ;;  %v5892_v34 = vadd.f32 %v5828_v0, %v12457_v56 }
 0x997   : > { %v6412_v8 = vpop.f32.mrb[196].mxu1 }
 0x998   : > { %5924 = vst [vmem:[%s11698_s9 + $0xa8] sm:$0xff] %v5892_v34  ;;  %v6413_v18 = vpop.f32.mrb[197].mxu1 }
 0x999   : > { %v6414_v33 = vadd.f32 %v6413_v18, %v6412_v8  ;;  %v6415_v13 = vpop.f32.mrb[198].mxu1 }
 0x99a   : > { %v6416_v37 = vpop.f32.mrb[199].mxu1 }
 0x99b   : > { %v6524_v22 = vpop.f32.mrb[212].mxu0  ;;  %v5672_v17 = vadd.f32 %v6414_v33, %v11669_v23  ;;  %v6417_v32 = vadd.f32 %v6416_v37, %v6415_v13 }
 0x99c   : > { %v6525_v60 = vpop.f32.mrb[213].mxu0 }
 0x99d   : > { %v6526_v44 = vadd.f32 %v6525_v60, %v6524_v22  ;;  %v6527_v21 = vpop.f32.mrb[214].mxu0  ;;  %v5675_v15 = vadd.f32 %v6417_v32, %v11669_v23 }
 0x99e   : > { %v6528_v6 = vpop.f32.mrb[215].mxu0 }
 0x99f   : > { %v5833_v19 = vadd.f32 %v6526_v44, %v5672_v17  ;;  %v6529_v42 = vadd.f32 %v6528_v6, %v6527_v21  ;;  %v12464_v6 = vld [vmem:[#allocation47_spill] sm:$0xff] }
 0x9a1   : > { %v5893_v3 = vadd.f32 %v5833_v19, %v12458_v50  ;;  %v5836_v25 = vadd.f32 %v6529_v42, %v5675_v15  ;;  %v12465_v50 = vld [vmem:[#allocation48_spill] sm:$0xff] }
 0x9a3   : > { %5925 = vst [vmem:[%s11698_s9 + $0xb0] sm:$0xff] %v5893_v3  ;;  %v5894_v29 = vadd.f32 %v5836_v25, %v12459_v1 }
 0x9a5   : > { %5926 = vst [vmem:[%s11698_s9 + $0xb8] sm:$0xff] %v5894_v29 }
 0x9c8   : > { %v6418_v62 = vpop.f32.mrb[200].mxu1 }
 0x9c9   : > { %v6419_v53 = vpop.f32.mrb[201].mxu1 }
 0x9ca   : > { %v6530_v4 = vpop.f32.mrb[216].mxu0  ;;  %v6420_v31 = vadd.f32 %v6419_v53, %v6418_v62  ;;  %v6421_v39 = vpop.f32.mrb[202].mxu1 }
 0x9cb   : > { %v6531_v38 = vpop.f32.mrb[217].mxu0  ;;  %v6422_v47 = vpop.f32.mrb[203].mxu1 }
 0x9cc   : > { %v5680_v48 = vadd.f32 %v6420_v31, %v11669_v23  ;;  %v6532_v40 = vadd.f32 %v6531_v38, %v6530_v4  ;;  %v6533_v57 = vpop.f32.mrb[218].mxu0  ;;  %v6423_v59 = vadd.f32 %v6422_v47, %v6421_v39 }
 0x9cd   : > { %v6534_v12 = vpop.f32.mrb[219].mxu0 }
 0x9ce   : > { %v5841_v27 = vadd.f32 %v6532_v40, %v5680_v48  ;;  %v5683_v7 = vadd.f32 %v6423_v59, %v11669_v23  ;;  %v6535_v10 = vadd.f32 %v6534_v12, %v6533_v57 }
 0x9d0   : > { %v5895_v11 = vadd.f32 %v5841_v27, %v12460_v2  ;;  %v5844_v24 = vadd.f32 %v6535_v10, %v5683_v7  ;;  %v6424_v63 = vpop.f32.mrb[204].mxu1  ;;  %v12466_v27 = vld [vmem:[#allocation49_spill] sm:$0xff] }
 0x9d1   : > { %v6425_v30 = vpop.f32.mrb[205].mxu1 }
 0x9d2   : > { %5927 = vst [vmem:[%s11698_s9 + $0xc0] sm:$0xff] %v5895_v11  ;;  %v5896_v51 = vadd.f32 %v5844_v24, %v12461_v45  ;;  %v6536_v52 = vpop.f32.mrb[220].mxu0  ;;  %v6426_v55 = vadd.f32 %v6425_v30, %v6424_v63  ;;  %v6427_v41 = vpop.f32.mrb[206].mxu1 }
 0x9d3   : > { %v6537_v28 = vpop.f32.mrb[221].mxu0  ;;  %v6428_v14 = vpop.f32.mrb[207].mxu1 }
 0x9d4   : > { %5928 = vst [vmem:[%s11698_s9 + $0xc8] sm:$0xff] %v5896_v51  ;;  %v5688_v49 = vadd.f32 %v6426_v55, %v11669_v23  ;;  %v6538_v20 = vadd.f32 %v6537_v28, %v6536_v52  ;;  %v6539_v61 = vpop.f32.mrb[222].mxu0  ;;  %v6429_v5 = vadd.f32 %v6428_v14, %v6427_v41 }
 0x9d5   : > { %v6540_v36 = vpop.f32.mrb[223].mxu0 }
 0x9d6   : > { %v5849_v9 = vadd.f32 %v6538_v20, %v5688_v49  ;;  %v5691_v35 = vadd.f32 %v6429_v5, %v11669_v23  ;;  %v6541_v58 = vadd.f32 %v6540_v36, %v6539_v61 }
 0x9d8   : > { %v5897_v46 = vadd.f32 %v5849_v9, %v12462_v54  ;;  %v5852_v16 = vadd.f32 %v6541_v58, %v5691_v35 }
 0x9da   : > { %5929 = vst [vmem:[%s11698_s9 + $0xd0] sm:$0xff] %v5897_v46  ;;  %v5898_v43 = vadd.f32 %v5852_v16, %v12463_v26 }
 0x9dc   : > { %5930 = vst [vmem:[%s11698_s9 + $0xd8] sm:$0xff] %v5898_v43 }
 0x9e0   : > { %v6430_v0 = vpop.f32.mrb[208].mxu1 }
 0x9e1   : > { %v6431_v56 = vpop.f32.mrb[209].mxu1 }
 0x9e2   : > { %v6432_v34 = vadd.f32 %v6431_v56, %v6430_v0  ;;  %v6433_v8 = vpop.f32.mrb[210].mxu1 }
 0x9e3   : > { %v6434_v33 = vpop.f32.mrb[211].mxu1 }
 0x9e4   : > { %v6542_v18 = vpop.f32.mrb[224].mxu0  ;;  %v5696_v13 = vadd.f32 %v6432_v34, %v11669_v23  ;;  %v6435_v22 = vadd.f32 %v6434_v33, %v6433_v8 }
 0x9e5   : > { %v6543_v37 = vpop.f32.mrb[225].mxu0 }
 0x9e6   : > { %v6544_v17 = vadd.f32 %v6543_v37, %v6542_v18  ;;  %v6545_v32 = vpop.f32.mrb[226].mxu0  ;;  %v5699_v60 = vadd.f32 %v6435_v22, %v11669_v23 }
 0x9e7   : > { %v6546_v44 = vpop.f32.mrb[227].mxu0 }
 0x9e8   : > { %v5857_v21 = vadd.f32 %v6544_v17, %v5696_v13  ;;  %v6547_v15 = vadd.f32 %v6546_v44, %v6545_v32 }
 0x9ea   : > { %v5899_v19 = vadd.f32 %v5857_v21, %v12464_v6  ;;  %v5860_v42 = vadd.f32 %v6547_v15, %v5699_v60 }
 0x9ec   : > { %5931 = vst [vmem:[%s11698_s9 + $0xe0] sm:$0xff] %v5899_v19  ;;  %v5900_v3 = vadd.f32 %v5860_v42, %v12465_v50  ;;  %v6436_v25 = vpop.f32.mrb[212].mxu1 }
 0x9ed   : > { %v6437_v1 = vpop.f32.mrb[213].mxu1 }
 0x9ee   : > { %5932 = vst [vmem:[%s11698_s9 + $0xe8] sm:$0xff] %v5900_v3  ;;  %v6438_v29 = vadd.f32 %v6437_v1, %v6436_v25  ;;  %v6439_v62 = vpop.f32.mrb[214].mxu1  ;;  %v6548_v53 = vpop.f32.mrb[228].mxu0 }
 0x9ef   : > { %v6440_v4 = vpop.f32.mrb[215].mxu1  ;;  %v6549_v39 = vpop.f32.mrb[229].mxu0 }
 0x9f0   : > { %v5704_v31 = vadd.f32 %v6438_v29, %v11669_v23  ;;  %v6441_v38 = vadd.f32 %v6440_v4, %v6439_v62  ;;  %v6550_v47 = vadd.f32 %v6549_v39, %v6548_v53  ;;  %v6551_v48 = vpop.f32.mrb[230].mxu0 }
 0x9f1   : > { %v6552_v57 = vpop.f32.mrb[231].mxu0 }
 0x9f2   : > { %v5707_v40 = vadd.f32 %v6441_v38, %v11669_v23  ;;  %v5865_v59 = vadd.f32 %v6550_v47, %v5704_v31  ;;  %v6553_v12 = vadd.f32 %v6552_v57, %v6551_v48  ;;  %v12468_v23 = vld [vmem:[#allocation50_spill] sm:$0xff] }
 0x9f4   : > { %v5901_v7 = vadd.f32 %v5865_v59, %v12466_v27  ;;  %v5868_v10 = vadd.f32 %v6553_v12, %v5707_v40 }
 0x9f6   : > { %5933 = vst [vmem:[%s11698_s9 + $0xf0] sm:$0xff] %v5901_v7  ;;  %v5902_v2 = vadd.f32 %v5868_v10, %v12468_v23 }
 0x9f8   : > { %5934 = vst [vmem:[%s11698_s9 + $0xf8] sm:$0xff] %v5902_v2 }
 0x9f9   : > { %7751 = shalt.err (!%p7748_p8)
}
 0x9fa   : > { %s7752_s9 = scalar_lea.hbm %s11809_s7, 4096  ;;  %s7756_s14 = scalar_lea.hbm %s12467_s30, 8192 }
 0x9fb   : > { %p7753_p6 = scmp.ne.s32.totalorder %s11809_s7, %s7752_s9  ;;  %p7757_p3 = scmp.lt.u32.totalorder %s11809_s7, %s12467_s30 }
 0x9fc   : > { %p7758_p0 = scmp.lt.u32.totalorder %s7756_s14, %s7752_s9  ;;  %p7760_p2 = scmp.lt.u32.totalorder %s7752_s9, %s11809_s7 }
 0x9fd   : > { %p7754_p9 = pnand %p7753_p6, %p12469_p7 }
 0x9fe   : > { %p7759_p5 = por %p7758_p0, %p7757_p3 }
 0x9ff   : > { %p7755_p4 = pneg %p7754_p9 }
 0xa00   : > { %p7761_p10 = por %p7760_p2, %p7759_p5 }
 0xa02   : > { %p7762_p1 = pnand %p7761_p10, %p7755_p4 }
 0xa04   : > { %7765 = shalt.err (!%p7762_p1)
}
 0xa05   : > { %s7834_s27 = smov 128   ;;  %s7835_s19 = smov 8  }
 0xa06   : > { %6816 = dma.vmem_to_hbm [thread:$0]  (%p12469_p7), %s11811_s13, 4096, %s11809_s7, %s5936_s12, %s7834_s27, %s7834_s27, %s7835_s19  }
 0xa07 PF: > { %s5965_s16 = sand.u32 1, %s7804_s21   ;;  %p12470_p11 = scmp.ne.s32.totalorder %s12038_s26, 0 }
 0xa08   : > { %p12471_p12 = scmp.ge.s32.totalorder %s7816_s24, 2  ;;  %s5966_s9 = scalar_lea.sflag [#allocation4], %s5965_s16 }
 0xa0a   : > { %p6839_p13 = pnand %p12471_p12, %p12470_p11 }
 0xa0c   : > { %7799 = dma.done.wait (!%p6839_p13), %s5966_s9, 4096  }
 0xa0d   : > { %7801 = vsyncadd (!%p6839_p13), %s5966_s9, 4294963200  ;;  %p28_p8 = scmp.ge.s32.totalorder %s8064_s25, 4   ;;  %s12472_s21 = smov %s7808_s22 }
 0xa0e   : > { %s12473_s22 = smov %s7812_s23  ;;  %s12474_s23 = smov %s8076_s20 }
 0xa0f   : > { %s12475_s24 = smov %s8064_s25  ;;  %30 = sbr.rel (!%p28_p8) target bundleno = 13 (0xd), region = 133 }
 0xa16   :  { %5971 = vsyncpa [#allocation3], 1 }
 0xa17   :  { %5973 = vsyncpa [#allocation3 + $0x1], 1 }
 0xa18   :  { %5974 = vsyncpa [#allocation6], 1 }
 0xa19   :  { %5975 = vsyncpa [#allocation9], 1 }
 0xa1a   :  { %5976 = vsyncpa [#allocation12], 1 }
 0xa1b   :  { %5977 = vsyncpa [#allocation4], 1 }
 0xa1c   :  { %5979 = vsyncpa [#allocation4 + $0x1], 1 }

</bundles_post_ra>
